<compile_context>
chip_gen: v6e
topology: v6e:2x2x1
jax: 0.10.0
libtpu: 0.0.40
codegen_flags: <defaults>
</compile_context>

<pallas_src>
import jax
import jax.numpy as jnp
from jax.experimental import pallas as pl
from jax.experimental.pallas import tpu as pltpu

OUT_PAD = 128        # lane-dense padded width of the 10-class output
NUM_CLASSES = 10


def fcnn_kernel(x_ref, w1_ref, b1_ref, w2_ref, b2_ref, w3_ref, b3_ref, o_ref):
    x = x_ref[...]                                                          # (TB, 784) bf16

    # Linear(784, 1024) + SiLU   (Dropout = identity in eval mode)
    h1 = jnp.dot(x, w1_ref[...], preferred_element_type=jnp.float32) + b1_ref[...]
    h1 = h1.astype(jnp.bfloat16)
    h1 = h1 * jax.nn.sigmoid(h1)                                            # bf16 SiLU (TB, 1024)

    # Linear(1024, 2048) + SiLU  (Dropout = identity in eval mode)
    h2 = jnp.dot(h1, w2_ref[...], preferred_element_type=jnp.float32) + b2_ref[...]
    h2 = h2.astype(jnp.bfloat16)
    h2 = h2 * jax.nn.sigmoid(h2)                                            # bf16 SiLU (TB, 2048)

    # Linear(2048, 10) padded to 128 lane-dense output columns.
    # w3 pad columns are exactly zero and b3 pad columns carry -1e30, so the padded logits
    # underflow to 0 in the exp below -- no in-kernel masking needed.
    logits = jnp.dot(h2, w3_ref[...], preferred_element_type=jnp.float32) + b3_ref[...]

    # Softmax over the last dim (max-subtracted; reciprocal on the EUP).
    m = jnp.max(logits, axis=-1, keepdims=True)
    e = jnp.exp(logits - m)
    denom = jnp.sum(e, axis=-1, keepdims=True)
    o_ref[...] = e * pl.reciprocal(denom, approx=True)


def _round_up(n, m):
    return ((n + m - 1) // m) * m


def _pick_batch_tile(B):
    """Batch tile: multiple of 16 (bf16 sublane packing); for mid/large batches choose a tile
    that gives >= 2 grid steps (both v7x TensorCores busy), capped at 512 (v7x VMEM headroom)."""
    b16 = _round_up(B, 16)
    if b16 <= 32:
        return b16
    half = _round_up(-(-b16 // 2), 16)     # ceil(b16/2) rounded to 16 -> at least 2 grid steps
    return min(half, 512)


def fcnn_forward(x, params):
    w1, b1, w2, b2, w3, b3 = params
    B = x.shape[0]

    TB = _pick_batch_tile(B)
    B_pad = _round_up(B, TB)

    # bf16 activations enter the MXU directly; pad the batch to a whole number of tiles.
    x = x.astype(jnp.bfloat16)
    if B_pad != B:
        x = jnp.pad(x, ((0, B_pad - B), (0, 0)))

    # bf16 weights (half the HBM weight traffic, full bf16 MXU rate); biases stay f32.
    w1b = w1.astype(jnp.bfloat16)
    w2b = w2.astype(jnp.bfloat16)
    # Lane-dense final layer: pad 10 -> 128 output columns with zero weights; the padded bias
    # columns carry -1e30 so they vanish in the softmax (w3 pad cols are 0 -> no inf*0 risk).
    w3p = jnp.zeros((w3.shape[0], OUT_PAD), jnp.bfloat16).at[:, :NUM_CLASSES].set(
        w3.astype(jnp.bfloat16))
    b3p = jnp.full((1, OUT_PAD), -1e30, jnp.float32).at[:, :NUM_CLASSES].set(b3)

    grid = (B_pad // TB,)
    resident = lambda i: (0, 0)            # weights/biases loaded once, stay in VMEM
    once = pl.Buffered(1)                  # constant block index -> no double buffering

    flops = 2 * B_pad * (784 * 1024 + 1024 * 2048 + 2048 * OUT_PAD)
    transcendentals = B_pad * (1024 + 2048 + OUT_PAD)
    bytes_accessed = ((w1b.size + w2b.size + w3p.size) * 2
                      + (b1.size + b2.size + b3p.size) * 4
                      + B_pad * 784 * 2 + B_pad * OUT_PAD * 4)

    out = pl.pallas_call(
        fcnn_kernel,
        out_shape=jax.ShapeDtypeStruct((B_pad, OUT_PAD), jnp.float32),
        grid=grid,
        in_specs=[
            pl.BlockSpec((TB, 784), lambda i: (i, 0)),                       # x: tiled, pipelined
            pl.BlockSpec((784, 1024), resident, pipeline_mode=once),         # w1 (bf16, resident)
            pl.BlockSpec((1, 1024), resident, pipeline_mode=once),           # b1
            pl.BlockSpec((1024, 2048), resident, pipeline_mode=once),        # w2 (bf16, resident)
            pl.BlockSpec((1, 2048), resident, pipeline_mode=once),           # b2
            pl.BlockSpec((2048, OUT_PAD), resident, pipeline_mode=once),     # w3 (bf16, padded)
            pl.BlockSpec((1, OUT_PAD), resident, pipeline_mode=once),        # b3 (mask baked in)
        ],
        out_specs=pl.BlockSpec((TB, OUT_PAD), lambda i: (i, 0)),
        compiler_params=pltpu.CompilerParams(
            dimension_semantics=("parallel",),            # megacore sharding on v7x
            vmem_limit_bytes=48 << 20,                    # fits v7x's 64 MiB physical VMEM
        ),
        cost_estimate=pl.CostEstimate(
            flops=flops,
            transcendentals=transcendentals,
            bytes_accessed=bytes_accessed,
        ),
    )(x, w1b, b1, w2b, b2, w3p, b3p)

    # NOTE: for a real pipeline, keep the lane-dense (B_pad, 128) slab and slice at the final
    # consumer to avoid this extra HBM pass; sliced here so the test sees the (B, 10) module output.
    return out[:B, :NUM_CLASSES]


def init_params(key):
    """Deterministic init mimicking PyTorch's default Linear init (uniform +/- 1/sqrt(fan_in))."""
    dims = [(784, 1024), (1024, 2048), (2048, 10)]
    params = []
    for i, (fin, fout) in enumerate(dims):
        kw, kb = jax.random.split(jax.random.fold_in(key, i))
        bound = 1.0 / (fin ** 0.5)
        w = jax.random.uniform(kw, (fin, fout), jnp.float32, -bound, bound)
        b = jax.random.uniform(kb, (1, fout), jnp.float32, -bound, bound)
        params += [w, b]
    return tuple(params)


def fcnn_reference(x, params):
    """Pure-JAX reference (bf16-cast inputs/weights/activations to mirror the kernel's precision)."""
    w1, b1, w2, b2, w3, b3 = params
    xb = x.astype(jnp.bfloat16).astype(jnp.float32)
    w1 = w1.astype(jnp.bfloat16).astype(jnp.float32)
    w2 = w2.astype(jnp.bfloat16).astype(jnp.float32)
    w3 = w3.astype(jnp.bfloat16).astype(jnp.float32)
    h = jax.nn.silu(xb @ w1 + b1)
    h = h.astype(jnp.bfloat16).astype(jnp.float32)
    h = jax.nn.silu(h @ w2 + b2)
    h = h.astype(jnp.bfloat16).astype(jnp.float32)
    return jax.nn.softmax(h @ w3 + b3, axis=-1)


if __name__ == "__main__":
    key = jax.random.PRNGKey(0)
    kx, kp = jax.random.split(key)

    B = 8                                    # small batch (padded to one 16-row bf16 tile)
    x = jax.random.normal(kx, (B, 784), jnp.float32)
    params = init_params(kp)

    out = jax.block_until_ready(fcnn_forward(x, params))
    ref = jax.block_until_ready(fcnn_reference(x, params))

    assert out.shape == (B, NUM_CLASSES)
    # Probabilities sum to ~1 (approx reciprocal introduces ~1e-3 relative error at most).
    assert jnp.allclose(jnp.sum(out, axis=-1), 1.0, atol=5e-3)
    # bf16 activations/matmuls/sigmoid vs near-f32 reference: generous tolerance on probabilities.
    assert jnp.allclose(out, ref, atol=3e-2)
    print("KERNEL_OK")
</pallas_src>

<mosaic_0001>
module attributes {stable_mosaic.version = 11 : i64} {
  func.func @fcnn_kernel(%arg0: i32, %arg1: memref<16x784xbf16, #tpu.memory_space<vmem>>, %arg2: memref<784x1024xbf16, #tpu.memory_space<vmem>>, %arg3: memref<1x1024xf32, #tpu.memory_space<vmem>>, %arg4: memref<1024x2048xbf16, #tpu.memory_space<vmem>>, %arg5: memref<1x2048xf32, #tpu.memory_space<vmem>>, %arg6: memref<2048x128xbf16, #tpu.memory_space<vmem>>, %arg7: memref<1x128xf32, #tpu.memory_space<vmem>>, %arg8: memref<16x128xf32, #tpu.memory_space<vmem>>) attributes {dimension_semantics = [#tpu.dimension_semantics<parallel>], iteration_bounds = array<i64: 1>, scalar_prefetch = 0 : i64, scratch_operands = 0 : i64, tpu.core_type = #tpu.core_type<tc>, window_params = [{transform_indices = @transform_0, window_bounds = array<i64: 16, 784>}, {pipeline_mode = #tpu.pipeline_mode<synchronous>, transform_indices = @transform_1, window_bounds = array<i64: 784, 1024>}, {pipeline_mode = #tpu.pipeline_mode<synchronous>, transform_indices = @transform_2, window_bounds = array<i64: 1, 1024>}, {pipeline_mode = #tpu.pipeline_mode<synchronous>, transform_indices = @transform_3, window_bounds = array<i64: 1024, 2048>}, {pipeline_mode = #tpu.pipeline_mode<synchronous>, transform_indices = @transform_4, window_bounds = array<i64: 1, 2048>}, {pipeline_mode = #tpu.pipeline_mode<synchronous>, transform_indices = @transform_5, window_bounds = array<i64: 2048, 128>}, {pipeline_mode = #tpu.pipeline_mode<synchronous>, transform_indices = @transform_6, window_bounds = array<i64: 1, 128>}, {transform_indices = @transform_7, window_bounds = array<i64: 16, 128>}]} {
    %c0 = arith.constant 0 : index
    %c0_0 = arith.constant 0 : index
    %0 = vector.load %arg1[%c0, %c0_0] : memref<16x784xbf16, #tpu.memory_space<vmem>>, vector<16x784xbf16>
    %c0_1 = arith.constant 0 : index
    %c0_2 = arith.constant 0 : index
    %1 = vector.load %arg2[%c0_1, %c0_2] : memref<784x1024xbf16, #tpu.memory_space<vmem>>, vector<784x1024xbf16>
    %cst = arith.constant dense<0.000000e+00> : vector<16x1024xf32>
    %2 = tpu.matmul %0, %1, %cst {dimension_numbers = #tpu.dot_dimension_numbers<[1], [0], [0], [1], [0, 0, 1, 1], [], []>} : vector<16x784xbf16>, vector<784x1024xbf16>, vector<16x1024xf32> -> vector<16x1024xf32>
    %c0_3 = arith.constant 0 : index
    %c0_4 = arith.constant 0 : index
    %3 = vector.load %arg3[%c0_3, %c0_4] : memref<1x1024xf32, #tpu.memory_space<vmem>>, vector<1x1024xf32>
    %4 = vector.broadcast %3 : vector<1x1024xf32> to vector<16x1024xf32>
    %5 = arith.addf %2, %4 : vector<16x1024xf32>
    %6 = arith.truncf %5 : vector<16x1024xf32> to vector<16x1024xbf16>
    %7 = arith.negf %6 : vector<16x1024xbf16>
    %8 = math.exp %7 : vector<16x1024xbf16>
    %cst_5 = arith.constant 1.000000e+00 : bf16
    %9 = vector.broadcast %cst_5 : bf16 to vector<16x1024xbf16>
    %10 = arith.addf %9, %8 : vector<16x1024xbf16>
    %11 = arith.divf %9, %10 : vector<16x1024xbf16>
    %12 = arith.mulf %6, %11 : vector<16x1024xbf16>
    %c0_6 = arith.constant 0 : index
    %c0_7 = arith.constant 0 : index
    %13 = vector.load %arg4[%c0_6, %c0_7] : memref<1024x2048xbf16, #tpu.memory_space<vmem>>, vector<1024x2048xbf16>
    %cst_8 = arith.constant dense<0.000000e+00> : vector<16x2048xf32>
    %14 = tpu.matmul %12, %13, %cst_8 {dimension_numbers = #tpu.dot_dimension_numbers<[1], [0], [0], [1], [0, 0, 1, 1], [], []>} : vector<16x1024xbf16>, vector<1024x2048xbf16>, vector<16x2048xf32> -> vector<16x2048xf32>
    %c0_9 = arith.constant 0 : index
    %c0_10 = arith.constant 0 : index
    %15 = vector.load %arg5[%c0_9, %c0_10] : memref<1x2048xf32, #tpu.memory_space<vmem>>, vector<1x2048xf32>
    %16 = vector.broadcast %15 : vector<1x2048xf32> to vector<16x2048xf32>
    %17 = arith.addf %14, %16 : vector<16x2048xf32>
    %18 = arith.truncf %17 : vector<16x2048xf32> to vector<16x2048xbf16>
    %19 = arith.negf %18 : vector<16x2048xbf16>
    %20 = math.exp %19 : vector<16x2048xbf16>
    %cst_11 = arith.constant 1.000000e+00 : bf16
    %21 = vector.broadcast %cst_11 : bf16 to vector<16x2048xbf16>
    %22 = arith.addf %21, %20 : vector<16x2048xbf16>
    %23 = arith.divf %21, %22 : vector<16x2048xbf16>
    %24 = arith.mulf %18, %23 : vector<16x2048xbf16>
    %c0_12 = arith.constant 0 : index
    %c0_13 = arith.constant 0 : index
    %25 = vector.load %arg6[%c0_12, %c0_13] : memref<2048x128xbf16, #tpu.memory_space<vmem>>, vector<2048x128xbf16>
    %cst_14 = arith.constant dense<0.000000e+00> : vector<16x128xf32>
    %26 = tpu.matmul %24, %25, %cst_14 {dimension_numbers = #tpu.dot_dimension_numbers<[1], [0], [0], [1], [0, 0, 1, 1], [], []>} : vector<16x2048xbf16>, vector<2048x128xbf16>, vector<16x128xf32> -> vector<16x128xf32>
    %c0_15 = arith.constant 0 : index
    %c0_16 = arith.constant 0 : index
    %27 = vector.load %arg7[%c0_15, %c0_16] : memref<1x128xf32, #tpu.memory_space<vmem>>, vector<1x128xf32>
    %28 = vector.broadcast %27 : vector<1x128xf32> to vector<16x128xf32>
    %29 = arith.addf %26, %28 : vector<16x128xf32>
    %cst_17 = arith.constant dense<0xFF800000> : vector<16xf32>
    %30 = vector.multi_reduction <maximumf>, %29, %cst_17 [1] : vector<16x128xf32> to vector<16xf32>
    %31 = vector.shape_cast %30 : vector<16xf32> to vector<16x1xf32>
    %32 = vector.broadcast %31 : vector<16x1xf32> to vector<16x128xf32>
    %33 = arith.subf %29, %32 : vector<16x128xf32>
    %34 = math.exp %33 : vector<16x128xf32>
    %cst_18 = arith.constant dense<0.000000e+00> : vector<16xf32>
    %35 = vector.multi_reduction <add>, %34, %cst_18 [1] : vector<16x128xf32> to vector<16xf32>
    %36 = vector.shape_cast %35 : vector<16xf32> to vector<16x1xf32>
    %37 = tpu.reciprocal %36 {approx = true} : vector<16x1xf32> -> vector<16x1xf32>
    %38 = vector.broadcast %37 : vector<16x1xf32> to vector<16x128xf32>
    %39 = arith.mulf %34, %38 : vector<16x128xf32>
    %c0_19 = arith.constant 0 : index
    %c0_20 = arith.constant 0 : index
    %40 = vector.load %arg8[%c0_19, %c0_20] : memref<16x128xf32, #tpu.memory_space<vmem>>, vector<16x128xf32>
    tpu.vector_store %arg8[%c0_19, %c0_20], %39 {strides = array<i32>} : memref<16x128xf32, #tpu.memory_space<vmem>>, vector<16x128xf32>,
    return
  }
  func.func @transform_0(%arg0: i32) -> (i32, i32) {
    %c0_i32 = arith.constant 0 : i32
    %c0_i32_0 = arith.constant 0 : i32
    return %arg0, %c0_i32 : i32, i32
  }
  func.func @transform_1(%arg0: i32) -> (i32, i32) {
    %c0_i32 = arith.constant 0 : i32
    %c0_i32_0 = arith.constant 0 : i32
    %c0_i32_1 = arith.constant 0 : i32
    return %c0_i32, %c0_i32_0 : i32, i32
  }
  func.func @transform_2(%arg0: i32) -> (i32, i32) {
    %c0_i32 = arith.constant 0 : i32
    %c0_i32_0 = arith.constant 0 : i32
    %c0_i32_1 = arith.constant 0 : i32
    return %c0_i32, %c0_i32_0 : i32, i32
  }
  func.func @transform_3(%arg0: i32) -> (i32, i32) {
    %c0_i32 = arith.constant 0 : i32
    %c0_i32_0 = arith.constant 0 : i32
    %c0_i32_1 = arith.constant 0 : i32
    return %c0_i32, %c0_i32_0 : i32, i32
  }
  func.func @transform_4(%arg0: i32) -> (i32, i32) {
    %c0_i32 = arith.constant 0 : i32
    %c0_i32_0 = arith.constant 0 : i32
    %c0_i32_1 = arith.constant 0 : i32
    return %c0_i32, %c0_i32_0 : i32, i32
  }
  func.func @transform_5(%arg0: i32) -> (i32, i32) {
    %c0_i32 = arith.constant 0 : i32
    %c0_i32_0 = arith.constant 0 : i32
    %c0_i32_1 = arith.constant 0 : i32
    return %c0_i32, %c0_i32_0 : i32, i32
  }
  func.func @transform_6(%arg0: i32) -> (i32, i32) {
    %c0_i32 = arith.constant 0 : i32
    %c0_i32_0 = arith.constant 0 : i32
    %c0_i32_1 = arith.constant 0 : i32
    return %c0_i32, %c0_i32_0 : i32, i32
  }
  func.func @transform_7(%arg0: i32) -> (i32, i32) {
    %c0_i32 = arith.constant 0 : i32
    %c0_i32_0 = arith.constant 0 : i32
    return %arg0, %c0_i32 : i32, i32
  }
}

</mosaic_0001>

<bundles_post_ra>
// kernel: tpu_custom_call.1
= control target key start
LH: loop header
LB: loop body
LE: loop exit
PB: predicated region body
PF: predicated region fallthrough
CT: control target
= control target key end

     0   :  { %12 = vsyncpa [#allocation3], 0  ;;  %s15326_s0 = inlined_call_operand.hbm [shape: bf16[16,784], index: 0, kind: input, shape index: {}]   ;;  %s15327_s1 = inlined_call_operand.hbm [shape: bf16[784,1024], index: 1, kind: input, shape index: {}]   ;;  %s15328_s2 = inlined_call_operand.hbm [shape: f32[1,1024], index: 2, kind: input, shape index: {}]   ;;  %s15329_s3 = inlined_call_operand.hbm [shape: bf16[1024,2048], index: 3, kind: input, shape index: {}]   ;;  %s15330_s4 = inlined_call_operand.hbm [shape: f32[1,2048], index: 4, kind: input, shape index: {}]   ;;  %s15331_s5 = inlined_call_operand.hbm [shape: bf16[2048,128], index: 5, kind: input, shape index: {}]   ;;  %s15332_s6 = inlined_call_operand.hbm [shape: f32[1,128], index: 6, kind: input, shape index: {}]   ;;  %s15333_s7 = inlined_call_operand.hbm [shape: f32[16,128], index: 7, kind: output, shape index: {}]  }
   0x1   :  { %13 = vsyncpa [#allocation6], 0 }
   0x2   :  { %14 = vsyncpa [#allocation9], 0 }
   0x3   :  { %15 = vsyncpa [#allocation12], 0 }
   0x4   :  { %16 = vsyncpa [#allocation4], 0  ;;  %s14665_s24 = smov [#allocation5]  }
   0x5   :  { %s34_s25 = sshll.u32 %s14665_s24, 4  ;;  %s35_s25 = int_to_ptr.vmem [resolvable:$true] %s34_s25 }
   0x6   :  { %s14503_s26 = scalar_lea.vmem %s35_s25, 50176  ;;  %p14508_p1 = scmp.lt.s32.totalorder %s35_s25, %s35_s25 }
   0x7   :  { %p14504_p0 = scmp.ne.s32.totalorder %s35_s25, %s14503_s26  ;;  %p14509_p2 = scmp.lt.s32.totalorder %s14503_s26, %s14503_s26 }
   0x9   :  { %p14510_p3 = por %p14509_p2, %p14508_p1 }
   0xb   :  { %p14511_p4 = pnand %p14510_p3, %p14504_p0 }
   0xd   :  { %14514 = shalt.err (!%p14511_p4)
}
   0xe   :  { %s14666_s27 = smov 512   ;;  %s14667_s28 = smov 32  }
   0xf   :  { %40 = dma.hbm_to_vmem [thread:$0]  %s15327_s1, 50176, %s35_s25, [#allocation6], %s14666_s27, %s14666_s27, %s14667_s28  }
  0x10   :  { %s14668_s8 = smov [#allocation8]  }
  0x11   :  { %s56_s9 = sshll.u32 %s14668_s8, 4  ;;  %s57_s9 = int_to_ptr.vmem [resolvable:$true] %s56_s9 }
  0x12   :  { %s14523_s10 = scalar_lea.vmem %s57_s9, 131072  ;;  %p14528_p6 = scmp.lt.s32.totalorder %s57_s9, %s57_s9 }
  0x13   :  { %p14524_p5 = scmp.ne.s32.totalorder %s57_s9, %s14523_s10  ;;  %p14529_p7 = scmp.lt.s32.totalorder %s14523_s10, %s14523_s10 }
  0x15   :  { %p14530_p8 = por %p14529_p7, %p14528_p6 }
  0x17   :  { %p14531_p9 = pnand %p14530_p8, %p14524_p5 }
  0x19   :  { %14534 = shalt.err (!%p14531_p9)
}
  0x1a   :  { %s14669_s11 = smov 1024   ;;  %s14670_s12 = smov 64  }
  0x1b   :  { %62 = dma.hbm_to_vmem [thread:$0]  %s15329_s3, 131072, %s57_s9, [#allocation9], %s14669_s11, %s14669_s11, %s14670_s12  }
  0x1c   :  { %s14671_s15 = smov [#allocation11]   ;;  %s14672_s1 = smov [#allocation2]  }
  0x1d   :  { %s78_s16 = sshll.u32 %s14671_s15, 4  ;;  %s22_s17 = sshll.u32 %s14672_s1, 4  ;;  %s79_s16 = int_to_ptr.vmem [resolvable:$true] %s78_s16  ;;  %s23_s17 = int_to_ptr.vmem [resolvable:$true] %s22_s17 }
  0x1e   :  { %s14543_s18 = scalar_lea.vmem %s79_s16, 16384  ;;  %p14548_p11 = scmp.lt.s32.totalorder %s79_s16, %s79_s16 }
  0x1f   :  { %p14544_p10 = scmp.ne.s32.totalorder %s79_s16, %s14543_s18  ;;  %p14549_p12 = scmp.lt.s32.totalorder %s14543_s18, %s14543_s18 }
  0x21   :  { %p14550_p13 = por %p14549_p12, %p14548_p11 }
  0x23   :  { %p14551_p0 = pnand %p14550_p13, %p14544_p10 }
  0x25   :  { %14554 = shalt.err (!%p14551_p0)
}
  0x26   :  { %s14673_s19 = smov 4   ;;  %s14563_s22 = scalar_lea.vmem %s23_s17, 896 }
  0x27   :  { %84 = dma.hbm_to_vmem [thread:$0]  %s15331_s5, 16384, %s79_s16, [#allocation12], %s14670_s12, %s14670_s12, %s14673_s19  }
  0x28   :  { %p14564_p1 = scmp.ne.s32.totalorder %s23_s17, %s14563_s22  ;;  %p14568_p2 = scmp.lt.s32.totalorder %s23_s17, %s23_s17 }
  0x29   :  { %p14569_p3 = scmp.lt.s32.totalorder %s14563_s22, %s14563_s22 }
  0x2b   :  { %p14570_p4 = por %p14569_p3, %p14568_p2 }
  0x2d   :  { %p14571_p5 = pnand %p14570_p4, %p14564_p1 }
  0x2f   :  { %14574 = shalt.err (!%p14571_p5)
}
  0x30   :  { %s14674_s3 = smov 448   ;;  %s14675_s23 = smov 28  }
  0x31   :  { %28 = dma.hbm_to_vmem [thread:$0]  %s15326_s0, 896, %s23_s17, [#allocation3], %s14674_s3, %s14674_s3, %s14675_s23  }
  0x32   :  { %s14676_s26 = smov [#allocation7]   ;;  %s14677_s28 = smov [#allocation10]  }
  0x33   :  { %s47_s27 = sshll.u32 %s14676_s26, 4  ;;  %s69_s29 = sshll.u32 %s14677_s28, 4  ;;  %s48_s27 = int_to_ptr.vmem [resolvable:$true] %s47_s27  ;;  %s70_s29 = int_to_ptr.vmem [resolvable:$true] %s69_s29 }
  0x34   :  { %s14583_s5 = scalar_lea.vmem %s48_s27, 128  ;;  %p14588_p7 = scmp.lt.s32.totalorder %s48_s27, %s48_s27 }
  0x35   :  { %p14584_p6 = scmp.ne.s32.totalorder %s48_s27, %s14583_s5  ;;  %p14589_p8 = scmp.lt.s32.totalorder %s14583_s5, %s14583_s5 }
  0x37   :  { %p14590_p9 = por %p14589_p8, %p14588_p7 }
  0x39   :  { %p14591_p10 = pnand %p14590_p9, %p14584_p6 }
  0x3b   :  { %14594 = shalt.err (!%p14591_p10)
}
  0x3c   :  { %50 = dma.hbm_to_vmem [thread:$0]  %s15328_s2, 128, %s48_s27, [#allocation6]  }
  0x3d   :  { %s14603_s9 = scalar_lea.vmem %s70_s29, 256  ;;  %p14608_p12 = scmp.lt.s32.totalorder %s70_s29, %s70_s29 }
  0x3e   :  { %p14604_p11 = scmp.ne.s32.totalorder %s70_s29, %s14603_s9  ;;  %p14609_p13 = scmp.lt.s32.totalorder %s14603_s9, %s14603_s9 }
  0x40   :  { %p14610_p0 = por %p14609_p13, %p14608_p12 }
  0x42   :  { %p14611_p1 = pnand %p14610_p0, %p14604_p11 }
  0x44   :  { %14614 = shalt.err (!%p14611_p1)
}
  0x45   :  { %72 = dma.hbm_to_vmem [thread:$0]  %s15330_s4, 256, %s70_s29, [#allocation9]  }
  0x46   :  { %s14678_s11 = smov [#allocation13]  }
  0x47   :  { %s91_s12 = sshll.u32 %s14678_s11, 4  ;;  %s92_s12 = int_to_ptr.vmem [resolvable:$true] %s91_s12 }
  0x48   :  { %s14623_s13 = scalar_lea.vmem %s92_s12, 16  ;;  %s14627_s14 = scalar_lea.vmem %s92_s12, 32 }
  0x49   :  { %p14624_p2 = scmp.ne.s32.totalorder %s92_s12, %s14623_s13  ;;  %p14628_p3 = scmp.lt.s32.totalorder %s92_s12, %s92_s12 }
  0x4a   :  { %p14629_p4 = scmp.lt.s32.totalorder %s14627_s14, %s14623_s13 }
  0x4c   :  { %p14630_p5 = por %p14629_p4, %p14628_p3 }
  0x4e   :  { %p14631_p6 = pnand %p14630_p5, %p14624_p2 }
  0x50   :  { %14634 = shalt.err (!%p14631_p6)
}
  0x51   :  { %94 = dma.hbm_to_vmem [thread:$0]  %s15332_s6, 16, %s92_s12, [#allocation12]  }
  0x52   :  { %14655 = dma.done.wait [#allocation3], 896  }
  0x53   :  { %14656 = vsyncadd [#allocation3], 4294966400 }
  0x54   :  { %14657 = dma.done.wait [#allocation6], 50304  }
  0x55   :  { %14658 = vsyncadd [#allocation6], 4294916992 }
  0x56   :  { %14659 = dma.done.wait [#allocation9], 131328  }
  0x57   :  { %14660 = vsyncadd [#allocation9], 4294835968 }
  0x58   :  { %14661 = dma.done.wait [#allocation12], 16400  }
  0x59   :  { %14662 = vsyncadd [#allocation12], 4294950896  ;;  %v182_v0 = vld [vmem:[#allocation5 + $0x1c0] sm:$0xff]  ;;  %v14744_v56 = vld [vmem:[#allocation2 + $0x4] ss:$28 sps:$4 sm:$0xff]   ;;  %vm2555_vm0 = vcmask 130048  }
  0x5a   :  { %v186_v1 = vld [vmem:[#allocation5 + $0x1e0] sm:$0xff]  ;;  %v14746_v59 = vld [vmem:[#allocation2 + $0xc] ss:$28 sps:$4 sm:$0xff]   ;;  %2591 = vmatprep.mubr.bf16.mxu0 %v14744_v56  ;;  %s14680_s4 = smov [#allocation14]  }
  0x5b   :  { %v310_v2 = vld [vmem:[#allocation5 + $0x5c0] sm:$0xff]  ;;  %v12530_v3 = vcombine.high %v182_v0, %v186_v1  ;;  %v12529_v5 = vcombine.low %v182_v0, %v186_v1  ;;  %2634 = vmatprep.mubr.bf16.mxu1 %v14746_v59  ;;  %s12451_s6 = sshll.u32 %s14680_s4, 4  ;;  %s12452_s6 = int_to_ptr.vmem [resolvable:$true] %s12451_s6 }
  0x5c   :  { %v314_v4 = vld [vmem:[#allocation5 + $0x5e0] sm:$0xff]  ;;  %s14635_s16 = scalar_lea.vmem %s12452_s6, 256  ;;  %p14640_p8 = scmp.lt.s32.totalorder %s12452_s6, %s12452_s6 }
  0x5d   :  { %v174_v6 = vld [vmem:[#allocation5 + $0x180] sm:$0xff]  ;;  %v12658_v8 = vcombine.high %v310_v2, %v314_v4  ;;  %v12657_v9 = vcombine.low %v310_v2, %v314_v4  ;;  %2559 = vmatprep.subr.bf16.mxu0 %v12530_v3  ;;  %p14636_p7 = scmp.ne.s32.totalorder %s12452_s6, %s14635_s16  ;;  %p14641_p9 = scmp.lt.s32.totalorder %s14635_s16, %s14635_s16 }
  0x5e   :  { %v178_v7 = vld [vmem:[#allocation5 + $0x1a0] sm:$0xff]  ;;  %2560 = vmatpush1.bf16.msra.mxu0 %v12529_v5 }
  0x5f   :  { %v12522_v10 = vcombine.high %v174_v6, %v178_v7  ;;  %v302_v11 = vld [vmem:[#allocation5 + $0x580] sm:$0xff]  ;;  %2602 = vmatprep.subr.bf16.mxu1 %v12658_v8  ;;  %v12521_v18 = vcombine.low %v174_v6, %v178_v7  ;;  %p14642_p10 = por %p14641_p9, %p14640_p8 }
  0x60   :  { %v306_v12 = vld [vmem:[#allocation5 + $0x5a0] sm:$0xff]  ;;  %2603 = vmatpush1.bf16.msra.mxu1 %v12657_v9 }
  0x61   :  { %v166_v13 = vld [vmem:[#allocation5 + $0x140] sm:$0xff]  ;;  %v12650_v14 = vcombine.high %v302_v11, %v306_v12  ;;  %2561 = vmatprep.subr.bf16.mxu0 %v12522_v10  ;;  %v12649_v19 = vcombine.low %v302_v11, %v306_v12  ;;  %p14643_p11 = pnand %p14642_p10, %p14636_p7 }
  0x62   :  { %v170_v15 = vld [vmem:[#allocation5 + $0x160] sm:$0xff]  ;;  %2562 = vmatpush1.bf16.msra.mxu0 %v12521_v18 }
  0x63   :  { %v294_v16 = vld [vmem:[#allocation5 + $0x540] sm:$0xff]  ;;  %v12514_v20 = vcombine.high %v166_v13, %v170_v15  ;;  %2604 = vmatprep.subr.bf16.mxu1 %v12650_v14  ;;  %v12513_v26 = vcombine.low %v166_v13, %v170_v15 }
  0x64   :  { %v298_v17 = vld [vmem:[#allocation5 + $0x560] sm:$0xff]  ;;  %2605 = vmatpush1.bf16.msra.mxu1 %v12649_v19 }
  0x65   :  { %v12642_v21 = vcombine.high %v294_v16, %v298_v17  ;;  %v158_v22 = vld [vmem:[#allocation5 + $0x100] sm:$0xff]  ;;  %2563 = vmatprep.subr.bf16.mxu0 %v12514_v20  ;;  %v12641_v27 = vcombine.low %v294_v16, %v298_v17 }
  0x66   :  { %v162_v23 = vld [vmem:[#allocation5 + $0x120] sm:$0xff]  ;;  %2564 = vmatpush1.bf16.msra.mxu0 %v12513_v26 }
  0x67   :  { %v286_v24 = vld [vmem:[#allocation5 + $0x500] sm:$0xff]  ;;  %v12506_v28 = vcombine.high %v158_v22, %v162_v23  ;;  %2606 = vmatprep.subr.bf16.mxu1 %v12642_v21  ;;  %v12505_v34 = vcombine.low %v158_v22, %v162_v23 }
  0x68   :  { %v290_v25 = vld [vmem:[#allocation5 + $0x520] sm:$0xff]  ;;  %2607 = vmatpush1.bf16.msra.mxu1 %v12641_v27 }
  0x69   :  { %v12634_v29 = vcombine.high %v286_v24, %v290_v25  ;;  %v150_v30 = vld [vmem:[#allocation5 + $0xc0] sm:$0xff]  ;;  %2565 = vmatprep.subr.bf16.mxu0 %v12506_v28  ;;  %v12633_v35 = vcombine.low %v286_v24, %v290_v25 }
  0x6a   :  { %v154_v31 = vld [vmem:[#allocation5 + $0xe0] sm:$0xff]  ;;  %2566 = vmatpush1.bf16.msra.mxu0 %v12505_v34 }
  0x6b   :  { %v278_v32 = vld [vmem:[#allocation5 + $0x4c0] sm:$0xff]  ;;  %v12498_v36 = vcombine.high %v150_v30, %v154_v31  ;;  %2608 = vmatprep.subr.bf16.mxu1 %v12634_v29  ;;  %v12497_v42 = vcombine.low %v150_v30, %v154_v31 }
  0x6c   :  { %v282_v33 = vld [vmem:[#allocation5 + $0x4e0] sm:$0xff]  ;;  %2609 = vmatpush1.bf16.msra.mxu1 %v12633_v35 }
  0x6d   :  { %v12626_v37 = vcombine.high %v278_v32, %v282_v33  ;;  %v142_v38 = vld [vmem:[#allocation5 + $0x80] sm:$0xff]  ;;  %2567 = vmatprep.subr.bf16.mxu0 %v12498_v36  ;;  %v12625_v43 = vcombine.low %v278_v32, %v282_v33 }
  0x6e   :  { %v146_v39 = vld [vmem:[#allocation5 + $0xa0] sm:$0xff]  ;;  %2568 = vmatpush1.bf16.msra.mxu0 %v12497_v42 }
  0x6f   :  { %v270_v40 = vld [vmem:[#allocation5 + $0x480] sm:$0xff]  ;;  %v12490_v44 = vcombine.high %v142_v38, %v146_v39  ;;  %2610 = vmatprep.subr.bf16.mxu1 %v12626_v37  ;;  %v12489_v50 = vcombine.low %v142_v38, %v146_v39 }
  0x70   :  { %v274_v41 = vld [vmem:[#allocation5 + $0x4a0] sm:$0xff]  ;;  %2611 = vmatpush1.bf16.msra.mxu1 %v12625_v43 }
  0x71   :  { %v12618_v45 = vcombine.high %v270_v40, %v274_v41  ;;  %v134_v46 = vld [vmem:[#allocation5 + $0x40] sm:$0xff]  ;;  %2569 = vmatprep.subr.bf16.mxu0 %v12490_v44  ;;  %v12617_v52 = vcombine.low %v270_v40, %v274_v41 }
  0x72   :  { %v138_v47 = vld [vmem:[#allocation5 + $0x60] sm:$0xff]  ;;  %2570 = vmatpush1.bf16.msra.mxu0 %v12489_v50 }
  0x73   :  { %v262_v48 = vld [vmem:[#allocation5 + $0x440] sm:$0xff]  ;;  %v12482_v53 = vcombine.high %v134_v46, %v138_v47  ;;  %2612 = vmatprep.subr.bf16.mxu1 %v12618_v45  ;;  %v12481_v60 = vcombine.low %v134_v46, %v138_v47 }
  0x74   :  { %v266_v49 = vld [vmem:[#allocation5 + $0x460] sm:$0xff]  ;;  %2613 = vmatpush1.bf16.msra.mxu1 %v12617_v52 }
  0x75   :  { %v126_v51 = vld [vmem:[#allocation5] sm:$0xff]  ;;  %v12610_v55 = vcombine.high %v262_v48, %v266_v49  ;;  %2571 = vmatprep.subr.bf16.mxu0 %v12482_v53  ;;  %v12609_v61 = vcombine.low %v262_v48, %v266_v49 }
  0x76   :  { %v130_v54 = vld [vmem:[#allocation5 + $0x20] sm:$0xff]  ;;  %2572 = vmatpush1.bf16.msra.mxu0 %v12481_v60 }
  0x77   :  { %v254_v57 = vld [vmem:[#allocation5 + $0x400] sm:$0xff]  ;;  %v12474_v62 = vcombine.high %v126_v51, %v130_v54  ;;  %2614 = vmatprep.subr.bf16.mxu1 %v12610_v55  ;;  %v12473_v4 = vcombine.low %v126_v51, %v130_v54 }
  0x78   :  { %v258_v58 = vld [vmem:[#allocation5 + $0x420] sm:$0xff]  ;;  %2615 = vmatpush1.bf16.msra.mxu1 %v12609_v61 }
  0x79   :  { %v12602_v63 = vcombine.high %v254_v57, %v258_v58  ;;  %v246_v0 = vld [vmem:[#allocation5 + $0x3c0] sm:$0xff]  ;;  %2573 = vmatprep.subr.bf16.mxu0 %v12474_v62  ;;  %v12601_v5 = vcombine.low %v254_v57, %v258_v58 }
  0x7a   :  { %v250_v1 = vld [vmem:[#allocation5 + $0x3e0] sm:$0xff]  ;;  %2574 = vmatpush1.bf16.msra.mxu0 %v12473_v4 }
  0x7b   :  { %v374_v2 = vld [vmem:[#allocation5 + $0x7c0] sm:$0xff]  ;;  %v12594_v6 = vcombine.high %v246_v0, %v250_v1  ;;  %2616 = vmatprep.subr.bf16.mxu1 %v12602_v63  ;;  %v12593_v12 = vcombine.low %v246_v0, %v250_v1 }
  0x7c   :  { %v378_v3 = vld [vmem:[#allocation5 + $0x7e0] sm:$0xff]  ;;  %2617 = vmatpush1.bf16.msra.mxu1 %v12601_v5 }
  0x7d   :  { %v12722_v7 = vcombine.high %v374_v2, %v378_v3  ;;  %v238_v8 = vld [vmem:[#allocation5 + $0x380] sm:$0xff]  ;;  %2575 = vmatprep.subr.bf16.mxu0 %v12594_v6  ;;  %v12721_v13 = vcombine.low %v374_v2, %v378_v3 }
  0x7e   :  { %v242_v9 = vld [vmem:[#allocation5 + $0x3a0] sm:$0xff]  ;;  %2576 = vmatpush2.bf16.msra.mxu0 %v12593_v12 }
  0x7f   :  { %v366_v10 = vld [vmem:[#allocation5 + $0x780] sm:$0xff]  ;;  %v12586_v14 = vcombine.high %v238_v8, %v242_v9  ;;  %2618 = vmatprep.subr.bf16.mxu1 %v12722_v7  ;;  %v12585_v20 = vcombine.low %v238_v8, %v242_v9 }
  0x80   :  { %v370_v11 = vld [vmem:[#allocation5 + $0x7a0] sm:$0xff]  ;;  %2619 = vmatpush2.bf16.msra.mxu1 %v12721_v13  ;;  %v183_v13 = vld [vmem:[#allocation5 + $0x1c8] sm:$0xff] }
  0x81   :  { %v12714_v15 = vcombine.high %v366_v10, %v370_v11  ;;  %v230_v16 = vld [vmem:[#allocation5 + $0x340] sm:$0xff]  ;;  %2577 = vmatprep.subr.bf16.mxu0 %v12586_v14  ;;  %v12713_v21 = vcombine.low %v366_v10, %v370_v11  ;;  %v187_v14 = vld [vmem:[#allocation5 + $0x1e8] sm:$0xff] }
  0x82   :  { %v234_v17 = vld [vmem:[#allocation5 + $0x360] sm:$0xff]  ;;  %2578 = vmatpush2.bf16.msra.mxu0 %v12585_v20 }
  0x83   :  { %v358_v18 = vld [vmem:[#allocation5 + $0x740] sm:$0xff]  ;;  %v12578_v22 = vcombine.high %v230_v16, %v234_v17  ;;  %2620 = vmatprep.subr.bf16.mxu1 %v12714_v15  ;;  %v12577_v28 = vcombine.low %v230_v16, %v234_v17  ;;  %v14245_v15 = vld [vmem:[#allocation2 + $0x8] ss:$28 sps:$4 sm:$0xff]  }
  0x84   :  { %v362_v19 = vld [vmem:[#allocation5 + $0x760] sm:$0xff]  ;;  %2621 = vmatpush2.bf16.msra.mxu1 %v12713_v21 }
  0x85   :  { %v12706_v23 = vcombine.high %v358_v18, %v362_v19  ;;  %v222_v24 = vld [vmem:[#allocation5 + $0x300] sm:$0xff]  ;;  %2579 = vmatprep.subr.bf16.mxu0 %v12578_v22  ;;  %v12705_v29 = vcombine.low %v358_v18, %v362_v19  ;;  %v12532_v19 = vcombine.high %v183_v13, %v187_v14  ;;  %v14753_v22 = vld [vmem:[#allocation2 + $0x14] ss:$28 sps:$4 sm:$0xff]  }
  0x86   :  { %v226_v25 = vld [vmem:[#allocation5 + $0x320] sm:$0xff]  ;;  %2580 = vmatpush2.bf16.msra.mxu0 %v12577_v28  ;;  %v14679_v28 = vmov 0  }
  0x87   :  { %v350_v26 = vld [vmem:[#allocation5 + $0x700] sm:$0xff]  ;;  %v12570_v30 = vcombine.high %v222_v24, %v226_v25  ;;  %2622 = vmatprep.subr.bf16.mxu1 %v12706_v23  ;;  %v12569_v36 = vcombine.low %v222_v24, %v226_v25  ;;  %v175_v25 = vld [vmem:[#allocation5 + $0x188] sm:$0xff] }
  0x88   :  { %v354_v27 = vld [vmem:[#allocation5 + $0x720] sm:$0xff]  ;;  %2623 = vmatpush2.bf16.msra.mxu1 %v12705_v29 }
  0x89   :  { %v12698_v31 = vcombine.high %v350_v26, %v354_v27  ;;  %v214_v32 = vld [vmem:[#allocation5 + $0x2c0] sm:$0xff]  ;;  %2581 = vmatprep.subr.bf16.mxu0 %v12570_v30  ;;  %v12697_v37 = vcombine.low %v350_v26, %v354_v27  ;;  %v179_v26 = vld [vmem:[#allocation5 + $0x1a8] sm:$0xff] }
  0x8a   :  { %v218_v33 = vld [vmem:[#allocation5 + $0x2e0] sm:$0xff]  ;;  %2582 = vmatpush2.bf16.msra.mxu0 %v12569_v36 }
  0x8b   :  { %v342_v34 = vld [vmem:[#allocation5 + $0x6c0] sm:$0xff]  ;;  %v12562_v38 = vcombine.high %v214_v32, %v218_v33  ;;  %2624 = vmatprep.subr.bf16.mxu1 %v12698_v31  ;;  %v12561_v44 = vcombine.low %v214_v32, %v218_v33  ;;  %v12531_v32 = vcombine.low %v183_v13, %v187_v14  ;;  %v131_v13 = vld [vmem:[#allocation5 + $0x28] sm:$0xff] }
  0x8c   :  { %v346_v35 = vld [vmem:[#allocation5 + $0x6e0] sm:$0xff]  ;;  %2625 = vmatpush2.bf16.msra.mxu1 %v12697_v37  ;;  %v12524_v37 = vcombine.high %v175_v25, %v179_v26 }
  0x8d   :  { %v12690_v39 = vcombine.high %v342_v34, %v346_v35  ;;  %v206_v40 = vld [vmem:[#allocation5 + $0x280] sm:$0xff]  ;;  %2583 = vmatprep.subr.bf16.mxu0 %v12562_v38  ;;  %v12689_v45 = vcombine.low %v342_v34, %v346_v35  ;;  %v167_v34 = vld [vmem:[#allocation5 + $0x148] sm:$0xff] }
  0x8e   :  { %v210_v41 = vld [vmem:[#allocation5 + $0x2a0] sm:$0xff]  ;;  %2584 = vmatpush2.bf16.msra.mxu0 %v12561_v44  ;;  %v171_v35 = vld [vmem:[#allocation5 + $0x168] sm:$0xff] }
  0x8f   :  { %v334_v42 = vld [vmem:[#allocation5 + $0x680] sm:$0xff]  ;;  %v12554_v46 = vcombine.high %v206_v40, %v210_v41  ;;  %2626 = vmatprep.subr.bf16.mxu1 %v12690_v39  ;;  %v12553_v52 = vcombine.low %v206_v40, %v210_v41  ;;  %v12523_v40 = vcombine.low %v175_v25, %v179_v26 }
  0x90   :  { %v338_v43 = vld [vmem:[#allocation5 + $0x6a0] sm:$0xff]  ;;  %2627 = vmatpush2.bf16.msra.mxu1 %v12689_v45  ;;  %v12516_v45 = vcombine.high %v167_v34, %v171_v35 }
  0x91   :  { %v12682_v47 = vcombine.high %v334_v42, %v338_v43  ;;  %v198_v48 = vld [vmem:[#allocation5 + $0x240] sm:$0xff]  ;;  %2585 = vmatprep.subr.bf16.mxu0 %v12554_v46  ;;  %v12681_v53 = vcombine.low %v334_v42, %v338_v43  ;;  %v159_v42 = vld [vmem:[#allocation5 + $0x108] sm:$0xff] }
  0x92   :  { %v202_v49 = vld [vmem:[#allocation5 + $0x260] sm:$0xff]  ;;  %2586 = vmatpush2.bf16.msra.mxu0 %v12553_v52  ;;  %v163_v43 = vld [vmem:[#allocation5 + $0x128] sm:$0xff] }
  0x93   :  { %v326_v50 = vld [vmem:[#allocation5 + $0x640] sm:$0xff]  ;;  %v12546_v54 = vcombine.high %v198_v48, %v202_v49  ;;  %2628 = vmatprep.subr.bf16.mxu1 %v12682_v47  ;;  %v12545_v62 = vcombine.low %v198_v48, %v202_v49  ;;  %v12515_v48 = vcombine.low %v167_v34, %v171_v35 }
  0x94   :  { %v330_v51 = vld [vmem:[#allocation5 + $0x660] sm:$0xff]  ;;  %2629 = vmatpush2.bf16.msra.mxu1 %v12681_v53  ;;  %v12508_v53 = vcombine.high %v159_v42, %v163_v43 }
  0x95   :  { %v12674_v55 = vcombine.high %v326_v50, %v330_v51  ;;  %v190_v57 = vld [vmem:[#allocation5 + $0x200] sm:$0xff]  ;;  %2587 = vmatprep.subr.bf16.mxu0 %v12546_v54  ;;  %v12673_v63 = vcombine.low %v326_v50, %v330_v51  ;;  %v151_v50 = vld [vmem:[#allocation5 + $0xc8] sm:$0xff] }
  0x96   :  { %v194_v58 = vld [vmem:[#allocation5 + $0x220] sm:$0xff]  ;;  %2588 = vmatpush2.bf16.msra.mxu0 %v12545_v62  ;;  %v155_v51 = vld [vmem:[#allocation5 + $0xe8] sm:$0xff] }
  0x97   :  { %v318_v60 = vld [vmem:[#allocation5 + $0x600] sm:$0xff]  ;;  %v12538_v0 = vcombine.high %v190_v57, %v194_v58  ;;  %2630 = vmatprep.subr.bf16.mxu1 %v12674_v55  ;;  %v12537_v6 = vcombine.low %v190_v57, %v194_v58  ;;  %v12507_v57 = vcombine.low %v159_v42, %v163_v43  ;;  %v12500_v62 = vcombine.high %v151_v50, %v155_v51 }
  0x98   :  { %v322_v61 = vld [vmem:[#allocation5 + $0x620] sm:$0xff]  ;;  %2631 = vmatpush2.bf16.msra.mxu1 %v12673_v63 }
  0x99   :  { %v12666_v1 = vcombine.high %v318_v60, %v322_v61  ;;  %v438_v2 = vld [vmem:[#allocation5 + $0x9c0] sm:$0xff]  ;;  %2589 = vmatprep.subr.bf16.mxu0 %v12538_v0  ;;  %v12665_v7 = vcombine.low %v318_v60, %v322_v61  ;;  %v143_v60 = vld [vmem:[#allocation5 + $0x88] sm:$0xff] }
  0x9a   :  { %v442_v3 = vld [vmem:[#allocation5 + $0x9e0] sm:$0xff]  ;;  %2590 = vmatpush2.bf16.msra.mxu0 %v12537_v6 }
  0x9b   :  { %v510_v4 = vld [vmem:[#allocation5 + $0xc00] sm:$0xff]  ;;  %v12786_v8 = vcombine.high %v438_v2, %v442_v3  ;;  %2632 = vmatprep.subr.bf16.mxu1 %v12666_v1  ;;  %v12785_v16 = vcombine.low %v438_v2, %v442_v3  ;;  %v12499_v1 = vcombine.low %v151_v50, %v155_v51  ;;  %v135_v3 = vld [vmem:[#allocation5 + $0x48] sm:$0xff] }
  0x9c   :  { %v514_v5 = vld [vmem:[#allocation5 + $0xc20] sm:$0xff]  ;;  %2633 = vmatpush2.bf16.msra.mxu1 %v12665_v7 }
  0x9d   :  { %v12858_v9 = vcombine.high %v510_v4, %v514_v5  ;;  %v430_v10 = vld [vmem:[#allocation5 + $0x980] sm:$0xff]  ;;  %2645 = vmatprep.subr.bf16.mxu0 %v12786_v8  ;;  %v12857_v17 = vcombine.low %v510_v4, %v514_v5  ;;  %v139_v4 = vld [vmem:[#allocation5 + $0x68] sm:$0xff] }
  0x9e   :  { %v434_v11 = vld [vmem:[#allocation5 + $0x9a0] sm:$0xff] }
  0x9f   :  { %v14750_v12 = vld [vmem:[#allocation2] ss:$28 sps:$4 sm:$0xff]   ;;  %v12778_v18 = vcombine.high %v430_v10, %v434_v11  ;;  %2702 = vmatprep.subr.bf16.mxu1 %v12858_v9  ;;  %2635 = vmatmul.mubr.bf16.vlgmr.msra.gmra.mxu1 %v14245_v15  ;;  %v12777_v23 = vcombine.low %v430_v10, %v434_v11  ;;  %v14246_v29 = vld [vmem:[#allocation2 + $0x18] ss:$28 sps:$4 sm:$0xff]   ;;  %v12484_v15 = vcombine.high %v135_v3, %v139_v4 }
  0xa0   :  { %v422_v20 = vld [vmem:[#allocation5 + $0x940] sm:$0xff]  ;;  %2592 = vmatmul.mubr.bf16.vlgmr.msra.gmra.mxu0 %v14750_v12  ;;  %2703 = vmatpush1.bf16.msra.mxu1 %v12857_v17  ;;  %v127_v11 = vld [vmem:[#allocation5 + $0x8] sm:$0xff] }
  0xa1   :  { %v426_v21 = vld [vmem:[#allocation5 + $0x960] sm:$0xff]  ;;  %2646 = vmatpush1.bf16.msra.mxu0 %v12785_v16  ;;  %2720 = vmatprep.mubr.bf16.mxu1 %v14679_v28 }
  0xa2   :  { %2647 = vmatprep.subr.bf16.mxu0 %v12778_v18  ;;  %v12770_v24 = vcombine.high %v422_v20, %v426_v21  ;;  %v414_v27 = vld [vmem:[#allocation5 + $0x900] sm:$0xff]  ;;  %2731 = vmatprep.subr.bf16.mxu1 %v12532_v19  ;;  %v12769_v31 = vcombine.low %v422_v20, %v426_v21  ;;  %v12483_v18 = vcombine.low %v135_v3, %v139_v4  ;;  %v247_v20 = vld [vmem:[#allocation5 + $0x3c8] sm:$0xff] }
  0xa3   :  { %v418_v30 = vld [vmem:[#allocation5 + $0x920] sm:$0xff]  ;;  %2677 = vmatprep.mubr.bf16.mxu0 %v14753_v22  ;;  %v251_v21 = vld [vmem:[#allocation5 + $0x3e8] sm:$0xff] }
  0xa4   :  { %v12762_v33 = vcombine.high %v414_v27, %v418_v30  ;;  %v406_v36 = vld [vmem:[#allocation5 + $0x8c0] sm:$0xff]  ;;  %v12761_v39 = vcombine.low %v414_v27, %v418_v30  ;;  %v12475_v27 = vcombine.low %v127_v11, %v131_v13  ;;  %v239_v30 = vld [vmem:[#allocation5 + $0x388] sm:$0xff] }
  0xa5   :  { %2648 = vmatpush1.bf16.msra.mxu0 %v12777_v23  ;;  %v410_v38 = vld [vmem:[#allocation5 + $0x8e0] sm:$0xff] }
  0xa6   :  { %2649 = vmatprep.subr.bf16.mxu0 %v12770_v24  ;;  %v12754_v41 = vcombine.high %v406_v36, %v410_v38  ;;  %v398_v44 = vld [vmem:[#allocation5 + $0x880] sm:$0xff]  ;;  %v12753_v47 = vcombine.low %v406_v36, %v410_v38  ;;  %v12476_v24 = vcombine.high %v127_v11, %v131_v13  ;;  %v12595_v36 = vcombine.low %v247_v20, %v251_v21  ;;  %v231_v38 = vld [vmem:[#allocation5 + $0x348] sm:$0xff] }
  0xa7   :  { %12865 = vmatmul.mubr.msk.bf16.vlgmr.msra.gmra.mxu1 %vm2555_vm0, %v14246_v29  ;;  %v402_v46 = vld [vmem:[#allocation5 + $0x8a0] sm:$0xff]  ;;  %v315_v11 = vld [vmem:[#allocation5 + $0x5e8] sm:$0xff] }
  0xa8   :  { %2732 = vmatpush1.bf16.msra.mxu1 %v12531_v32  ;;  %2763 = vmatprep.mubr.bf16.mxu1 %v14744_v56  ;;  %v12746_v49 = vcombine.high %v398_v44, %v402_v46  ;;  %v390_v52 = vld [vmem:[#allocation5 + $0x840] sm:$0xff]  ;;  %v12745_v55 = vcombine.low %v398_v44, %v402_v46  ;;  %v147_v56 = vld [vmem:[#allocation5 + $0xa8] sm:$0xff] }
  0xa9   :  { %2650 = vmatpush1.bf16.msra.mxu0 %v12769_v31  ;;  %2733 = vmatprep.subr.bf16.mxu1 %v12524_v37  ;;  %v394_v54 = vld [vmem:[#allocation5 + $0x860] sm:$0xff]  ;;  %v12492_v6 = vcombine.high %v143_v60, %v147_v56  ;;  %v12491_v9 = vcombine.low %v143_v60, %v147_v56  ;;  %v243_v31 = vld [vmem:[#allocation5 + $0x3a8] sm:$0xff] }
  0xaa   :  { %2651 = vmatprep.subr.bf16.mxu0 %v12762_v33  ;;  %v12738_v58 = vcombine.high %v390_v52, %v394_v54  ;;  %v382_v61 = vld [vmem:[#allocation5 + $0x800] sm:$0xff]  ;;  %v12737_v0 = vcombine.low %v390_v52, %v394_v54  ;;  %v12596_v33 = vcombine.high %v247_v20, %v251_v21  ;;  %v12587_v44 = vcombine.low %v239_v30, %v243_v31  ;;  %v223_v46 = vld [vmem:[#allocation5 + $0x308] sm:$0xff] }
  0xab   :  { %v386_v63 = vld [vmem:[#allocation5 + $0x820] sm:$0xff]  ;;  %v215_v54 = vld [vmem:[#allocation5 + $0x2c8] sm:$0xff] }
  0xac   :  { %2734 = vmatpush1.bf16.msra.mxu1 %v12523_v40  ;;  %v12730_v2 = vcombine.high %v382_v61, %v386_v63  ;;  %v502_v5 = vld [vmem:[#allocation5 + $0xbc0] sm:$0xff]  ;;  %v12729_v8 = vcombine.low %v382_v61, %v386_v63  ;;  %v207_v63 = vld [vmem:[#allocation5 + $0x288] sm:$0xff] }
  0xad   :  { %2652 = vmatpush1.bf16.msra.mxu0 %v12761_v39  ;;  %2735 = vmatprep.subr.bf16.mxu1 %v12516_v45  ;;  %v506_v7 = vld [vmem:[#allocation5 + $0xbe0] sm:$0xff]  ;;  %v235_v39 = vld [vmem:[#allocation5 + $0x368] sm:$0xff] }
  0xae   :  { %2653 = vmatprep.subr.bf16.mxu0 %v12754_v41  ;;  %v12850_v10 = vcombine.high %v502_v5, %v506_v7  ;;  %v494_v14 = vld [vmem:[#allocation5 + $0xb80] sm:$0xff]  ;;  %v12849_v17 = vcombine.low %v502_v5, %v506_v7  ;;  %v12588_v41 = vcombine.high %v239_v30, %v243_v31  ;;  %v12579_v52 = vcombine.low %v231_v38, %v235_v39  ;;  %v199_v7 = vld [vmem:[#allocation5 + $0x248] sm:$0xff] }
  0xaf   :  { %v498_v16 = vld [vmem:[#allocation5 + $0xba0] sm:$0xff]  ;;  %v307_v21 = vld [vmem:[#allocation5 + $0x5a8] sm:$0xff] }
  0xb0   :  { %2736 = vmatpush1.bf16.msra.mxu1 %v12515_v48  ;;  %v12842_v19 = vcombine.high %v494_v14, %v498_v16  ;;  %v486_v23 = vld [vmem:[#allocation5 + $0xb40] sm:$0xff]  ;;  %v12841_v26 = vcombine.low %v494_v14, %v498_v16  ;;  %v295_v30 = vld [vmem:[#allocation5 + $0x548] sm:$0xff] }
  0xb1   :  { %2654 = vmatpush1.bf16.msra.mxu0 %v12753_v47  ;;  %2737 = vmatprep.subr.bf16.mxu1 %v12508_v53  ;;  %v490_v25 = vld [vmem:[#allocation5 + $0xb60] sm:$0xff]  ;;  %v227_v47 = vld [vmem:[#allocation5 + $0x328] sm:$0xff] }
  0xb2   :  { %2655 = vmatprep.subr.bf16.mxu0 %v12746_v49  ;;  %v12834_v29 = vcombine.high %v486_v23, %v490_v25  ;;  %v478_v32 = vld [vmem:[#allocation5 + $0xb00] sm:$0xff]  ;;  %v12833_v35 = vcombine.low %v486_v23, %v490_v25  ;;  %v12580_v49 = vcombine.high %v231_v38, %v235_v39  ;;  %v12571_v61 = vcombine.low %v223_v46, %v227_v47  ;;  %v299_v31 = vld [vmem:[#allocation5 + $0x568] sm:$0xff] }
  0xb3   :  { %v482_v34 = vld [vmem:[#allocation5 + $0xb20] sm:$0xff]  ;;  %v291_v39 = vld [vmem:[#allocation5 + $0x528] sm:$0xff] }
  0xb4   :  { %2738 = vmatpush1.bf16.msra.mxu1 %v12507_v57  ;;  %v12826_v37 = vcombine.high %v478_v32, %v482_v34  ;;  %v470_v40 = vld [vmem:[#allocation5 + $0xac0] sm:$0xff]  ;;  %v12825_v43 = vcombine.low %v478_v32, %v482_v34  ;;  %v12644_v34 = vcombine.high %v295_v30, %v299_v31 }
  0xb5   :  { %2656 = vmatpush1.bf16.msra.mxu0 %v12745_v55  ;;  %2739 = vmatprep.subr.bf16.mxu1 %v12500_v62  ;;  %v474_v42 = vld [vmem:[#allocation5 + $0xae0] sm:$0xff]  ;;  %v219_v55 = vld [vmem:[#allocation5 + $0x2e8] sm:$0xff] }
  0xb6   :  { %2657 = vmatprep.subr.bf16.mxu0 %v12738_v58  ;;  %v12818_v45 = vcombine.high %v470_v40, %v474_v42  ;;  %v462_v48 = vld [vmem:[#allocation5 + $0xa80] sm:$0xff]  ;;  %v12817_v51 = vcombine.low %v470_v40, %v474_v42  ;;  %v12572_v58 = vcombine.high %v223_v46, %v227_v47  ;;  %v12563_v5 = vcombine.low %v215_v54, %v219_v55 }
  0xb7   :  { %v466_v50 = vld [vmem:[#allocation5 + $0xaa0] sm:$0xff]  ;;  %v12643_v40 = vcombine.low %v295_v30, %v299_v31  ;;  %v507_v30 = vld [vmem:[#allocation5 + $0xbe8] sm:$0xff] }
  0xb8   :  { %2740 = vmatpush1.bf16.msra.mxu1 %v12499_v1  ;;  %v12810_v53 = vcombine.high %v462_v48, %v466_v50  ;;  %v454_v57 = vld [vmem:[#allocation5 + $0xa40] sm:$0xff]  ;;  %v12809_v56 = vcombine.low %v462_v48, %v466_v50  ;;  %v415_v50 = vld [vmem:[#allocation5 + $0x908] sm:$0xff] }
  0xb9   :  { %2658 = vmatpush1.bf16.msra.mxu0 %v12737_v0  ;;  %2741 = vmatprep.subr.bf16.mxu1 %v12492_v6  ;;  %v458_v60 = vld [vmem:[#allocation5 + $0xa60] sm:$0xff]  ;;  %v211_v0 = vld [vmem:[#allocation5 + $0x2a8] sm:$0xff] }
  0xba   :  { %2659 = vmatprep.subr.bf16.mxu0 %v12730_v2  ;;  %v12802_v62 = vcombine.high %v454_v57, %v458_v60  ;;  %v446_v1 = vld [vmem:[#allocation5 + $0xa00] sm:$0xff]  ;;  %v12564_v2 = vcombine.high %v215_v54, %v219_v55  ;;  %v12801_v4 = vcombine.low %v454_v57, %v458_v60  ;;  %v12555_v14 = vcombine.low %v207_v63, %v211_v0  ;;  %v411_v60 = vld [vmem:[#allocation5 + $0x8e8] sm:$0xff] }
  0xbb   :  { %v450_v3 = vld [vmem:[#allocation5 + $0xa20] sm:$0xff] }
  0xbc   :  { %2742 = vmatpush1.bf16.msra.mxu1 %v12491_v9  ;;  %v12794_v6 = vcombine.high %v446_v1, %v450_v3  ;;  %v311_v9 = vld [vmem:[#allocation5 + $0x5c8] sm:$0xff]  ;;  %v12793_v13 = vcombine.low %v446_v1, %v450_v3 }
  0xbd   :  { %2660 = vmatpush1.bf16.msra.mxu0 %v12729_v8  ;;  %2743 = vmatprep.subr.bf16.mxu1 %v12484_v15  ;;  %v203_v8 = vld [vmem:[#allocation5 + $0x268] sm:$0xff]  ;;  %v14759_v15 = vld [vmem:[#allocation2 + $0x10] ss:$28 sps:$4 sm:$0xff]   ;;  %v12660_v16 = vcombine.high %v311_v9, %v315_v11  ;;  %v12659_v23 = vcombine.low %v311_v9, %v315_v11 }
  0xbe   :  { %2661 = vmatprep.subr.bf16.mxu0 %v12850_v10  ;;  %v12556_v10 = vcombine.high %v207_v63, %v211_v0  ;;  %v12548_v20 = vcombine.high %v199_v7, %v203_v8  ;;  %v391_v9 = vld [vmem:[#allocation5 + $0x848] sm:$0xff] }
  0xc0   :  { %2744 = vmatpush1.bf16.msra.mxu1 %v12483_v18  ;;  %v195_v18 = vld [vmem:[#allocation5 + $0x228] sm:$0xff] }
  0xc1   :  { %2662 = vmatpush2.bf16.msra.mxu0 %v12849_v17  ;;  %2745 = vmatprep.subr.bf16.mxu1 %v12476_v24  ;;  %v191_v17 = vld [vmem:[#allocation5 + $0x208] sm:$0xff]  ;;  %v12547_v24 = vcombine.low %v199_v7, %v203_v8 }
  0xc2   :  { %2663 = vmatprep.subr.bf16.mxu0 %v12842_v19  ;;  %v303_v19 = vld [vmem:[#allocation5 + $0x588] sm:$0xff] }
  0xc3   :  { %v12652_v25 = vcombine.high %v303_v19, %v307_v21  ;;  %v12651_v32 = vcombine.low %v303_v19, %v307_v21  ;;  %v383_v19 = vld [vmem:[#allocation5 + $0x808] sm:$0xff] }
  0xc4   :  { %2746 = vmatpush1.bf16.msra.mxu1 %v12475_v27  ;;  %v443_v27 = vld [vmem:[#allocation5 + $0x9e8] sm:$0xff] }
  0xc5   :  { %2664 = vmatpush2.bf16.msra.mxu0 %v12841_v26  ;;  %2747 = vmatprep.subr.bf16.mxu1 %v12596_v33  ;;  %v439_v26 = vld [vmem:[#allocation5 + $0x9c8] sm:$0xff]  ;;  %v12539_v33 = vcombine.low %v191_v17, %v195_v18 }
  0xc6   :  { %2665 = vmatprep.subr.bf16.mxu0 %v12834_v29  ;;  %v12540_v29 = vcombine.high %v191_v17, %v195_v18  ;;  %v12788_v38 = vcombine.high %v439_v26, %v443_v27 }
  0xc8   :  { %2748 = vmatpush2.bf16.msra.mxu1 %v12595_v36  ;;  %v435_v36 = vld [vmem:[#allocation5 + $0x9a8] sm:$0xff] }
  0xc9   :  { %2666 = vmatpush2.bf16.msra.mxu0 %v12833_v35  ;;  %2749 = vmatprep.subr.bf16.mxu1 %v12588_v41  ;;  %v431_v35 = vld [vmem:[#allocation5 + $0x988] sm:$0xff]  ;;  %v12787_v41 = vcombine.low %v439_v26, %v443_v27 }
  0xca   :  { %2667 = vmatprep.subr.bf16.mxu0 %v12826_v37  ;;  %v287_v37 = vld [vmem:[#allocation5 + $0x508] sm:$0xff]  ;;  %v12780_v46 = vcombine.high %v431_v35, %v435_v36  ;;  %v12779_v48 = vcombine.low %v431_v35, %v435_v36 }
  0xcb   :  { %v12636_v42 = vcombine.high %v287_v37, %v291_v39  ;;  %v12635_v47 = vcombine.low %v287_v37, %v291_v39  ;;  %v495_v37 = vld [vmem:[#allocation5 + $0xb88] sm:$0xff] }
  0xcc   :  { %2750 = vmatpush2.bf16.msra.mxu1 %v12587_v44  ;;  %v427_v44 = vld [vmem:[#allocation5 + $0x968] sm:$0xff] }
  0xcd   :  { %2668 = vmatpush2.bf16.msra.mxu0 %v12825_v43  ;;  %2751 = vmatprep.subr.bf16.mxu1 %v12580_v49  ;;  %v423_v43 = vld [vmem:[#allocation5 + $0x948] sm:$0xff] }
  0xce   :  { %2669 = vmatprep.subr.bf16.mxu0 %v12818_v45  ;;  %v279_v45 = vld [vmem:[#allocation5 + $0x4c8] sm:$0xff]  ;;  %v12772_v54 = vcombine.high %v423_v43, %v427_v44  ;;  %v12771_v57 = vcombine.low %v423_v43, %v427_v44 }
  0xd0   :  { %2752 = vmatpush2.bf16.msra.mxu1 %v12579_v52  ;;  %v271_v52 = vld [vmem:[#allocation5 + $0x488] sm:$0xff] }
  0xd1   :  { %2670 = vmatpush2.bf16.msra.mxu0 %v12817_v51  ;;  %2753 = vmatprep.subr.bf16.mxu1 %v12572_v58  ;;  %v419_v51 = vld [vmem:[#allocation5 + $0x928] sm:$0xff] }
  0xd2   :  { %2671 = vmatprep.subr.bf16.mxu0 %v12810_v53  ;;  %v275_v53 = vld [vmem:[#allocation5 + $0x4a8] sm:$0xff]  ;;  %v12763_v0 = vcombine.low %v415_v50, %v419_v51 }
  0xd3   :  { %v407_v58 = vld [vmem:[#allocation5 + $0x8c8] sm:$0xff]  ;;  %v12619_v63 = vcombine.low %v271_v52, %v275_v53 }
  0xd4   :  { %2754 = vmatpush2.bf16.msra.mxu1 %v12571_v61  ;;  %v267_v61 = vld [vmem:[#allocation5 + $0x468] sm:$0xff]  ;;  %v12756_v3 = vcombine.high %v407_v58, %v411_v60  ;;  %v12755_v7 = vcombine.low %v407_v58, %v411_v60 }
  0xd5   :  { %2672 = vmatpush2.bf16.msra.mxu0 %v12809_v56  ;;  %2755 = vmatprep.subr.bf16.mxu1 %v12564_v2  ;;  %v263_v56 = vld [vmem:[#allocation5 + $0x448] sm:$0xff] }
  0xd6   :  { %2673 = vmatprep.subr.bf16.mxu0 %v12802_v62  ;;  %v12764_v62 = vcombine.high %v415_v50, %v419_v51  ;;  %v12612_v1 = vcombine.high %v263_v56, %v267_v61  ;;  %v399_v2 = vld [vmem:[#allocation5 + $0x888] sm:$0xff] }
  0xd8   :  { %2756 = vmatpush2.bf16.msra.mxu1 %v12563_v5  ;;  %v259_v5 = vld [vmem:[#allocation5 + $0x428] sm:$0xff] }
  0xd9   :  { %2674 = vmatpush2.bf16.msra.mxu0 %v12801_v4  ;;  %2757 = vmatprep.subr.bf16.mxu1 %v12556_v10  ;;  %v255_v4 = vld [vmem:[#allocation5 + $0x408] sm:$0xff] }
  0xda   :  { %2675 = vmatprep.subr.bf16.mxu0 %v12794_v6  ;;  %v12611_v6 = vcombine.low %v263_v56, %v267_v61  ;;  %v12604_v8 = vcombine.high %v255_v4, %v259_v5  ;;  %v395_v10 = vld [vmem:[#allocation5 + $0x868] sm:$0xff] }
  0xdb   :  { %v12740_v21 = vcombine.high %v391_v9, %v395_v10  ;;  %v12739_v26 = vcombine.low %v391_v9, %v395_v10  ;;  %v471_v56 = vld [vmem:[#allocation5 + $0xac8] sm:$0xff] }
  0xdc   :  { %2758 = vmatpush2.bf16.msra.mxu1 %v12555_v14  ;;  %v379_v14 = vld [vmem:[#allocation5 + $0x7e8] sm:$0xff] }
  0xdd   :  { %2676 = vmatpush2.bf16.msra.mxu0 %v12793_v13  ;;  %2759 = vmatprep.subr.bf16.mxu1 %v12548_v20  ;;  %v375_v13 = vld [vmem:[#allocation5 + $0x7c8] sm:$0xff] }
  0xde   :  { %2774 = vmatprep.subr.bf16.mxu0 %v12660_v16  ;;  %v12603_v16 = vcombine.low %v255_v4, %v259_v5  ;;  %v12724_v18 = vcombine.high %v375_v13, %v379_v14  ;;  %v387_v20 = vld [vmem:[#allocation5 + $0x828] sm:$0xff] }
  0xdf   :  { %v12732_v31 = vcombine.high %v383_v19, %v387_v20  ;;  %v12731_v35 = vcombine.low %v383_v19, %v387_v20  ;;  %v475_v61 = vld [vmem:[#allocation5 + $0xae8] sm:$0xff] }
  0xe0   :  { %2678 = vmatmul.mubr.bf16.vlgmr.msra.gmra.mxu0 %v14759_v15  ;;  %2760 = vmatpush2.bf16.msra.mxu1 %v12547_v24  ;;  %v371_v24 = vld [vmem:[#allocation5 + $0x7a8] sm:$0xff]  ;;  %v12820_v5 = vcombine.high %v471_v56, %v475_v61  ;;  %v12819_v9 = vcombine.low %v471_v56, %v475_v61 }
  0xe1   :  { %2775 = vmatpush1.bf16.msra.mxu0 %v12659_v23  ;;  %2806 = vmatprep.mubr.bf16.mxu0 %v14746_v59  ;;  %v283_v59 = vld [vmem:[#allocation5 + $0x4e8] sm:$0xff] }
  0xe2   :  { %2776 = vmatprep.subr.bf16.mxu0 %v12652_v25  ;;  %2761 = vmatprep.subr.bf16.mxu1 %v12540_v29  ;;  %v12628_v49 = vcombine.high %v279_v45, %v283_v59  ;;  %v12627_v55 = vcombine.low %v279_v45, %v283_v59  ;;  %v367_v23 = vld [vmem:[#allocation5 + $0x788] sm:$0xff]  ;;  %v12723_v25 = vcombine.low %v375_v13, %v379_v14 }
  0xe3   :  { %v12716_v27 = vcombine.high %v367_v23, %v371_v24  ;;  %v503_v29 = vld [vmem:[#allocation5 + $0xbc8] sm:$0xff] }
  0xe4   :  { %2762 = vmatpush2.bf16.msra.mxu1 %v12539_v33  ;;  %v363_v33 = vld [vmem:[#allocation5 + $0x768] sm:$0xff]  ;;  %v12852_v39 = vcombine.high %v503_v29, %v507_v30  ;;  %v12851_v43 = vcombine.low %v503_v29, %v507_v30 }
  0xe5   :  { %2777 = vmatpush1.bf16.msra.mxu0 %v12651_v32  ;;  %2817 = vmatprep.subr.bf16.mxu1 %v12788_v38  ;;  %v359_v32 = vld [vmem:[#allocation5 + $0x748] sm:$0xff] }
  0xe6   :  { %2778 = vmatprep.subr.bf16.mxu0 %v12644_v34  ;;  %v12715_v34 = vcombine.low %v367_v23, %v371_v24  ;;  %v12708_v36 = vcombine.high %v359_v32, %v363_v33  ;;  %v499_v38 = vld [vmem:[#allocation5 + $0xba8] sm:$0xff] }
  0xe7   :  { %2764 = vmatmul.mubr.bf16.vlgmr.msra.gmra.mxu1 %v14750_v12  ;;  %v12620_v12 = vcombine.high %v271_v52, %v275_v53  ;;  %v487_v45 = vld [vmem:[#allocation5 + $0xb48] sm:$0xff]  ;;  %v12843_v50 = vcombine.low %v495_v37, %v499_v38 }
  0xe8   :  { %2818 = vmatpush1.bf16.msra.mxu1 %v12787_v41  ;;  %2849 = vmatprep.mubr.bf16.mxu1 %v14753_v22  ;;  %v403_v22 = vld [vmem:[#allocation5 + $0x8a8] sm:$0xff] }
  0xe9   :  { %2779 = vmatpush1.bf16.msra.mxu0 %v12643_v40  ;;  %2819 = vmatprep.subr.bf16.mxu1 %v12780_v46  ;;  %v12748_v11 = vcombine.high %v399_v2, %v403_v22  ;;  %v12747_v17 = vcombine.low %v399_v2, %v403_v22  ;;  %v351_v40 = vld [vmem:[#allocation5 + $0x708] sm:$0xff]  ;;  %v12844_v46 = vcombine.high %v495_v37, %v499_v38  ;;  %v176_v37 = vld [vmem:[#allocation5 + $0x190] sm:$0xff] }
  0xea   :  { %2780 = vmatprep.subr.bf16.mxu0 %v12636_v42  ;;  %v355_v41 = vld [vmem:[#allocation5 + $0x728] sm:$0xff]  ;;  %v12707_v42 = vcombine.low %v359_v32, %v363_v33  ;;  %v312_v32 = vld [vmem:[#allocation5 + $0x5d0] sm:$0xff] }
  0xeb   :  { %v12700_v44 = vcombine.high %v351_v40, %v355_v41  ;;  %v491_v59 = vld [vmem:[#allocation5 + $0xb68] sm:$0xff]  ;;  %v316_v33 = vld [vmem:[#allocation5 + $0x5f0] sm:$0xff] }
  0xec   :  { %2820 = vmatpush1.bf16.msra.mxu1 %v12779_v48  ;;  %v347_v48 = vld [vmem:[#allocation5 + $0x6e8] sm:$0xff]  ;;  %v12835_v58 = vcombine.low %v487_v45, %v491_v59  ;;  %v180_v38 = vld [vmem:[#allocation5 + $0x1b0] sm:$0xff] }
  0xed   :  { %2781 = vmatpush1.bf16.msra.mxu0 %v12635_v47  ;;  %2821 = vmatprep.subr.bf16.mxu1 %v12772_v54  ;;  %v343_v47 = vld [vmem:[#allocation5 + $0x6c8] sm:$0xff]  ;;  %v12836_v54 = vcombine.high %v487_v45, %v491_v59  ;;  %v168_v45 = vld [vmem:[#allocation5 + $0x150] sm:$0xff] }
  0xee   :  { %2782 = vmatprep.subr.bf16.mxu0 %v12628_v49  ;;  %v12699_v49 = vcombine.low %v351_v40, %v355_v41  ;;  %v12692_v51 = vcombine.high %v343_v47, %v347_v48  ;;  %v479_v52 = vld [vmem:[#allocation5 + $0xb08] sm:$0xff]  ;;  %v308_v40 = vld [vmem:[#allocation5 + $0x5b0] sm:$0xff] }
  0xef   :  { %v483_v53 = vld [vmem:[#allocation5 + $0xb28] sm:$0xff]  ;;  %v172_v59 = vld [vmem:[#allocation5 + $0x170] sm:$0xff] }
  0xf0   :  { %2822 = vmatpush1.bf16.msra.mxu1 %v12771_v57  ;;  %v339_v57 = vld [vmem:[#allocation5 + $0x6a8] sm:$0xff]  ;;  %v12827_v2 = vcombine.low %v479_v52, %v483_v53 }
  0xf1   :  { %2783 = vmatpush1.bf16.msra.mxu0 %v12627_v55  ;;  %2823 = vmatprep.subr.bf16.mxu1 %v12764_v62  ;;  %v335_v55 = vld [vmem:[#allocation5 + $0x688] sm:$0xff]  ;;  %v12828_v62 = vcombine.high %v479_v52, %v483_v53  ;;  %v160_v53 = vld [vmem:[#allocation5 + $0x110] sm:$0xff] }
  0xf2   :  { %2784 = vmatprep.subr.bf16.mxu0 %v12620_v12  ;;  %v12691_v12 = vcombine.low %v343_v47, %v347_v48  ;;  %v12684_v60 = vcombine.high %v335_v55, %v339_v57  ;;  %v467_v4 = vld [vmem:[#allocation5 + $0xaa8] sm:$0xff]  ;;  %v296_v47 = vld [vmem:[#allocation5 + $0x550] sm:$0xff] }
  0xf3   :  { %v459_v13 = vld [vmem:[#allocation5 + $0xa68] sm:$0xff]  ;;  %v300_v48 = vld [vmem:[#allocation5 + $0x570] sm:$0xff] }
  0xf4   :  { %2824 = vmatpush1.bf16.msra.mxu1 %v12763_v0  ;;  %v331_v0 = vld [vmem:[#allocation5 + $0x668] sm:$0xff]  ;;  %v12646_v52 = vcombine.high %v296_v47, %v300_v48 }
  0xf5   :  { %2785 = vmatpush1.bf16.msra.mxu0 %v12619_v63  ;;  %2825 = vmatprep.subr.bf16.mxu1 %v12756_v3  ;;  %v327_v63 = vld [vmem:[#allocation5 + $0x648] sm:$0xff] }
  0xf6   :  { %2786 = vmatprep.subr.bf16.mxu0 %v12612_v1  ;;  %v12683_v1 = vcombine.low %v335_v55, %v339_v57  ;;  %v12676_v22 = vcombine.high %v327_v63, %v331_v0  ;;  %v463_v3 = vld [vmem:[#allocation5 + $0xa88] sm:$0xff]  ;;  %v288_v57 = vld [vmem:[#allocation5 + $0x510] sm:$0xff] }
  0xf7   :  { %v12812_v14 = vcombine.high %v463_v3, %v467_v4  ;;  %v12811_v19 = vcombine.low %v463_v3, %v467_v4  ;;  %v451_v23 = vld [vmem:[#allocation5 + $0xa28] sm:$0xff] }
  0xf8   :  { %2826 = vmatpush1.bf16.msra.mxu1 %v12755_v7  ;;  %v323_v7 = vld [vmem:[#allocation5 + $0x628] sm:$0xff] }
  0xf9   :  { %2787 = vmatpush1.bf16.msra.mxu0 %v12611_v6  ;;  %2827 = vmatprep.subr.bf16.mxu1 %v12748_v11  ;;  %v319_v6 = vld [vmem:[#allocation5 + $0x608] sm:$0xff] }
  0xfa   :  { %2788 = vmatprep.subr.bf16.mxu0 %v12604_v8  ;;  %v12675_v8 = vcombine.low %v327_v63, %v331_v0  ;;  %v12668_v10 = vcombine.high %v319_v6, %v323_v7  ;;  %v455_v11 = vld [vmem:[#allocation5 + $0xa48] sm:$0xff]  ;;  %v156_v63 = vld [vmem:[#allocation5 + $0xf0] sm:$0xff] }
  0xfb   :  { %v12804_v24 = vcombine.high %v455_v11, %v459_v13  ;;  %v12803_v29 = vcombine.low %v455_v11, %v459_v13  ;;  %v14774_v55 = vld [vmem:[#allocation2 + $0x4] ss:$28 sps:$4 sm:$0xff]   ;;  %v280_v0 = vld [vmem:[#allocation5 + $0x4d0] sm:$0xff] }
  0xfc   :  { %2828 = vmatpush1.bf16.msra.mxu1 %v12747_v17  ;;  %v515_v17 = vld [vmem:[#allocation5 + $0xc28] sm:$0xff] }
  0xfd   :  { %2789 = vmatpush1.bf16.msra.mxu0 %v12603_v16  ;;  %2829 = vmatprep.subr.bf16.mxu1 %v12740_v21  ;;  %v511_v16 = vld [vmem:[#allocation5 + $0xc08] sm:$0xff] }
  0xfe   :  { %2790 = vmatprep.subr.bf16.mxu0 %v12724_v18  ;;  %v12667_v18 = vcombine.low %v319_v6, %v323_v7  ;;  %v12860_v20 = vcombine.high %v511_v16, %v515_v17  ;;  %v447_v21 = vld [vmem:[#allocation5 + $0xa08] sm:$0xff]  ;;  %v148_v6 = vld [vmem:[#allocation5 + $0xb0] sm:$0xff] }
  0xff   :  { %v272_v7 = vld [vmem:[#allocation5 + $0x490] sm:$0xff] }
 0x100   :  { %2830 = vmatpush1.bf16.msra.mxu1 %v12739_v26  ;;  %v188_v26 = vld [vmem:[#allocation5 + $0x1f0] sm:$0xff] }
 0x101   :  { %2791 = vmatpush2.bf16.msra.mxu0 %v12723_v25  ;;  %2831 = vmatprep.subr.bf16.mxu1 %v12732_v31  ;;  %v184_v25 = vld [vmem:[#allocation5 + $0x1d0] sm:$0xff]  ;;  %v12796_v31 = vcombine.high %v447_v21, %v451_v23 }
 0x102   :  { %2792 = vmatprep.subr.bf16.mxu0 %v12716_v27  ;;  %v12859_v27 = vcombine.low %v511_v16, %v515_v17  ;;  %v12534_v30 = vcombine.high %v184_v25, %v188_v26  ;;  %v12533_v41 = vcombine.low %v184_v25, %v188_v26  ;;  %v140_v16 = vld [vmem:[#allocation5 + $0x70] sm:$0xff] }
 0x103   :  { %v264_v17 = vld [vmem:[#allocation5 + $0x450] sm:$0xff] }
 0x104   :  { %2832 = vmatpush1.bf16.msra.mxu1 %v12731_v35  ;;  %v12795_v35 = vcombine.low %v447_v21, %v451_v23  ;;  %v132_v25 = vld [vmem:[#allocation5 + $0x30] sm:$0xff] }
 0x105   :  { %2793 = vmatpush2.bf16.msra.mxu0 %v12715_v34  ;;  %2833 = vmatprep.subr.bf16.mxu1 %v12852_v39  ;;  %v14765_v34 = vld [vmem:[#allocation2 + $0x8] ss:$28 sps:$4 sm:$0xff]  }
 0x106   :  { %2794 = vmatprep.subr.bf16.mxu0 %v12708_v36  ;;  %v12662_v36 = vcombine.high %v312_v32, %v316_v33  ;;  %v304_v39 = vld [vmem:[#allocation5 + $0x590] sm:$0xff] }
 0x107   :  { %v256_v26 = vld [vmem:[#allocation5 + $0x410] sm:$0xff] }
 0x108   :  { %2834 = vmatpush2.bf16.msra.mxu1 %v12851_v43  ;;  %v12526_v43 = vcombine.high %v176_v37, %v180_v38 }
 0x109   :  { %2795 = vmatpush2.bf16.msra.mxu0 %v12707_v42  ;;  %2835 = vmatprep.subr.bf16.mxu1 %v12844_v46  ;;  %v12661_v42 = vcombine.low %v312_v32, %v316_v33  ;;  %v14769_v46 = vld [vmem:[#allocation2 + $0x18] ss:$28 sps:$4 sm:$0xff]   ;;  %v248_v33 = vld [vmem:[#allocation5 + $0x3d0] sm:$0xff] }
 0x10a   :  { %2796 = vmatprep.subr.bf16.mxu0 %v12700_v44  ;;  %v12654_v44 = vcombine.high %v304_v39, %v308_v40 }
 0x10c   :  { %2836 = vmatpush2.bf16.msra.mxu1 %v12843_v50  ;;  %v12653_v50 = vcombine.low %v304_v39, %v308_v40 }
 0x10d   :  { %2797 = vmatpush2.bf16.msra.mxu0 %v12699_v49  ;;  %2837 = vmatprep.subr.bf16.mxu1 %v12836_v54  ;;  %v12525_v49 = vcombine.low %v176_v37, %v180_v38  ;;  %v164_v54 = vld [vmem:[#allocation5 + $0x130] sm:$0xff] }
 0x10e   :  { %2798 = vmatprep.subr.bf16.mxu0 %v12692_v51  ;;  %v12518_v51 = vcombine.high %v168_v45, %v172_v59  ;;  %v12510_v56 = vcombine.high %v160_v53, %v164_v54  ;;  %v380_v37 = vld [vmem:[#allocation5 + $0x7f0] sm:$0xff] }
 0x110   :  { %2838 = vmatpush2.bf16.msra.mxu1 %v12835_v58  ;;  %v14777_v58 = vld [vmem:[#allocation2 + $0xc] ss:$28 sps:$4 sm:$0xff]  }
 0x111   :  { %2799 = vmatpush2.bf16.msra.mxu0 %v12691_v12  ;;  %2839 = vmatprep.subr.bf16.mxu1 %v12828_v62  ;;  %v292_v12 = vld [vmem:[#allocation5 + $0x530] sm:$0xff] }
 0x112   :  { %2800 = vmatprep.subr.bf16.mxu0 %v12684_v60  ;;  %v12645_v60 = vcombine.low %v296_v47, %v300_v48  ;;  %v12638_v61 = vcombine.high %v288_v57, %v292_v12  ;;  %v152_v62 = vld [vmem:[#allocation5 + $0xd0] sm:$0xff] }
 0x113   :  { %v12502_v3 = vcombine.high %v152_v62, %v156_v63 }
 0x114   :  { %2840 = vmatpush2.bf16.msra.mxu1 %v12827_v2  ;;  %v12509_v2 = vcombine.low %v160_v53, %v164_v54  ;;  %v364_v53 = vld [vmem:[#allocation5 + $0x770] sm:$0xff] }
 0x115   :  { %2801 = vmatpush2.bf16.msra.mxu0 %v12683_v1  ;;  %2841 = vmatprep.subr.bf16.mxu1 %v12820_v5  ;;  %v284_v1 = vld [vmem:[#allocation5 + $0x4f0] sm:$0xff] }
 0x116   :  { %2802 = vmatprep.subr.bf16.mxu0 %v12676_v22  ;;  %v12637_v22 = vcombine.low %v288_v57, %v292_v12  ;;  %v12630_v4 = vcombine.high %v280_v0, %v284_v1  ;;  %v144_v5 = vld [vmem:[#allocation5 + $0x90] sm:$0xff] }
 0x117   :  { %v12494_v11 = vcombine.high %v144_v5, %v148_v6 }
 0x118   :  { %2842 = vmatpush2.bf16.msra.mxu1 %v12819_v9  ;;  %v12501_v9 = vcombine.low %v152_v62, %v156_v63  ;;  %v356_v62 = vld [vmem:[#allocation5 + $0x730] sm:$0xff] }
 0x119   :  { %2803 = vmatpush2.bf16.msra.mxu0 %v12675_v8  ;;  %2843 = vmatprep.subr.bf16.mxu1 %v12812_v14  ;;  %v276_v8 = vld [vmem:[#allocation5 + $0x4b0] sm:$0xff] }
 0x11a   :  { %2804 = vmatprep.subr.bf16.mxu0 %v12668_v10  ;;  %v12629_v10 = vcombine.low %v280_v0, %v284_v1  ;;  %v12622_v13 = vcombine.high %v272_v7, %v276_v8  ;;  %v136_v14 = vld [vmem:[#allocation5 + $0x50] sm:$0xff] }
 0x11b   :  { %v12486_v21 = vcombine.high %v136_v14, %v140_v16 }
 0x11c   :  { %2844 = vmatpush2.bf16.msra.mxu1 %v12811_v19  ;;  %v12493_v19 = vcombine.low %v144_v5, %v148_v6  ;;  %v348_v5 = vld [vmem:[#allocation5 + $0x6f0] sm:$0xff] }
 0x11d   :  { %2805 = vmatpush2.bf16.msra.mxu0 %v12667_v18  ;;  %2845 = vmatprep.subr.bf16.mxu1 %v12804_v24  ;;  %v268_v18 = vld [vmem:[#allocation5 + $0x470] sm:$0xff] }
 0x11e   :  { %2874 = vmatprep.subr.bf16.mxu0 %v12860_v20  ;;  %v12621_v20 = vcombine.low %v272_v7, %v276_v8  ;;  %v12614_v23 = vcombine.high %v264_v17, %v268_v18  ;;  %v128_v24 = vld [vmem:[#allocation5 + $0x10] sm:$0xff]  ;;  %v520_v7 = vlaneseq }
 0x11f   :  { %v12477_v38 = vcombine.low %v128_v24, %v132_v25 }
 0x120   :  { %2807 = vmatmul.mubr.bf16.vlgmr.msra.gmra.mxu0 %v14765_v34  ;;  %2846 = vmatpush2.bf16.msra.mxu1 %v12803_v29  ;;  %v12485_v29 = vcombine.low %v136_v14, %v140_v16  ;;  %v336_v14 = vld [vmem:[#allocation5 + $0x690] sm:$0xff] }
 0x121   :  { %2875 = vmatpush1.bf16.msra.mxu0 %v12859_v27  ;;  %2892 = vmatprep.mubr.bf16.mxu0 %v14679_v28  ;;  %v260_v27 = vld [vmem:[#allocation5 + $0x430] sm:$0xff] }
 0x122   :  { %2903 = vmatprep.subr.bf16.mxu0 %v12534_v30  ;;  %2847 = vmatprep.subr.bf16.mxu1 %v12796_v31  ;;  %v12613_v30 = vcombine.low %v264_v17, %v268_v18  ;;  %v12478_v31 = vcombine.high %v128_v24, %v132_v25  ;;  %v12606_v32 = vcombine.high %v256_v26, %v260_v27  ;;  %v340_v16 = vld [vmem:[#allocation5 + $0x6b0] sm:$0xff]  ;;  %v14780_v18 = vshrl.u32 %v520_v7, 7 }
 0x123   :  { %v12605_v39 = vcombine.low %v256_v26, %v260_v27  ;;  %v204_v24 = vld [vmem:[#allocation5 + $0x270] sm:$0xff] }
 0x124   :  { %2848 = vmatpush2.bf16.msra.mxu1 %v12795_v35  ;;  %v252_v35 = vld [vmem:[#allocation5 + $0x3f0] sm:$0xff] }
 0x125   :  { %2946 = vmatprep.subr.bf16.mxu1 %v12662_v36  ;;  %v376_v36 = vld [vmem:[#allocation5 + $0x7d0] sm:$0xff]  ;;  %v12598_v40 = vcombine.high %v248_v33, %v252_v35 }
 0x126   :  { %v12725_v47 = vcombine.low %v376_v36, %v380_v37  ;;  %v328_v25 = vld [vmem:[#allocation5 + $0x650] sm:$0xff] }
 0x127   :  { %2850 = vmatmul.mubr.bf16.vlgmr.msra.gmra.mxu1 %v14759_v15  ;;  %v12517_v15 = vcombine.low %v168_v45, %v172_v59  ;;  %v372_v45 = vld [vmem:[#allocation5 + $0x7b0] sm:$0xff]  ;;  %v12597_v59 = vcombine.low %v248_v33, %v252_v35 }
 0x128   :  { %12866 = vmatmul.mubr.msk.bf16.vlgmr.msra.gmra.mxu0 %vm2555_vm0, %v14769_v46  ;;  %2947 = vmatpush1.bf16.msra.mxu1 %v12661_v42  ;;  %v240_v42 = vld [vmem:[#allocation5 + $0x390] sm:$0xff] }
 0x129   :  { %2904 = vmatpush1.bf16.msra.mxu0 %v12533_v41  ;;  %2948 = vmatprep.subr.bf16.mxu1 %v12654_v44  ;;  %v12726_v41 = vcombine.high %v376_v36, %v380_v37  ;;  %v368_v44 = vld [vmem:[#allocation5 + $0x790] sm:$0xff] }
 0x12a   :  { %2905 = vmatprep.subr.bf16.mxu0 %v12526_v43  ;;  %2935 = vmatprep.mubr.bf16.mxu0 %v14774_v55  ;;  %v244_v43 = vld [vmem:[#allocation5 + $0x3b0] sm:$0xff]  ;;  %v12717_v57 = vcombine.low %v368_v44, %v372_v45 }
 0x12b   :  { %2978 = vmatprep.mubr.bf16.mxu1 %v14777_v58  ;;  %v12590_v48 = vcombine.high %v240_v42, %v244_v43  ;;  %v12589_v54 = vcombine.low %v240_v42, %v244_v43  ;;  %v332_v26 = vld [vmem:[#allocation5 + $0x670] sm:$0xff] }
 0x12c   :  { %2949 = vmatpush1.bf16.msra.mxu1 %v12653_v50  ;;  %v232_v50 = vld [vmem:[#allocation5 + $0x350] sm:$0xff]  ;;  %v12678_v33 = vcombine.high %v328_v25, %v332_v26 }
 0x12d   :  { %2906 = vmatpush1.bf16.msra.mxu0 %v12525_v49  ;;  %2950 = vmatprep.subr.bf16.mxu1 %v12646_v52  ;;  %v12718_v49 = vcombine.high %v368_v44, %v372_v45  ;;  %v360_v52 = vld [vmem:[#allocation5 + $0x750] sm:$0xff] }
 0x12e   :  { %2907 = vmatprep.subr.bf16.mxu0 %v12518_v51  ;;  %v236_v51 = vld [vmem:[#allocation5 + $0x370] sm:$0xff]  ;;  %v12709_v0 = vcombine.low %v360_v52, %v364_v53 }
 0x12f   :  { %v12582_v12 = vcombine.high %v232_v50, %v236_v51  ;;  %v12581_v63 = vcombine.low %v232_v50, %v236_v51  ;;  %v192_v35 = vld [vmem:[#allocation5 + $0x210] sm:$0xff] }
 0x130   :  { %2951 = vmatpush1.bf16.msra.mxu1 %v12645_v60  ;;  %v224_v60 = vld [vmem:[#allocation5 + $0x310] sm:$0xff] }
 0x131   :  { %2908 = vmatpush1.bf16.msra.mxu0 %v12517_v15  ;;  %2952 = vmatprep.subr.bf16.mxu1 %v12638_v61  ;;  %v12710_v15 = vcombine.high %v360_v52, %v364_v53  ;;  %v352_v61 = vld [vmem:[#allocation5 + $0x710] sm:$0xff] }
 0x132   :  { %2909 = vmatprep.subr.bf16.mxu0 %v12510_v56  ;;  %v228_v56 = vld [vmem:[#allocation5 + $0x330] sm:$0xff]  ;;  %v12701_v8 = vcombine.low %v352_v61, %v356_v62 }
 0x133   :  { %v12574_v1 = vcombine.high %v224_v60, %v228_v56  ;;  %v12573_v6 = vcombine.low %v224_v60, %v228_v56  ;;  %v196_v36 = vld [vmem:[#allocation5 + $0x230] sm:$0xff] }
 0x134   :  { %2953 = vmatpush1.bf16.msra.mxu1 %v12637_v22  ;;  %v216_v22 = vld [vmem:[#allocation5 + $0x2d0] sm:$0xff]  ;;  %v12542_v42 = vcombine.high %v192_v35, %v196_v36  ;;  %v12541_v51 = vcombine.low %v192_v35, %v196_v36 }
 0x135   :  { %2910 = vmatpush1.bf16.msra.mxu0 %v12509_v2  ;;  %2954 = vmatprep.subr.bf16.mxu1 %v12630_v4  ;;  %v12702_v2 = vcombine.high %v352_v61, %v356_v62  ;;  %v344_v4 = vld [vmem:[#allocation5 + $0x6d0] sm:$0xff]  ;;  %v185_v62 = vld [vmem:[#allocation5 + $0x1d8] sm:$0xff] }
 0x136   :  { %2911 = vmatprep.subr.bf16.mxu0 %v12502_v3  ;;  %v220_v3 = vld [vmem:[#allocation5 + $0x2f0] sm:$0xff] }
 0x137   :  { %v12565_v17 = vcombine.low %v216_v22, %v220_v3  ;;  %v320_v37 = vld [vmem:[#allocation5 + $0x610] sm:$0xff] }
 0x138   :  { %2955 = vmatpush1.bf16.msra.mxu1 %v12629_v10  ;;  %v12694_v10 = vcombine.high %v344_v4, %v348_v5  ;;  %v440_v44 = vld [vmem:[#allocation5 + $0x9d0] sm:$0xff] }
 0x139   :  { %2912 = vmatpush1.bf16.msra.mxu0 %v12501_v9  ;;  %2956 = vmatprep.subr.bf16.mxu1 %v12622_v13  ;;  %v12566_v9 = vcombine.high %v216_v22, %v220_v3  ;;  %v212_v13 = vld [vmem:[#allocation5 + $0x2b0] sm:$0xff] }
 0x13a   :  { %2913 = vmatprep.subr.bf16.mxu0 %v12494_v11  ;;  %v208_v11 = vld [vmem:[#allocation5 + $0x290] sm:$0xff] }
 0x13b   :  { %v12557_v27 = vcombine.low %v208_v11, %v212_v13  ;;  %v444_v45 = vld [vmem:[#allocation5 + $0x9f0] sm:$0xff] }
 0x13c   :  { %2957 = vmatpush1.bf16.msra.mxu1 %v12621_v20  ;;  %v12558_v20 = vcombine.high %v208_v11, %v212_v13  ;;  %v432_v60 = vld [vmem:[#allocation5 + $0x990] sm:$0xff] }
 0x13d   :  { %2914 = vmatpush1.bf16.msra.mxu0 %v12493_v19  ;;  %2958 = vmatprep.subr.bf16.mxu1 %v12614_v23  ;;  %v12693_v19 = vcombine.low %v344_v4, %v348_v5  ;;  %v200_v23 = vld [vmem:[#allocation5 + $0x250] sm:$0xff] }
 0x13e   :  { %2915 = vmatprep.subr.bf16.mxu0 %v12486_v21  ;;  %v12686_v21 = vcombine.high %v336_v14, %v340_v16  ;;  %v436_v56 = vld [vmem:[#allocation5 + $0x9b0] sm:$0xff] }
 0x13f   :  { %v12782_v3 = vcombine.high %v432_v60, %v436_v56  ;;  %v428_v7 = vld [vmem:[#allocation5 + $0x970] sm:$0xff] }
 0x140   :  { %2959 = vmatpush1.bf16.msra.mxu1 %v12613_v30  ;;  %v12685_v30 = vcombine.low %v336_v14, %v340_v16  ;;  %v416_v11 = vld [vmem:[#allocation5 + $0x910] sm:$0xff]  ;;  %v177_v14 = vld [vmem:[#allocation5 + $0x198] sm:$0xff] }
 0x141   :  { %2916 = vmatpush1.bf16.msra.mxu0 %v12485_v29  ;;  %2960 = vmatprep.subr.bf16.mxu1 %v12606_v32  ;;  %v14783_v29 = vsub.s32 0, %v14780_v18  ;;  %v14785_v32 = vld [vmem:[#allocation7] sm:$0xff]  ;;  %v420_v13 = vld [vmem:[#allocation5 + $0x930] sm:$0xff]  ;;  %v181_v16 = vld [vmem:[#allocation5 + $0x1b8] sm:$0xff] }
 0x142   :  { %2917 = vmatprep.subr.bf16.mxu0 %v12478_v31  ;;  %v12550_v31 = vcombine.high %v200_v23, %v204_v24  ;;  %v400_v35 = vld [vmem:[#allocation5 + $0x890] sm:$0xff] }
 0x143   :  { %v404_v36 = vld [vmem:[#allocation5 + $0x8b0] sm:$0xff] }
 0x144   :  { %2961 = vmatpush1.bf16.msra.mxu1 %v12605_v39  ;;  %v12549_v39 = vcombine.low %v200_v23, %v204_v24  ;;  %v408_v23 = vld [vmem:[#allocation5 + $0x8d0] sm:$0xff] }
 0x145   :  { %2918 = vmatpush1.bf16.msra.mxu0 %v12477_v38  ;;  %2962 = vmatprep.subr.bf16.mxu1 %v12726_v41  ;;  %v324_v38 = vld [vmem:[#allocation5 + $0x630] sm:$0xff]  ;;  %v12677_v41 = vcombine.low %v328_v25, %v332_v26  ;;  %v169_v25 = vld [vmem:[#allocation5 + $0x158] sm:$0xff] }
 0x146   :  { %2919 = vmatprep.subr.bf16.mxu0 %v12598_v40  ;;  %v523_v40 = vrot.slane %v14785_v32, %v14783_v29  ;;  %v12670_v43 = vcombine.high %v320_v37, %v324_v38  ;;  %v12669_v53 = vcombine.low %v320_v37, %v324_v38  ;;  %v412_v24 = vld [vmem:[#allocation5 + $0x8f0] sm:$0xff]  ;;  %v173_v26 = vld [vmem:[#allocation5 + $0x178] sm:$0xff] }
 0x147   :  { %v161_v37 = vld [vmem:[#allocation5 + $0x118] sm:$0xff] }
 0x148   :  { %2963 = vmatpush2.bf16.msra.mxu1 %v12725_v47  ;;  %v512_v47 = vld [vmem:[#allocation5 + $0xc10] sm:$0xff]  ;;  %v165_v38 = vld [vmem:[#allocation5 + $0x138] sm:$0xff] }
 0x149   :  { %2920 = vmatpush2.bf16.msra.mxu0 %v12597_v59  ;;  %2964 = vmatprep.subr.bf16.mxu1 %v12718_v49 }
 0x14a   :  { %2921 = vmatprep.subr.bf16.mxu0 %v12590_v48  ;;  %v516_v48 = vld [vmem:[#allocation5 + $0xc30] sm:$0xff] }
 0x14b   :  { %v12861_v22 = vcombine.low %v512_v47, %v516_v48 }
 0x14c   :  { %2965 = vmatpush2.bf16.msra.mxu1 %v12717_v57 }
 0x14d   :  { %2922 = vmatpush2.bf16.msra.mxu0 %v12589_v54  ;;  %2966 = vmatprep.subr.bf16.mxu1 %v12710_v15  ;;  %v12790_v54 = vcombine.high %v440_v44, %v444_v45  ;;  %v12862_v15 = vcombine.high %v512_v47, %v516_v48  ;;  %v12511_v47 = vcombine.low %v161_v37, %v165_v38 }
 0x14e   :  { %2923 = vmatprep.subr.bf16.mxu0 %v12582_v12 }
 0x150   :  { %2967 = vmatpush2.bf16.msra.mxu1 %v12709_v0 }
 0x151   :  { %2924 = vmatpush2.bf16.msra.mxu0 %v12581_v63  ;;  %2968 = vmatprep.subr.bf16.mxu1 %v12702_v2  ;;  %v189_v63 = vld [vmem:[#allocation5 + $0x1f8] sm:$0xff] }
 0x152   :  { %2925 = vmatprep.subr.bf16.mxu0 %v12574_v1  ;;  %v12789_v1 = vcombine.low %v440_v44, %v444_v45  ;;  %v12536_v5 = vcombine.high %v185_v62, %v189_v63  ;;  %v153_v44 = vld [vmem:[#allocation5 + $0xd8] sm:$0xff] }
 0x153   :  { %v157_v45 = vld [vmem:[#allocation5 + $0xf8] sm:$0xff] }
 0x154   :  { %2969 = vmatpush2.bf16.msra.mxu1 %v12701_v8  ;;  %v14797_v8 = vld [vmem:[#allocation2] ss:$28 sps:$4 sm:$0xff]   ;;  %v12504_v48 = vcombine.high %v153_v44, %v157_v45 }
 0x155   :  { %2926 = vmatpush2.bf16.msra.mxu0 %v12573_v6  ;;  %2970 = vmatprep.subr.bf16.mxu1 %v12694_v10  ;;  %v424_v6 = vld [vmem:[#allocation5 + $0x950] sm:$0xff] }
 0x156   :  { %2927 = vmatprep.subr.bf16.mxu0 %v12566_v9  ;;  %v12781_v9 = vcombine.low %v432_v60, %v436_v56  ;;  %v12774_v10 = vcombine.high %v424_v6, %v428_v7 }
 0x158   :  { %2971 = vmatpush2.bf16.msra.mxu1 %v12693_v19  ;;  %v12773_v19 = vcombine.low %v424_v6, %v428_v7  ;;  %v500_v6 = vld [vmem:[#allocation5 + $0xbb0] sm:$0xff]  ;;  %v129_v7 = vld [vmem:[#allocation5 + $0x18] sm:$0xff] }
 0x159   :  { %2928 = vmatpush2.bf16.msra.mxu0 %v12565_v17  ;;  %2972 = vmatprep.subr.bf16.mxu1 %v12686_v21  ;;  %v14802_v17 = vld [vmem:[#allocation2 + $0x14] ss:$28 sps:$4 sm:$0xff]   ;;  %v12528_v21 = vcombine.high %v177_v14, %v181_v16 }
 0x15a   :  { %2929 = vmatprep.subr.bf16.mxu0 %v12558_v20  ;;  %v12535_v20 = vcombine.low %v185_v62, %v189_v63  ;;  %v508_v62 = vld [vmem:[#allocation5 + $0xbf0] sm:$0xff]  ;;  %v137_v63 = vld [vmem:[#allocation5 + $0x58] sm:$0xff] }
 0x15c   :  { %2973 = vmatpush2.bf16.msra.mxu1 %v12685_v30  ;;  %v12527_v30 = vcombine.low %v177_v14, %v181_v16  ;;  %v488_v16 = vld [vmem:[#allocation5 + $0xb50] sm:$0xff] }
 0x15d   :  { %2930 = vmatpush2.bf16.msra.mxu0 %v12557_v27  ;;  %2974 = vmatprep.subr.bf16.mxu1 %v12678_v33  ;;  %v12765_v27 = vcombine.low %v416_v11, %v420_v13  ;;  %v12520_v33 = vcombine.high %v169_v25, %v173_v26 }
 0x15e   :  { %2931 = vmatprep.subr.bf16.mxu0 %v12550_v31  ;;  %v12758_v31 = vcombine.high %v408_v23, %v412_v24 }
 0x15f   :  { %v2636_v50 = vpop.f32.mrf.mxu1 }
 0x160   :  { %v2593_v59 = vpop.f32.mrf.mxu0  ;;  %2975 = vmatpush2.bf16.msra.mxu1 %v12677_v41  ;;  %v12512_v41 = vcombine.high %v161_v37, %v165_v38  ;;  %v472_v38 = vld [vmem:[#allocation5 + $0xad0] sm:$0xff] }
 0x161   :  { %v2594_v49 = vadd.f32 %v2593_v59, %v523_v40  ;;  %2932 = vmatpush2.bf16.msra.mxu0 %v12549_v39  ;;  %v14793_v12 = vpop.f32.mrf.mxu1  ;;  %2976 = vmatprep.subr.bf16.mxu1 %v12670_v43  ;;  %v12757_v39 = vcombine.low %v408_v23, %v412_v24  ;;  %v396_v43 = vld [vmem:[#allocation5 + $0x870] sm:$0xff]  ;;  %v12749_v59 = vcombine.low %v400_v35, %v404_v36 }
 0x162   :  { %v14789_v52 = vpop.f32.mrf.mxu0  ;;  %2933 = vmatprep.subr.bf16.mxu0 %v12542_v42  ;;  %v392_v42 = vld [vmem:[#allocation5 + $0x850] sm:$0xff] }
 0x163   :  { %v14791_v57 = vadd.f32 %v2636_v50, %v2594_v49  ;;  %v2640_v2 = vpop.f32.mrf.mxu1  ;;  %v384_v49 = vld [vmem:[#allocation5 + $0x810] sm:$0xff] }
 0x164   :  { %v2597_v61 = vpop.f32.mrf.mxu0  ;;  %2977 = vmatpush2.bf16.msra.mxu1 %v12669_v53  ;;  %v388_v50 = vld [vmem:[#allocation5 + $0x830] sm:$0xff]  ;;  %v149_v53 = vld [vmem:[#allocation5 + $0xb8] sm:$0xff] }
 0x165   :  { %v2598_v0 = vadd.f32 %v2597_v61, %v523_v40  ;;  %2934 = vmatpush2.bf16.msra.mxu0 %v12541_v51  ;;  %3046 = vmatprep.subr.bf16.mxu1 %v12862_v15  ;;  %v12519_v40 = vcombine.low %v169_v25, %v173_v26  ;;  %v145_v51 = vld [vmem:[#allocation5 + $0x98] sm:$0xff]  ;;  %v12503_v15 = vcombine.low %v153_v44, %v157_v45  ;;  %v504_v61 = vld [vmem:[#allocation5 + $0xbd0] sm:$0xff] }
 0x166   :  { %2989 = vmatprep.subr.bf16.mxu0 %v12790_v54  ;;  %v12741_v54 = vcombine.low %v392_v42, %v396_v43  ;;  %v12734_v60 = vcombine.high %v384_v49, %v388_v50  ;;  %v12496_v56 = vcombine.high %v145_v51, %v149_v53  ;;  %v480_v26 = vld [vmem:[#allocation5 + $0xb10] sm:$0xff] }
 0x167   :  { %v14795_v4 = vadd.f32 %v2640_v2, %v2598_v0  ;;  %2979 = vmatmul.mubr.bf16.vlgmr.msra.gmra.mxu1 %v14765_v34  ;;  %v12766_v34 = vcombine.high %v416_v11, %v420_v13  ;;  %v141_v0 = vld [vmem:[#allocation5 + $0x78] sm:$0xff]  ;;  %v12495_v2 = vcombine.low %v145_v51, %v149_v53  ;;  %v464_v45 = vld [vmem:[#allocation5 + $0xa90] sm:$0xff] }
 0x168   :  { %2936 = vmatmul.mubr.bf16.vlgmr.msra.gmra.mxu0 %v14797_v8  ;;  %3047 = vmatpush1.bf16.msra.mxu1 %v12861_v22  ;;  %v12854_v22 = vcombine.high %v504_v61, %v508_v62  ;;  %v12487_v11 = vcombine.low %v137_v63, %v141_v0  ;;  %v456_v53 = vld [vmem:[#allocation5 + $0xa50] sm:$0xff] }
 0x169   :  { %2990 = vmatpush1.bf16.msra.mxu0 %v12789_v1  ;;  %3064 = vmatprep.mubr.bf16.mxu1 %v14679_v28  ;;  %v12733_v1 = vcombine.low %v384_v49, %v388_v50 }
 0x16a   :  { %2991 = vmatprep.subr.bf16.mxu0 %v12782_v3  ;;  %3075 = vmatprep.subr.bf16.mxu1 %v12536_v5  ;;  %v12488_v3 = vcombine.high %v137_v63, %v141_v0  ;;  %v496_v5 = vld [vmem:[#allocation5 + $0xb90] sm:$0xff] }
 0x16b   :  { %3021 = vmatprep.mubr.bf16.mxu0 %v14802_v17  ;;  %v12846_v13 = vcombine.high %v496_v5, %v500_v6 }
 0x16d   :  { %2992 = vmatpush1.bf16.msra.mxu0 %v12781_v9  ;;  %v133_v9 = vld [vmem:[#allocation5 + $0x38] sm:$0xff] }
 0x16e   :  { %2993 = vmatprep.subr.bf16.mxu0 %v12774_v10  ;;  %v12853_v10 = vcombine.low %v504_v61, %v508_v62  ;;  %v12480_v14 = vcombine.high %v129_v7, %v133_v9  ;;  %v12479_v23 = vcombine.low %v129_v7, %v133_v9  ;;  %v14808_v61 = vpop.f32.mrf.mxu1 }
 0x16f   :  { %12867 = vmatmul.mubr.msk.bf16.vlgmr.msra.gmra.mxu1 %vm2555_vm0, %v14769_v46  ;;  %v12750_v46 = vcombine.high %v400_v35, %v404_v36 }
 0x170   :  { %3076 = vmatpush1.bf16.msra.mxu1 %v12535_v20  ;;  %3107 = vmatprep.mubr.bf16.mxu1 %v14774_v55  ;;  %v12742_v55 = vcombine.high %v392_v42, %v396_v43  ;;  %v249_v20 = vld [vmem:[#allocation5 + $0x3d8] sm:$0xff]  ;;  %v2722_v7 = vpop.f32.mrf.mxu1 }
 0x171   :  { %2994 = vmatpush1.bf16.msra.mxu0 %v12773_v19  ;;  %3077 = vmatprep.subr.bf16.mxu1 %v12528_v21  ;;  %v492_v19 = vld [vmem:[#allocation5 + $0xb70] sm:$0xff]  ;;  %v12845_v21 = vcombine.low %v496_v5, %v500_v6  ;;  %v14810_v6 = vpop.f32.mrf.mxu0 }
 0x172   :  { %2995 = vmatprep.subr.bf16.mxu0 %v12766_v34  ;;  %v253_v34 = vld [vmem:[#allocation5 + $0x3f8] sm:$0xff]  ;;  %v12838_v24 = vcombine.high %v488_v16, %v492_v19 }
 0x173   :  { %v12600_v25 = vcombine.high %v249_v20, %v253_v34  ;;  %v12599_v35 = vcombine.low %v249_v20, %v253_v34  ;;  %v205_v20 = vld [vmem:[#allocation5 + $0x278] sm:$0xff] }
 0x174   :  { %3078 = vmatpush1.bf16.msra.mxu1 %v12527_v30  ;;  %v241_v30 = vld [vmem:[#allocation5 + $0x398] sm:$0xff] }
 0x175   :  { %2996 = vmatpush1.bf16.msra.mxu0 %v12765_v27  ;;  %3079 = vmatprep.subr.bf16.mxu1 %v12520_v33  ;;  %v484_v27 = vld [vmem:[#allocation5 + $0xb30] sm:$0xff]  ;;  %v12837_v33 = vcombine.low %v488_v16, %v492_v19  ;;  %v201_v19 = vld [vmem:[#allocation5 + $0x258] sm:$0xff] }
 0x176   :  { %2997 = vmatprep.subr.bf16.mxu0 %v12758_v31  ;;  %v245_v31 = vld [vmem:[#allocation5 + $0x3b8] sm:$0xff]  ;;  %v12830_v36 = vcombine.high %v480_v26, %v484_v27 }
 0x177   :  { %v12592_v37 = vcombine.high %v241_v30, %v245_v31  ;;  %v12591_v42 = vcombine.low %v241_v30, %v245_v31  ;;  %v12552_v30 = vcombine.high %v201_v19, %v205_v20  ;;  %v305_v31 = vld [vmem:[#allocation5 + $0x598] sm:$0xff] }
 0x178   :  { %3080 = vmatpush1.bf16.msra.mxu1 %v12519_v40  ;;  %v233_v40 = vld [vmem:[#allocation5 + $0x358] sm:$0xff] }
 0x179   :  { %2998 = vmatpush1.bf16.msra.mxu0 %v12757_v39  ;;  %3081 = vmatprep.subr.bf16.mxu1 %v12512_v41  ;;  %v476_v39 = vld [vmem:[#allocation5 + $0xaf0] sm:$0xff]  ;;  %v12829_v41 = vcombine.low %v480_v26, %v484_v27 }
 0x17a   :  { %2999 = vmatprep.subr.bf16.mxu0 %v12750_v46  ;;  %v237_v46 = vld [vmem:[#allocation5 + $0x378] sm:$0xff]  ;;  %v12822_v43 = vcombine.high %v472_v38, %v476_v39 }
 0x17b   :  { %v12584_v44 = vcombine.high %v233_v40, %v237_v46  ;;  %v12583_v49 = vcombine.low %v233_v40, %v237_v46  ;;  %v12551_v40 = vcombine.low %v201_v19, %v205_v20  ;;  %v277_v19 = vld [vmem:[#allocation5 + $0x4b8] sm:$0xff] }
 0x17c   :  { %3082 = vmatpush1.bf16.msra.mxu1 %v12511_v47  ;;  %v225_v47 = vld [vmem:[#allocation5 + $0x318] sm:$0xff] }
 0x17d   :  { %3000 = vmatpush1.bf16.msra.mxu0 %v12749_v59  ;;  %3083 = vmatprep.subr.bf16.mxu1 %v12504_v48  ;;  %v468_v59 = vld [vmem:[#allocation5 + $0xab0] sm:$0xff]  ;;  %v12821_v48 = vcombine.low %v472_v38, %v476_v39  ;;  %v417_v20 = vld [vmem:[#allocation5 + $0x918] sm:$0xff] }
 0x17e   :  { %3001 = vmatprep.subr.bf16.mxu0 %v12742_v55  ;;  %v229_v55 = vld [vmem:[#allocation5 + $0x338] sm:$0xff]  ;;  %v12814_v50 = vcombine.high %v464_v45, %v468_v59 }
 0x17f   :  { %v12576_v51 = vcombine.high %v225_v47, %v229_v55  ;;  %v12575_v62 = vcombine.low %v225_v47, %v229_v55  ;;  %v445_v47 = vld [vmem:[#allocation5 + $0x9f8] sm:$0xff] }
 0x180   :  { %3084 = vmatpush1.bf16.msra.mxu1 %v12503_v15  ;;  %v217_v15 = vld [vmem:[#allocation5 + $0x2d8] sm:$0xff] }
 0x181   :  { %3002 = vmatpush1.bf16.msra.mxu0 %v12741_v54  ;;  %3085 = vmatprep.subr.bf16.mxu1 %v12496_v56  ;;  %v460_v54 = vld [vmem:[#allocation5 + $0xa70] sm:$0xff]  ;;  %v12813_v56 = vcombine.low %v464_v45, %v468_v59  ;;  %v441_v59 = vld [vmem:[#allocation5 + $0x9d8] sm:$0xff] }
 0x182   :  { %3003 = vmatprep.subr.bf16.mxu0 %v12734_v60  ;;  %v221_v60 = vld [vmem:[#allocation5 + $0x2f8] sm:$0xff]  ;;  %v12806_v63 = vcombine.high %v456_v53, %v460_v54  ;;  %v12805_v5 = vcombine.low %v456_v53, %v460_v54 }
 0x183   :  { %v12568_v0 = vcombine.high %v217_v15, %v221_v60  ;;  %v12567_v9 = vcombine.low %v217_v15, %v221_v60  ;;  %v14818_v45 = vld [vmem:[#allocation2 + $0x10] ss:$28 sps:$4 sm:$0xff]  }
 0x184   :  { %3086 = vmatpush1.bf16.msra.mxu1 %v12495_v2  ;;  %v452_v2 = vld [vmem:[#allocation5 + $0xa30] sm:$0xff]  ;;  %v289_v53 = vld [vmem:[#allocation5 + $0x518] sm:$0xff] }
 0x185   :  { %3004 = vmatpush1.bf16.msra.mxu0 %v12733_v1  ;;  %3087 = vmatprep.subr.bf16.mxu1 %v12488_v3  ;;  %v448_v1 = vld [vmem:[#allocation5 + $0xa10] sm:$0xff]  ;;  %v213_v3 = vld [vmem:[#allocation5 + $0x2b8] sm:$0xff] }
 0x186   :  { %3005 = vmatprep.subr.bf16.mxu0 %v12854_v22  ;;  %v209_v22 = vld [vmem:[#allocation5 + $0x298] sm:$0xff] }
 0x187   :  { %v293_v54 = vld [vmem:[#allocation5 + $0x538] sm:$0xff] }
 0x188   :  { %3088 = vmatpush1.bf16.msra.mxu1 %v12487_v11  ;;  %v12560_v11 = vcombine.high %v209_v22, %v213_v3  ;;  %v433_v15 = vld [vmem:[#allocation5 + $0x998] sm:$0xff] }
 0x189   :  { %3006 = vmatpush2.bf16.msra.mxu0 %v12853_v10  ;;  %3089 = vmatprep.subr.bf16.mxu1 %v12480_v14  ;;  %v12798_v10 = vcombine.high %v448_v1, %v452_v2  ;;  %v317_v14 = vld [vmem:[#allocation5 + $0x5f8] sm:$0xff] }
 0x18a   :  { %3007 = vmatprep.subr.bf16.mxu0 %v12846_v13  ;;  %v313_v13 = vld [vmem:[#allocation5 + $0x5d8] sm:$0xff] }
 0x18b   :  { %v12664_v26 = vcombine.high %v313_v13, %v317_v14  ;;  %v12663_v38 = vcombine.low %v313_v13, %v317_v14  ;;  %v437_v60 = vld [vmem:[#allocation5 + $0x9b8] sm:$0xff] }
 0x18c   :  { %3090 = vmatpush1.bf16.msra.mxu1 %v12479_v23  ;;  %v14813_v23 = vpop.f32.mrf.mxu1 }
 0x18d   :  { %3008 = vmatpush2.bf16.msra.mxu0 %v12845_v21  ;;  %3091 = vmatprep.subr.bf16.mxu1 %v12600_v25  ;;  %v12797_v21 = vcombine.low %v448_v1, %v452_v2  ;;  %v12559_v25 = vcombine.low %v209_v22, %v213_v3  ;;  %v281_v1 = vld [vmem:[#allocation5 + $0x4d8] sm:$0xff] }
 0x18e   :  { %3009 = vmatprep.subr.bf16.mxu0 %v12838_v24  ;;  %v2726_v39 = vpop.f32.mrf.mxu1  ;;  %v285_v2 = vld [vmem:[#allocation5 + $0x4f8] sm:$0xff] }
 0x18f   :  { %v425_v3 = vld [vmem:[#allocation5 + $0x958] sm:$0xff] }
 0x190   :  { %3092 = vmatpush2.bf16.msra.mxu1 %v12599_v35 }
 0x191   :  { %3010 = vmatpush2.bf16.msra.mxu0 %v12837_v33  ;;  %3093 = vmatprep.subr.bf16.mxu1 %v12592_v37  ;;  %v309_v33 = vld [vmem:[#allocation5 + $0x5b8] sm:$0xff] }
 0x192   :  { %3011 = vmatprep.subr.bf16.mxu0 %v12830_v36  ;;  %v193_v36 = vld [vmem:[#allocation5 + $0x218] sm:$0xff]  ;;  %v12656_v46 = vcombine.high %v305_v31, %v309_v33 }
 0x193   :  { %v197_v37 = vld [vmem:[#allocation5 + $0x238] sm:$0xff] }
 0x194   :  { %3094 = vmatpush2.bf16.msra.mxu1 %v12591_v42  ;;  %v12544_v42 = vcombine.high %v193_v36, %v197_v37 }
 0x195   :  { %3012 = vmatpush2.bf16.msra.mxu0 %v12829_v41  ;;  %3095 = vmatprep.subr.bf16.mxu1 %v12584_v44  ;;  %v301_v44 = vld [vmem:[#allocation5 + $0x578] sm:$0xff] }
 0x196   :  { %3013 = vmatprep.subr.bf16.mxu0 %v12822_v43  ;;  %v297_v43 = vld [vmem:[#allocation5 + $0x558] sm:$0xff] }
 0x198   :  { %3096 = vmatpush2.bf16.msra.mxu1 %v12583_v49  ;;  %v12543_v49 = vcombine.low %v193_v36, %v197_v37 }
 0x199   :  { %3014 = vmatpush2.bf16.msra.mxu0 %v12821_v48  ;;  %3097 = vmatprep.subr.bf16.mxu1 %v12576_v51  ;;  %v14825_v48 = vsub.s32 1, %v14780_v18  ;;  %v12792_v51 = vcombine.high %v441_v59, %v445_v47 }
 0x19a   :  { %3015 = vmatprep.subr.bf16.mxu0 %v12814_v50  ;;  %v12648_v50 = vcombine.high %v297_v43, %v301_v44 }
 0x19c   :  { %3098 = vmatpush2.bf16.msra.mxu1 %v12575_v62  ;;  %v527_v62 = vrot.slane %v14785_v32, %v14825_v48 }
 0x19d   :  { %3016 = vmatpush2.bf16.msra.mxu0 %v12813_v56  ;;  %3099 = vmatprep.subr.bf16.mxu1 %v12568_v0  ;;  %v12647_v56 = vcombine.low %v297_v43, %v301_v44  ;;  %v12784_v0 = vcombine.high %v433_v15, %v437_v60 }
 0x19e   :  { %3017 = vmatprep.subr.bf16.mxu0 %v12806_v63  ;;  %v12640_v63 = vcombine.high %v289_v53, %v293_v54  ;;  %v2600_v22 = vadd.f32 %v14810_v6, %v527_v62 }
 0x1a0   :  { %v2679_v16 = vpop.f32.mrf.mxu0  ;;  %3100 = vmatpush2.bf16.msra.mxu1 %v12567_v9  ;;  %v2596_v9 = vadd.f32 %v14789_v52, %v527_v62  ;;  %v2643_v6 = vadd.f32 %v14808_v61, %v2600_v22  ;;  %v2728_v61 = vpop.f32.mrf.mxu1  ;;  %v373_v62 = vld [vmem:[#allocation5 + $0x7b8] sm:$0xff] }
 0x1a1   :  { %v2680_v34 = vadd.f32 %v2679_v16, %v14791_v57  ;;  %3018 = vmatpush2.bf16.msra.mxu0 %v12805_v5  ;;  %3101 = vmatprep.subr.bf16.mxu1 %v12560_v11  ;;  %v429_v5 = vld [vmem:[#allocation5 + $0x978] sm:$0xff]  ;;  %v12632_v11 = vcombine.high %v281_v1, %v285_v2 }
 0x1a2   :  { %v14815_v24 = vpop.f32.mrf.mxu0  ;;  %3019 = vmatprep.subr.bf16.mxu0 %v12798_v10  ;;  %v12783_v10 = vcombine.low %v433_v15, %v437_v60  ;;  %v12776_v14 = vcombine.high %v425_v3, %v429_v5  ;;  %v273_v16 = vld [vmem:[#allocation5 + $0x498] sm:$0xff]  ;;  %v2639_v52 = vadd.f32 %v14793_v12, %v2596_v9 }
 0x1a3   :  { %v2723_v27 = vadd.f32 %v2722_v7, %v2680_v34  ;;  %v12639_v7 = vcombine.low %v289_v53, %v293_v54  ;;  %v421_v34 = vld [vmem:[#allocation5 + $0x938] sm:$0xff]  ;;  %v12623_v36 = vcombine.low %v273_v16, %v277_v19 }
 0x1a4   :  { %v2683_v35 = vpop.f32.mrf.mxu0  ;;  %3102 = vmatpush2.bf16.msra.mxu1 %v12559_v25  ;;  %v509_v9 = vld [vmem:[#allocation5 + $0xbf8] sm:$0xff] }
 0x1a5   :  { %v2684_v57 = vadd.f32 %v2683_v35, %v14795_v4  ;;  %3020 = vmatpush2.bf16.msra.mxu0 %v12797_v21  ;;  %3103 = vmatprep.subr.bf16.mxu1 %v12552_v30  ;;  %v12655_v4 = vcombine.low %v305_v31, %v309_v33  ;;  %v12631_v21 = vcombine.low %v281_v1, %v285_v2  ;;  %v265_v30 = vld [vmem:[#allocation5 + $0x458] sm:$0xff] }
 0x1a6   :  { %3118 = vmatprep.subr.bf16.mxu0 %v12664_v26  ;;  %v2685_v13 = vpop.f32.mrf.mxu0  ;;  %v12624_v26 = vcombine.high %v273_v16, %v277_v19  ;;  %v269_v31 = vld [vmem:[#allocation5 + $0x478] sm:$0xff]  ;;  %v2682_v33 = vadd.f32 %v14815_v24, %v2639_v52 }
 0x1a7   :  { %v2727_v41 = vadd.f32 %v2726_v39, %v2684_v57  ;;  %v2686_v25 = vadd.f32 %v2685_v13, %v2643_v6  ;;  %v413_v35 = vld [vmem:[#allocation5 + $0x8f8] sm:$0xff]  ;;  %v12767_v57 = vcombine.low %v417_v20, %v421_v34  ;;  %v12616_v12 = vcombine.high %v265_v30, %v269_v31 }
 0x1a8   :  { %3022 = vmatmul.mubr.bf16.vlgmr.msra.gmra.mxu0 %v14818_v45  ;;  %3104 = vmatpush2.bf16.msra.mxu1 %v12551_v40  ;;  %v257_v39 = vld [vmem:[#allocation5 + $0x418] sm:$0xff]  ;;  %v12615_v24 = vcombine.low %v265_v30, %v269_v31 }
 0x1a9   :  { %v14821_v55 = vpack.c.bf16 %v2727_v41, %v2723_v27  ;;  %3119 = vmatpush1.bf16.msra.mxu0 %v12663_v38  ;;  %3150 = vmatprep.mubr.bf16.mxu0 %v14777_v58  ;;  %v12791_v58 = vcombine.low %v441_v59, %v445_v47  ;;  %v12768_v27 = vcombine.high %v417_v20, %v421_v34  ;;  %v261_v40 = vld [vmem:[#allocation5 + $0x438] sm:$0xff] }
 0x1aa   :  { %3120 = vmatprep.subr.bf16.mxu0 %v12656_v46  ;;  %3105 = vmatprep.subr.bf16.mxu1 %v12544_v42  ;;  %v2729_v37 = vadd.f32 %v2728_v61, %v2686_v25  ;;  %v2725_v46 = vadd.f32 %v14813_v23, %v2682_v33  ;;  %v401_v41 = vld [vmem:[#allocation5 + $0x898] sm:$0xff]  ;;  %v12608_v59 = vcombine.high %v257_v39, %v261_v40 }
 0x1ab   :  { %v405_v42 = vld [vmem:[#allocation5 + $0x8b8] sm:$0xff]  ;;  %v12607_v53 = vcombine.low %v257_v39, %v261_v40 }
 0x1ac   :  { %3106 = vmatpush2.bf16.msra.mxu1 %v12543_v49  ;;  %v14837_v43 = vpack.c.bf16 %v2729_v37, %v2725_v46  ;;  %v12752_v47 = vcombine.high %v401_v41, %v405_v42  ;;  %v381_v49 = vld [vmem:[#allocation5 + $0x7f8] sm:$0xff]  ;;  %v12751_v54 = vcombine.low %v401_v41, %v405_v42 }
 0x1ad   :  { %3121 = vmatpush1.bf16.msra.mxu0 %v12655_v4  ;;  %3161 = vmatprep.subr.bf16.mxu1 %v12792_v51  ;;  %v377_v4 = vld [vmem:[#allocation5 + $0x7d8] sm:$0xff] }
 0x1ae   :  { %3122 = vmatprep.subr.bf16.mxu0 %v12648_v50  ;;  %v393_v50 = vld [vmem:[#allocation5 + $0x858] sm:$0xff]  ;;  %v12870_v23 = vmul.bf16 3216621497, %v14837_v43  ;;  %v12728_v15 = vcombine.high %v377_v4, %v381_v49 }
 0x1af   :  { %3108 = vmatmul.mubr.bf16.vlgmr.msra.gmra.mxu1 %v14797_v8  ;;  %v12775_v8 = vcombine.low %v425_v3, %v429_v5  ;;  %v397_v51 = vld [vmem:[#allocation5 + $0x878] sm:$0xff] }
 0x1b0   :  { %3162 = vmatpush1.bf16.msra.mxu1 %v12791_v58  ;;  %3193 = vmatprep.mubr.bf16.mxu1 %v14802_v17  ;;  %v409_v17 = vld [vmem:[#allocation5 + $0x8d8] sm:$0xff]  ;;  %v12744_v60 = vcombine.high %v393_v50, %v397_v51  ;;  %14378 = vpow.bf16 %v12870_v23  ;;  %v12743_v1 = vcombine.low %v393_v50, %v397_v51  ;;  %v14840_v50 = vpop.f32.mrf.mxu1 }
 0x1b1   :  { %3123 = vmatpush1.bf16.msra.mxu0 %v12647_v56  ;;  %3163 = vmatprep.subr.bf16.mxu1 %v12784_v0  ;;  %v12760_v38 = vcombine.high %v409_v17, %v413_v35  ;;  %v12759_v44 = vcombine.low %v409_v17, %v413_v35  ;;  %v369_v56 = vld [vmem:[#allocation5 + $0x798] sm:$0xff]  ;;  %v12727_v0 = vcombine.low %v377_v4, %v381_v49 }
 0x1b2   :  { %3124 = vmatprep.subr.bf16.mxu0 %v12640_v63  ;;  %v385_v58 = vld [vmem:[#allocation5 + $0x818] sm:$0xff]  ;;  %v12720_v2 = vcombine.high %v369_v56, %v373_v62 }
 0x1b3   :  { %v389_v63 = vld [vmem:[#allocation5 + $0x838] sm:$0xff] }
 0x1b4   :  { %3164 = vmatpush1.bf16.msra.mxu1 %v12783_v10  ;;  %v12736_v22 = vcombine.high %v385_v58, %v389_v63  ;;  %v361_v3 = vld [vmem:[#allocation5 + $0x758] sm:$0xff]  ;;  %v12719_v10 = vcombine.low %v369_v56, %v373_v62 }
 0x1b5   :  { %3125 = vmatpush1.bf16.msra.mxu0 %v12639_v7  ;;  %3165 = vmatprep.subr.bf16.mxu1 %v12776_v14  ;;  %v365_v5 = vld [vmem:[#allocation5 + $0x778] sm:$0xff] }
 0x1b6   :  { %3126 = vmatprep.subr.bf16.mxu0 %v12632_v11  ;;  %v505_v7 = vld [vmem:[#allocation5 + $0xbd8] sm:$0xff]  ;;  %v12735_v11 = vcombine.low %v385_v58, %v389_v63  ;;  %v12712_v13 = vcombine.high %v361_v3, %v365_v5  ;;  %v12711_v34 = vcombine.low %v361_v3, %v365_v5  ;;  %v2767_v58 = vpop.f32.mrf.mxu1 }
 0x1b7   :  { %v12856_v14 = vcombine.high %v505_v7, %v509_v9  ;;  %v353_v16 = vld [vmem:[#allocation5 + $0x718] sm:$0xff] }
 0x1b8   :  { %3166 = vmatpush1.bf16.msra.mxu1 %v12775_v8  ;;  %v357_v19 = vld [vmem:[#allocation5 + $0x738] sm:$0xff]  ;;  %v12855_v8 = vcombine.low %v505_v7, %v509_v9  ;;  %v14845_v7 = vsub.s32 3, %v14780_v18 }
 0x1b9   :  { %3127 = vmatpush1.bf16.msra.mxu0 %v12631_v21  ;;  %3167 = vmatprep.subr.bf16.mxu1 %v12768_v27  ;;  %v497_v6 = vld [vmem:[#allocation5 + $0xb98] sm:$0xff]  ;;  %v12704_v21 = vcombine.high %v353_v16, %v357_v19  ;;  %v12703_v31 = vcombine.low %v353_v16, %v357_v19  ;;  %v14849_v16 = vld [vmem:[#allocation8 + $0x380] sm:$0xff] }
 0x1ba   :  { %3128 = vmatprep.subr.bf16.mxu0 %v12624_v26  ;;  %v501_v20 = vld [vmem:[#allocation5 + $0xbb8] sm:$0xff]  ;;  %15342 = vst [vmem:[#allocation20_spill] sm:$0xff] %v14845_v7  ;;  %v14851_v19 = vld [vmem:[#allocation8 + $0x3c0] sm:$0xff] }
 0x1bb   :  { %v12848_v52 = vcombine.high %v497_v6, %v501_v20  ;;  %v345_v25 = vld [vmem:[#allocation5 + $0x6d8] sm:$0xff]  ;;  %v12847_v33 = vcombine.low %v497_v6, %v501_v20 }
 0x1bc   :  { %3168 = vmatpush1.bf16.msra.mxu1 %v12767_v57  ;;  %v349_v26 = vld [vmem:[#allocation5 + $0x6f8] sm:$0xff] }
 0x1bd   :  { %3129 = vmatpush1.bf16.msra.mxu0 %v12623_v36  ;;  %3169 = vmatprep.subr.bf16.mxu1 %v12760_v38  ;;  %v489_v27 = vld [vmem:[#allocation5 + $0xb58] sm:$0xff]  ;;  %v12696_v17 = vcombine.high %v345_v25, %v349_v26  ;;  %v12695_v38 = vcombine.low %v345_v25, %v349_v26  ;;  %v12990_v26 = vcombine.high %v14849_v16, %v14851_v19 }
 0x1be   :  { %3130 = vmatprep.subr.bf16.mxu0 %v12616_v12  ;;  %v493_v30 = vld [vmem:[#allocation5 + $0xb78] sm:$0xff]  ;;  %v14379_v37 = vpop.eup %14378 }
 0x1bf   :  { %v12840_v35 = vcombine.high %v489_v27, %v493_v30  ;;  %v337_v61 = vld [vmem:[#allocation5 + $0x698] sm:$0xff]  ;;  %v12839_v39 = vcombine.low %v489_v27, %v493_v30  ;;  %v3288_v46 = vadd.bf16 1065369472, %v14379_v37 }
 0x1c0   :  { %3170 = vmatpush1.bf16.msra.mxu1 %v12759_v44  ;;  %v341_v36 = vld [vmem:[#allocation5 + $0x6b8] sm:$0xff] }
 0x1c1   :  { %3131 = vmatpush1.bf16.msra.mxu0 %v12615_v24  ;;  %3171 = vmatprep.subr.bf16.mxu1 %v12752_v47  ;;  %v481_v57 = vld [vmem:[#allocation5 + $0xb18] sm:$0xff]  ;;  %v12688_v40 = vcombine.high %v337_v61, %v341_v36  ;;  %v12687_v47 = vcombine.low %v337_v61, %v341_v36  ;;  %14380 = vrcp.bf16 %v3288_v46  ;;  %v3415_v46 = vld [vmem:[#allocation8 + $0x300] sm:$0xff] }
 0x1c2   :  { %3132 = vmatprep.subr.bf16.mxu0 %v12608_v59  ;;  %v485_v12 = vld [vmem:[#allocation5 + $0xb38] sm:$0xff] }
 0x1c3   :  { %v12832_v41 = vcombine.high %v481_v57, %v485_v12  ;;  %v329_v42 = vld [vmem:[#allocation5 + $0x658] sm:$0xff]  ;;  %v12831_v4 = vcombine.low %v481_v57, %v485_v12 }
 0x1c4   :  { %3172 = vmatpush1.bf16.msra.mxu1 %v12751_v54  ;;  %v333_v24 = vld [vmem:[#allocation5 + $0x678] sm:$0xff] }
 0x1c5   :  { %3133 = vmatpush1.bf16.msra.mxu0 %v12607_v53  ;;  %3173 = vmatprep.subr.bf16.mxu1 %v12744_v60  ;;  %v473_v44 = vld [vmem:[#allocation5 + $0xad8] sm:$0xff]  ;;  %v12680_v49 = vcombine.high %v329_v42, %v333_v24  ;;  %v12679_v60 = vcombine.low %v329_v42, %v333_v24 }
 0x1c6   :  { %3134 = vmatprep.subr.bf16.mxu0 %v12728_v15  ;;  %v477_v59 = vld [vmem:[#allocation5 + $0xaf8] sm:$0xff] }
 0x1c7   :  { %v12824_v51 = vcombine.high %v473_v44, %v477_v59  ;;  %v321_v53 = vld [vmem:[#allocation5 + $0x618] sm:$0xff]  ;;  %v12823_v56 = vcombine.low %v473_v44, %v477_v59  ;;  %v3423_v59 = vld [vmem:[#allocation8 + $0x340] sm:$0xff] }
 0x1c8   :  { %3174 = vmatpush1.bf16.msra.mxu1 %v12743_v1  ;;  %v325_v23 = vld [vmem:[#allocation5 + $0x638] sm:$0xff] }
 0x1c9   :  { %3135 = vmatpush2.bf16.msra.mxu0 %v12727_v0  ;;  %3175 = vmatprep.subr.bf16.mxu1 %v12736_v22  ;;  %v465_v54 = vld [vmem:[#allocation5 + $0xa98] sm:$0xff]  ;;  %v12672_v62 = vcombine.high %v321_v53, %v325_v23  ;;  %v12671_v5 = vcombine.low %v321_v53, %v325_v23 }
 0x1ca   :  { %3136 = vmatprep.subr.bf16.mxu0 %v12720_v2  ;;  %v469_v15 = vld [vmem:[#allocation5 + $0xab8] sm:$0xff] }
 0x1cb   :  { %v12816_v63 = vcombine.high %v465_v54, %v469_v15  ;;  %v513_v0 = vld [vmem:[#allocation5 + $0xc18] sm:$0xff] }
 0x1cc   :  { %3176 = vmatpush1.bf16.msra.mxu1 %v12735_v11  ;;  %v517_v1 = vld [vmem:[#allocation5 + $0xc38] sm:$0xff] }
 0x1cd   :  { %3137 = vmatpush2.bf16.msra.mxu0 %v12719_v10  ;;  %3177 = vmatprep.subr.bf16.mxu1 %v12856_v14  ;;  %v457_v22 = vld [vmem:[#allocation5 + $0xa58] sm:$0xff]  ;;  %v12815_v10 = vcombine.low %v465_v54, %v469_v15  ;;  %v12864_v11 = vcombine.high %v513_v0, %v517_v1 }
 0x1ce   :  { %3138 = vmatprep.subr.bf16.mxu0 %v12712_v13  ;;  %v461_v3 = vld [vmem:[#allocation5 + $0xa78] sm:$0xff]  ;;  %v14847_v13 = vpop.f32.mrf.mxu1 }
 0x1cf   :  { %v12808_v14 = vcombine.high %v457_v22, %v461_v3  ;;  %v449_v20 = vld [vmem:[#allocation5 + $0xa18] sm:$0xff]  ;;  %v12807_v25 = vcombine.low %v457_v22, %v461_v3  ;;  %v14381_v61 = vpop.eup %14380  ;;  %v3655_v3 = vld [vmem:[#allocation8 + $0xa80] sm:$0xff] }
 0x1d0   :  { %3178 = vmatpush2.bf16.msra.mxu1 %v12855_v8  ;;  %v12863_v8 = vcombine.low %v513_v0, %v517_v1  ;;  %v2771_v27 = vpop.f32.mrf.mxu1  ;;  %v14490_v22 = vld [vmem:[#allocation2 + $0x18] ss:$28 sps:$4 sm:$0xff]  }
 0x1d1   :  { %3139 = vmatpush2.bf16.msra.mxu0 %v12711_v34  ;;  %3179 = vmatprep.subr.bf16.mxu1 %v12848_v52  ;;  %v453_v34 = vld [vmem:[#allocation5 + $0xa38] sm:$0xff] }
 0x1d2   :  { %3140 = vmatprep.subr.bf16.mxu0 %v12704_v21  ;;  %v535_v21 = vrot.slane %v14785_v32, %v14845_v7  ;;  %v12800_v30 = vcombine.high %v449_v20, %v453_v34  ;;  %v12799_v12 = vcombine.low %v449_v20, %v453_v34  ;;  %v3383_v34 = vld [vmem:[#allocation8 + $0x200] sm:$0xff] }
 0x1d4   :  { %3180 = vmatpush2.bf16.msra.mxu1 %v12847_v33  ;;  %v2768_v37 = vadd.f32 %v2767_v58, %v535_v21  ;;  %v2772_v42 = vadd.f32 %v2771_v27, %v535_v21  ;;  %v3399_v58 = vld [vmem:[#allocation8 + $0x280] sm:$0xff] }
 0x1d5   :  { %3141 = vmatpush2.bf16.msra.mxu0 %v12703_v31  ;;  %3181 = vmatprep.subr.bf16.mxu1 %v12840_v35  ;;  %v14489_v31 = vld [vmem:[#allocation2 + $0x8] ss:$28 sps:$4 sm:$0xff]  }
 0x1d6   :  { %3142 = vmatprep.subr.bf16.mxu0 %v12696_v17  ;;  %v3687_v17 = vld [vmem:[#allocation8 + $0xb80] sm:$0xff] }
 0x1d7   :  { %v3695_v35 = vld [vmem:[#allocation8 + $0xbc0] sm:$0xff] }
 0x1d8   :  { %3182 = vmatpush2.bf16.msra.mxu1 %v12839_v39  ;;  %v13245_v23 = vcombine.low %v3687_v17, %v3695_v35  ;;  %v3647_v21 = vld [vmem:[#allocation8 + $0xa40] sm:$0xff] }
 0x1d9   :  { %3143 = vmatpush2.bf16.msra.mxu0 %v12695_v38  ;;  %3183 = vmatprep.subr.bf16.mxu1 %v12832_v41  ;;  %v14865_v38 = vsub.s32 2, %v14780_v18  ;;  %v3298_v41 = vmul.bf16 1065369472, %v14381_v61  ;;  %v3623_v61 = vld [vmem:[#allocation8 + $0x980] sm:$0xff] }
 0x1da   :  { %3144 = vmatprep.subr.bf16.mxu0 %v12688_v40  ;;  %v13246_v40 = vcombine.high %v3687_v17, %v3695_v35  ;;  %v3367_v17 = vld [vmem:[#allocation8 + $0x180] sm:$0xff] }
 0x1db   :  { %15343 = vst [vmem:[#allocation21_spill] sm:$0xff] %v14865_v38  ;;  %v531_v54 = vrot.slane %v14785_v32, %v14865_v38  ;;  %v14872_v0 = vmul.bf16 %v3298_v41, %v14837_v43  ;;  %v12973_v32 = vcombine.low %v3415_v46, %v3423_v59  ;;  %v3375_v35 = vld [vmem:[#allocation8 + $0x1c0] sm:$0xff] }
 0x1dc   :  { %3184 = vmatpush2.bf16.msra.mxu1 %v12831_v4  ;;  %v3679_v4 = vld [vmem:[#allocation8 + $0xb40] sm:$0xff] }
 0x1dd   :  { %3145 = vmatpush2.bf16.msra.mxu0 %v12687_v47  ;;  %3185 = vmatprep.subr.bf16.mxu1 %v12824_v51  ;;  %v3671_v47 = vld [vmem:[#allocation8 + $0xb00] sm:$0xff] }
 0x1de   :  { %3146 = vmatprep.subr.bf16.mxu0 %v12680_v49  ;;  %v12989_v49 = vcombine.low %v14849_v16, %v14851_v19  ;;  %v2766_v16 = vadd.f32 %v14840_v50, %v531_v54  ;;  %v3351_v41 = vld [vmem:[#allocation8 + $0x100] sm:$0xff] }
 0x1e0   :  { %v14842_v2 = vpop.f32.mrf.mxu0  ;;  %3186 = vmatpush2.bf16.msra.mxu1 %v12823_v56  ;;  %v12974_v56 = vcombine.high %v3415_v46, %v3423_v59 }
 0x1e1   :  { %3147 = vmatpush2.bf16.msra.mxu0 %v12679_v60  ;;  %3187 = vmatprep.subr.bf16.mxu1 %v12816_v63  ;;  %v3407_v63 = vld [vmem:[#allocation8 + $0x2c0] sm:$0xff] }
 0x1e2   :  { %v2810_v9 = vpop.f32.mrf.mxu0  ;;  %3148 = vmatprep.subr.bf16.mxu0 %v12672_v62  ;;  %v13230_v62 = vcombine.high %v3671_v47, %v3679_v4  ;;  %v12958_v43 = vcombine.high %v3399_v58, %v3407_v63 }
 0x1e3   :  { %v2811_v24 = vadd.f32 %v2810_v9, %v2768_v37  ;;  %v2770_v9 = vadd.f32 %v14847_v13, %v531_v54  ;;  %v3391_v13 = vld [vmem:[#allocation8 + $0x240] sm:$0xff] }
 0x1e4   :  { %v14853_v6 = vpop.f32.mrf.mxu0  ;;  %3188 = vmatpush2.bf16.msra.mxu1 %v12815_v10  ;;  %v13229_v10 = vcombine.low %v3671_v47, %v3679_v4  ;;  %v3631_v37 = vld [vmem:[#allocation8 + $0x9c0] sm:$0xff]  ;;  %v12925_v47 = vcombine.low %v3367_v17, %v3375_v35 }
 0x1e5   :  { %3149 = vmatpush2.bf16.msra.mxu0 %v12671_v5  ;;  %3189 = vmatprep.subr.bf16.mxu1 %v12808_v14  ;;  %v3663_v5 = vld [vmem:[#allocation8 + $0xac0] sm:$0xff]  ;;  %v2813_v19 = vadd.f32 %v14853_v6, %v2770_v9  ;;  %v12942_v6 = vcombine.high %v3383_v34, %v3391_v13  ;;  %v13182_v46 = vcombine.high %v3623_v61, %v3631_v37 }
 0x1e6   :  { %v2814_v52 = vpop.f32.mrf.mxu0  ;;  %3218 = vmatprep.subr.bf16.mxu0 %v12864_v11  ;;  %v13214_v20 = vcombine.high %v3655_v3, %v3663_v5  ;;  %v13213_v50 = vcombine.low %v3655_v3, %v3663_v5 }
 0x1e7   :  { %v14861_v36 = vpop.f32.mrf.mxu1  ;;  %v2815_v51 = vadd.f32 %v2814_v52, %v2772_v42  ;;  %v2809_v52 = vadd.f32 %v14842_v2, %v2766_v16  ;;  %v12941_v2 = vcombine.low %v3383_v34, %v3391_v13  ;;  %v3607_v42 = vld [vmem:[#allocation8 + $0x900] sm:$0xff] }
 0x1e8   :  { %3151 = vmatmul.mubr.bf16.vlgmr.msra.gmra.mxu0 %v14489_v31  ;;  %v14859_v33 = vpop.f32.mrf.mxu0  ;;  %3190 = vmatpush2.bf16.msra.mxu1 %v12807_v25  ;;  %v3815_v16 = vld [vmem:[#allocation8 + $0xf80] sm:$0xff] }
 0x1e9   :  { %3219 = vmatpush1.bf16.msra.mxu0 %v12863_v8  ;;  %3236 = vmatprep.mubr.bf16.mxu0 %v14679_v28  ;;  %v2853_v39 = vpop.f32.mrf.mxu1 }
 0x1ea   :  { %v2896_v57 = vpop.f32.mrf.mxu0  ;;  %9547 = vmatprep.subr.bf16.mxu0 %v12990_v26  ;;  %3191 = vmatprep.subr.bf16.mxu1 %v12800_v30  ;;  %v2854_v53 = vadd.f32 %v2853_v39, %v2811_v24  ;;  %v12957_v26 = vcombine.low %v3399_v58, %v3407_v63  ;;  %v2852_v30 = vadd.f32 %v14861_v36, %v2809_v52  ;;  %v3359_v36 = vld [vmem:[#allocation8 + $0x140] sm:$0xff] }
 0x1eb   :  { %v2855_v28 = vpop.f32.mrf.mxu1  ;;  %v12926_v39 = vcombine.high %v3367_v17, %v3375_v35  ;;  %v3615_v24 = vld [vmem:[#allocation8 + $0x940] sm:$0xff]  ;;  %v12910_v4 = vcombine.high %v3351_v41, %v3359_v36 }
 0x1ec   :  { %v2898_v44 = vpop.f32.mrf.mxu0  ;;  %3192 = vmatpush2.bf16.msra.mxu1 %v12799_v12  ;;  %v2897_v11 = vadd.f32 %v2896_v57, %v2854_v53  ;;  %v2856_v25 = vadd.f32 %v2855_v28, %v2813_v19  ;;  %v13166_v28 = vcombine.high %v3607_v42, %v3615_v24  ;;  %v3591_v53 = vld [vmem:[#allocation8 + $0x880] sm:$0xff] }
 0x1ed   :  { %v2857_v15 = vpop.f32.mrf.mxu1  ;;  %9590 = vmatprep.subr.bf16.mxu1 %v13246_v40  ;;  %v2895_v40 = vadd.f32 %v14859_v33, %v2852_v30  ;;  %v12869_v33 = vmul.bf16 3216621497, %v14821_v55  ;;  %v3319_v58 = vld [vmem:[#allocation8] sm:$0xff] }
 0x1ee   :  { %v2900_v60 = vpop.f32.mrf.mxu0  ;;  %v2858_v1 = vadd.f32 %v2857_v15, %v2815_v51  ;;  %v2899_v57 = vadd.f32 %v2898_v44, %v2856_v25  ;;  %v13181_v44 = vcombine.low %v3623_v61, %v3631_v37  ;;  %v3343_v51 = vld [vmem:[#allocation8 + $0xc0] sm:$0xff]  ;;  %v12909_v15 = vcombine.low %v3351_v41, %v3359_v36 }
 0x1ef   :  { %3194 = vmatmul.mubr.bf16.vlgmr.msra.gmra.mxu1 %v14818_v45  ;;  %v3639_v45 = vld [vmem:[#allocation8 + $0xa00] sm:$0xff] }
 0x1f0   :  { %12868 = vmatmul.mubr.msk.bf16.vlgmr.msra.gmra.mxu0 %vm2555_vm0, %v14490_v22  ;;  %v2901_v14 = vadd.f32 %v2900_v60, %v2858_v1  ;;  %9591 = vmatpush1.bf16.msra.mxu1 %v13245_v23  ;;  %v13198_v31 = vcombine.high %v3639_v45, %v3647_v21  ;;  %v13197_v12 = vcombine.low %v3639_v45, %v3647_v21  ;;  %v3599_v23 = vld [vmem:[#allocation8 + $0x8c0] sm:$0xff] }
 0x1f1   :  { %9548 = vmatpush1.bf16.msra.mxu0 %v12989_v49  ;;  %9579 = vmatprep.mubr.bf16.mxu0 %v14872_v0  ;;  %v14886_v59 = vpack.c.bf16 %v2899_v57, %v2895_v40  ;;  %v3335_v49 = vld [vmem:[#allocation8 + $0x80] sm:$0xff]  ;;  %v13165_v60 = vcombine.low %v3607_v42, %v3615_v24  ;;  %v13149_v9 = vcombine.low %v3591_v53, %v3599_v23 }
 0x1f2   :  { %9549 = vmatprep.subr.bf16.mxu0 %v12974_v56  ;;  %9592 = vmatprep.subr.bf16.mxu1 %v13230_v62  ;;  %v14880_v8 = vpack.c.bf16 %v2901_v14, %v2897_v11  ;;  %v12894_v56 = vcombine.high %v3335_v49, %v3343_v51  ;;  %v13150_v62 = vcombine.high %v3591_v53, %v3599_v23  ;;  %v3327_v63 = vld [vmem:[#allocation8 + $0x40] sm:$0xff] }
 0x1f3   :  { %v12871_v54 = vmul.bf16 3216621497, %v14886_v59  ;;  %v3575_v1 = vld [vmem:[#allocation8 + $0x800] sm:$0xff]  ;;  %v12893_v3 = vcombine.low %v3335_v49, %v3343_v51 }
 0x1f4   :  { %v12872_v27 = vmul.bf16 3216621497, %v14880_v8  ;;  %9593 = vmatpush1.bf16.msra.mxu1 %v13229_v10  ;;  %v3583_v22 = vld [vmem:[#allocation8 + $0x840] sm:$0xff] }
 0x1f5   :  { %9550 = vmatpush1.bf16.msra.mxu0 %v12973_v32  ;;  %9594 = vmatprep.subr.bf16.mxu1 %v13214_v20  ;;  %v12878_v32 = vcombine.high %v3319_v58, %v3327_v63  ;;  %v13134_v11 = vcombine.high %v3575_v1, %v3583_v22  ;;  %v3559_v14 = vld [vmem:[#allocation8 + $0x780] sm:$0xff]  ;;  %v12877_v20 = vcombine.low %v3319_v58, %v3327_v63 }
 0x1f6   :  { %9551 = vmatprep.subr.bf16.mxu0 %v12958_v43  ;;  %14382 = vpow.bf16 %v12872_v27  ;;  %v3567_v43 = vld [vmem:[#allocation8 + $0x7c0] sm:$0xff]  ;;  %v13133_v34 = vcombine.low %v3575_v1, %v3583_v22 }
 0x1f7   :  { %14384 = vpow.bf16 %v12869_v33  ;;  %v3823_v19 = vld [vmem:[#allocation8 + $0xfc0] sm:$0xff]  ;;  %v13118_v13 = vcombine.high %v3559_v14, %v3567_v43  ;;  %v13117_v27 = vcombine.low %v3559_v14, %v3567_v43 }
 0x1f8   :  { %9595 = vmatpush1.bf16.msra.mxu1 %v13213_v50  ;;  %14386 = vpow.bf16 %v12871_v54  ;;  %v13374_v45 = vcombine.high %v3815_v16, %v3823_v19  ;;  %v3543_v21 = vld [vmem:[#allocation8 + $0x700] sm:$0xff]  ;;  %v13373_v50 = vcombine.low %v3815_v16, %v3823_v19 }
 0x1f9   :  { %9552 = vmatpush1.bf16.msra.mxu0 %v12957_v26  ;;  %9596 = vmatprep.subr.bf16.mxu1 %v13198_v31  ;;  %v3551_v52 = vld [vmem:[#allocation8 + $0x740] sm:$0xff] }
 0x1fa   :  { %9553 = vmatprep.subr.bf16.mxu0 %v12942_v6  ;;  %v3799_v25 = vld [vmem:[#allocation8 + $0xf00] sm:$0xff]  ;;  %v13102_v6 = vcombine.high %v3543_v21, %v3551_v52  ;;  %v13101_v37 = vcombine.low %v3543_v21, %v3551_v52 }
 0x1fb   :  { %v3807_v26 = vld [vmem:[#allocation8 + $0xf40] sm:$0xff] }
 0x1fc   :  { %9597 = vmatpush1.bf16.msra.mxu1 %v13197_v12  ;;  %v13358_v30 = vcombine.high %v3799_v25, %v3807_v26  ;;  %v3527_v31 = vld [vmem:[#allocation8 + $0x680] sm:$0xff] }
 0x1fd   :  { %9554 = vmatpush1.bf16.msra.mxu0 %v12941_v2  ;;  %9598 = vmatprep.subr.bf16.mxu1 %v13182_v46  ;;  %v3535_v17 = vld [vmem:[#allocation8 + $0x6c0] sm:$0xff]  ;;  %v13357_v2 = vcombine.low %v3799_v25, %v3807_v26 }
 0x1fe   :  { %9555 = vmatprep.subr.bf16.mxu0 %v12926_v39  ;;  %v3783_v35 = vld [vmem:[#allocation8 + $0xe80] sm:$0xff]  ;;  %v13086_v12 = vcombine.high %v3527_v31, %v3535_v17 }
 0x1ff   :  { %v3791_v61 = vld [vmem:[#allocation8 + $0xec0] sm:$0xff] }
 0x200   :  { %9599 = vmatpush1.bf16.msra.mxu1 %v13181_v44  ;;  %v13342_v40 = vcombine.high %v3783_v35, %v3791_v61  ;;  %v3511_v46 = vld [vmem:[#allocation8 + $0x600] sm:$0xff] }
 0x201   :  { %9556 = vmatpush1.bf16.msra.mxu0 %v12925_v47  ;;  %9600 = vmatprep.subr.bf16.mxu1 %v13166_v28  ;;  %v3519_v41 = vld [vmem:[#allocation8 + $0x640] sm:$0xff]  ;;  %v13085_v47 = vcombine.low %v3527_v31, %v3535_v17 }
 0x202   :  { %9557 = vmatprep.subr.bf16.mxu0 %v12910_v4  ;;  %v3767_v36 = vld [vmem:[#allocation8 + $0xe00] sm:$0xff]  ;;  %v13341_v4 = vcombine.low %v3783_v35, %v3791_v61  ;;  %v13070_v28 = vcombine.high %v3511_v46, %v3519_v41 }
 0x203   :  { %v3775_v42 = vld [vmem:[#allocation8 + $0xe40] sm:$0xff] }
 0x204   :  { %v14383_v5 = vpop.eup %14382  ;;  %9601 = vmatpush1.bf16.msra.mxu1 %v13165_v60  ;;  %v13326_v51 = vcombine.high %v3767_v36, %v3775_v42  ;;  %v3495_v33 = vld [vmem:[#allocation8 + $0x580] sm:$0xff]  ;;  %v13069_v60 = vcombine.low %v3511_v46, %v3519_v41 }
 0x205   :  { %9558 = vmatpush1.bf16.msra.mxu0 %v12909_v15  ;;  %v3290_v10 = vadd.bf16 1065369472, %v14383_v5  ;;  %9602 = vmatprep.subr.bf16.mxu1 %v13150_v62  ;;  %v14385_v57 = vpop.eup %14384  ;;  %v3503_v53 = vld [vmem:[#allocation8 + $0x5c0] sm:$0xff]  ;;  %v13325_v62 = vcombine.low %v3767_v36, %v3775_v42 }
 0x206   :  { %9559 = vmatprep.subr.bf16.mxu0 %v12894_v56  ;;  %v14387_v39 = vpop.eup %14386  ;;  %v3287_v24 = vadd.bf16 1065369472, %v14385_v57  ;;  %v3751_v54 = vld [vmem:[#allocation8 + $0xd80] sm:$0xff]  ;;  %v13054_v58 = vcombine.high %v3495_v33, %v3503_v53 }
 0x207   :  { %14388 = vrcp.bf16 %v3290_v10  ;;  %v3289_v44 = vadd.bf16 1065369472, %v14387_v39  ;;  %v3759_v15 = vld [vmem:[#allocation8 + $0xdc0] sm:$0xff] }
 0x208   :  { %9603 = vmatpush1.bf16.msra.mxu1 %v13149_v9  ;;  %14390 = vrcp.bf16 %v3287_v24  ;;  %v13310_v63 = vcombine.high %v3751_v54, %v3759_v15  ;;  %v3479_v1 = vld [vmem:[#allocation8 + $0x500] sm:$0xff]  ;;  %v13053_v9 = vcombine.low %v3495_v33, %v3503_v53 }
 0x209   :  { %9560 = vmatpush1.bf16.msra.mxu0 %v12893_v3  ;;  %9604 = vmatprep.subr.bf16.mxu1 %v13134_v11  ;;  %14392 = vrcp.bf16 %v3289_v44  ;;  %v3487_v22 = vld [vmem:[#allocation8 + $0x540] sm:$0xff] }
 0x20a   :  { %9561 = vmatprep.subr.bf16.mxu0 %v12878_v32  ;;  %v3735_v3 = vld [vmem:[#allocation8 + $0xd00] sm:$0xff]  ;;  %v13309_v32 = vcombine.low %v3751_v54, %v3759_v15  ;;  %v13038_v10 = vcombine.high %v3479_v1, %v3487_v22  ;;  %v13037_v19 = vcombine.low %v3479_v1, %v3487_v22 }
 0x20b   :  { %v3743_v5 = vld [vmem:[#allocation8 + $0xd40] sm:$0xff] }
 0x20c   :  { %9605 = vmatpush1.bf16.msra.mxu1 %v13133_v34  ;;  %v3463_v11 = vld [vmem:[#allocation8 + $0x480] sm:$0xff] }
 0x20d   :  { %9562 = vmatpush1.bf16.msra.mxu0 %v12877_v20  ;;  %9606 = vmatprep.subr.bf16.mxu1 %v13374_v45  ;;  %v3471_v14 = vld [vmem:[#allocation8 + $0x4c0] sm:$0xff]  ;;  %v13293_v20 = vcombine.low %v3735_v3, %v3743_v5 }
 0x20e   :  { %9563 = vmatprep.subr.bf16.mxu0 %v13118_v13  ;;  %v3719_v43 = vld [vmem:[#allocation8 + $0xc80] sm:$0xff]  ;;  %v13022_v34 = vcombine.high %v3463_v11, %v3471_v14  ;;  %v13021_v26 = vcombine.low %v3463_v11, %v3471_v14 }
 0x20f   :  { %v3727_v16 = vld [vmem:[#allocation8 + $0xcc0] sm:$0xff] }
 0x210   :  { %9607 = vmatpush2.bf16.msra.mxu1 %v13373_v50  ;;  %v13278_v13 = vcombine.high %v3719_v43, %v3727_v16  ;;  %v3447_v45 = vld [vmem:[#allocation8 + $0x400] sm:$0xff] }
 0x211   :  { %9564 = vmatpush2.bf16.msra.mxu0 %v13117_v27  ;;  %9608 = vmatprep.subr.bf16.mxu1 %v13358_v30  ;;  %v3455_v21 = vld [vmem:[#allocation8 + $0x440] sm:$0xff]  ;;  %v13277_v27 = vcombine.low %v3719_v43, %v3727_v16 }
 0x212   :  { %9565 = vmatprep.subr.bf16.mxu0 %v13102_v6  ;;  %v3703_v52 = vld [vmem:[#allocation8 + $0xc00] sm:$0xff]  ;;  %v13006_v50 = vcombine.high %v3447_v45, %v3455_v21  ;;  %v13005_v57 = vcombine.low %v3447_v45, %v3455_v21 }
 0x213   :  { %v3711_v25 = vld [vmem:[#allocation8 + $0xc40] sm:$0xff] }
 0x214   :  { %9609 = vmatpush2.bf16.msra.mxu1 %v13357_v2  ;;  %v13262_v30 = vcombine.high %v3703_v52, %v3711_v25  ;;  %v3943_v31 = vld [vmem:[#allocation8 + $0x1380] sm:$0xff] }
 0x215   :  { %9566 = vmatpush2.bf16.msra.mxu0 %v13101_v37  ;;  %v14389_v49 = vpop.eup %14388  ;;  %9610 = vmatprep.subr.bf16.mxu1 %v13342_v40  ;;  %v3951_v17 = vld [vmem:[#allocation8 + $0x13c0] sm:$0xff] }
 0x216   :  { %9567 = vmatprep.subr.bf16.mxu0 %v13086_v12  ;;  %v3302_v23 = vmul.bf16 1065369472, %v14389_v49  ;;  %v14391_v6 = vpop.eup %14390  ;;  %v4199_v61 = vld [vmem:[#allocation8 + $0x1b80] sm:$0xff]  ;;  %v13261_v12 = vcombine.low %v3703_v52, %v3711_v25  ;;  %v13502_v39 = vcombine.high %v3943_v31, %v3951_v17 }
 0x217   :  { %v14393_v35 = vpop.eup %14392  ;;  %v4207_v37 = vld [vmem:[#allocation8 + $0x1bc0] sm:$0xff]  ;;  %v3296_v2 = vmul.bf16 1065369472, %v14391_v6 }
 0x218   :  { %v14891_v56 = vmul.bf16 %v3302_v23, %v14880_v8  ;;  %9611 = vmatpush2.bf16.msra.mxu1 %v13341_v4  ;;  %v13294_v8 = vcombine.high %v3735_v3, %v3743_v5  ;;  %v3300_v40 = vmul.bf16 1065369472, %v14393_v35  ;;  %v3927_v46 = vld [vmem:[#allocation8 + $0x1300] sm:$0xff]  ;;  %v13758_v36 = vcombine.high %v4199_v61, %v4207_v37 }
 0x219   :  { %9568 = vmatpush2.bf16.msra.mxu0 %v13085_v47  ;;  %9612 = vmatprep.subr.bf16.mxu1 %v13326_v51  ;;  %v3935_v41 = vld [vmem:[#allocation8 + $0x1340] sm:$0xff]  ;;  %v13501_v47 = vcombine.low %v3943_v31, %v3951_v17  ;;  %v14895_v44 = vmul.bf16 %v3296_v2, %v14821_v55 }
 0x21a   :  { %9569 = vmatprep.subr.bf16.mxu0 %v13070_v28  ;;  %9622 = vmatprep.mubr.bf16.mxu1 %v14891_v56  ;;  %v4183_v42 = vld [vmem:[#allocation8 + $0x1b00] sm:$0xff]  ;;  %v13486_v4 = vcombine.high %v3927_v46, %v3935_v41  ;;  %v13757_v28 = vcombine.low %v4199_v61, %v4207_v37  ;;  %v14898_v49 = vmul.bf16 %v3300_v40, %v14886_v59 }
 0x21b   :  { %v4191_v24 = vld [vmem:[#allocation8 + $0x1b40] sm:$0xff]  ;;  %v13485_v55 = vcombine.low %v3927_v46, %v3935_v41 }
 0x21c   :  { %9613 = vmatpush2.bf16.msra.mxu1 %v13325_v62  ;;  %v3911_v51 = vld [vmem:[#allocation8 + $0x1280] sm:$0xff]  ;;  %v13742_v53 = vcombine.high %v4183_v42, %v4191_v24 }
 0x21d   :  { %9570 = vmatpush2.bf16.msra.mxu0 %v13069_v60  ;;  %9614 = vmatprep.subr.bf16.mxu1 %v13310_v63  ;;  %v3919_v33 = vld [vmem:[#allocation8 + $0x12c0] sm:$0xff]  ;;  %v13741_v60 = vcombine.low %v4183_v42, %v4191_v24 }
 0x21e   :  { %9571 = vmatprep.subr.bf16.mxu0 %v13054_v58  ;;  %v4167_v23 = vld [vmem:[#allocation8 + $0x1a80] sm:$0xff]  ;;  %v13470_v15 = vcombine.high %v3911_v51, %v3919_v33  ;;  %v13469_v22 = vcombine.low %v3911_v51, %v3919_v33 }
 0x21f   :  { %v4175_v54 = vld [vmem:[#allocation8 + $0x1ac0] sm:$0xff] }
 0x220   :  { %9615 = vmatpush2.bf16.msra.mxu1 %v13309_v32  ;;  %v3895_v62 = vld [vmem:[#allocation8 + $0x1200] sm:$0xff]  ;;  %v13726_v59 = vcombine.high %v4167_v23, %v4175_v54  ;;  %v13725_v5 = vcombine.low %v4167_v23, %v4175_v54 }
 0x221   :  { %9572 = vmatpush2.bf16.msra.mxu0 %v13053_v9  ;;  %9616 = vmatprep.subr.bf16.mxu1 %v13294_v8  ;;  %v3903_v58 = vld [vmem:[#allocation8 + $0x1240] sm:$0xff] }
 0x222   :  { %9573 = vmatprep.subr.bf16.mxu0 %v13038_v10  ;;  %v4151_v63 = vld [vmem:[#allocation8 + $0x1a00] sm:$0xff]  ;;  %v13454_v3 = vcombine.high %v3895_v62, %v3903_v58  ;;  %v13453_v14 = vcombine.low %v3895_v62, %v3903_v58 }
 0x223   :  { %v4159_v1 = vld [vmem:[#allocation8 + $0x1a40] sm:$0xff] }
 0x224   :  { %9617 = vmatpush2.bf16.msra.mxu1 %v13293_v20  ;;  %v3879_v9 = vld [vmem:[#allocation8 + $0x1180] sm:$0xff]  ;;  %v13710_v10 = vcombine.high %v4151_v63, %v4159_v1  ;;  %v13709_v16 = vcombine.low %v4151_v63, %v4159_v1 }
 0x225   :  { %9574 = vmatpush2.bf16.msra.mxu0 %v13037_v19  ;;  %9618 = vmatprep.subr.bf16.mxu1 %v13278_v13  ;;  %v3887_v32 = vld [vmem:[#allocation8 + $0x11c0] sm:$0xff] }
 0x226   :  { %9575 = vmatprep.subr.bf16.mxu0 %v13022_v34  ;;  %v4135_v8 = vld [vmem:[#allocation8 + $0x1980] sm:$0xff]  ;;  %v13438_v43 = vcombine.high %v3879_v9, %v3887_v32  ;;  %v13437_v21 = vcombine.low %v3879_v9, %v3887_v32 }
 0x227   :  { %v4143_v11 = vld [vmem:[#allocation8 + $0x19c0] sm:$0xff] }
 0x228   :  { %9619 = vmatpush2.bf16.msra.mxu1 %v13277_v27  ;;  %v3863_v19 = vld [vmem:[#allocation8 + $0x1100] sm:$0xff]  ;;  %v13694_v34 = vcombine.high %v4135_v8, %v4143_v11  ;;  %v13693_v25 = vcombine.low %v4135_v8, %v4143_v11  ;;  %v14902_v11 = vpop.f32.mrf.mxu1 }
 0x229   :  { %9576 = vmatpush2.bf16.msra.mxu0 %v13021_v26  ;;  %9620 = vmatprep.subr.bf16.mxu1 %v13262_v30  ;;  %v3871_v20 = vld [vmem:[#allocation8 + $0x1140] sm:$0xff] }
 0x22a   :  { %9577 = vmatprep.subr.bf16.mxu0 %v13006_v50  ;;  %v4119_v13 = vld [vmem:[#allocation8 + $0x1900] sm:$0xff]  ;;  %v13422_v52 = vcombine.high %v3863_v19, %v3871_v20  ;;  %v13421_v31 = vcombine.low %v3863_v19, %v3871_v20 }
 0x22b   :  { %v4127_v45 = vld [vmem:[#allocation8 + $0x1940] sm:$0xff] }
 0x22c   :  { %9621 = vmatpush2.bf16.msra.mxu1 %v13261_v12  ;;  %v3847_v26 = vld [vmem:[#allocation8 + $0x1080] sm:$0xff]  ;;  %v13678_v50 = vcombine.high %v4119_v13, %v4127_v45  ;;  %v13677_v35 = vcombine.low %v4119_v13, %v4127_v45 }
 0x22d   :  { %9578 = vmatpush2.bf16.msra.mxu0 %v13005_v57  ;;  %9676 = vmatprep.subr.bf16.mxu1 %v13758_v36  ;;  %v3855_v27 = vld [vmem:[#allocation8 + $0x10c0] sm:$0xff] }
 0x22e   :  { %9633 = vmatprep.subr.bf16.mxu0 %v13502_v39  ;;  %v4103_v6 = vld [vmem:[#allocation8 + $0x1880] sm:$0xff]  ;;  %v13406_v17 = vcombine.high %v3847_v26, %v3855_v27  ;;  %v13405_v39 = vcombine.low %v3847_v26, %v3855_v27  ;;  %v2937_v27 = vpop.f32.mrf.mxu0 }
 0x22f   :  { %9623 = vmatmul.mubr.bf16.vlgmr.msra.gmra.mxu1 %v14898_v49  ;;  %v4111_v30 = vld [vmem:[#allocation8 + $0x18c0] sm:$0xff] }
 0x230   :  { %9580 = vmatmul.mubr.bf16.vlgmr.msra.gmra.mxu0 %v14895_v44  ;;  %9677 = vmatpush1.bf16.msra.mxu1 %v13757_v28  ;;  %v3831_v61 = vld [vmem:[#allocation8 + $0x1000] sm:$0xff]  ;;  %v13662_v57 = vcombine.high %v4103_v6, %v4111_v30  ;;  %v13661_v46 = vcombine.low %v4103_v6, %v4111_v30 }
 0x231   :  { %9634 = vmatpush1.bf16.msra.mxu0 %v13501_v47  ;;  %9678 = vmatprep.subr.bf16.mxu1 %v13742_v53  ;;  %v3839_v37 = vld [vmem:[#allocation8 + $0x1040] sm:$0xff] }
 0x232   :  { %9635 = vmatprep.subr.bf16.mxu0 %v13486_v4  ;;  %v4087_v2 = vld [vmem:[#allocation8 + $0x1800] sm:$0xff]  ;;  %v13390_v40 = vcombine.high %v3831_v61, %v3839_v37  ;;  %v13389_v4 = vcombine.low %v3831_v61, %v3839_v37 }
 0x233   :  { %v4095_v12 = vld [vmem:[#allocation8 + $0x1840] sm:$0xff] }
 0x234   :  { %9679 = vmatpush1.bf16.msra.mxu1 %v13741_v60  ;;  %v4071_v41 = vld [vmem:[#allocation8 + $0x1780] sm:$0xff]  ;;  %v13646_v42 = vcombine.high %v4087_v2, %v4095_v12  ;;  %v13645_v51 = vcombine.low %v4087_v2, %v4095_v12  ;;  %v2939_v12 = vpop.f32.mrf.mxu0 }
 0x235   :  { %9636 = vmatpush1.bf16.msra.mxu0 %v13485_v55  ;;  %9680 = vmatprep.subr.bf16.mxu1 %v13726_v59  ;;  %v4079_v36 = vld [vmem:[#allocation8 + $0x17c0] sm:$0xff] }
 0x236   :  { %9637 = vmatprep.subr.bf16.mxu0 %v13470_v15  ;;  %v4327_v24 = vld [vmem:[#allocation8 + $0x1f80] sm:$0xff]  ;;  %v13630_v28 = vcombine.high %v4071_v41, %v4079_v36  ;;  %v13629_v15 = vcombine.low %v4071_v41, %v4079_v36 }
 0x237   :  { %v4335_v47 = vld [vmem:[#allocation8 + $0x1fc0] sm:$0xff] }
 0x238   :  { %9681 = vmatpush1.bf16.msra.mxu1 %v13725_v5  ;;  %v4055_v33 = vld [vmem:[#allocation8 + $0x1700] sm:$0xff]  ;;  %v13886_v23 = vcombine.high %v4327_v24, %v4335_v47  ;;  %v13885_v62 = vcombine.low %v4327_v24, %v4335_v47 }
 0x239   :  { %9638 = vmatpush1.bf16.msra.mxu0 %v13469_v22  ;;  %9682 = vmatprep.subr.bf16.mxu1 %v13710_v10  ;;  %v4063_v53 = vld [vmem:[#allocation8 + $0x1740] sm:$0xff] }
 0x23a   :  { %9639 = vmatprep.subr.bf16.mxu0 %v13454_v3  ;;  %v4311_v54 = vld [vmem:[#allocation8 + $0x1f00] sm:$0xff]  ;;  %v13614_v60 = vcombine.high %v4055_v33, %v4063_v53  ;;  %v13613_v3 = vcombine.low %v4055_v33, %v4063_v53  ;;  %v14918_v53 = vld [vmem:[#allocation8 + $0xb88] sm:$0xff] }
 0x23b   :  { %v4319_v55 = vld [vmem:[#allocation8 + $0x1f40] sm:$0xff] }
 0x23c   :  { %9683 = vmatpush1.bf16.msra.mxu1 %v13709_v16  ;;  %v4039_v58 = vld [vmem:[#allocation8 + $0x1680] sm:$0xff]  ;;  %v13870_v63 = vcombine.high %v4311_v54, %v4319_v55  ;;  %v13869_v9 = vcombine.low %v4311_v54, %v4319_v55  ;;  %v2941_v54 = vpop.f32.mrf.mxu0 }
 0x23d   :  { %9640 = vmatpush1.bf16.msra.mxu0 %v13453_v14  ;;  %9684 = vmatprep.subr.bf16.mxu1 %v13694_v34  ;;  %v4047_v59 = vld [vmem:[#allocation8 + $0x16c0] sm:$0xff] }
 0x23e   :  { %9641 = vmatprep.subr.bf16.mxu0 %v13438_v43  ;;  %v4295_v1 = vld [vmem:[#allocation8 + $0x1e80] sm:$0xff]  ;;  %v13598_v5 = vcombine.high %v4039_v58, %v4047_v59  ;;  %v13597_v16 = vcombine.low %v4039_v58, %v4047_v59 }
 0x23f   :  { %v4303_v22 = vld [vmem:[#allocation8 + $0x1ec0] sm:$0xff] }
 0x240   :  { %9685 = vmatpush1.bf16.msra.mxu1 %v13693_v25  ;;  %v4023_v32 = vld [vmem:[#allocation8 + $0x1600] sm:$0xff]  ;;  %v13854_v8 = vcombine.high %v4295_v1, %v4303_v22  ;;  %v13853_v20 = vcombine.low %v4295_v1, %v4303_v22 }
 0x241   :  { %9642 = vmatpush1.bf16.msra.mxu0 %v13437_v21  ;;  %9686 = vmatprep.subr.bf16.mxu1 %v13678_v50  ;;  %v4031_v10 = vld [vmem:[#allocation8 + $0x1640] sm:$0xff]  ;;  %v14904_v21 = vpop.f32.mrf.mxu1 }
 0x242   :  { %9643 = vmatprep.subr.bf16.mxu0 %v13422_v52  ;;  %v4279_v14 = vld [vmem:[#allocation8 + $0x1e00] sm:$0xff]  ;;  %v13582_v19 = vcombine.high %v4023_v32, %v4031_v10  ;;  %v13581_v26 = vcombine.low %v4023_v32, %v4031_v10  ;;  %v2943_v32 = vpop.f32.mrf.mxu0 }
 0x243   :  { %v4287_v43 = vld [vmem:[#allocation8 + $0x1e40] sm:$0xff] }
 0x244   :  { %9687 = vmatpush1.bf16.msra.mxu1 %v13677_v35  ;;  %v4007_v34 = vld [vmem:[#allocation8 + $0x1580] sm:$0xff]  ;;  %v13838_v45 = vcombine.high %v4279_v14, %v4287_v43  ;;  %v13837_v6 = vcombine.low %v4279_v14, %v4287_v43  ;;  %v14906_v35 = vpop.f32.mrf.mxu1 }
 0x245   :  { %9644 = vmatpush1.bf16.msra.mxu0 %v13421_v31  ;;  %9688 = vmatprep.subr.bf16.mxu1 %v13662_v57  ;;  %v4015_v13 = vld [vmem:[#allocation8 + $0x15c0] sm:$0xff]  ;;  %v14909_v57 = vsub.s32 4, %v14780_v18 }
 0x246   :  { %9645 = vmatprep.subr.bf16.mxu0 %v13406_v17  ;;  %v4263_v52 = vld [vmem:[#allocation8 + $0x1d80] sm:$0xff]  ;;  %v13566_v50 = vcombine.high %v4007_v34, %v4015_v13  ;;  %v13565_v2 = vcombine.low %v4007_v34, %v4015_v13  ;;  %v2986_v24 = vpop.f32.mrf.mxu1 }
 0x247   :  { %v4271_v25 = vld [vmem:[#allocation8 + $0x1dc0] sm:$0xff]  ;;  %15344 = vst [vmem:[#allocation22_spill] sm:$0xff] %v14909_v57 }
 0x248   :  { %9689 = vmatpush1.bf16.msra.mxu1 %v13661_v46  ;;  %v3991_v30 = vld [vmem:[#allocation8 + $0x1500] sm:$0xff]  ;;  %v13822_v17 = vcombine.high %v4263_v52, %v4271_v25  ;;  %v14912_v46 = vsub.s32 5, %v14780_v18  ;;  %v3066_v1 = vpop.f32.mrf.mxu1 }
 0x249   :  { %9646 = vmatpush1.bf16.msra.mxu0 %v13405_v39  ;;  %9690 = vmatprep.subr.bf16.mxu1 %v13646_v42  ;;  %v3999_v31 = vld [vmem:[#allocation8 + $0x1540] sm:$0xff] }
 0x24a   :  { %9647 = vmatprep.subr.bf16.mxu0 %v13390_v40  ;;  %v4247_v61 = vld [vmem:[#allocation8 + $0x1d00] sm:$0xff]  ;;  %v13550_v39 = vcombine.high %v3991_v30, %v3999_v31  ;;  %v13821_v40 = vcombine.low %v4263_v52, %v4271_v25  ;;  %v13549_v33 = vcombine.low %v3991_v30, %v3999_v31  ;;  %v3068_v34 = vpop.f32.mrf.mxu1 }
 0x24b   :  { %v4255_v37 = vld [vmem:[#allocation8 + $0x1d40] sm:$0xff] }
 0x24c   :  { %9691 = vmatpush1.bf16.msra.mxu1 %v13645_v51  ;;  %v3975_v41 = vld [vmem:[#allocation8 + $0x1480] sm:$0xff]  ;;  %v13806_v42 = vcombine.high %v4247_v61, %v4255_v37 }
 0x24d   :  { %9648 = vmatpush1.bf16.msra.mxu0 %v13389_v4  ;;  %9692 = vmatprep.subr.bf16.mxu1 %v13886_v23  ;;  %v3983_v36 = vld [vmem:[#allocation8 + $0x14c0] sm:$0xff]  ;;  %v14920_v23 = vld [vmem:[#allocation8 + $0xbc8] sm:$0xff] }
 0x24e   :  { %9649 = vmatprep.subr.bf16.mxu0 %v13630_v28  ;;  %v4231_v47 = vld [vmem:[#allocation8 + $0x1c80] sm:$0xff]  ;;  %v14914_v28 = vld [vmem:[#allocation7] sm:$0xff]  ;;  %v13534_v55 = vcombine.high %v3975_v41, %v3983_v36 }
 0x24f   :  { %v4239_v4 = vld [vmem:[#allocation8 + $0x1cc0] sm:$0xff]  ;;  %v539_v51 = vrot.slane %v14914_v28, %v14909_v57  ;;  %v3660_v57 = vld [vmem:[#allocation8 + $0xaa8] sm:$0xff] }
 0x250   :  { %9693 = vmatpush2.bf16.msra.mxu1 %v13885_v62  ;;  %v3959_v62 = vld [vmem:[#allocation8 + $0x1400] sm:$0xff]  ;;  %v13790_v59 = vcombine.high %v4231_v47, %v4239_v4 }
 0x251   :  { %9650 = vmatpush2.bf16.msra.mxu0 %v13629_v15  ;;  %9694 = vmatprep.subr.bf16.mxu1 %v13870_v63  ;;  %v13805_v15 = vcombine.low %v4247_v61, %v4255_v37  ;;  %v3967_v58 = vld [vmem:[#allocation8 + $0x1440] sm:$0xff]  ;;  %v13247_v63 = vcombine.low %v14918_v53, %v14920_v23  ;;  %v2942_v43 = vadd.f32 %v2941_v54, %v539_v51  ;;  %v3070_v61 = vpop.f32.mrf.mxu1 }
 0x252   :  { %9651 = vmatprep.subr.bf16.mxu0 %v13614_v60  ;;  %v543_v60 = vrot.slane %v14914_v28, %v14912_v46  ;;  %v4215_v22 = vld [vmem:[#allocation8 + $0x1c00] sm:$0xff]  ;;  %v13518_v10 = vcombine.high %v3959_v62, %v3967_v58  ;;  %v13517_v25 = vcombine.low %v3959_v62, %v3967_v58 }
 0x253   :  { %v2985_v30 = vadd.f32 %v14906_v35, %v2942_v43 }
 0x254   :  { %9695 = vmatpush2.bf16.msra.mxu1 %v13869_v9  ;;  %v13533_v9 = vcombine.low %v3975_v41, %v3983_v36  ;;  %v2940_v14 = vadd.f32 %v2939_v12, %v543_v60  ;;  %v2944_v52 = vadd.f32 %v2943_v32, %v543_v60 }
 0x255   :  { %9652 = vmatpush2.bf16.msra.mxu0 %v13613_v3  ;;  %9696 = vmatprep.subr.bf16.mxu1 %v13854_v8  ;;  %v4223_v3 = vld [vmem:[#allocation8 + $0x1c40] sm:$0xff]  ;;  %v13789_v8 = vcombine.low %v4231_v47, %v4239_v4 }
 0x256   :  { %9653 = vmatprep.subr.bf16.mxu0 %v13598_v5  ;;  %v2938_v5 = vadd.f32 %v2937_v27, %v539_v51 }
 0x258   :  { %9697 = vmatpush2.bf16.msra.mxu1 %v13853_v20  ;;  %v13774_v20 = vcombine.high %v4215_v22, %v4223_v3 }
 0x259   :  { %9654 = vmatpush2.bf16.msra.mxu0 %v13597_v16  ;;  %9698 = vmatprep.subr.bf16.mxu1 %v13838_v45  ;;  %v3432_v16 = vld [vmem:[#allocation8 + $0x388] sm:$0xff]  ;;  %v2981_v45 = vadd.f32 %v14902_v11, %v2938_v5  ;;  %v2987_v11 = vadd.f32 %v2986_v24, %v2944_v52 }
 0x25a   :  { %9655 = vmatprep.subr.bf16.mxu0 %v13582_v19  ;;  %v3440_v19 = vld [vmem:[#allocation8 + $0x3c8] sm:$0xff] }
 0x25b   :  { %v12992_v27 = vcombine.high %v3432_v16, %v3440_v19  ;;  %v12991_v5 = vcombine.low %v3432_v16, %v3440_v19  ;;  %v3376_v52 = vld [vmem:[#allocation8 + $0x1c8] sm:$0xff] }
 0x25c   :  { %9699 = vmatpush2.bf16.msra.mxu1 %v13837_v6  ;;  %v2983_v6 = vadd.f32 %v14904_v21, %v2940_v14  ;;  %v3072_v21 = vpop.f32.mrf.mxu1 }
 0x25d   :  { %9656 = vmatpush2.bf16.msra.mxu0 %v13581_v26  ;;  %9700 = vmatprep.subr.bf16.mxu1 %v13822_v17  ;;  %v13248_v17 = vcombine.high %v14918_v53, %v14920_v23  ;;  %v3848_v23 = vld [vmem:[#allocation8 + $0x1088] sm:$0xff] }
 0x25e   :  { %9657 = vmatprep.subr.bf16.mxu0 %v13566_v50  ;;  %v13773_v50 = vcombine.low %v4215_v22, %v4223_v3  ;;  %v3424_v22 = vld [vmem:[#allocation8 + $0x348] sm:$0xff] }
 0x260   :  { %9701 = vmatpush2.bf16.msra.mxu1 %v13821_v40 }
 0x261   :  { %9658 = vmatpush2.bf16.msra.mxu0 %v13565_v2  ;;  %9702 = vmatprep.subr.bf16.mxu1 %v13806_v42 }
 0x262   :  { %9659 = vmatprep.subr.bf16.mxu0 %v13550_v39 }
 0x264   :  { %9703 = vmatpush2.bf16.msra.mxu1 %v13805_v15 }
 0x265   :  { %9660 = vmatpush2.bf16.msra.mxu0 %v13549_v33  ;;  %9704 = vmatprep.subr.bf16.mxu1 %v13790_v59 }
 0x266   :  { %9661 = vmatprep.subr.bf16.mxu0 %v13534_v55 }
 0x268   :  { %v3023_v13 = vpop.f32.mrf.mxu0  ;;  %9705 = vmatpush2.bf16.msra.mxu1 %v13789_v8  ;;  %v3408_v8 = vld [vmem:[#allocation8 + $0x2c8] sm:$0xff] }
 0x269   :  { %9662 = vmatpush2.bf16.msra.mxu0 %v13533_v9  ;;  %v3024_v31 = vadd.f32 %v3023_v13, %v2981_v45  ;;  %9706 = vmatprep.subr.bf16.mxu1 %v13774_v20  ;;  %v3384_v20 = vld [vmem:[#allocation8 + $0x208] sm:$0xff] }
 0x26a   :  { %v3025_v26 = vpop.f32.mrf.mxu0  ;;  %9663 = vmatprep.subr.bf16.mxu0 %v13518_v10  ;;  %v3400_v10 = vld [vmem:[#allocation8 + $0x288] sm:$0xff] }
 0x26b   :  { %v3026_v2 = vadd.f32 %v3025_v26, %v2983_v6  ;;  %v3067_v40 = vadd.f32 %v3066_v1, %v3024_v31  ;;  %v3416_v1 = vld [vmem:[#allocation8 + $0x308] sm:$0xff]  ;;  %v12960_v43 = vcombine.high %v3400_v10, %v3408_v8  ;;  %v12959_v13 = vcombine.low %v3400_v10, %v3408_v8 }
 0x26c   :  { %v3027_v37 = vpop.f32.mrf.mxu0  ;;  %9707 = vmatpush2.bf16.msra.mxu1 %v13773_v50  ;;  %v12976_v32 = vcombine.high %v3416_v1, %v3424_v22  ;;  %v12975_v14 = vcombine.low %v3416_v1, %v3424_v22  ;;  %v3368_v45 = vld [vmem:[#allocation8 + $0x188] sm:$0xff] }
 0x26d   :  { %v3028_v12 = vadd.f32 %v3027_v37, %v2985_v30  ;;  %9664 = vmatpush2.bf16.msra.mxu0 %v13517_v25  ;;  %9762 = vmatprep.subr.bf16.mxu1 %v13248_v17  ;;  %v3069_v35 = vadd.f32 %v3068_v34, %v3026_v2  ;;  %v3392_v34 = vld [vmem:[#allocation8 + $0x248] sm:$0xff]  ;;  %v12928_v26 = vcombine.high %v3368_v45, %v3376_v52  ;;  %v14939_v30 = vsub.s32 6, %v14780_v18 }
 0x26e   :  { %v3029_v39 = vpop.f32.mrf.mxu0  ;;  %9719 = vmatprep.subr.bf16.mxu0 %v12992_v27  ;;  %v12944_v16 = vcombine.high %v3384_v20, %v3392_v34  ;;  %v12943_v25 = vcombine.low %v3384_v20, %v3392_v34  ;;  %v3352_v50 = vld [vmem:[#allocation8 + $0x108] sm:$0xff]  ;;  %v12927_v17 = vcombine.low %v3368_v45, %v3376_v52 }
 0x26f   :  { %v3071_v41 = vadd.f32 %v3070_v61, %v3028_v12  ;;  %v3030_v36 = vadd.f32 %v3029_v39, %v2987_v11  ;;  %v3109_v19 = vpop.f32.mrf.mxu1  ;;  %v3360_v6 = vld [vmem:[#allocation8 + $0x148] sm:$0xff]  ;;  %15345 = vst [vmem:[#allocation23_spill] sm:$0xff] %v14939_v30  ;;  %v14942_v61 = vsub.s32 7, %v14780_v18 }
 0x270   :  { %v12912_v11 = vcombine.high %v3352_v50, %v3360_v6  ;;  %v3336_v12 = vld [vmem:[#allocation8 + $0x88] sm:$0xff] }
 0x271   :  { %v3251_v42 = vpack.c.bf16 %v3071_v41, %v3067_v40  ;;  %v3073_v47 = vadd.f32 %v3072_v21, %v3030_v36  ;;  %v3111_v27 = vpop.f32.mrf.mxu1  ;;  %15346 = vst [vmem:[#allocation24_spill] sm:$0xff] %v14942_v61  ;;  %v3344_v39 = vld [vmem:[#allocation8 + $0xc8] sm:$0xff]  ;;  %v547_v40 = vrot.slane %v14914_v28, %v14939_v30  ;;  %v12911_v36 = vcombine.low %v3352_v50, %v3360_v6 }
 0x272   :  { %v551_v21 = vrot.slane %v14914_v28, %v14942_v61  ;;  %v3560_v1 = vld [vmem:[#allocation8 + $0x788] sm:$0xff] }
 0x273   :  { %v12873_v4 = vmul.bf16 3216621497, %v3251_v42  ;;  %v3252_v51 = vpack.c.bf16 %v3073_v47, %v3069_v35  ;;  %v3113_v2 = vpop.f32.mrf.mxu1  ;;  %v3320_v47 = vld [vmem:[#allocation8 + $0x8] sm:$0xff] }
 0x274   :  { %v3568_v28 = vld [vmem:[#allocation8 + $0x7c8] sm:$0xff] }
 0x275   :  { %14394 = vpow.bf16 %v12873_v4  ;;  %v12874_v33 = vmul.bf16 3216621497, %v3252_v51  ;;  %v3115_v18 = vpop.f32.mrf.mxu1  ;;  %v3328_v4 = vld [vmem:[#allocation8 + $0x48] sm:$0xff]  ;;  %v13119_v6 = vcombine.low %v3560_v1, %v3568_v28 }
 0x276   :  { %v3116_v22 = vadd.f32 %v3115_v18, %v551_v21  ;;  %v3544_v52 = vld [vmem:[#allocation8 + $0x708] sm:$0xff] }
 0x277   :  { %14396 = vpow.bf16 %v12874_v33 }
 0x283   :  { %v14395_v24 = vpop.eup %14394 }
 0x284   :  { %v3291_v54 = vadd.bf16 1065369472, %v14395_v24 }
 0x285   :  { %v14397_v55 = vpop.eup %14396 }
 0x286   :  { %14398 = vrcp.bf16 %v3291_v54  ;;  %v3292_v15 = vadd.bf16 1065369472, %v14397_v55  ;;  %v12895_v54 = vcombine.low %v3336_v12, %v3344_v39  ;;  %v3112_v55 = vadd.f32 %v3111_v27, %v551_v21 }
 0x288   :  { %14400 = vrcp.bf16 %v3292_v15  ;;  %v3114_v15 = vadd.f32 %v3113_v2, %v547_v40  ;;  %v3528_v2 = vld [vmem:[#allocation8 + $0x688] sm:$0xff] }
 0x294   :  { %v14399_v60 = vpop.eup %14398 }
 0x295   :  { %v3304_v58 = vmul.bf16 1065369472, %v14399_v60 }
 0x296   :  { %v14401_v62 = vpop.eup %14400 }
 0x297   :  { %v3306_v59 = vmul.bf16 1065369472, %v14401_v62  ;;  %v14933_v9 = vmul.bf16 %v3304_v58, %v3251_v42  ;;  %v12896_v42 = vcombine.high %v3336_v12, %v3344_v39  ;;  %v12880_v58 = vcombine.high %v3320_v47, %v3328_v4  ;;  %v3536_v12 = vld [vmem:[#allocation8 + $0x6c8] sm:$0xff] }
 0x298   :  { %v13088_v21 = vcombine.high %v3528_v2, %v3536_v12  ;;  %v13087_v18 = vcombine.low %v3528_v2, %v3536_v12  ;;  %v3672_v2 = vld [vmem:[#allocation8 + $0xb08] sm:$0xff] }
 0x299   :  { %v14931_v3 = vmul.bf16 %v3306_v59, %v3252_v51  ;;  %v3110_v51 = vadd.f32 %v3109_v19, %v547_v40 }
 0x29b   :  { %9665 = vmatprep.mubr.bf16.mxu0 %v14931_v3 }
 0x29c   :  { %9666 = vmatmul.mubr.bf16.vlgmr.msra.gmra.mxu0 %v14933_v9 }
 0x29d   :  { %9720 = vmatpush1.bf16.msra.mxu0 %v12991_v5  ;;  %9751 = vmatprep.mubr.bf16.mxu0 %v14872_v0 }
 0x29e   :  { %9721 = vmatprep.subr.bf16.mxu0 %v12976_v32 }
 0x2a1   :  { %9722 = vmatpush1.bf16.msra.mxu0 %v12975_v14 }
 0x2a2   :  { %9723 = vmatprep.subr.bf16.mxu0 %v12960_v43  ;;  %v12879_v43 = vcombine.low %v3320_v47, %v3328_v4  ;;  %v3496_v4 = vld [vmem:[#allocation8 + $0x588] sm:$0xff] }
 0x2a5   :  { %9724 = vmatpush1.bf16.msra.mxu0 %v12959_v13 }
 0x2a6   :  { %9725 = vmatprep.subr.bf16.mxu0 %v12944_v16  ;;  %v13120_v16 = vcombine.high %v3560_v1, %v3568_v28 }
 0x2a8   :  { %v3152_v31 = vpop.f32.mrf.mxu0 }
 0x2a9   :  { %9726 = vmatpush1.bf16.msra.mxu0 %v12943_v25  ;;  %v3153_v60 = vadd.f32 %v3152_v31, %v3110_v51  ;;  %v3552_v25 = vld [vmem:[#allocation8 + $0x748] sm:$0xff] }
 0x2aa   :  { %v3154_v37 = vpop.f32.mrf.mxu0  ;;  %9727 = vmatprep.subr.bf16.mxu0 %v12928_v26  ;;  %v3504_v51 = vld [vmem:[#allocation8 + $0x5c8] sm:$0xff] }
 0x2ab   :  { %v3155_v5 = vadd.f32 %v3154_v37, %v3112_v55  ;;  %v3488_v55 = vld [vmem:[#allocation8 + $0x548] sm:$0xff] }
 0x2ac   :  { %v3156_v41 = vpop.f32.mrf.mxu0 }
 0x2ad   :  { %9728 = vmatpush1.bf16.msra.mxu0 %v12927_v17  ;;  %v3157_v32 = vadd.f32 %v3156_v41, %v3114_v15  ;;  %v13103_v41 = vcombine.low %v3544_v52, %v3552_v25  ;;  %v13055_v15 = vcombine.low %v3496_v4, %v3504_v51 }
 0x2ae   :  { %v3158_v35 = vpop.f32.mrf.mxu0  ;;  %9729 = vmatprep.subr.bf16.mxu0 %v12912_v11  ;;  %v13104_v11 = vcombine.high %v3544_v52, %v3552_v25 }
 0x2af   :  { %v3195_v24 = vpop.f32.mrf.mxu1  ;;  %v3159_v20 = vadd.f32 %v3158_v35, %v3116_v22  ;;  %v3512_v35 = vld [vmem:[#allocation8 + $0x608] sm:$0xff] }
 0x2b0   :  { %v3238_v33 = vpop.f32.mrf.mxu0  ;;  %v3196_v10 = vadd.f32 %v3195_v24, %v3153_v60  ;;  %v13056_v24 = vcombine.high %v3496_v4, %v3504_v51  ;;  %v3880_v4 = vld [vmem:[#allocation8 + $0x1188] sm:$0xff] }
 0x2b1   :  { %9730 = vmatpush1.bf16.msra.mxu0 %v12911_v36  ;;  %v3197_v59 = vpop.f32.mrf.mxu1  ;;  %v3888_v51 = vld [vmem:[#allocation8 + $0x11c8] sm:$0xff] }
 0x2b2   :  { %v3240_v62 = vpop.f32.mrf.mxu0  ;;  %9731 = vmatprep.subr.bf16.mxu0 %v12896_v42  ;;  %v3198_v34 = vadd.f32 %v3197_v59, %v3155_v5  ;;  %v3239_v26 = vadd.f32 %v3238_v33, %v3196_v10  ;;  %v3520_v42 = vld [vmem:[#allocation8 + $0x648] sm:$0xff] }
 0x2b3   :  { %v3199_v14 = vpop.f32.mrf.mxu1  ;;  %v13072_v47 = vcombine.high %v3512_v35, %v3520_v42  ;;  %v13071_v33 = vcombine.low %v3512_v35, %v3520_v42  ;;  %v3448_v10 = vld [vmem:[#allocation8 + $0x408] sm:$0xff] }
 0x2b4   :  { %v3242_v8 = vpop.f32.mrf.mxu0  ;;  %v3200_v13 = vadd.f32 %v3199_v14, %v3157_v32  ;;  %v3241_v31 = vadd.f32 %v3240_v62, %v3198_v34  ;;  %v3464_v62 = vld [vmem:[#allocation8 + $0x488] sm:$0xff] }
 0x2b5   :  { %9732 = vmatpush1.bf16.msra.mxu0 %v12895_v54  ;;  %v3201_v19 = vpop.f32.mrf.mxu1  ;;  %v3480_v54 = vld [vmem:[#allocation8 + $0x508] sm:$0xff] }
 0x2b6   :  { %9733 = vmatprep.subr.bf16.mxu0 %v12880_v58  ;;  %v3244_v45 = vpop.f32.mrf.mxu0  ;;  %v3243_v27 = vadd.f32 %v3242_v8, %v3200_v13  ;;  %v3202_v50 = vadd.f32 %v3201_v19, %v3159_v20  ;;  %v13040_v60 = vcombine.high %v3480_v54, %v3488_v55  ;;  %v3472_v58 = vld [vmem:[#allocation8 + $0x4c8] sm:$0xff]  ;;  %v13039_v28 = vcombine.low %v3480_v54, %v3488_v55 }
 0x2b7   :  { %v13024_v5 = vcombine.high %v3464_v62, %v3472_v58  ;;  %v3456_v8 = vld [vmem:[#allocation8 + $0x448] sm:$0xff]  ;;  %v13023_v14 = vcombine.low %v3464_v62, %v3472_v58 }
 0x2b8   :  { %v14948_v17 = vpack.c.bf16 %v3243_v27, %v3239_v26  ;;  %v3245_v37 = vadd.f32 %v3244_v45, %v3202_v50  ;;  %v3944_v20 = vld [vmem:[#allocation8 + $0x1388] sm:$0xff]  ;;  %v13007_v13 = vcombine.low %v3448_v10, %v3456_v8 }
 0x2b9   :  { %9734 = vmatpush1.bf16.msra.mxu0 %v12879_v43  ;;  %v13008_v43 = vcombine.high %v3448_v10, %v3456_v8  ;;  %v3952_v34 = vld [vmem:[#allocation8 + $0x13c8] sm:$0xff] }
 0x2ba   :  { %9735 = vmatprep.subr.bf16.mxu0 %v13120_v16  ;;  %v12875_v39 = vmul.bf16 3216621497, %v14948_v17  ;;  %v14951_v40 = vpack.c.bf16 %v3245_v37, %v3241_v31  ;;  %v13504_v16 = vcombine.high %v3944_v20, %v3952_v34  ;;  %v3928_v19 = vld [vmem:[#allocation8 + $0x1308] sm:$0xff]  ;;  %v13503_v52 = vcombine.low %v3944_v20, %v3952_v34 }
 0x2bb   :  { %v3936_v45 = vld [vmem:[#allocation8 + $0x1348] sm:$0xff] }
 0x2bc   :  { %14402 = vpow.bf16 %v12875_v39  ;;  %v12876_v36 = vmul.bf16 3216621497, %v14951_v40  ;;  %v13488_v25 = vcombine.high %v3928_v19, %v3936_v45  ;;  %v3912_v26 = vld [vmem:[#allocation8 + $0x1288] sm:$0xff] }
 0x2bd   :  { %9736 = vmatpush2.bf16.msra.mxu0 %v13119_v6  ;;  %v3920_v27 = vld [vmem:[#allocation8 + $0x12c8] sm:$0xff]  ;;  %v13487_v6 = vcombine.low %v3928_v19, %v3936_v45 }
 0x2be   :  { %9737 = vmatprep.subr.bf16.mxu0 %v13104_v11  ;;  %14404 = vpow.bf16 %v12876_v36  ;;  %v13472_v31 = vcombine.high %v3912_v26, %v3920_v27  ;;  %v3680_v39 = vld [vmem:[#allocation8 + $0xb48] sm:$0xff] }
 0x2bf   :  { %v3904_v36 = vld [vmem:[#allocation8 + $0x1248] sm:$0xff] }
 0x2c0   :  { %v3640_v62 = vld [vmem:[#allocation8 + $0xa08] sm:$0xff] }
 0x2c1   :  { %9738 = vmatpush2.bf16.msra.mxu0 %v13103_v41  ;;  %v3896_v41 = vld [vmem:[#allocation8 + $0x1208] sm:$0xff] }
 0x2c2   :  { %9739 = vmatprep.subr.bf16.mxu0 %v13088_v21  ;;  %v13471_v21 = vcombine.low %v3912_v26, %v3920_v27  ;;  %v13455_v54 = vcombine.low %v3896_v41, %v3904_v36  ;;  %v3648_v58 = vld [vmem:[#allocation8 + $0xa48] sm:$0xff] }
 0x2c3   :  { %v13200_v53 = vcombine.high %v3640_v62, %v3648_v58  ;;  %v13199_v10 = vcombine.low %v3640_v62, %v3648_v58  ;;  %v3840_v20 = vld [vmem:[#allocation8 + $0x1048] sm:$0xff] }
 0x2c4   :  { %v3608_v34 = vld [vmem:[#allocation8 + $0x908] sm:$0xff] }
 0x2c5   :  { %9740 = vmatpush2.bf16.msra.mxu0 %v13087_v18  ;;  %v13232_v18 = vcombine.high %v3672_v2, %v3680_v39  ;;  %v4080_v26 = vld [vmem:[#allocation8 + $0x17c8] sm:$0xff] }
 0x2c6   :  { %9741 = vmatprep.subr.bf16.mxu0 %v13072_v47  ;;  %v13456_v47 = vcombine.high %v3896_v41, %v3904_v36  ;;  %v3592_v27 = vld [vmem:[#allocation8 + $0x888] sm:$0xff] }
 0x2c7   :  { %v3584_v41 = vld [vmem:[#allocation8 + $0x848] sm:$0xff] }
 0x2c8   :  { %v3800_v62 = vld [vmem:[#allocation8 + $0xf08] sm:$0xff] }
 0x2c9   :  { %9742 = vmatpush2.bf16.msra.mxu0 %v13071_v33  ;;  %v3656_v33 = vld [vmem:[#allocation8 + $0xa88] sm:$0xff] }
 0x2ca   :  { %9743 = vmatprep.subr.bf16.mxu0 %v13056_v24  ;;  %v14403_v59 = vpop.eup %14402  ;;  %v3664_v24 = vld [vmem:[#allocation8 + $0xac8] sm:$0xff] }
 0x2cb   :  { %v3293_v1 = vadd.bf16 1065369472, %v14403_v59  ;;  %v13216_v55 = vcombine.high %v3656_v33, %v3664_v24  ;;  %v13439_v59 = vcombine.low %v3880_v4, %v3888_v51  ;;  %v3808_v58 = vld [vmem:[#allocation8 + $0xf48] sm:$0xff] }
 0x2cc   :  { %v14405_v22 = vpop.eup %14404 }
 0x2cd   :  { %9744 = vmatpush2.bf16.msra.mxu0 %v13055_v15  ;;  %14406 = vrcp.bf16 %v3293_v1  ;;  %v3294_v32 = vadd.bf16 1065369472, %v14405_v22  ;;  %v3864_v15 = vld [vmem:[#allocation8 + $0x1108] sm:$0xff]  ;;  %v13215_v1 = vcombine.low %v3656_v33, %v3664_v24 }
 0x2ce   :  { %9745 = vmatprep.subr.bf16.mxu0 %v13040_v60  ;;  %v3872_v60 = vld [vmem:[#allocation8 + $0x1148] sm:$0xff] }
 0x2cf   :  { %14408 = vrcp.bf16 %v3294_v32  ;;  %v3624_v22 = vld [vmem:[#allocation8 + $0x988] sm:$0xff]  ;;  %v13423_v32 = vcombine.low %v3864_v15, %v3872_v60 }
 0x2d0   :  { %v3816_v33 = vld [vmem:[#allocation8 + $0xf88] sm:$0xff] }
 0x2d1   :  { %9746 = vmatpush2.bf16.msra.mxu0 %v13039_v28  ;;  %v13424_v28 = vcombine.high %v3864_v15, %v3872_v60  ;;  %v3824_v24 = vld [vmem:[#allocation8 + $0xfc8] sm:$0xff] }
 0x2d2   :  { %9747 = vmatprep.subr.bf16.mxu0 %v13024_v5  ;;  %v3632_v5 = vld [vmem:[#allocation8 + $0x9c8] sm:$0xff] }
 0x2d3   :  { %v13183_v19 = vcombine.low %v3624_v22, %v3632_v5  ;;  %v4024_v15 = vld [vmem:[#allocation8 + $0x1608] sm:$0xff] }
 0x2d4   :  { %v4032_v60 = vld [vmem:[#allocation8 + $0x1648] sm:$0xff] }
 0x2d5   :  { %9748 = vmatpush2.bf16.msra.mxu0 %v13023_v14  ;;  %v13184_v14 = vcombine.high %v3624_v22, %v3632_v5  ;;  %v3784_v22 = vld [vmem:[#allocation8 + $0xe88] sm:$0xff] }
 0x2d6   :  { %9749 = vmatprep.subr.bf16.mxu0 %v13008_v43  ;;  %v3832_v43 = vld [vmem:[#allocation8 + $0x1008] sm:$0xff] }
 0x2d7   :  { %v13392_v45 = vcombine.high %v3832_v43, %v3840_v20  ;;  %v3792_v5 = vld [vmem:[#allocation8 + $0xec8] sm:$0xff] }
 0x2d9   :  { %9750 = vmatpush2.bf16.msra.mxu0 %v13007_v13  ;;  %v3616_v13 = vld [vmem:[#allocation8 + $0x948] sm:$0xff] }
 0x2da   :  { %9805 = vmatprep.subr.bf16.mxu0 %v13504_v16 }
 0x2db   :  { %v14407_v50 = vpop.eup %14406 }
 0x2dc   :  { %9752 = vmatmul.mubr.bf16.vlgmr.msra.gmra.mxu0 %v14895_v44  ;;  %v3308_v11 = vmul.bf16 1065369472, %v14407_v50  ;;  %v3600_v50 = vld [vmem:[#allocation8 + $0x8c8] sm:$0xff] }
 0x2dd   :  { %9806 = vmatpush1.bf16.msra.mxu0 %v13503_v52  ;;  %9837 = vmatprep.mubr.bf16.mxu0 %v14931_v3  ;;  %v14409_v37 = vpop.eup %14408  ;;  %v13168_v52 = vcombine.high %v3608_v34, %v3616_v13 }
 0x2de   :  { %9807 = vmatprep.subr.bf16.mxu0 %v13488_v25  ;;  %v3310_v12 = vmul.bf16 1065369472, %v14409_v37  ;;  %v14960_v42 = vmul.bf16 %v3308_v11, %v14948_v17  ;;  %v13231_v17 = vcombine.low %v3672_v2, %v3680_v39  ;;  %v4072_v25 = vld [vmem:[#allocation8 + $0x1788] sm:$0xff]  ;;  %v13152_v11 = vcombine.high %v3592_v27, %v3600_v50 }
 0x2df   :  { %v13632_v37 = vcombine.high %v4072_v25, %v4080_v26  ;;  %v4056_v2 = vld [vmem:[#allocation8 + $0x1708] sm:$0xff]  ;;  %v13631_v36 = vcombine.low %v4072_v25, %v4080_v26 }
 0x2e0   :  { %v14957_v35 = vmul.bf16 %v3310_v12, %v14951_v40  ;;  %v13440_v40 = vcombine.high %v3880_v4, %v3888_v51  ;;  %v4064_v12 = vld [vmem:[#allocation8 + $0x1748] sm:$0xff] }
 0x2e1   :  { %9808 = vmatpush1.bf16.msra.mxu0 %v13487_v6  ;;  %v13391_v6 = vcombine.low %v3832_v43, %v3840_v20  ;;  %v3576_v39 = vld [vmem:[#allocation8 + $0x808] sm:$0xff] }
 0x2e2   :  { %9809 = vmatprep.subr.bf16.mxu0 %v13472_v31  ;;  %9708 = vmatprep.mubr.bf16.mxu1 %v14957_v35  ;;  %v13167_v31 = vcombine.low %v3608_v34, %v3616_v13  ;;  %v4040_v4 = vld [vmem:[#allocation8 + $0x1688] sm:$0xff] }
 0x2e3   :  { %9709 = vmatmul.mubr.bf16.vlgmr.msra.gmra.mxu1 %v14960_v42  ;;  %v4048_v51 = vld [vmem:[#allocation8 + $0x16c8] sm:$0xff] }
 0x2e4   :  { %9763 = vmatpush1.bf16.msra.mxu1 %v13247_v63  ;;  %9794 = vmatprep.mubr.bf16.mxu1 %v14891_v56  ;;  %v3856_v63 = vld [vmem:[#allocation8 + $0x10c8] sm:$0xff] }
 0x2e5   :  { %9810 = vmatpush1.bf16.msra.mxu0 %v13471_v21  ;;  %9764 = vmatprep.subr.bf16.mxu1 %v13232_v18  ;;  %v13408_v8 = vcombine.high %v3848_v23, %v3856_v63  ;;  %v13407_v16 = vcombine.low %v3848_v23, %v3856_v63  ;;  %v13151_v21 = vcombine.low %v3592_v27, %v3600_v50  ;;  %v4008_v23 = vld [vmem:[#allocation8 + $0x1588] sm:$0xff] }
 0x2e6   :  { %9811 = vmatprep.subr.bf16.mxu0 %v13456_v47  ;;  %v13616_v18 = vcombine.high %v4056_v2, %v4064_v12  ;;  %v13136_v47 = vcombine.high %v3576_v39, %v3584_v41  ;;  %v4016_v63 = vld [vmem:[#allocation8 + $0x15c8] sm:$0xff] }
 0x2e7   :  { %v3992_v43 = vld [vmem:[#allocation8 + $0x1508] sm:$0xff] }
 0x2e8   :  { %9765 = vmatpush1.bf16.msra.mxu1 %v13231_v17  ;;  %v13135_v17 = vcombine.low %v3576_v39, %v3584_v41  ;;  %v4000_v20 = vld [vmem:[#allocation8 + $0x1548] sm:$0xff] }
 0x2e9   :  { %9812 = vmatpush1.bf16.msra.mxu0 %v13455_v54  ;;  %9766 = vmatprep.subr.bf16.mxu1 %v13216_v55  ;;  %v13615_v54 = vcombine.low %v4056_v2, %v4064_v12  ;;  %v13376_v55 = vcombine.high %v3816_v33, %v3824_v24  ;;  %v3768_v34 = vld [vmem:[#allocation8 + $0xe08] sm:$0xff] }
 0x2ea   :  { %9813 = vmatprep.subr.bf16.mxu0 %v13440_v40  ;;  %v13600_v40 = vcombine.high %v4040_v4, %v4048_v51  ;;  %v3776_v13 = vld [vmem:[#allocation8 + $0xe48] sm:$0xff] }
 0x2eb   :  { %v3976_v25 = vld [vmem:[#allocation8 + $0x1488] sm:$0xff] }
 0x2ec   :  { %9767 = vmatpush1.bf16.msra.mxu1 %v13215_v1  ;;  %v13375_v1 = vcombine.low %v3816_v33, %v3824_v24  ;;  %v3984_v26 = vld [vmem:[#allocation8 + $0x14c8] sm:$0xff] }
 0x2ed   :  { %9814 = vmatpush1.bf16.msra.mxu0 %v13439_v59  ;;  %9768 = vmatprep.subr.bf16.mxu1 %v13200_v53  ;;  %v13599_v59 = vcombine.low %v4040_v4, %v4048_v51  ;;  %v13360_v53 = vcombine.high %v3800_v62, %v3808_v58  ;;  %v3752_v27 = vld [vmem:[#allocation8 + $0xd88] sm:$0xff]  ;;  %v3433_v4 = vld [vmem:[#allocation8 + $0x390] sm:$0xff] }
 0x2ee   :  { %9815 = vmatprep.subr.bf16.mxu0 %v13424_v28  ;;  %v13584_v28 = vcombine.high %v4024_v15, %v4032_v60  ;;  %v3760_v50 = vld [vmem:[#allocation8 + $0xdc8] sm:$0xff]  ;;  %v3441_v51 = vld [vmem:[#allocation8 + $0x3d0] sm:$0xff] }
 0x2ef   :  { %v3960_v2 = vld [vmem:[#allocation8 + $0x1408] sm:$0xff] }
 0x2f0   :  { %9769 = vmatpush1.bf16.msra.mxu1 %v13199_v10  ;;  %v13359_v10 = vcombine.low %v3800_v62, %v3808_v58  ;;  %v3968_v12 = vld [vmem:[#allocation8 + $0x1448] sm:$0xff] }
 0x2f1   :  { %9816 = vmatpush1.bf16.msra.mxu0 %v13423_v32  ;;  %9770 = vmatprep.subr.bf16.mxu1 %v13184_v14  ;;  %v13583_v32 = vcombine.low %v4024_v15, %v4032_v60  ;;  %v13344_v14 = vcombine.high %v3784_v22, %v3792_v5  ;;  %v3736_v39 = vld [vmem:[#allocation8 + $0xd08] sm:$0xff]  ;;  %v3417_v15 = vld [vmem:[#allocation8 + $0x310] sm:$0xff] }
 0x2f2   :  { %9817 = vmatprep.subr.bf16.mxu0 %v13408_v8  ;;  %v13568_v8 = vcombine.high %v4008_v23, %v4016_v63  ;;  %v3744_v41 = vld [vmem:[#allocation8 + $0xd48] sm:$0xff]  ;;  %v3425_v60 = vld [vmem:[#allocation8 + $0x350] sm:$0xff] }
 0x2f3   :  { %v3720_v33 = vld [vmem:[#allocation8 + $0xc88] sm:$0xff] }
 0x2f4   :  { %9771 = vmatpush1.bf16.msra.mxu1 %v13183_v19  ;;  %v13343_v19 = vcombine.low %v3784_v22, %v3792_v5  ;;  %v3728_v24 = vld [vmem:[#allocation8 + $0xcc8] sm:$0xff] }
 0x2f5   :  { %9818 = vmatpush1.bf16.msra.mxu0 %v13407_v16  ;;  %9772 = vmatprep.subr.bf16.mxu1 %v13168_v52  ;;  %v13567_v16 = vcombine.low %v4008_v23, %v4016_v63  ;;  %v13328_v52 = vcombine.high %v3768_v34, %v3776_v13  ;;  %v3704_v62 = vld [vmem:[#allocation8 + $0xc08] sm:$0xff]  ;;  %v3401_v23 = vld [vmem:[#allocation8 + $0x290] sm:$0xff] }
 0x2f6   :  { %9819 = vmatprep.subr.bf16.mxu0 %v13392_v45  ;;  %v13552_v45 = vcombine.high %v3992_v43, %v4000_v20  ;;  %v3712_v58 = vld [vmem:[#allocation8 + $0xc48] sm:$0xff]  ;;  %v3409_v63 = vld [vmem:[#allocation8 + $0x2d0] sm:$0xff] }
 0x2f7   :  { %v4200_v22 = vld [vmem:[#allocation8 + $0x1b88] sm:$0xff] }
 0x2f8   :  { %9773 = vmatpush1.bf16.msra.mxu1 %v13167_v31  ;;  %v13327_v31 = vcombine.low %v3768_v34, %v3776_v13  ;;  %v4208_v5 = vld [vmem:[#allocation8 + $0x1bc8] sm:$0xff]  ;;  %v3385_v34 = vld [vmem:[#allocation8 + $0x210] sm:$0xff] }
 0x2f9   :  { %9820 = vmatpush1.bf16.msra.mxu0 %v13391_v6  ;;  %9774 = vmatprep.subr.bf16.mxu1 %v13152_v11  ;;  %v13551_v6 = vcombine.low %v3992_v43, %v4000_v20  ;;  %v13312_v11 = vcombine.high %v3752_v27, %v3760_v50  ;;  %v4184_v43 = vld [vmem:[#allocation8 + $0x1b08] sm:$0xff]  ;;  %v3393_v13 = vld [vmem:[#allocation8 + $0x250] sm:$0xff] }
 0x2fa   :  { %9821 = vmatprep.subr.bf16.mxu0 %v13632_v37  ;;  %v13536_v37 = vcombine.high %v3976_v25, %v3984_v26  ;;  %v4192_v20 = vld [vmem:[#allocation8 + $0x1b48] sm:$0xff] }
 0x2fc   :  { %9775 = vmatpush1.bf16.msra.mxu1 %v13151_v21  ;;  %v13311_v21 = vcombine.low %v3752_v27, %v3760_v50  ;;  %v4168_v27 = vld [vmem:[#allocation8 + $0x1a88] sm:$0xff] }
 0x2fd   :  { %9822 = vmatpush2.bf16.msra.mxu0 %v13631_v36  ;;  %9776 = vmatprep.subr.bf16.mxu1 %v13136_v47  ;;  %v13535_v36 = vcombine.low %v3976_v25, %v3984_v26  ;;  %v13296_v47 = vcombine.high %v3736_v39, %v3744_v41  ;;  %v3369_v25 = vld [vmem:[#allocation8 + $0x190] sm:$0xff]  ;;  %v4176_v50 = vld [vmem:[#allocation8 + $0x1ac8] sm:$0xff] }
 0x2fe   :  { %9823 = vmatprep.subr.bf16.mxu0 %v13616_v18  ;;  %v13520_v18 = vcombine.high %v3960_v2, %v3968_v12  ;;  %v3377_v26 = vld [vmem:[#allocation8 + $0x1d0] sm:$0xff] }
 0x300   :  { %9777 = vmatpush1.bf16.msra.mxu1 %v13135_v17  ;;  %v13295_v17 = vcombine.low %v3736_v39, %v3744_v41  ;;  %v4152_v39 = vld [vmem:[#allocation8 + $0x1a08] sm:$0xff] }
 0x301   :  { %9824 = vmatpush2.bf16.msra.mxu0 %v13615_v54  ;;  %9778 = vmatprep.subr.bf16.mxu1 %v13376_v55  ;;  %v13519_v54 = vcombine.low %v3960_v2, %v3968_v12  ;;  %v13280_v55 = vcombine.high %v3720_v33, %v3728_v24  ;;  %v3353_v2 = vld [vmem:[#allocation8 + $0x110] sm:$0xff]  ;;  %v4160_v41 = vld [vmem:[#allocation8 + $0x1a48] sm:$0xff] }
 0x302   :  { %9825 = vmatprep.subr.bf16.mxu0 %v13600_v40  ;;  %v12994_v40 = vcombine.high %v3433_v4, %v3441_v51  ;;  %v3361_v12 = vld [vmem:[#allocation8 + $0x150] sm:$0xff] }
 0x304   :  { %9779 = vmatpush2.bf16.msra.mxu1 %v13375_v1  ;;  %v13279_v1 = vcombine.low %v3720_v33, %v3728_v24  ;;  %v4136_v33 = vld [vmem:[#allocation8 + $0x1988] sm:$0xff] }
 0x305   :  { %9826 = vmatpush2.bf16.msra.mxu0 %v13599_v59  ;;  %9780 = vmatprep.subr.bf16.mxu1 %v13360_v53  ;;  %v12993_v59 = vcombine.low %v3433_v4, %v3441_v51  ;;  %v13264_v53 = vcombine.high %v3704_v62, %v3712_v58  ;;  %v3337_v4 = vld [vmem:[#allocation8 + $0x90] sm:$0xff]  ;;  %v4144_v24 = vld [vmem:[#allocation8 + $0x19c8] sm:$0xff] }
 0x306   :  { %9827 = vmatprep.subr.bf16.mxu0 %v13584_v28  ;;  %v12978_v28 = vcombine.high %v3417_v15, %v3425_v60  ;;  %v3345_v51 = vld [vmem:[#allocation8 + $0xd0] sm:$0xff] }
 0x308   :  { %9781 = vmatpush2.bf16.msra.mxu1 %v13359_v10  ;;  %v13263_v10 = vcombine.low %v3704_v62, %v3712_v58  ;;  %v4120_v62 = vld [vmem:[#allocation8 + $0x1908] sm:$0xff] }
 0x309   :  { %9828 = vmatpush2.bf16.msra.mxu0 %v13583_v32  ;;  %9782 = vmatprep.subr.bf16.mxu1 %v13344_v14  ;;  %v12977_v32 = vcombine.low %v3417_v15, %v3425_v60  ;;  %v13760_v14 = vcombine.high %v4200_v22, %v4208_v5  ;;  %v3321_v15 = vld [vmem:[#allocation8 + $0x10] sm:$0xff]  ;;  %v4128_v58 = vld [vmem:[#allocation8 + $0x1948] sm:$0xff] }
 0x30a   :  { %9829 = vmatprep.subr.bf16.mxu0 %v13568_v8  ;;  %v12962_v8 = vcombine.high %v3401_v23, %v3409_v63  ;;  %v3329_v60 = vld [vmem:[#allocation8 + $0x50] sm:$0xff] }
 0x30c   :  { %9783 = vmatpush2.bf16.msra.mxu1 %v13343_v19  ;;  %v13759_v19 = vcombine.low %v4200_v22, %v4208_v5  ;;  %v4104_v22 = vld [vmem:[#allocation8 + $0x1888] sm:$0xff] }
 0x30d   :  { %9830 = vmatpush2.bf16.msra.mxu0 %v13567_v16  ;;  %9784 = vmatprep.subr.bf16.mxu1 %v13328_v52  ;;  %v12961_v16 = vcombine.low %v3401_v23, %v3409_v63  ;;  %v12946_v52 = vcombine.high %v3385_v34, %v3393_v13  ;;  %v3561_v23 = vld [vmem:[#allocation8 + $0x790] sm:$0xff]  ;;  %v4112_v5 = vld [vmem:[#allocation8 + $0x18c8] sm:$0xff] }
 0x30e   :  { %9831 = vmatprep.subr.bf16.mxu0 %v13552_v45  ;;  %v13744_v45 = vcombine.high %v4184_v43, %v4192_v20  ;;  %v3569_v63 = vld [vmem:[#allocation8 + $0x7d0] sm:$0xff] }
 0x310   :  { %9785 = vmatpush2.bf16.msra.mxu1 %v13327_v31  ;;  %v13743_v31 = vcombine.low %v4184_v43, %v4192_v20  ;;  %v3545_v43 = vld [vmem:[#allocation8 + $0x710] sm:$0xff] }
 0x311   :  { %9832 = vmatpush2.bf16.msra.mxu0 %v13551_v6  ;;  %9786 = vmatprep.subr.bf16.mxu1 %v13312_v11  ;;  %v12945_v6 = vcombine.low %v3385_v34, %v3393_v13  ;;  %v13728_v11 = vcombine.high %v4168_v27, %v4176_v50  ;;  %v3553_v20 = vld [vmem:[#allocation8 + $0x750] sm:$0xff]  ;;  %v4088_v34 = vld [vmem:[#allocation8 + $0x1808] sm:$0xff] }
 0x312   :  { %9833 = vmatprep.subr.bf16.mxu0 %v13536_v37  ;;  %v12930_v37 = vcombine.high %v3369_v25, %v3377_v26  ;;  %v4096_v13 = vld [vmem:[#allocation8 + $0x1848] sm:$0xff] }
 0x314   :  { %9787 = vmatpush2.bf16.msra.mxu1 %v13311_v21  ;;  %v13727_v21 = vcombine.low %v4168_v27, %v4176_v50  ;;  %v4328_v27 = vld [vmem:[#allocation8 + $0x1f88] sm:$0xff] }
 0x315   :  { %9834 = vmatpush2.bf16.msra.mxu0 %v13535_v36  ;;  %9788 = vmatprep.subr.bf16.mxu1 %v13296_v47  ;;  %v12929_v36 = vcombine.low %v3369_v25, %v3377_v26  ;;  %v13712_v47 = vcombine.high %v4152_v39, %v4160_v41  ;;  %v3529_v25 = vld [vmem:[#allocation8 + $0x690] sm:$0xff]  ;;  %v4336_v50 = vld [vmem:[#allocation8 + $0x1fc8] sm:$0xff] }
 0x316   :  { %9835 = vmatprep.subr.bf16.mxu0 %v13520_v18  ;;  %v12914_v18 = vcombine.high %v3353_v2, %v3361_v12  ;;  %v3537_v26 = vld [vmem:[#allocation8 + $0x6d0] sm:$0xff] }
 0x318   :  { %9789 = vmatpush2.bf16.msra.mxu1 %v13295_v17  ;;  %v13711_v17 = vcombine.low %v4152_v39, %v4160_v41  ;;  %v4312_v39 = vld [vmem:[#allocation8 + $0x1f08] sm:$0xff] }
 0x319   :  { %9836 = vmatpush2.bf16.msra.mxu0 %v13519_v54  ;;  %9790 = vmatprep.subr.bf16.mxu1 %v13280_v55  ;;  %v12913_v54 = vcombine.low %v3353_v2, %v3361_v12  ;;  %v13696_v55 = vcombine.high %v4136_v33, %v4144_v24  ;;  %v3513_v2 = vld [vmem:[#allocation8 + $0x610] sm:$0xff]  ;;  %v4320_v41 = vld [vmem:[#allocation8 + $0x1f48] sm:$0xff] }
 0x31a   :  { %9891 = vmatprep.subr.bf16.mxu0 %v12994_v40  ;;  %v12898_v40 = vcombine.high %v3337_v4, %v3345_v51  ;;  %v3521_v12 = vld [vmem:[#allocation8 + $0x650] sm:$0xff] }
 0x31c   :  { %9838 = vmatmul.mubr.bf16.vlgmr.msra.gmra.mxu0 %v14933_v9  ;;  %9791 = vmatpush2.bf16.msra.mxu1 %v13279_v1  ;;  %v13695_v1 = vcombine.low %v4136_v33, %v4144_v24  ;;  %v4296_v33 = vld [vmem:[#allocation8 + $0x1e88] sm:$0xff] }
 0x31d   :  { %9892 = vmatpush1.bf16.msra.mxu0 %v12993_v59  ;;  %9923 = vmatprep.mubr.bf16.mxu0 %v14872_v0  ;;  %v12897_v59 = vcombine.low %v3337_v4, %v3345_v51  ;;  %v3497_v4 = vld [vmem:[#allocation8 + $0x590] sm:$0xff]  ;;  %v4304_v24 = vld [vmem:[#allocation8 + $0x1ec8] sm:$0xff] }
 0x31e   :  { %9893 = vmatprep.subr.bf16.mxu0 %v12978_v28  ;;  %9792 = vmatprep.subr.bf16.mxu1 %v13264_v53  ;;  %v12882_v28 = vcombine.high %v3321_v15, %v3329_v60  ;;  %v13680_v53 = vcombine.high %v4120_v62, %v4128_v58  ;;  %v3505_v51 = vld [vmem:[#allocation8 + $0x5d0] sm:$0xff] }
 0x320   :  { %9793 = vmatpush2.bf16.msra.mxu1 %v13263_v10  ;;  %v13679_v10 = vcombine.low %v4120_v62, %v4128_v58  ;;  %v4280_v62 = vld [vmem:[#allocation8 + $0x1e08] sm:$0xff] }
 0x321   :  { %9894 = vmatpush1.bf16.msra.mxu0 %v12977_v32  ;;  %9848 = vmatprep.subr.bf16.mxu1 %v13760_v14  ;;  %v12881_v32 = vcombine.low %v3321_v15, %v3329_v60  ;;  %v13664_v14 = vcombine.high %v4104_v22, %v4112_v5  ;;  %v3481_v15 = vld [vmem:[#allocation8 + $0x510] sm:$0xff]  ;;  %v4288_v58 = vld [vmem:[#allocation8 + $0x1e48] sm:$0xff] }
 0x322   :  { %9895 = vmatprep.subr.bf16.mxu0 %v12962_v8  ;;  %v13122_v8 = vcombine.high %v3561_v23, %v3569_v63  ;;  %v3489_v60 = vld [vmem:[#allocation8 + $0x550] sm:$0xff] }
 0x323   :  { %9795 = vmatmul.mubr.bf16.vlgmr.msra.gmra.mxu1 %v14898_v49 }
 0x324   :  { %9849 = vmatpush1.bf16.msra.mxu1 %v13759_v19  ;;  %9880 = vmatprep.mubr.bf16.mxu1 %v14957_v35  ;;  %v13663_v19 = vcombine.low %v4104_v22, %v4112_v5  ;;  %v4264_v22 = vld [vmem:[#allocation8 + $0x1d88] sm:$0xff] }
 0x325   :  { %9896 = vmatpush1.bf16.msra.mxu0 %v12961_v16  ;;  %9850 = vmatprep.subr.bf16.mxu1 %v13744_v45  ;;  %v13121_v16 = vcombine.low %v3561_v23, %v3569_v63  ;;  %v13106_v45 = vcombine.high %v3545_v43, %v3553_v20  ;;  %v3465_v23 = vld [vmem:[#allocation8 + $0x490] sm:$0xff]  ;;  %v4272_v5 = vld [vmem:[#allocation8 + $0x1dc8] sm:$0xff] }
 0x326   :  { %9897 = vmatprep.subr.bf16.mxu0 %v12946_v52  ;;  %v13648_v52 = vcombine.high %v4088_v34, %v4096_v13  ;;  %v3473_v63 = vld [vmem:[#allocation8 + $0x4d0] sm:$0xff] }
 0x328   :  { %9851 = vmatpush1.bf16.msra.mxu1 %v13743_v31  ;;  %v13647_v31 = vcombine.low %v4088_v34, %v4096_v13  ;;  %v4248_v34 = vld [vmem:[#allocation8 + $0x1d08] sm:$0xff] }
 0x329   :  { %9898 = vmatpush1.bf16.msra.mxu0 %v12945_v6  ;;  %9852 = vmatprep.subr.bf16.mxu1 %v13728_v11  ;;  %v13105_v6 = vcombine.low %v3545_v43, %v3553_v20  ;;  %v13888_v11 = vcombine.high %v4328_v27, %v4336_v50  ;;  %v3449_v43 = vld [vmem:[#allocation8 + $0x410] sm:$0xff]  ;;  %v4256_v13 = vld [vmem:[#allocation8 + $0x1d48] sm:$0xff] }
 0x32a   :  { %9899 = vmatprep.subr.bf16.mxu0 %v12930_v37  ;;  %v13090_v37 = vcombine.high %v3529_v25, %v3537_v26  ;;  %v3457_v20 = vld [vmem:[#allocation8 + $0x450] sm:$0xff] }
 0x32c   :  { %9853 = vmatpush1.bf16.msra.mxu1 %v13727_v21  ;;  %v13887_v21 = vcombine.low %v4328_v27, %v4336_v50  ;;  %v4232_v27 = vld [vmem:[#allocation8 + $0x1c88] sm:$0xff] }
 0x32d   :  { %9900 = vmatpush1.bf16.msra.mxu0 %v12929_v36  ;;  %9854 = vmatprep.subr.bf16.mxu1 %v13712_v47  ;;  %v13089_v36 = vcombine.low %v3529_v25, %v3537_v26  ;;  %v13872_v47 = vcombine.high %v4312_v39, %v4320_v41  ;;  %v3945_v25 = vld [vmem:[#allocation8 + $0x1390] sm:$0xff]  ;;  %v4240_v50 = vld [vmem:[#allocation8 + $0x1cc8] sm:$0xff] }
 0x32e   :  { %9901 = vmatprep.subr.bf16.mxu0 %v12914_v18  ;;  %v13074_v18 = vcombine.high %v3513_v2, %v3521_v12  ;;  %v3953_v26 = vld [vmem:[#allocation8 + $0x13d0] sm:$0xff] }
 0x330   :  { %9855 = vmatpush1.bf16.msra.mxu1 %v13711_v17  ;;  %v13871_v17 = vcombine.low %v4312_v39, %v4320_v41  ;;  %v4216_v39 = vld [vmem:[#allocation8 + $0x1c08] sm:$0xff] }
 0x331   :  { %9902 = vmatpush1.bf16.msra.mxu0 %v12913_v54  ;;  %9856 = vmatprep.subr.bf16.mxu1 %v13696_v55  ;;  %v13073_v54 = vcombine.low %v3513_v2, %v3521_v12  ;;  %v13856_v55 = vcombine.high %v4296_v33, %v4304_v24  ;;  %v3929_v2 = vld [vmem:[#allocation8 + $0x1310] sm:$0xff]  ;;  %v4224_v41 = vld [vmem:[#allocation8 + $0x1c48] sm:$0xff] }
 0x332   :  { %9903 = vmatprep.subr.bf16.mxu0 %v12898_v40  ;;  %v13058_v40 = vcombine.high %v3497_v4, %v3505_v51  ;;  %v3937_v12 = vld [vmem:[#allocation8 + $0x1350] sm:$0xff] }
 0x334   :  { %9857 = vmatpush1.bf16.msra.mxu1 %v13695_v1  ;;  %v13855_v1 = vcombine.low %v4296_v33, %v4304_v24  ;;  %v3689_v33 = vld [vmem:[#allocation8 + $0xb90] sm:$0xff] }
 0x335   :  { %9904 = vmatpush1.bf16.msra.mxu0 %v12897_v59  ;;  %9858 = vmatprep.subr.bf16.mxu1 %v13680_v53  ;;  %v13057_v59 = vcombine.low %v3497_v4, %v3505_v51  ;;  %v13840_v53 = vcombine.high %v4280_v62, %v4288_v58  ;;  %v3913_v4 = vld [vmem:[#allocation8 + $0x1290] sm:$0xff] }
 0x336   :  { %9905 = vmatprep.subr.bf16.mxu0 %v12882_v28  ;;  %v13042_v28 = vcombine.high %v3481_v15, %v3489_v60  ;;  %v3921_v51 = vld [vmem:[#allocation8 + $0x12d0] sm:$0xff] }
 0x337   :  { %v3697_v24 = vld [vmem:[#allocation8 + $0xbd0] sm:$0xff] }
 0x338   :  { %9859 = vmatpush1.bf16.msra.mxu1 %v13679_v10  ;;  %v13839_v10 = vcombine.low %v4280_v62, %v4288_v58  ;;  %v3897_v62 = vld [vmem:[#allocation8 + $0x1210] sm:$0xff] }
 0x339   :  { %9906 = vmatpush1.bf16.msra.mxu0 %v12881_v32  ;;  %9860 = vmatprep.subr.bf16.mxu1 %v13664_v14  ;;  %v13041_v32 = vcombine.low %v3481_v15, %v3489_v60  ;;  %v13824_v14 = vcombine.high %v4264_v22, %v4272_v5  ;;  %v3673_v15 = vld [vmem:[#allocation8 + $0xb10] sm:$0xff] }
 0x33a   :  { %9907 = vmatprep.subr.bf16.mxu0 %v13122_v8  ;;  %v13026_v8 = vcombine.high %v3465_v23, %v3473_v63  ;;  %v3681_v60 = vld [vmem:[#allocation8 + $0xb50] sm:$0xff] }
 0x33b   :  { %v3905_v58 = vld [vmem:[#allocation8 + $0x1250] sm:$0xff] }
 0x33c   :  { %9861 = vmatpush1.bf16.msra.mxu1 %v13663_v19  ;;  %v13823_v19 = vcombine.low %v4264_v22, %v4272_v5  ;;  %v3657_v22 = vld [vmem:[#allocation8 + $0xa90] sm:$0xff] }
 0x33d   :  { %9908 = vmatpush2.bf16.msra.mxu0 %v13121_v16  ;;  %9862 = vmatprep.subr.bf16.mxu1 %v13648_v52  ;;  %v13025_v16 = vcombine.low %v3465_v23, %v3473_v63  ;;  %v13808_v52 = vcombine.high %v4248_v34, %v4256_v13  ;;  %v3881_v23 = vld [vmem:[#allocation8 + $0x1190] sm:$0xff] }
 0x33e   :  { %9909 = vmatprep.subr.bf16.mxu0 %v13106_v45  ;;  %v13010_v45 = vcombine.high %v3449_v43, %v3457_v20  ;;  %v3889_v63 = vld [vmem:[#allocation8 + $0x11d0] sm:$0xff] }
 0x33f   :  { %v3665_v5 = vld [vmem:[#allocation8 + $0xad0] sm:$0xff] }
 0x340   :  { %9863 = vmatpush1.bf16.msra.mxu1 %v13647_v31  ;;  %v13807_v31 = vcombine.low %v4248_v34, %v4256_v13  ;;  %v3641_v34 = vld [vmem:[#allocation8 + $0xa10] sm:$0xff] }
 0x341   :  { %9910 = vmatpush2.bf16.msra.mxu0 %v13105_v6  ;;  %9864 = vmatprep.subr.bf16.mxu1 %v13888_v11  ;;  %v13009_v6 = vcombine.low %v3449_v43, %v3457_v20  ;;  %v13792_v11 = vcombine.high %v4232_v27, %v4240_v50  ;;  %v3865_v43 = vld [vmem:[#allocation8 + $0x1110] sm:$0xff] }
 0x342   :  { %9911 = vmatprep.subr.bf16.mxu0 %v13090_v37  ;;  %v13506_v37 = vcombine.high %v3945_v25, %v3953_v26  ;;  %v3873_v20 = vld [vmem:[#allocation8 + $0x1150] sm:$0xff] }
 0x343   :  { %v3649_v13 = vld [vmem:[#allocation8 + $0xa50] sm:$0xff] }
 0x344   :  { %9865 = vmatpush2.bf16.msra.mxu1 %v13887_v21  ;;  %v13791_v21 = vcombine.low %v4232_v27, %v4240_v50  ;;  %v3625_v27 = vld [vmem:[#allocation8 + $0x990] sm:$0xff] }
 0x345   :  { %9912 = vmatpush2.bf16.msra.mxu0 %v13089_v36  ;;  %9866 = vmatprep.subr.bf16.mxu1 %v13872_v47  ;;  %v13505_v36 = vcombine.low %v3945_v25, %v3953_v26  ;;  %v13776_v47 = vcombine.high %v4216_v39, %v4224_v41  ;;  %v3849_v25 = vld [vmem:[#allocation8 + $0x1090] sm:$0xff] }
 0x346   :  { %9913 = vmatprep.subr.bf16.mxu0 %v13074_v18  ;;  %v13490_v18 = vcombine.high %v3929_v2, %v3937_v12  ;;  %v3857_v26 = vld [vmem:[#allocation8 + $0x10d0] sm:$0xff] }
 0x347   :  { %v3633_v50 = vld [vmem:[#allocation8 + $0x9d0] sm:$0xff] }
 0x348   :  { %9867 = vmatpush2.bf16.msra.mxu1 %v13871_v17  ;;  %v13775_v17 = vcombine.low %v4216_v39, %v4224_v41  ;;  %v3609_v39 = vld [vmem:[#allocation8 + $0x910] sm:$0xff] }
 0x349   :  { %9914 = vmatpush2.bf16.msra.mxu0 %v13073_v54  ;;  %9868 = vmatprep.subr.bf16.mxu1 %v13856_v55  ;;  %v13489_v54 = vcombine.low %v3929_v2, %v3937_v12  ;;  %v13250_v55 = vcombine.high %v3689_v33, %v3697_v24  ;;  %v3833_v2 = vld [vmem:[#allocation8 + $0x1010] sm:$0xff] }
 0x34a   :  { %9915 = vmatprep.subr.bf16.mxu0 %v13058_v40  ;;  %v13474_v40 = vcombine.high %v3913_v4, %v3921_v51  ;;  %v3841_v12 = vld [vmem:[#allocation8 + $0x1050] sm:$0xff] }
 0x34b   :  { %v3617_v41 = vld [vmem:[#allocation8 + $0x950] sm:$0xff] }
 0x34c   :  { %9869 = vmatpush2.bf16.msra.mxu1 %v13855_v1  ;;  %v13249_v1 = vcombine.low %v3689_v33, %v3697_v24  ;;  %v3593_v33 = vld [vmem:[#allocation8 + $0x890] sm:$0xff] }
 0x34d   :  { %9916 = vmatpush2.bf16.msra.mxu0 %v13057_v59  ;;  %9870 = vmatprep.subr.bf16.mxu1 %v13840_v53  ;;  %v13473_v59 = vcombine.low %v3913_v4, %v3921_v51  ;;  %v13458_v53 = vcombine.high %v3897_v62, %v3905_v58  ;;  %v4073_v4 = vld [vmem:[#allocation8 + $0x1790] sm:$0xff] }
 0x34e   :  { %9917 = vmatprep.subr.bf16.mxu0 %v13042_v28  ;;  %v13234_v28 = vcombine.high %v3673_v15, %v3681_v60  ;;  %v4081_v51 = vld [vmem:[#allocation8 + $0x17d0] sm:$0xff] }
 0x34f   :  { %v3601_v24 = vld [vmem:[#allocation8 + $0x8d0] sm:$0xff] }
 0x350   :  { %9871 = vmatpush2.bf16.msra.mxu1 %v13839_v10  ;;  %v13233_v10 = vcombine.low %v3673_v15, %v3681_v60  ;;  %v4057_v15 = vld [vmem:[#allocation8 + $0x1710] sm:$0xff] }
 0x351   :  { %9918 = vmatpush2.bf16.msra.mxu0 %v13041_v32  ;;  %9872 = vmatprep.subr.bf16.mxu1 %v13824_v14  ;;  %v13457_v32 = vcombine.low %v3897_v62, %v3905_v58  ;;  %v13218_v14 = vcombine.high %v3657_v22, %v3665_v5  ;;  %v4065_v60 = vld [vmem:[#allocation8 + $0x1750] sm:$0xff] }
 0x352   :  { %9919 = vmatprep.subr.bf16.mxu0 %v13026_v8  ;;  %v13442_v8 = vcombine.high %v3881_v23, %v3889_v63  ;;  %v3577_v62 = vld [vmem:[#allocation8 + $0x810] sm:$0xff] }
 0x353   :  { %v3585_v58 = vld [vmem:[#allocation8 + $0x850] sm:$0xff] }
 0x354   :  { %9873 = vmatpush2.bf16.msra.mxu1 %v13823_v19  ;;  %v13217_v19 = vcombine.low %v3657_v22, %v3665_v5  ;;  %v3817_v22 = vld [vmem:[#allocation8 + $0xf90] sm:$0xff] }
 0x355   :  { %9920 = vmatpush2.bf16.msra.mxu0 %v13025_v16  ;;  %9874 = vmatprep.subr.bf16.mxu1 %v13808_v52  ;;  %v13441_v16 = vcombine.low %v3881_v23, %v3889_v63  ;;  %v13202_v52 = vcombine.high %v3641_v34, %v3649_v13  ;;  %v4041_v23 = vld [vmem:[#allocation8 + $0x1690] sm:$0xff] }
 0x356   :  { %9921 = vmatprep.subr.bf16.mxu0 %v13010_v45  ;;  %v13426_v45 = vcombine.high %v3865_v43, %v3873_v20  ;;  %v4049_v63 = vld [vmem:[#allocation8 + $0x16d0] sm:$0xff] }
 0x357   :  { %v3825_v5 = vld [vmem:[#allocation8 + $0xfd0] sm:$0xff] }
 0x358   :  { %9875 = vmatpush2.bf16.msra.mxu1 %v13807_v31  ;;  %v13201_v31 = vcombine.low %v3641_v34, %v3649_v13  ;;  %v3801_v34 = vld [vmem:[#allocation8 + $0xf10] sm:$0xff] }
 0x359   :  { %9922 = vmatpush2.bf16.msra.mxu0 %v13009_v6  ;;  %9876 = vmatprep.subr.bf16.mxu1 %v13792_v11  ;;  %v13425_v6 = vcombine.low %v3865_v43, %v3873_v20  ;;  %v13186_v11 = vcombine.high %v3625_v27, %v3633_v50  ;;  %v4025_v43 = vld [vmem:[#allocation8 + $0x1610] sm:$0xff] }
 0x35a   :  { %9977 = vmatprep.subr.bf16.mxu0 %v13506_v37  ;;  %v13410_v37 = vcombine.high %v3849_v25, %v3857_v26  ;;  %v4033_v20 = vld [vmem:[#allocation8 + $0x1650] sm:$0xff] }
 0x35b   :  { %v3809_v13 = vld [vmem:[#allocation8 + $0xf50] sm:$0xff] }
 0x35c   :  { %9924 = vmatmul.mubr.bf16.vlgmr.msra.gmra.mxu0 %v14895_v44  ;;  %9877 = vmatpush2.bf16.msra.mxu1 %v13791_v21  ;;  %v13185_v21 = vcombine.low %v3625_v27, %v3633_v50  ;;  %v3785_v27 = vld [vmem:[#allocation8 + $0xe90] sm:$0xff] }
 0x35d   :  { %9978 = vmatpush1.bf16.msra.mxu0 %v13505_v36  ;;  %10009 = vmatprep.mubr.bf16.mxu0 %v14931_v3  ;;  %v13409_v36 = vcombine.low %v3849_v25, %v3857_v26  ;;  %v4009_v25 = vld [vmem:[#allocation8 + $0x1590] sm:$0xff] }
 0x35e   :  { %9979 = vmatprep.subr.bf16.mxu0 %v13490_v18  ;;  %9878 = vmatprep.subr.bf16.mxu1 %v13776_v47  ;;  %v13394_v18 = vcombine.high %v3833_v2, %v3841_v12  ;;  %v13170_v47 = vcombine.high %v3609_v39, %v3617_v41  ;;  %v4017_v26 = vld [vmem:[#allocation8 + $0x15d0] sm:$0xff] }
 0x35f   :  { %v3793_v50 = vld [vmem:[#allocation8 + $0xed0] sm:$0xff] }
 0x360   :  { %9879 = vmatpush2.bf16.msra.mxu1 %v13775_v17  ;;  %v13169_v17 = vcombine.low %v3609_v39, %v3617_v41  ;;  %v3769_v39 = vld [vmem:[#allocation8 + $0xe10] sm:$0xff] }
 0x361   :  { %9980 = vmatpush1.bf16.msra.mxu0 %v13489_v54  ;;  %9934 = vmatprep.subr.bf16.mxu1 %v13250_v55  ;;  %v13393_v54 = vcombine.low %v3833_v2, %v3841_v12  ;;  %v13154_v55 = vcombine.high %v3593_v33, %v3601_v24  ;;  %v3993_v2 = vld [vmem:[#allocation8 + $0x1510] sm:$0xff] }
 0x362   :  { %9981 = vmatprep.subr.bf16.mxu0 %v13474_v40  ;;  %v13634_v40 = vcombine.high %v4073_v4, %v4081_v51  ;;  %v4001_v12 = vld [vmem:[#allocation8 + $0x1550] sm:$0xff] }
 0x363   :  { %9881 = vmatmul.mubr.bf16.vlgmr.msra.gmra.mxu1 %v14960_v42  ;;  %v3777_v41 = vld [vmem:[#allocation8 + $0xe50] sm:$0xff] }
 0x364   :  { %9935 = vmatpush1.bf16.msra.mxu1 %v13249_v1  ;;  %9966 = vmatprep.mubr.bf16.mxu1 %v14891_v56  ;;  %v13153_v1 = vcombine.low %v3593_v33, %v3601_v24  ;;  %v3753_v33 = vld [vmem:[#allocation8 + $0xd90] sm:$0xff] }
 0x365   :  { %9982 = vmatpush1.bf16.msra.mxu0 %v13473_v59  ;;  %9936 = vmatprep.subr.bf16.mxu1 %v13234_v28  ;;  %v13633_v59 = vcombine.low %v4073_v4, %v4081_v51  ;;  %v13618_v28 = vcombine.high %v4057_v15, %v4065_v60  ;;  %v3977_v4 = vld [vmem:[#allocation8 + $0x1490] sm:$0xff] }
 0x366   :  { %9983 = vmatprep.subr.bf16.mxu0 %v13458_v53  ;;  %v13138_v53 = vcombine.high %v3577_v62, %v3585_v58  ;;  %v3985_v51 = vld [vmem:[#allocation8 + $0x14d0] sm:$0xff] }
 0x367   :  { %v3761_v24 = vld [vmem:[#allocation8 + $0xdd0] sm:$0xff] }
 0x368   :  { %9937 = vmatpush1.bf16.msra.mxu1 %v13233_v10  ;;  %v13137_v10 = vcombine.low %v3577_v62, %v3585_v58  ;;  %v3737_v62 = vld [vmem:[#allocation8 + $0xd10] sm:$0xff] }
 0x369   :  { %9984 = vmatpush1.bf16.msra.mxu0 %v13457_v32  ;;  %9938 = vmatprep.subr.bf16.mxu1 %v13218_v14  ;;  %v13617_v32 = vcombine.low %v4057_v15, %v4065_v60  ;;  %v13378_v14 = vcombine.high %v3817_v22, %v3825_v5  ;;  %v3961_v15 = vld [vmem:[#allocation8 + $0x1410] sm:$0xff] }
 0x36a   :  { %9985 = vmatprep.subr.bf16.mxu0 %v13442_v8  ;;  %v13602_v8 = vcombine.high %v4041_v23, %v4049_v63  ;;  %v3969_v60 = vld [vmem:[#allocation8 + $0x1450] sm:$0xff] }
 0x36b   :  { %v3745_v58 = vld [vmem:[#allocation8 + $0xd50] sm:$0xff] }
 0x36c   :  { %9939 = vmatpush1.bf16.msra.mxu1 %v13217_v19  ;;  %v13377_v19 = vcombine.low %v3817_v22, %v3825_v5  ;;  %v3721_v22 = vld [vmem:[#allocation8 + $0xc90] sm:$0xff] }
 0x36d   :  { %9986 = vmatpush1.bf16.msra.mxu0 %v13441_v16  ;;  %9940 = vmatprep.subr.bf16.mxu1 %v13202_v52  ;;  %v13601_v16 = vcombine.low %v4041_v23, %v4049_v63  ;;  %v13362_v52 = vcombine.high %v3801_v34, %v3809_v13  ;;  %v3434_v23 = vld [vmem:[#allocation8 + $0x398] sm:$0xff]  ;;  %v3729_v5 = vld [vmem:[#allocation8 + $0xcd0] sm:$0xff] }
 0x36e   :  { %9987 = vmatprep.subr.bf16.mxu0 %v13426_v45  ;;  %v13586_v45 = vcombine.high %v4025_v43, %v4033_v20  ;;  %v3442_v63 = vld [vmem:[#allocation8 + $0x3d8] sm:$0xff] }
 0x370   :  { %9941 = vmatpush1.bf16.msra.mxu1 %v13201_v31  ;;  %v13361_v31 = vcombine.low %v3801_v34, %v3809_v13  ;;  %v3705_v34 = vld [vmem:[#allocation8 + $0xc10] sm:$0xff] }
 0x371   :  { %9988 = vmatpush1.bf16.msra.mxu0 %v13425_v6  ;;  %9942 = vmatprep.subr.bf16.mxu1 %v13186_v11  ;;  %v13585_v6 = vcombine.low %v4025_v43, %v4033_v20  ;;  %v13346_v11 = vcombine.high %v3785_v27, %v3793_v50  ;;  %v3418_v43 = vld [vmem:[#allocation8 + $0x318] sm:$0xff]  ;;  %v3713_v13 = vld [vmem:[#allocation8 + $0xc50] sm:$0xff] }
 0x372   :  { %9989 = vmatprep.subr.bf16.mxu0 %v13410_v37  ;;  %v13570_v37 = vcombine.high %v4009_v25, %v4017_v26  ;;  %v3426_v20 = vld [vmem:[#allocation8 + $0x358] sm:$0xff] }
 0x374   :  { %9943 = vmatpush1.bf16.msra.mxu1 %v13185_v21  ;;  %v13345_v21 = vcombine.low %v3785_v27, %v3793_v50  ;;  %v4201_v27 = vld [vmem:[#allocation8 + $0x1b90] sm:$0xff] }
 0x375   :  { %9990 = vmatpush1.bf16.msra.mxu0 %v13409_v36  ;;  %9944 = vmatprep.subr.bf16.mxu1 %v13170_v47  ;;  %v13569_v36 = vcombine.low %v4009_v25, %v4017_v26  ;;  %v13330_v47 = vcombine.high %v3769_v39, %v3777_v41  ;;  %v3402_v25 = vld [vmem:[#allocation8 + $0x298] sm:$0xff]  ;;  %v4209_v50 = vld [vmem:[#allocation8 + $0x1bd0] sm:$0xff] }
 0x376   :  { %9991 = vmatprep.subr.bf16.mxu0 %v13394_v18  ;;  %v13554_v18 = vcombine.high %v3993_v2, %v4001_v12  ;;  %v3410_v26 = vld [vmem:[#allocation8 + $0x2d8] sm:$0xff] }
 0x378   :  { %9945 = vmatpush1.bf16.msra.mxu1 %v13169_v17  ;;  %v13329_v17 = vcombine.low %v3769_v39, %v3777_v41  ;;  %v3386_v39 = vld [vmem:[#allocation8 + $0x218] sm:$0xff] }
 0x379   :  { %9992 = vmatpush1.bf16.msra.mxu0 %v13393_v54  ;;  %9946 = vmatprep.subr.bf16.mxu1 %v13154_v55  ;;  %v13553_v54 = vcombine.low %v3993_v2, %v4001_v12  ;;  %v13314_v55 = vcombine.high %v3753_v33, %v3761_v24  ;;  %v4185_v2 = vld [vmem:[#allocation8 + $0x1b10] sm:$0xff]  ;;  %v3394_v41 = vld [vmem:[#allocation8 + $0x258] sm:$0xff] }
 0x37a   :  { %9993 = vmatprep.subr.bf16.mxu0 %v13634_v40  ;;  %v13538_v40 = vcombine.high %v3977_v4, %v3985_v51  ;;  %v4193_v12 = vld [vmem:[#allocation8 + $0x1b50] sm:$0xff] }
 0x37c   :  { %9947 = vmatpush1.bf16.msra.mxu1 %v13153_v1  ;;  %v13313_v1 = vcombine.low %v3753_v33, %v3761_v24  ;;  %v4169_v33 = vld [vmem:[#allocation8 + $0x1a90] sm:$0xff] }
 0x37d   :  { %9994 = vmatpush2.bf16.msra.mxu0 %v13633_v59  ;;  %9948 = vmatprep.subr.bf16.mxu1 %v13138_v53  ;;  %v13537_v59 = vcombine.low %v3977_v4, %v3985_v51  ;;  %v13298_v53 = vcombine.high %v3737_v62, %v3745_v58  ;;  %v3370_v4 = vld [vmem:[#allocation8 + $0x198] sm:$0xff]  ;;  %v4177_v24 = vld [vmem:[#allocation8 + $0x1ad0] sm:$0xff] }
 0x37e   :  { %9995 = vmatprep.subr.bf16.mxu0 %v13618_v28  ;;  %v13522_v28 = vcombine.high %v3961_v15, %v3969_v60  ;;  %v3378_v51 = vld [vmem:[#allocation8 + $0x1d8] sm:$0xff] }
 0x380   :  { %9949 = vmatpush1.bf16.msra.mxu1 %v13137_v10  ;;  %v13297_v10 = vcombine.low %v3737_v62, %v3745_v58  ;;  %v4153_v62 = vld [vmem:[#allocation8 + $0x1a10] sm:$0xff] }
 0x381   :  { %9996 = vmatpush2.bf16.msra.mxu0 %v13617_v32  ;;  %9950 = vmatprep.subr.bf16.mxu1 %v13378_v14  ;;  %v13521_v32 = vcombine.low %v3961_v15, %v3969_v60  ;;  %v13282_v14 = vcombine.high %v3721_v22, %v3729_v5  ;;  %v3354_v15 = vld [vmem:[#allocation8 + $0x118] sm:$0xff]  ;;  %v4161_v58 = vld [vmem:[#allocation8 + $0x1a50] sm:$0xff] }
 0x382   :  { %9997 = vmatprep.subr.bf16.mxu0 %v13602_v8  ;;  %v12996_v8 = vcombine.high %v3434_v23, %v3442_v63  ;;  %v3362_v60 = vld [vmem:[#allocation8 + $0x158] sm:$0xff] }
 0x384   :  { %9951 = vmatpush2.bf16.msra.mxu1 %v13377_v19  ;;  %v13281_v19 = vcombine.low %v3721_v22, %v3729_v5  ;;  %v4137_v22 = vld [vmem:[#allocation8 + $0x1990] sm:$0xff] }
 0x385   :  { %9998 = vmatpush2.bf16.msra.mxu0 %v13601_v16  ;;  %9952 = vmatprep.subr.bf16.mxu1 %v13362_v52  ;;  %v12995_v16 = vcombine.low %v3434_v23, %v3442_v63  ;;  %v13266_v52 = vcombine.high %v3705_v34, %v3713_v13  ;;  %v3338_v23 = vld [vmem:[#allocation8 + $0x98] sm:$0xff]  ;;  %v4145_v5 = vld [vmem:[#allocation8 + $0x19d0] sm:$0xff] }
 0x386   :  { %9999 = vmatprep.subr.bf16.mxu0 %v13586_v45  ;;  %v12980_v45 = vcombine.high %v3418_v43, %v3426_v20  ;;  %v3346_v63 = vld [vmem:[#allocation8 + $0xd8] sm:$0xff] }
 0x388   :  { %9953 = vmatpush2.bf16.msra.mxu1 %v13361_v31  ;;  %v13265_v31 = vcombine.low %v3705_v34, %v3713_v13  ;;  %v4121_v34 = vld [vmem:[#allocation8 + $0x1910] sm:$0xff] }
 0x389   :  { %10000 = vmatpush2.bf16.msra.mxu0 %v13585_v6  ;;  %9954 = vmatprep.subr.bf16.mxu1 %v13346_v11  ;;  %v12979_v6 = vcombine.low %v3418_v43, %v3426_v20  ;;  %v13762_v11 = vcombine.high %v4201_v27, %v4209_v50  ;;  %v3322_v43 = vld [vmem:[#allocation8 + $0x18] sm:$0xff]  ;;  %v4129_v13 = vld [vmem:[#allocation8 + $0x1950] sm:$0xff] }
 0x38a   :  { %10001 = vmatprep.subr.bf16.mxu0 %v13570_v37  ;;  %v12964_v37 = vcombine.high %v3402_v25, %v3410_v26  ;;  %v3330_v20 = vld [vmem:[#allocation8 + $0x58] sm:$0xff] }
 0x38c   :  { %9955 = vmatpush2.bf16.msra.mxu1 %v13345_v21  ;;  %v13761_v21 = vcombine.low %v4201_v27, %v4209_v50  ;;  %v4105_v27 = vld [vmem:[#allocation8 + $0x1890] sm:$0xff] }
 0x38d   :  { %10002 = vmatpush2.bf16.msra.mxu0 %v13569_v36  ;;  %9956 = vmatprep.subr.bf16.mxu1 %v13330_v47  ;;  %v12963_v36 = vcombine.low %v3402_v25, %v3410_v26  ;;  %v12948_v47 = vcombine.high %v3386_v39, %v3394_v41  ;;  %v3562_v25 = vld [vmem:[#allocation8 + $0x798] sm:$0xff]  ;;  %v4113_v50 = vld [vmem:[#allocation8 + $0x18d0] sm:$0xff] }
 0x38e   :  { %10003 = vmatprep.subr.bf16.mxu0 %v13554_v18  ;;  %v13746_v18 = vcombine.high %v4185_v2, %v4193_v12  ;;  %v3570_v26 = vld [vmem:[#allocation8 + $0x7d8] sm:$0xff] }
 0x390   :  { %9957 = vmatpush2.bf16.msra.mxu1 %v13329_v17  ;;  %v13745_v17 = vcombine.low %v4185_v2, %v4193_v12  ;;  %v3546_v2 = vld [vmem:[#allocation8 + $0x718] sm:$0xff] }
 0x391   :  { %10004 = vmatpush2.bf16.msra.mxu0 %v13553_v54  ;;  %9958 = vmatprep.subr.bf16.mxu1 %v13314_v55  ;;  %v12947_v54 = vcombine.low %v3386_v39, %v3394_v41  ;;  %v13730_v55 = vcombine.high %v4169_v33, %v4177_v24  ;;  %v3554_v12 = vld [vmem:[#allocation8 + $0x758] sm:$0xff]  ;;  %v4089_v39 = vld [vmem:[#allocation8 + $0x1810] sm:$0xff] }
 0x392   :  { %10005 = vmatprep.subr.bf16.mxu0 %v13538_v40  ;;  %v12932_v40 = vcombine.high %v3370_v4, %v3378_v51  ;;  %v4097_v41 = vld [vmem:[#allocation8 + $0x1850] sm:$0xff] }
 0x394   :  { %9959 = vmatpush2.bf16.msra.mxu1 %v13313_v1  ;;  %v13729_v1 = vcombine.low %v4169_v33, %v4177_v24  ;;  %v3538_v33 = vld [vmem:[#allocation8 + $0x6d8] sm:$0xff]  ;;  %v4329_v24 = vld [vmem:[#allocation8 + $0x1f90] sm:$0xff] }
 0x395   :  { %10006 = vmatpush2.bf16.msra.mxu0 %v13537_v59  ;;  %9960 = vmatprep.subr.bf16.mxu1 %v13298_v53  ;;  %v12931_v59 = vcombine.low %v3370_v4, %v3378_v51  ;;  %v13714_v53 = vcombine.high %v4153_v62, %v4161_v58  ;;  %v13650_v4 = vcombine.high %v4089_v39, %v4097_v41  ;;  %v3530_v51 = vld [vmem:[#allocation8 + $0x698] sm:$0xff] }
 0x396   :  { %10007 = vmatprep.subr.bf16.mxu0 %v13522_v28  ;;  %v12916_v28 = vcombine.high %v3354_v15, %v3362_v60 }
 0x398   :  { %9961 = vmatpush2.bf16.msra.mxu1 %v13297_v10  ;;  %v13713_v10 = vcombine.low %v4153_v62, %v4161_v58  ;;  %v3514_v62 = vld [vmem:[#allocation8 + $0x618] sm:$0xff] }
 0x399   :  { %10008 = vmatpush2.bf16.msra.mxu0 %v13521_v32  ;;  %9962 = vmatprep.subr.bf16.mxu1 %v13282_v14  ;;  %v12915_v32 = vcombine.low %v3354_v15, %v3362_v60  ;;  %v13698_v14 = vcombine.high %v4137_v22, %v4145_v5  ;;  %v13092_v15 = vcombine.high %v3530_v51, %v3538_v33  ;;  %v3522_v58 = vld [vmem:[#allocation8 + $0x658] sm:$0xff] }
 0x39a   :  { %10063 = vmatprep.subr.bf16.mxu0 %v12996_v8  ;;  %v12900_v8 = vcombine.high %v3338_v23, %v3346_v63 }
 0x39c   :  { %10010 = vmatmul.mubr.bf16.vlgmr.msra.gmra.mxu0 %v14933_v9  ;;  %9963 = vmatpush2.bf16.msra.mxu1 %v13281_v19  ;;  %v13697_v19 = vcombine.low %v4137_v22, %v4145_v5  ;;  %v3498_v5 = vld [vmem:[#allocation8 + $0x598] sm:$0xff] }
 0x39d   :  { %10064 = vmatpush1.bf16.msra.mxu0 %v12995_v16  ;;  %10095 = vmatprep.mubr.bf16.mxu0 %v14872_v0  ;;  %v12899_v16 = vcombine.low %v3338_v23, %v3346_v63  ;;  %v13076_v63 = vcombine.high %v3514_v62, %v3522_v58 }
 0x39e   :  { %10065 = vmatprep.subr.bf16.mxu0 %v12980_v45  ;;  %9964 = vmatprep.subr.bf16.mxu1 %v13266_v52  ;;  %v12884_v45 = vcombine.high %v3322_v43, %v3330_v20  ;;  %v13682_v52 = vcombine.high %v4121_v34, %v4129_v13 }
 0x3a0   :  { %9965 = vmatpush2.bf16.msra.mxu1 %v13265_v31  ;;  %v13681_v31 = vcombine.low %v4121_v34, %v4129_v13 }
 0x3a1   :  { %10066 = vmatpush1.bf16.msra.mxu0 %v12979_v6  ;;  %10020 = vmatprep.subr.bf16.mxu1 %v13762_v11  ;;  %v12883_v6 = vcombine.low %v3322_v43, %v3330_v20  ;;  %v13666_v11 = vcombine.high %v4105_v27, %v4113_v50  ;;  %v13075_v43 = vcombine.low %v3514_v62, %v3522_v58 }
 0x3a2   :  { %10067 = vmatprep.subr.bf16.mxu0 %v12964_v37  ;;  %v13124_v37 = vcombine.high %v3562_v25, %v3570_v26 }
 0x3a3   :  { %9967 = vmatmul.mubr.bf16.vlgmr.msra.gmra.mxu1 %v14898_v49 }
 0x3a4   :  { %10021 = vmatpush1.bf16.msra.mxu1 %v13761_v21  ;;  %10052 = vmatprep.mubr.bf16.mxu1 %v14957_v35  ;;  %v13123_v21 = vcombine.low %v3562_v25, %v3570_v26  ;;  %v4289_v25 = vld [vmem:[#allocation8 + $0x1e50] sm:$0xff]  ;;  %v14990_v26 = vpop.f32.mrf.mxu1 }
 0x3a5   :  { %10068 = vmatpush1.bf16.msra.mxu0 %v12963_v36  ;;  %10022 = vmatprep.subr.bf16.mxu1 %v13746_v18  ;;  %v14980_v36 = vpop.f32.mrf.mxu0  ;;  %v13665_v18 = vcombine.low %v4105_v27, %v4113_v50 }
 0x3a6   :  { %10069 = vmatprep.subr.bf16.mxu0 %v12948_v47  ;;  %v13108_v47 = vcombine.high %v3546_v2, %v3554_v12 }
 0x3a8   :  { %10023 = vmatpush1.bf16.msra.mxu1 %v13745_v17  ;;  %v14982_v17 = vpop.f32.mrf.mxu0 }
 0x3a9   :  { %10070 = vmatpush1.bf16.msra.mxu0 %v12947_v54  ;;  %10024 = vmatprep.subr.bf16.mxu1 %v13730_v55  ;;  %v4337_v54 = vld [vmem:[#allocation8 + $0x1fd0] sm:$0xff]  ;;  %v13649_v55 = vcombine.low %v4089_v39, %v4097_v41  ;;  %v14994_v41 = vpop.f32.mrf.mxu1 }
 0x3aa   :  { %10071 = vmatprep.subr.bf16.mxu0 %v12932_v40  ;;  %v13107_v40 = vcombine.low %v3546_v2, %v3554_v12  ;;  %v13890_v60 = vcombine.high %v4329_v24, %v4337_v54  ;;  %v13889_v23 = vcombine.low %v4329_v24, %v4337_v54  ;;  %v3474_v2 = vld [vmem:[#allocation8 + $0x4d8] sm:$0xff]  ;;  %v4265_v12 = vld [vmem:[#allocation8 + $0x1d90] sm:$0xff] }
 0x3ab   :  { %v4273_v39 = vld [vmem:[#allocation8 + $0x1dd0] sm:$0xff]  ;;  %v3458_v24 = vld [vmem:[#allocation8 + $0x458] sm:$0xff] }
 0x3ac   :  { %10025 = vmatpush1.bf16.msra.mxu1 %v13729_v1  ;;  %v4321_v1 = vld [vmem:[#allocation8 + $0x1f50] sm:$0xff] }
 0x3ad   :  { %10072 = vmatpush1.bf16.msra.mxu0 %v12931_v59  ;;  %10026 = vmatprep.subr.bf16.mxu1 %v13714_v53  ;;  %v4313_v59 = vld [vmem:[#allocation8 + $0x1f10] sm:$0xff]  ;;  %v13091_v53 = vcombine.low %v3530_v51, %v3538_v33  ;;  %v13826_v51 = vcombine.high %v4265_v12, %v4273_v39  ;;  %v3450_v33 = vld [vmem:[#allocation8 + $0x418] sm:$0xff] }
 0x3ae   :  { %10073 = vmatprep.subr.bf16.mxu0 %v12916_v28  ;;  %v14984_v28 = vpop.f32.mrf.mxu0  ;;  %v13874_v22 = vcombine.high %v4313_v59, %v4321_v1  ;;  %v13873_v20 = vcombine.low %v4313_v59, %v4321_v1  ;;  %v4249_v54 = vld [vmem:[#allocation8 + $0x1d10] sm:$0xff]  ;;  %v13012_v62 = vcombine.high %v3450_v33, %v3458_v24  ;;  %v3946_v1 = vld [vmem:[#allocation8 + $0x1398] sm:$0xff] }
 0x3b0   :  { %10027 = vmatpush1.bf16.msra.mxu1 %v13713_v10  ;;  %v4297_v10 = vld [vmem:[#allocation8 + $0x1e90] sm:$0xff] }
 0x3b1   :  { %10074 = vmatpush1.bf16.msra.mxu0 %v12915_v32  ;;  %10028 = vmatprep.subr.bf16.mxu1 %v13698_v14  ;;  %v3506_v32 = vld [vmem:[#allocation8 + $0x5d8] sm:$0xff]  ;;  %v14986_v14 = vpop.f32.mrf.mxu0 }
 0x3b2   :  { %10075 = vmatprep.subr.bf16.mxu0 %v12900_v8  ;;  %v4305_v8 = vld [vmem:[#allocation8 + $0x1ed0] sm:$0xff]  ;;  %v13060_v34 = vcombine.high %v3498_v5, %v3506_v32  ;;  %v13059_v27 = vcombine.low %v3498_v5, %v3506_v32  ;;  %v13011_v32 = vcombine.low %v3450_v33, %v3458_v24  ;;  %v4343_v33 = vld [vmem:[#allocation10] sm:$0xff] }
 0x3b3   :  { %v14988_v13 = vpop.f32.mrf.mxu0  ;;  %v13857_v50 = vcombine.low %v4297_v10, %v4305_v8 }
 0x3b4   :  { %10029 = vmatpush1.bf16.msra.mxu1 %v13697_v19  ;;  %v3482_v19 = vld [vmem:[#allocation8 + $0x518] sm:$0xff] }
 0x3b5   :  { %10076 = vmatpush1.bf16.msra.mxu0 %v12899_v16  ;;  %10030 = vmatprep.subr.bf16.mxu1 %v13682_v52  ;;  %v13858_v16 = vcombine.high %v4297_v10, %v4305_v8  ;;  %v4281_v52 = vld [vmem:[#allocation8 + $0x1e10] sm:$0xff] }
 0x3b6   :  { %10077 = vmatprep.subr.bf16.mxu0 %v12884_v45  ;;  %v3490_v45 = vld [vmem:[#allocation8 + $0x558] sm:$0xff] }
 0x3b8   :  { %10031 = vmatpush1.bf16.msra.mxu1 %v13681_v31  ;;  %v14992_v31 = vpop.f32.mrf.mxu0 }
 0x3b9   :  { %10078 = vmatpush1.bf16.msra.mxu0 %v12883_v6  ;;  %10032 = vmatprep.subr.bf16.mxu1 %v13666_v11  ;;  %v13044_v6 = vcombine.high %v3482_v19, %v3490_v45  ;;  %v3466_v11 = vld [vmem:[#allocation8 + $0x498] sm:$0xff] }
 0x3ba   :  { %10079 = vmatprep.subr.bf16.mxu0 %v13124_v37  ;;  %v13842_v37 = vcombine.high %v4281_v52, %v4289_v25 }
 0x3bc   :  { %10033 = vmatpush1.bf16.msra.mxu1 %v13665_v18  ;;  %v13841_v18 = vcombine.low %v4281_v52, %v4289_v25 }
 0x3bd   :  { %10080 = vmatpush2.bf16.msra.mxu0 %v13123_v21  ;;  %10034 = vmatprep.subr.bf16.mxu1 %v13650_v4  ;;  %v13043_v21 = vcombine.low %v3482_v19, %v3490_v45  ;;  %v14996_v4 = vpop.f32.mrf.mxu0  ;;  %v4217_v19 = vld [vmem:[#allocation8 + $0x1c10] sm:$0xff] }
 0x3be   :  { %10081 = vmatprep.subr.bf16.mxu0 %v13108_v47  ;;  %v13028_v47 = vcombine.high %v3466_v11, %v3474_v2  ;;  %v4225_v45 = vld [vmem:[#allocation8 + $0x1c50] sm:$0xff] }
 0x3bf   :  { %v15000_v58 = vpop.f32.mrf.mxu0 }
 0x3c0   :  { %10035 = vmatpush1.bf16.msra.mxu1 %v13649_v55  ;;  %v14998_v55 = vpop.f32.mrf.mxu1 }
 0x3c1   :  { %10082 = vmatpush2.bf16.msra.mxu0 %v13107_v40  ;;  %10036 = vmatprep.subr.bf16.mxu1 %v13890_v60  ;;  %v4257_v40 = vld [vmem:[#allocation8 + $0x1d50] sm:$0xff]  ;;  %v13825_v60 = vcombine.low %v4265_v12, %v4273_v39  ;;  %v9753_v5 = vpop.f32.mrf.mxu0  ;;  %v3690_v12 = vld [vmem:[#allocation8 + $0xb98] sm:$0xff] }
 0x3c2   :  { %10083 = vmatprep.subr.bf16.mxu0 %v13092_v15  ;;  %v13027_v15 = vcombine.low %v3466_v11, %v3474_v2  ;;  %v13810_v59 = vcombine.high %v4249_v54, %v4257_v40  ;;  %v13809_v10 = vcombine.low %v4249_v54, %v4257_v40  ;;  %v3914_v11 = vld [vmem:[#allocation8 + $0x1298] sm:$0xff] }
 0x3c3   :  { %v9755_v52 = vpop.f32.mrf.mxu0  ;;  %v3922_v2 = vld [vmem:[#allocation8 + $0x12d8] sm:$0xff] }
 0x3c4   :  { %10037 = vmatpush2.bf16.msra.mxu1 %v13889_v23  ;;  %v4233_v23 = vld [vmem:[#allocation8 + $0x1c90] sm:$0xff]  ;;  %v3698_v39 = vld [vmem:[#allocation8 + $0xbd8] sm:$0xff] }
 0x3c5   :  { %10084 = vmatpush2.bf16.msra.mxu0 %v13091_v53  ;;  %10038 = vmatprep.subr.bf16.mxu1 %v13874_v22  ;;  %v3954_v53 = vld [vmem:[#allocation8 + $0x13d8] sm:$0xff]  ;;  %v15002_v22 = vpop.f32.mrf.mxu1  ;;  %v13252_v54 = vcombine.high %v3690_v12, %v3698_v39 }
 0x3c6   :  { %10085 = vmatprep.subr.bf16.mxu0 %v13076_v63  ;;  %v4241_v63 = vld [vmem:[#allocation8 + $0x1cd0] sm:$0xff]  ;;  %v13508_v8 = vcombine.high %v3946_v1, %v3954_v53  ;;  %v13507_v25 = vcombine.low %v3946_v1, %v3954_v53  ;;  %v3674_v40 = vld [vmem:[#allocation8 + $0xb18] sm:$0xff]  ;;  %v13475_v53 = vcombine.low %v3914_v11, %v3922_v2 }
 0x3c8   :  { %10039 = vmatpush2.bf16.msra.mxu1 %v13873_v20  ;;  %v13794_v20 = vcombine.high %v4233_v23, %v4241_v63 }
 0x3c9   :  { %10086 = vmatpush2.bf16.msra.mxu0 %v13075_v43  ;;  %10040 = vmatprep.subr.bf16.mxu1 %v13858_v16  ;;  %v15004_v43 = vpop.f32.mrf.mxu1  ;;  %v3938_v16 = vld [vmem:[#allocation8 + $0x1358] sm:$0xff] }
 0x3ca   :  { %10087 = vmatprep.subr.bf16.mxu0 %v13060_v34  ;;  %15347 = vst [vmem:[#allocation25_spill] sm:$0xff] %v15004_v43  ;;  %v3930_v34 = vld [vmem:[#allocation8 + $0x1318] sm:$0xff] }
 0x3cc   :  { %10041 = vmatpush2.bf16.msra.mxu1 %v13857_v50  ;;  %v13492_v50 = vcombine.high %v3930_v34, %v3938_v16 }
 0x3cd   :  { %10088 = vmatpush2.bf16.msra.mxu0 %v13059_v27  ;;  %10042 = vmatprep.subr.bf16.mxu1 %v13842_v37  ;;  %v13793_v27 = vcombine.low %v4233_v23, %v4241_v63  ;;  %v13778_v37 = vcombine.high %v4217_v19, %v4225_v45  ;;  %v15016_v23 = vrot.slane %v4343_v33, %v14845_v7 }
 0x3ce   :  { %10089 = vmatprep.subr.bf16.mxu0 %v13044_v6  ;;  %v15006_v6 = vpop.f32.mrf.mxu1  ;;  %v13251_v63 = vcombine.low %v3690_v12, %v3698_v39 }
 0x3cf   :  { %15349 = vst [vmem:[#allocation27_spill] sm:$0xff] %v15016_v23 }
 0x3d0   :  { %10043 = vmatpush2.bf16.msra.mxu1 %v13841_v18  ;;  %v13491_v18 = vcombine.low %v3930_v34, %v3938_v16  ;;  %v15010_v24 = vpop.f32.mrf.mxu1  ;;  %v3882_v34 = vld [vmem:[#allocation8 + $0x1198] sm:$0xff] }
 0x3d1   :  { %10090 = vmatpush2.bf16.msra.mxu0 %v13043_v21  ;;  %10044 = vmatprep.subr.bf16.mxu1 %v13826_v51  ;;  %v9757_v21 = vpop.f32.mrf.mxu0  ;;  %v13476_v51 = vcombine.high %v3914_v11, %v3922_v2  ;;  %v3890_v16 = vld [vmem:[#allocation8 + $0x11d8] sm:$0xff]  ;;  %v9756_v11 = vadd.f32 %v9755_v52, %v15016_v23 }
 0x3d2   :  { %10091 = vmatprep.subr.bf16.mxu0 %v13028_v47  ;;  %v13777_v47 = vcombine.low %v4217_v19, %v4225_v45  ;;  %v3658_v45 = vld [vmem:[#allocation8 + $0xa98] sm:$0xff]  ;;  %v13444_v12 = vcombine.high %v3882_v34, %v3890_v16 }
 0x3d3   :  { %v15013_v1 = vpop.f32.mrf.mxu0 }
 0x3d4   :  { %10045 = vmatpush2.bf16.msra.mxu1 %v13825_v60  ;;  %v3682_v60 = vld [vmem:[#allocation8 + $0xb58] sm:$0xff]  ;;  %15348 = vst [vmem:[#allocation26_spill] sm:$0xff] %v15013_v1 }
 0x3d5   :  { %10092 = vmatpush2.bf16.msra.mxu0 %v13027_v15  ;;  %10046 = vmatprep.subr.bf16.mxu1 %v13810_v59  ;;  %v4358_v15 = vrot.slane %v4343_v33, %v14865_v38  ;;  %v3906_v59 = vld [vmem:[#allocation8 + $0x1258] sm:$0xff] }
 0x3d6   :  { %10093 = vmatprep.subr.bf16.mxu0 %v13012_v62  ;;  %v3898_v62 = vld [vmem:[#allocation8 + $0x1218] sm:$0xff] }
 0x3d7   :  { %v9754_v19 = vadd.f32 %v9753_v5, %v4358_v15  ;;  %v9758_v33 = vadd.f32 %v9757_v21, %v4358_v15  ;;  %v3858_v38 = vld [vmem:[#allocation8 + $0x10d8] sm:$0xff] }
 0x3d8   :  { %10047 = vmatpush2.bf16.msra.mxu1 %v13809_v10  ;;  %v3626_v21 = vld [vmem:[#allocation8 + $0x998] sm:$0xff] }
 0x3d9   :  { %10094 = vmatpush2.bf16.msra.mxu0 %v13011_v32  ;;  %10048 = vmatprep.subr.bf16.mxu1 %v13794_v20  ;;  %v15018_v32 = vpop.f32.mrf.mxu1  ;;  %v13460_v20 = vcombine.high %v3898_v62, %v3906_v59  ;;  %v3634_v15 = vld [vmem:[#allocation8 + $0x9d8] sm:$0xff] }
 0x3da   :  { %10149 = vmatprep.subr.bf16.mxu0 %v13508_v8  ;;  %v13236_v8 = vcombine.high %v3674_v40, %v3682_v60 }
 0x3dc   :  { %10096 = vmatmul.mubr.bf16.vlgmr.msra.gmra.mxu0 %v14895_v44  ;;  %10049 = vmatpush2.bf16.msra.mxu1 %v13793_v27  ;;  %v9839_v10 = vpop.f32.mrf.mxu0 }
 0x3dd   :  { %10150 = vmatpush1.bf16.msra.mxu0 %v13507_v25  ;;  %10181 = vmatprep.mubr.bf16.mxu0 %v14931_v3  ;;  %v3666_v25 = vld [vmem:[#allocation8 + $0xad8] sm:$0xff] }
 0x3de   :  { %10151 = vmatprep.subr.bf16.mxu0 %v13492_v50  ;;  %10050 = vmatprep.subr.bf16.mxu1 %v13778_v37  ;;  %v13235_v50 = vcombine.low %v3674_v40, %v3682_v60  ;;  %v13459_v37 = vcombine.low %v3898_v62, %v3906_v59  ;;  %v15023_v39 = vpop.f32.mrf.mxu0  ;;  %v13220_v5 = vcombine.high %v3658_v45, %v3666_v25  ;;  %v3642_v40 = vld [vmem:[#allocation8 + $0xa18] sm:$0xff] }
 0x3df   :  { %15350 = vst [vmem:[#allocation28_spill] sm:$0xff] %v15023_v39  ;;  %v3650_v60 = vld [vmem:[#allocation8 + $0xa58] sm:$0xff]  ;;  %v13443_v59 = vcombine.low %v3882_v34, %v3890_v16  ;;  %v13188_v16 = vcombine.high %v3626_v21, %v3634_v15 }
 0x3e0   :  { %10051 = vmatpush2.bf16.msra.mxu1 %v13777_v47  ;;  %v3866_v47 = vld [vmem:[#allocation8 + $0x1118] sm:$0xff] }
 0x3e1   :  { %10152 = vmatpush1.bf16.msra.mxu0 %v13491_v18  ;;  %10106 = vmatprep.subr.bf16.mxu1 %v13252_v54 }
 0x3e2   :  { %10153 = vmatprep.subr.bf16.mxu0 %v13476_v51  ;;  %v3874_v51 = vld [vmem:[#allocation8 + $0x1158] sm:$0xff] }
 0x3e3   :  { %v9796_v27 = vpop.f32.mrf.mxu1  ;;  %10053 = vmatmul.mubr.bf16.vlgmr.msra.gmra.mxu1 %v14960_v42 }
 0x3e4   :  { %v9797_v2 = vadd.f32 %v9796_v27, %v9754_v19  ;;  %10107 = vmatpush1.bf16.msra.mxu1 %v13251_v63  ;;  %10138 = vmatprep.mubr.bf16.mxu1 %v14891_v56  ;;  %v13219_v63 = vcombine.low %v3658_v45, %v3666_v25  ;;  %v13428_v19 = vcombine.high %v3866_v47, %v3874_v51  ;;  %v3850_v27 = vld [vmem:[#allocation8 + $0x1098] sm:$0xff] }
 0x3e5   :  { %10154 = vmatpush1.bf16.msra.mxu0 %v13475_v53  ;;  %v9798_v18 = vpop.f32.mrf.mxu1  ;;  %10108 = vmatprep.subr.bf16.mxu1 %v13236_v8  ;;  %v9843_v8 = vpop.f32.mrf.mxu0  ;;  %v13412_v34 = vcombine.high %v3850_v27, %v3858_v38  ;;  %v3834_v45 = vld [vmem:[#allocation8 + $0x1018] sm:$0xff] }
 0x3e6   :  { %10155 = vmatprep.subr.bf16.mxu0 %v13460_v20  ;;  %v15025_v54 = vadd.f32 %v9798_v18, %v9756_v11  ;;  %v15027_v62 = vadd.f32 %v9839_v10, %v9797_v2  ;;  %v13204_v20 = vcombine.high %v3642_v40, %v3650_v60  ;;  %v13427_v10 = vcombine.low %v3866_v47, %v3874_v51  ;;  %v3842_v25 = vld [vmem:[#allocation8 + $0x1058] sm:$0xff] }
 0x3e7   :  { %v9800_v52 = vpop.f32.mrf.mxu1  ;;  %v13203_v2 = vcombine.low %v3642_v40, %v3650_v60  ;;  %v13187_v18 = vcombine.low %v3626_v21, %v3634_v15  ;;  %v4082_v47 = vld [vmem:[#allocation8 + $0x17d8] sm:$0xff]  ;;  %v13395_v60 = vcombine.low %v3834_v45, %v3842_v25 }
 0x3e8   :  { %15351 = vst [vmem:[#allocation29_spill] sm:$0xff] %v15025_v54  ;;  %v9801_v53 = vadd.f32 %v9800_v52, %v9758_v33  ;;  %10109 = vmatpush1.bf16.msra.mxu1 %v13235_v50  ;;  %v3610_v50 = vld [vmem:[#allocation8 + $0x918] sm:$0xff] }
 0x3e9   :  { %10156 = vmatpush1.bf16.msra.mxu0 %v13459_v37  ;;  %10110 = vmatprep.subr.bf16.mxu1 %v13220_v5  ;;  %v3618_v37 = vld [vmem:[#allocation8 + $0x958] sm:$0xff]  ;;  %v13396_v5 = vcombine.high %v3834_v45, %v3842_v25 }
 0x3ea   :  { %10157 = vmatprep.subr.bf16.mxu0 %v13444_v12  ;;  %v15029_v11 = vadd.f32 %v9843_v8, %v9801_v53  ;;  %v13411_v12 = vcombine.low %v3850_v27, %v3858_v38  ;;  %v13172_v33 = vcombine.high %v3610_v50, %v3618_v37  ;;  %v4074_v52 = vld [vmem:[#allocation8 + $0x1798] sm:$0xff] }
 0x3eb   :  { %v3594_v51 = vld [vmem:[#allocation8 + $0x898] sm:$0xff]  ;;  %v13636_v53 = vcombine.high %v4074_v52, %v4082_v47  ;;  %v13635_v27 = vcombine.low %v4074_v52, %v4082_v47 }
 0x3ec   :  { %10111 = vmatpush1.bf16.msra.mxu1 %v13219_v63  ;;  %v3602_v40 = vld [vmem:[#allocation8 + $0x8d8] sm:$0xff] }
 0x3ed   :  { %10158 = vmatpush1.bf16.msra.mxu0 %v13443_v59  ;;  %10112 = vmatprep.subr.bf16.mxu1 %v13204_v20  ;;  %v13171_v59 = vcombine.low %v3610_v50, %v3618_v37  ;;  %v13156_v63 = vcombine.high %v3594_v51, %v3602_v40  ;;  %v4066_v38 = vld [vmem:[#allocation8 + $0x1758] sm:$0xff]  ;;  %v13155_v21 = vcombine.low %v3594_v51, %v3602_v40 }
 0x3ee   :  { %10159 = vmatprep.subr.bf16.mxu0 %v13428_v19  ;;  %v4058_v19 = vld [vmem:[#allocation8 + $0x1718] sm:$0xff] }
 0x3ef   :  { %v3578_v8 = vld [vmem:[#allocation8 + $0x818] sm:$0xff]  ;;  %v13620_v15 = vcombine.high %v4058_v19, %v4066_v38  ;;  %v13619_v25 = vcombine.low %v4058_v19, %v4066_v38 }
 0x3f0   :  { %10113 = vmatpush1.bf16.msra.mxu1 %v13203_v2  ;;  %v3586_v20 = vld [vmem:[#allocation8 + $0x858] sm:$0xff] }
 0x3f1   :  { %10160 = vmatpush1.bf16.msra.mxu0 %v13427_v10  ;;  %10114 = vmatprep.subr.bf16.mxu1 %v13188_v16  ;;  %v13140_v10 = vcombine.high %v3578_v8, %v3586_v20  ;;  %v4042_v2 = vld [vmem:[#allocation8 + $0x1698] sm:$0xff]  ;;  %v13139_v50 = vcombine.low %v3578_v8, %v3586_v20 }
 0x3f2   :  { %10161 = vmatprep.subr.bf16.mxu0 %v13412_v34  ;;  %v4050_v34 = vld [vmem:[#allocation8 + $0x16d8] sm:$0xff] }
 0x3f3   :  { %v3818_v16 = vld [vmem:[#allocation8 + $0xf98] sm:$0xff]  ;;  %v13604_v37 = vcombine.high %v4042_v2, %v4050_v34  ;;  %v13603_v47 = vcombine.low %v4042_v2, %v4050_v34 }
 0x3f4   :  { %10115 = vmatpush1.bf16.msra.mxu1 %v13187_v18  ;;  %v3826_v45 = vld [vmem:[#allocation8 + $0xfd8] sm:$0xff] }
 0x3f5   :  { %10162 = vmatpush1.bf16.msra.mxu0 %v13411_v12  ;;  %10116 = vmatprep.subr.bf16.mxu1 %v13172_v33  ;;  %v13380_v12 = vcombine.high %v3818_v16, %v3826_v45  ;;  %v4026_v18 = vld [vmem:[#allocation8 + $0x1618] sm:$0xff]  ;;  %v13379_v51 = vcombine.low %v3818_v16, %v3826_v45 }
 0x3f6   :  { %10163 = vmatprep.subr.bf16.mxu0 %v13396_v5  ;;  %v4034_v5 = vld [vmem:[#allocation8 + $0x1658] sm:$0xff] }
 0x3f7   :  { %v3802_v33 = vld [vmem:[#allocation8 + $0xf18] sm:$0xff]  ;;  %v13588_v40 = vcombine.high %v4026_v18, %v4034_v5  ;;  %v13587_v38 = vcombine.low %v4026_v18, %v4034_v5 }
 0x3f8   :  { %10117 = vmatpush1.bf16.msra.mxu1 %v13171_v59  ;;  %v3810_v52 = vld [vmem:[#allocation8 + $0xf58] sm:$0xff] }
 0x3f9   :  { %10164 = vmatpush1.bf16.msra.mxu0 %v13395_v60  ;;  %10118 = vmatprep.subr.bf16.mxu1 %v13156_v63  ;;  %v13364_v60 = vcombine.high %v3802_v33, %v3810_v52  ;;  %v4010_v59 = vld [vmem:[#allocation8 + $0x1598] sm:$0xff]  ;;  %v13363_v8 = vcombine.low %v3802_v33, %v3810_v52 }
 0x3fa   :  { %10165 = vmatprep.subr.bf16.mxu0 %v13636_v53  ;;  %v4018_v53 = vld [vmem:[#allocation8 + $0x15d8] sm:$0xff] }
 0x3fb   :  { %v3786_v63 = vld [vmem:[#allocation8 + $0xe98] sm:$0xff]  ;;  %v13572_v20 = vcombine.high %v4010_v59, %v4018_v53  ;;  %v13571_v34 = vcombine.low %v4010_v59, %v4018_v53 }
 0x3fc   :  { %10119 = vmatpush1.bf16.msra.mxu1 %v13155_v21  ;;  %v3794_v19 = vld [vmem:[#allocation8 + $0xed8] sm:$0xff] }
 0x3fd   :  { %10166 = vmatpush2.bf16.msra.mxu0 %v13635_v27  ;;  %10120 = vmatprep.subr.bf16.mxu1 %v13140_v10  ;;  %v13348_v27 = vcombine.high %v3786_v63, %v3794_v19  ;;  %v3994_v21 = vld [vmem:[#allocation8 + $0x1518] sm:$0xff]  ;;  %v13347_v16 = vcombine.low %v3786_v63, %v3794_v19 }
 0x3fe   :  { %10167 = vmatprep.subr.bf16.mxu0 %v13620_v15  ;;  %v4002_v15 = vld [vmem:[#allocation8 + $0x1558] sm:$0xff] }
 0x3ff   :  { %v3770_v10 = vld [vmem:[#allocation8 + $0xe18] sm:$0xff]  ;;  %v13556_v45 = vcombine.high %v3994_v21, %v4002_v15  ;;  %v13555_v5 = vcombine.low %v3994_v21, %v4002_v15 }
 0x400   :  { %10121 = vmatpush1.bf16.msra.mxu1 %v13139_v50  ;;  %v3778_v2 = vld [vmem:[#allocation8 + $0xe58] sm:$0xff] }
 0x401   :  { %10168 = vmatpush2.bf16.msra.mxu0 %v13619_v25  ;;  %10122 = vmatprep.subr.bf16.mxu1 %v13380_v12  ;;  %v13332_v25 = vcombine.high %v3770_v10, %v3778_v2  ;;  %v3978_v50 = vld [vmem:[#allocation8 + $0x1498] sm:$0xff]  ;;  %v13331_v33 = vcombine.low %v3770_v10, %v3778_v2 }
 0x402   :  { %10169 = vmatprep.subr.bf16.mxu0 %v13604_v37  ;;  %v3986_v37 = vld [vmem:[#allocation8 + $0x14d8] sm:$0xff] }
 0x403   :  { %v3754_v12 = vld [vmem:[#allocation8 + $0xd98] sm:$0xff]  ;;  %v13540_v52 = vcombine.high %v3978_v50, %v3986_v37  ;;  %v13539_v53 = vcombine.low %v3978_v50, %v3986_v37 }
 0x404   :  { %10123 = vmatpush2.bf16.msra.mxu1 %v13379_v51  ;;  %v3762_v18 = vld [vmem:[#allocation8 + $0xdd8] sm:$0xff] }
 0x405   :  { %10170 = vmatpush2.bf16.msra.mxu0 %v13603_v47  ;;  %10124 = vmatprep.subr.bf16.mxu1 %v13364_v60  ;;  %v13316_v47 = vcombine.high %v3754_v12, %v3762_v18  ;;  %v3962_v51 = vld [vmem:[#allocation8 + $0x1418] sm:$0xff]  ;;  %v13315_v63 = vcombine.low %v3754_v12, %v3762_v18 }
 0x406   :  { %10171 = vmatprep.subr.bf16.mxu0 %v13588_v40  ;;  %v3970_v40 = vld [vmem:[#allocation8 + $0x1458] sm:$0xff] }
 0x407   :  { %v3738_v60 = vld [vmem:[#allocation8 + $0xd18] sm:$0xff]  ;;  %v13524_v19 = vcombine.high %v3962_v51, %v3970_v40  ;;  %v13523_v15 = vcombine.low %v3962_v51, %v3970_v40 }
 0x408   :  { %10125 = vmatpush2.bf16.msra.mxu1 %v13363_v8  ;;  %v3746_v59 = vld [vmem:[#allocation8 + $0xd58] sm:$0xff]  ;;  %v3435_v8 = vld [vmem:[#allocation8 + $0x3a0] sm:$0xff] }
 0x409   :  { %10172 = vmatpush2.bf16.msra.mxu0 %v13587_v38  ;;  %10126 = vmatprep.subr.bf16.mxu1 %v13348_v27  ;;  %v13300_v38 = vcombine.high %v3738_v60, %v3746_v59  ;;  %v3722_v27 = vld [vmem:[#allocation8 + $0xc98] sm:$0xff]  ;;  %v13299_v10 = vcombine.low %v3738_v60, %v3746_v59 }
 0x40a   :  { %10173 = vmatprep.subr.bf16.mxu0 %v13572_v20  ;;  %v3443_v20 = vld [vmem:[#allocation8 + $0x3e0] sm:$0xff]  ;;  %v3730_v21 = vld [vmem:[#allocation8 + $0xcd8] sm:$0xff] }
 0x40b   :  { %v12998_v2 = vcombine.high %v3435_v8, %v3443_v20  ;;  %v3714_v50 = vld [vmem:[#allocation8 + $0xc58] sm:$0xff]  ;;  %v12997_v37 = vcombine.low %v3435_v8, %v3443_v20  ;;  %v13283_v12 = vcombine.low %v3722_v27, %v3730_v21  ;;  %v3395_v8 = vld [vmem:[#allocation8 + $0x260] sm:$0xff] }
 0x40c   :  { %10127 = vmatpush2.bf16.msra.mxu1 %v13347_v16  ;;  %v3419_v16 = vld [vmem:[#allocation8 + $0x320] sm:$0xff]  ;;  %v4210_v51 = vld [vmem:[#allocation8 + $0x1bd8] sm:$0xff] }
 0x40d   :  { %10174 = vmatpush2.bf16.msra.mxu0 %v13571_v34  ;;  %10128 = vmatprep.subr.bf16.mxu1 %v13332_v25  ;;  %v13284_v34 = vcombine.high %v3722_v27, %v3730_v21  ;;  %v3706_v25 = vld [vmem:[#allocation8 + $0xc18] sm:$0xff]  ;;  %v15033_v21 = vpop.f32.mrf.mxu1 }
 0x40e   :  { %10175 = vmatprep.subr.bf16.mxu0 %v13556_v45  ;;  %v3427_v45 = vld [vmem:[#allocation8 + $0x360] sm:$0xff]  ;;  %v13267_v60 = vcombine.low %v3706_v25, %v3714_v50  ;;  %15352 = vst [vmem:[#allocation30_spill] sm:$0xff] %v15033_v21 }
 0x40f   :  { %v12982_v18 = vcombine.high %v3419_v16, %v3427_v45  ;;  %v12981_v40 = vcombine.low %v3419_v16, %v3427_v45  ;;  %v4170_v16 = vld [vmem:[#allocation8 + $0x1a98] sm:$0xff] }
 0x410   :  { %10129 = vmatpush2.bf16.msra.mxu1 %v13331_v33  ;;  %v3403_v33 = vld [vmem:[#allocation8 + $0x2a0] sm:$0xff]  ;;  %v4178_v45 = vld [vmem:[#allocation8 + $0x1ad8] sm:$0xff] }
 0x411   :  { %10176 = vmatpush2.bf16.msra.mxu0 %v13555_v5  ;;  %10130 = vmatprep.subr.bf16.mxu1 %v13316_v47  ;;  %v13268_v5 = vcombine.high %v3706_v25, %v3714_v50  ;;  %v4202_v47 = vld [vmem:[#allocation8 + $0x1b98] sm:$0xff] }
 0x412   :  { %10177 = vmatprep.subr.bf16.mxu0 %v13540_v52  ;;  %v3411_v52 = vld [vmem:[#allocation8 + $0x2e0] sm:$0xff]  ;;  %v13763_v27 = vcombine.low %v4202_v47, %v4210_v51 }
 0x413   :  { %v12966_v59 = vcombine.high %v3403_v33, %v3411_v52  ;;  %v12965_v20 = vcombine.low %v3403_v33, %v3411_v52  ;;  %v13732_v33 = vcombine.high %v4170_v16, %v4178_v45  ;;  %v3355_v52 = vld [vmem:[#allocation8 + $0x120] sm:$0xff] }
 0x414   :  { %10131 = vmatpush2.bf16.msra.mxu1 %v13315_v63  ;;  %v4186_v63 = vld [vmem:[#allocation8 + $0x1b18] sm:$0xff] }
 0x415   :  { %10178 = vmatpush2.bf16.msra.mxu0 %v13539_v53  ;;  %10132 = vmatprep.subr.bf16.mxu1 %v13300_v38  ;;  %v13764_v53 = vcombine.high %v4202_v47, %v4210_v51  ;;  %v3387_v38 = vld [vmem:[#allocation8 + $0x220] sm:$0xff]  ;;  %v4154_v51 = vld [vmem:[#allocation8 + $0x1a18] sm:$0xff] }
 0x416   :  { %10179 = vmatprep.subr.bf16.mxu0 %v13524_v19  ;;  %v4194_v19 = vld [vmem:[#allocation8 + $0x1b58] sm:$0xff]  ;;  %v12949_v50 = vcombine.low %v3387_v38, %v3395_v8  ;;  %v3363_v47 = vld [vmem:[#allocation8 + $0x160] sm:$0xff] }
 0x418   :  { %10133 = vmatpush2.bf16.msra.mxu1 %v13299_v10  ;;  %v12950_v10 = vcombine.high %v3387_v38, %v3395_v8  ;;  %v12918_v38 = vcombine.high %v3355_v52, %v3363_v47  ;;  %v3347_v8 = vld [vmem:[#allocation8 + $0xe0] sm:$0xff] }
 0x419   :  { %10180 = vmatpush2.bf16.msra.mxu0 %v13523_v15  ;;  %10134 = vmatprep.subr.bf16.mxu1 %v13284_v34  ;;  %v13748_v15 = vcombine.high %v4186_v63, %v4194_v19  ;;  %v3379_v34 = vld [vmem:[#allocation8 + $0x1e0] sm:$0xff] }
 0x41a   :  { %10235 = vmatprep.subr.bf16.mxu0 %v12998_v2  ;;  %v3371_v2 = vld [vmem:[#allocation8 + $0x1a0] sm:$0xff] }
 0x41c   :  { %10182 = vmatmul.mubr.bf16.vlgmr.msra.gmra.mxu0 %v14933_v9  ;;  %10135 = vmatpush2.bf16.msra.mxu1 %v13283_v12  ;;  %v13747_v12 = vcombine.low %v4186_v63, %v4194_v19  ;;  %v3339_v19 = vld [vmem:[#allocation8 + $0xa0] sm:$0xff] }
 0x41d   :  { %10236 = vmatpush1.bf16.msra.mxu0 %v12997_v37  ;;  %10267 = vmatprep.mubr.bf16.mxu0 %v14872_v0 }
 0x41e   :  { %10237 = vmatprep.subr.bf16.mxu0 %v12982_v18  ;;  %10136 = vmatprep.subr.bf16.mxu1 %v13268_v5  ;;  %v12934_v18 = vcombine.high %v3371_v2, %v3379_v34 }
 0x420   :  { %10137 = vmatpush2.bf16.msra.mxu1 %v13267_v60 }
 0x421   :  { %10238 = vmatpush1.bf16.msra.mxu0 %v12981_v40  ;;  %10192 = vmatprep.subr.bf16.mxu1 %v13764_v53  ;;  %v4162_v40 = vld [vmem:[#allocation8 + $0x1a58] sm:$0xff] }
 0x422   :  { %10239 = vmatprep.subr.bf16.mxu0 %v12966_v59  ;;  %v12933_v59 = vcombine.low %v3371_v2, %v3379_v34  ;;  %v13716_v63 = vcombine.high %v4154_v51, %v4162_v40  ;;  %v12902_v2 = vcombine.high %v3339_v19, %v3347_v8  ;;  %v3323_v34 = vld [vmem:[#allocation8 + $0x20] sm:$0xff] }
 0x423   :  { %v9882_v25 = vpop.f32.mrf.mxu1  ;;  %10139 = vmatmul.mubr.bf16.vlgmr.msra.gmra.mxu1 %v14898_v49 }
 0x424   :  { %v9883_v37 = vadd.f32 %v9882_v25, %v15027_v62  ;;  %10193 = vmatpush1.bf16.msra.mxu1 %v13763_v27  ;;  %10224 = vmatprep.mubr.bf16.mxu1 %v14957_v35  ;;  %v13731_v62 = vcombine.low %v4170_v16, %v4178_v45  ;;  %v4138_v27 = vld [vmem:[#allocation8 + $0x1998] sm:$0xff]  ;;  %v13715_v25 = vcombine.low %v4154_v51, %v4162_v40  ;;  %v3331_v16 = vld [vmem:[#allocation8 + $0x60] sm:$0xff] }
 0x425   :  { %10240 = vmatpush1.bf16.msra.mxu0 %v12965_v20  ;;  %v15038_v5 = vpop.f32.mrf.mxu1  ;;  %10194 = vmatprep.subr.bf16.mxu1 %v13748_v15  ;;  %v4146_v15 = vld [vmem:[#allocation8 + $0x19d8] sm:$0xff]  ;;  %v12885_v40 = vcombine.low %v3323_v34, %v3331_v16 }
 0x426   :  { %15353 = vst [vmem:[#allocation31_spill] sm:$0xff] %v15038_v5  ;;  %10241 = vmatprep.subr.bf16.mxu0 %v12950_v10  ;;  %v12917_v10 = vcombine.low %v3355_v52, %v3363_v47  ;;  %v4122_v45 = vld [vmem:[#allocation8 + $0x1918] sm:$0xff]  ;;  %v3571_v52 = vld [vmem:[#allocation8 + $0x7e0] sm:$0xff] }
 0x427   :  { %v9886_v60 = vpop.f32.mrf.mxu1  ;;  %v4106_v47 = vld [vmem:[#allocation8 + $0x1898] sm:$0xff] }
 0x428   :  { %v9887_v53 = vadd.f32 %v9886_v60, %v15029_v11  ;;  %10195 = vmatpush1.bf16.msra.mxu1 %v13747_v12  ;;  %v13700_v11 = vcombine.high %v4138_v27, %v4146_v15  ;;  %v12901_v12 = vcombine.low %v3339_v19, %v3347_v8  ;;  %v3563_v60 = vld [vmem:[#allocation8 + $0x7a0] sm:$0xff]  ;;  %v4114_v51 = vld [vmem:[#allocation8 + $0x18d8] sm:$0xff] }
 0x429   :  { %10242 = vmatpush1.bf16.msra.mxu0 %v12949_v50  ;;  %10196 = vmatprep.subr.bf16.mxu1 %v13732_v33  ;;  %v4130_v50 = vld [vmem:[#allocation8 + $0x1958] sm:$0xff] }
 0x42a   :  { %10243 = vmatprep.subr.bf16.mxu0 %v12934_v18  ;;  %v15041_v20 = vpack.c.bf16 %v9887_v53, %v9883_v37  ;;  %v13699_v18 = vcombine.low %v4138_v27, %v4146_v15  ;;  %v12886_v37 = vcombine.high %v3323_v34, %v3331_v16  ;;  %v13684_v33 = vcombine.high %v4122_v45, %v4130_v50  ;;  %v4090_v19 = vld [vmem:[#allocation8 + $0x1818] sm:$0xff] }
 0x42b   :  { %v13126_v53 = vcombine.high %v3563_v60, %v3571_v52  ;;  %v4098_v8 = vld [vmem:[#allocation8 + $0x1858] sm:$0xff]  ;;  %v13125_v27 = vcombine.low %v3563_v60, %v3571_v52  ;;  %v13667_v15 = vcombine.low %v4106_v47, %v4114_v51 }
 0x42c   :  { %15354 = vst [vmem:[#allocation32_spill] sm:$0xff] %v15041_v20  ;;  %10197 = vmatpush1.bf16.msra.mxu1 %v13731_v62  ;;  %v13668_v62 = vcombine.high %v4106_v47, %v4114_v51  ;;  %v4330_v34 = vld [vmem:[#allocation8 + $0x1f98] sm:$0xff] }
 0x42d   :  { %10244 = vmatpush1.bf16.msra.mxu0 %v12933_v59  ;;  %10198 = vmatprep.subr.bf16.mxu1 %v13716_v63  ;;  %v13683_v59 = vcombine.low %v4122_v45, %v4130_v50  ;;  %v3555_v63 = vld [vmem:[#allocation8 + $0x760] sm:$0xff]  ;;  %v4338_v16 = vld [vmem:[#allocation8 + $0x1fd8] sm:$0xff]  ;;  %v13651_v50 = vcombine.low %v4090_v19, %v4098_v8 }
 0x42e   :  { %10245 = vmatprep.subr.bf16.mxu0 %v12918_v38  ;;  %v3547_v38 = vld [vmem:[#allocation8 + $0x720] sm:$0xff]  ;;  %v4314_v60 = vld [vmem:[#allocation8 + $0x1f18] sm:$0xff]  ;;  %v13891_v51 = vcombine.low %v4330_v34, %v4338_v16 }
 0x42f   :  { %v13109_v45 = vcombine.low %v3547_v38, %v3555_v63  ;;  %v4322_v52 = vld [vmem:[#allocation8 + $0x1f58] sm:$0xff] }
 0x430   :  { %10199 = vmatpush1.bf16.msra.mxu1 %v13715_v25  ;;  %v13652_v25 = vcombine.high %v4090_v19, %v4098_v8  ;;  %v13875_v8 = vcombine.low %v4314_v60, %v4322_v52 }
 0x431   :  { %10246 = vmatpush1.bf16.msra.mxu0 %v12917_v10  ;;  %10200 = vmatprep.subr.bf16.mxu1 %v13700_v11  ;;  %v13110_v10 = vcombine.high %v3547_v38, %v3555_v63  ;;  %v3539_v11 = vld [vmem:[#allocation8 + $0x6e0] sm:$0xff]  ;;  %v4298_v38 = vld [vmem:[#allocation8 + $0x1e98] sm:$0xff] }
 0x432   :  { %10247 = vmatprep.subr.bf16.mxu0 %v12902_v2  ;;  %v3531_v2 = vld [vmem:[#allocation8 + $0x6a0] sm:$0xff]  ;;  %v4306_v63 = vld [vmem:[#allocation8 + $0x1ed8] sm:$0xff] }
 0x433   :  { %v13093_v47 = vcombine.low %v3531_v2, %v3539_v11 }
 0x434   :  { %10201 = vmatpush1.bf16.msra.mxu1 %v13699_v18  ;;  %v13892_v18 = vcombine.high %v4330_v34, %v4338_v16  ;;  %v13859_v16 = vcombine.low %v4298_v38, %v4306_v63 }
 0x435   :  { %10248 = vmatpush1.bf16.msra.mxu0 %v12901_v12  ;;  %10202 = vmatprep.subr.bf16.mxu1 %v13684_v33  ;;  %v13094_v12 = vcombine.high %v3531_v2, %v3539_v11  ;;  %v3523_v33 = vld [vmem:[#allocation8 + $0x660] sm:$0xff]  ;;  %v4282_v2 = vld [vmem:[#allocation8 + $0x1e18] sm:$0xff] }
 0x436   :  { %10249 = vmatprep.subr.bf16.mxu0 %v12886_v37  ;;  %v3515_v37 = vld [vmem:[#allocation8 + $0x620] sm:$0xff]  ;;  %v4290_v11 = vld [vmem:[#allocation8 + $0x1e58] sm:$0xff] }
 0x437   :  { %v13077_v19 = vcombine.low %v3515_v37, %v3523_v33 }
 0x438   :  { %10203 = vmatpush1.bf16.msra.mxu1 %v13683_v59  ;;  %v13876_v59 = vcombine.high %v4314_v60, %v4322_v52  ;;  %v13843_v52 = vcombine.low %v4282_v2, %v4290_v11 }
 0x439   :  { %10250 = vmatpush1.bf16.msra.mxu0 %v12885_v40  ;;  %10204 = vmatprep.subr.bf16.mxu1 %v13668_v62  ;;  %v13078_v40 = vcombine.high %v3515_v37, %v3523_v33  ;;  %v3507_v62 = vld [vmem:[#allocation8 + $0x5e0] sm:$0xff]  ;;  %v4266_v37 = vld [vmem:[#allocation8 + $0x1d98] sm:$0xff] }
 0x43a   :  { %10251 = vmatprep.subr.bf16.mxu0 %v13126_v53  ;;  %v3499_v53 = vld [vmem:[#allocation8 + $0x5a0] sm:$0xff]  ;;  %v4274_v33 = vld [vmem:[#allocation8 + $0x1dd8] sm:$0xff] }
 0x43b   :  { %v13061_v34 = vcombine.low %v3499_v53, %v3507_v62 }
 0x43c   :  { %10205 = vmatpush1.bf16.msra.mxu1 %v13667_v15  ;;  %v13860_v15 = vcombine.high %v4298_v38, %v4306_v63  ;;  %v13827_v63 = vcombine.low %v4266_v37, %v4274_v33 }
 0x43d   :  { %10252 = vmatpush2.bf16.msra.mxu0 %v13125_v27  ;;  %10206 = vmatprep.subr.bf16.mxu1 %v13652_v25  ;;  %v13062_v27 = vcombine.high %v3499_v53, %v3507_v62  ;;  %v3491_v25 = vld [vmem:[#allocation8 + $0x560] sm:$0xff]  ;;  %v4250_v53 = vld [vmem:[#allocation8 + $0x1d18] sm:$0xff] }
 0x43e   :  { %10253 = vmatprep.subr.bf16.mxu0 %v13110_v10  ;;  %v3483_v10 = vld [vmem:[#allocation8 + $0x520] sm:$0xff]  ;;  %v4258_v62 = vld [vmem:[#allocation8 + $0x1d58] sm:$0xff] }
 0x43f   :  { %v13045_v60 = vcombine.low %v3483_v10, %v3491_v25 }
 0x440   :  { %10207 = vmatpush1.bf16.msra.mxu1 %v13651_v50  ;;  %v13844_v50 = vcombine.high %v4282_v2, %v4290_v11  ;;  %v13811_v11 = vcombine.low %v4250_v53, %v4258_v62 }
 0x441   :  { %10254 = vmatpush2.bf16.msra.mxu0 %v13109_v45  ;;  %10208 = vmatprep.subr.bf16.mxu1 %v13892_v18  ;;  %v13046_v45 = vcombine.high %v3483_v10, %v3491_v25  ;;  %v3475_v18 = vld [vmem:[#allocation8 + $0x4e0] sm:$0xff]  ;;  %v4234_v10 = vld [vmem:[#allocation8 + $0x1c98] sm:$0xff] }
 0x442   :  { %10255 = vmatprep.subr.bf16.mxu0 %v13094_v12  ;;  %v3467_v12 = vld [vmem:[#allocation8 + $0x4a0] sm:$0xff]  ;;  %v4242_v25 = vld [vmem:[#allocation8 + $0x1cd8] sm:$0xff] }
 0x443   :  { %v13029_v38 = vcombine.low %v3467_v12, %v3475_v18 }
 0x444   :  { %10209 = vmatpush2.bf16.msra.mxu1 %v13891_v51  ;;  %v13828_v51 = vcombine.high %v4266_v37, %v4274_v33  ;;  %v13795_v33 = vcombine.low %v4234_v10, %v4242_v25 }
 0x445   :  { %10256 = vmatpush2.bf16.msra.mxu0 %v13093_v47  ;;  %10210 = vmatprep.subr.bf16.mxu1 %v13876_v59  ;;  %v13030_v47 = vcombine.high %v3467_v12, %v3475_v18  ;;  %v3459_v59 = vld [vmem:[#allocation8 + $0x460] sm:$0xff]  ;;  %v4218_v12 = vld [vmem:[#allocation8 + $0x1c18] sm:$0xff] }
 0x446   :  { %10257 = vmatprep.subr.bf16.mxu0 %v13078_v40  ;;  %v3451_v40 = vld [vmem:[#allocation8 + $0x420] sm:$0xff]  ;;  %v4226_v18 = vld [vmem:[#allocation8 + $0x1c58] sm:$0xff] }
 0x447   :  { %v13013_v2 = vcombine.low %v3451_v40, %v3459_v59 }
 0x448   :  { %10211 = vmatpush2.bf16.msra.mxu1 %v13875_v8  ;;  %v13812_v8 = vcombine.high %v4250_v53, %v4258_v62  ;;  %v13779_v62 = vcombine.low %v4218_v12, %v4226_v18 }
 0x449   :  { %10258 = vmatpush2.bf16.msra.mxu0 %v13077_v19  ;;  %10212 = vmatprep.subr.bf16.mxu1 %v13860_v15  ;;  %v13014_v19 = vcombine.high %v3451_v40, %v3459_v59  ;;  %v3955_v15 = vld [vmem:[#allocation8 + $0x13e0] sm:$0xff] }
 0x44a   :  { %10259 = vmatprep.subr.bf16.mxu0 %v13062_v27  ;;  %v3947_v27 = vld [vmem:[#allocation8 + $0x13a0] sm:$0xff] }
 0x44b   :  { %v13509_v37 = vcombine.low %v3947_v27, %v3955_v15  ;;  %v3691_v40 = vld [vmem:[#allocation8 + $0xba0] sm:$0xff] }
 0x44c   :  { %10213 = vmatpush2.bf16.msra.mxu1 %v13859_v16  ;;  %v13796_v16 = vcombine.high %v4234_v10, %v4242_v25  ;;  %v3699_v59 = vld [vmem:[#allocation8 + $0xbe0] sm:$0xff] }
 0x44d   :  { %10260 = vmatpush2.bf16.msra.mxu0 %v13061_v34  ;;  %10214 = vmatprep.subr.bf16.mxu1 %v13844_v50  ;;  %v13510_v34 = vcombine.high %v3947_v27, %v3955_v15  ;;  %v3939_v50 = vld [vmem:[#allocation8 + $0x1360] sm:$0xff]  ;;  %v13253_v25 = vcombine.low %v3691_v40, %v3699_v59 }
 0x44e   :  { %10261 = vmatprep.subr.bf16.mxu0 %v13046_v45  ;;  %v3931_v45 = vld [vmem:[#allocation8 + $0x1320] sm:$0xff] }
 0x44f   :  { %v13493_v53 = vcombine.low %v3931_v45, %v3939_v50  ;;  %v3899_v27 = vld [vmem:[#allocation8 + $0x1220] sm:$0xff] }
 0x450   :  { %10215 = vmatpush2.bf16.msra.mxu1 %v13843_v52  ;;  %v13780_v52 = vcombine.high %v4218_v12, %v4226_v18  ;;  %v3907_v15 = vld [vmem:[#allocation8 + $0x1260] sm:$0xff] }
 0x451   :  { %10262 = vmatpush2.bf16.msra.mxu0 %v13045_v60  ;;  %10216 = vmatprep.subr.bf16.mxu1 %v13828_v51  ;;  %v13494_v60 = vcombine.high %v3931_v45, %v3939_v50  ;;  %v3923_v51 = vld [vmem:[#allocation8 + $0x12e0] sm:$0xff]  ;;  %v13461_v12 = vcombine.low %v3899_v27, %v3907_v15 }
 0x452   :  { %10263 = vmatprep.subr.bf16.mxu0 %v13030_v47  ;;  %v3915_v47 = vld [vmem:[#allocation8 + $0x12a0] sm:$0xff] }
 0x453   :  { %v13477_v10 = vcombine.low %v3915_v47, %v3923_v51  ;;  %v3659_v45 = vld [vmem:[#allocation8 + $0xaa0] sm:$0xff] }
 0x454   :  { %10217 = vmatpush2.bf16.msra.mxu1 %v13827_v63  ;;  %v13254_v63 = vcombine.high %v3691_v40, %v3699_v59  ;;  %v3667_v50 = vld [vmem:[#allocation8 + $0xae0] sm:$0xff] }
 0x455   :  { %10264 = vmatpush2.bf16.msra.mxu0 %v13029_v38  ;;  %10218 = vmatprep.subr.bf16.mxu1 %v13812_v8  ;;  %v13478_v38 = vcombine.high %v3915_v47, %v3923_v51  ;;  %v3683_v8 = vld [vmem:[#allocation8 + $0xb60] sm:$0xff]  ;;  %v13221_v59 = vcombine.low %v3659_v45, %v3667_v50 }
 0x456   :  { %10265 = vmatprep.subr.bf16.mxu0 %v13014_v19  ;;  %v3675_v19 = vld [vmem:[#allocation8 + $0xb20] sm:$0xff] }
 0x457   :  { %v13237_v18 = vcombine.low %v3675_v19, %v3683_v8  ;;  %v3643_v47 = vld [vmem:[#allocation8 + $0xa20] sm:$0xff] }
 0x458   :  { %10219 = vmatpush2.bf16.msra.mxu1 %v13811_v11  ;;  %v13462_v11 = vcombine.high %v3899_v27, %v3907_v15  ;;  %v3651_v51 = vld [vmem:[#allocation8 + $0xa60] sm:$0xff] }
 0x459   :  { %10266 = vmatpush2.bf16.msra.mxu0 %v13013_v2  ;;  %10220 = vmatprep.subr.bf16.mxu1 %v13796_v16  ;;  %v13238_v2 = vcombine.high %v3675_v19, %v3683_v8  ;;  %v3891_v16 = vld [vmem:[#allocation8 + $0x11e0] sm:$0xff]  ;;  %v13205_v15 = vcombine.low %v3643_v47, %v3651_v51 }
 0x45a   :  { %10321 = vmatprep.subr.bf16.mxu0 %v13510_v34  ;;  %v3883_v34 = vld [vmem:[#allocation8 + $0x11a0] sm:$0xff] }
 0x45b   :  { %v13445_v40 = vcombine.low %v3883_v34, %v3891_v16  ;;  %v3627_v27 = vld [vmem:[#allocation8 + $0x9a0] sm:$0xff] }
 0x45c   :  { %10268 = vmatmul.mubr.bf16.vlgmr.msra.gmra.mxu0 %v14895_v44  ;;  %10221 = vmatpush2.bf16.msra.mxu1 %v13795_v33  ;;  %v13222_v33 = vcombine.high %v3659_v45, %v3667_v50  ;;  %v3635_v19 = vld [vmem:[#allocation8 + $0x9e0] sm:$0xff] }
 0x45d   :  { %10322 = vmatpush1.bf16.msra.mxu0 %v13509_v37  ;;  %10353 = vmatprep.mubr.bf16.mxu0 %v14931_v3  ;;  %v13446_v37 = vcombine.high %v3883_v34, %v3891_v16  ;;  %v3611_v34 = vld [vmem:[#allocation8 + $0x920] sm:$0xff]  ;;  %v13189_v50 = vcombine.low %v3627_v27, %v3635_v19 }
 0x45e   :  { %10323 = vmatprep.subr.bf16.mxu0 %v13494_v60  ;;  %10222 = vmatprep.subr.bf16.mxu1 %v13780_v52  ;;  %v3867_v60 = vld [vmem:[#allocation8 + $0x1120] sm:$0xff] }
 0x45f   :  { %v3875_v52 = vld [vmem:[#allocation8 + $0x1160] sm:$0xff] }
 0x460   :  { %10223 = vmatpush2.bf16.msra.mxu1 %v13779_v62  ;;  %v13206_v62 = vcombine.high %v3643_v47, %v3651_v51  ;;  %v13429_v8 = vcombine.low %v3867_v60, %v3875_v52  ;;  %v3619_v16 = vld [vmem:[#allocation8 + $0x960] sm:$0xff] }
 0x461   :  { %10324 = vmatpush1.bf16.msra.mxu0 %v13493_v53  ;;  %10278 = vmatprep.subr.bf16.mxu1 %v13254_v63  ;;  %v13430_v53 = vcombine.high %v3867_v60, %v3875_v52  ;;  %v3859_v63 = vld [vmem:[#allocation8 + $0x10e0] sm:$0xff]  ;;  %v13173_v51 = vcombine.low %v3611_v34, %v3619_v16 }
 0x462   :  { %10325 = vmatprep.subr.bf16.mxu0 %v13478_v38  ;;  %v3851_v38 = vld [vmem:[#allocation8 + $0x10a0] sm:$0xff] }
 0x463   :  { %10225 = vmatmul.mubr.bf16.vlgmr.msra.gmra.mxu1 %v14960_v42  ;;  %v13413_v45 = vcombine.low %v3851_v38, %v3859_v63  ;;  %v3595_v60 = vld [vmem:[#allocation8 + $0x8a0] sm:$0xff] }
 0x464   :  { %10279 = vmatpush1.bf16.msra.mxu1 %v13253_v25  ;;  %10310 = vmatprep.mubr.bf16.mxu1 %v14891_v56  ;;  %v13190_v25 = vcombine.high %v3627_v27, %v3635_v19  ;;  %v3603_v52 = vld [vmem:[#allocation8 + $0x8e0] sm:$0xff] }
 0x465   :  { %10326 = vmatpush1.bf16.msra.mxu0 %v13477_v10  ;;  %10280 = vmatprep.subr.bf16.mxu1 %v13238_v2  ;;  %v13414_v10 = vcombine.high %v3851_v38, %v3859_v63  ;;  %v3835_v2 = vld [vmem:[#allocation8 + $0x1020] sm:$0xff]  ;;  %v13157_v19 = vcombine.low %v3595_v60, %v3603_v52 }
 0x466   :  { %10327 = vmatprep.subr.bf16.mxu0 %v13462_v11  ;;  %v3843_v11 = vld [vmem:[#allocation8 + $0x1060] sm:$0xff] }
 0x467   :  { %v13397_v47 = vcombine.low %v3835_v2, %v3843_v11  ;;  %v3579_v38 = vld [vmem:[#allocation8 + $0x820] sm:$0xff] }
 0x468   :  { %10281 = vmatpush1.bf16.msra.mxu1 %v13237_v18  ;;  %v13174_v18 = vcombine.high %v3611_v34, %v3619_v16  ;;  %v3587_v63 = vld [vmem:[#allocation8 + $0x860] sm:$0xff] }
 0x469   :  { %10328 = vmatpush1.bf16.msra.mxu0 %v13461_v12  ;;  %10282 = vmatprep.subr.bf16.mxu1 %v13222_v33  ;;  %v13398_v12 = vcombine.high %v3835_v2, %v3843_v11  ;;  %v4083_v33 = vld [vmem:[#allocation8 + $0x17e0] sm:$0xff]  ;;  %v13141_v16 = vcombine.low %v3579_v38, %v3587_v63 }
 0x46a   :  { %10329 = vmatprep.subr.bf16.mxu0 %v13446_v37  ;;  %v4075_v37 = vld [vmem:[#allocation8 + $0x17a0] sm:$0xff] }
 0x46b   :  { %v13637_v27 = vcombine.low %v4075_v37, %v4083_v33  ;;  %v3819_v2 = vld [vmem:[#allocation8 + $0xfa0] sm:$0xff] }
 0x46c   :  { %10283 = vmatpush1.bf16.msra.mxu1 %v13221_v59  ;;  %v13158_v59 = vcombine.high %v3595_v60, %v3603_v52  ;;  %v3827_v11 = vld [vmem:[#allocation8 + $0xfe0] sm:$0xff] }
 0x46d   :  { %10330 = vmatpush1.bf16.msra.mxu0 %v13445_v40  ;;  %10284 = vmatprep.subr.bf16.mxu1 %v13206_v62  ;;  %v13638_v40 = vcombine.high %v4075_v37, %v4083_v33  ;;  %v4067_v62 = vld [vmem:[#allocation8 + $0x1760] sm:$0xff]  ;;  %v13381_v52 = vcombine.low %v3819_v2, %v3827_v11 }
 0x46e   :  { %10331 = vmatprep.subr.bf16.mxu0 %v13430_v53  ;;  %v4059_v53 = vld [vmem:[#allocation8 + $0x1720] sm:$0xff] }
 0x46f   :  { %v13621_v34 = vcombine.low %v4059_v53, %v4067_v62  ;;  %v3803_v37 = vld [vmem:[#allocation8 + $0xf20] sm:$0xff] }
 0x470   :  { %10285 = vmatpush1.bf16.msra.mxu1 %v13205_v15  ;;  %v13142_v15 = vcombine.high %v3579_v38, %v3587_v63  ;;  %v3811_v33 = vld [vmem:[#allocation8 + $0xf60] sm:$0xff] }
 0x471   :  { %10332 = vmatpush1.bf16.msra.mxu0 %v13429_v8  ;;  %10286 = vmatprep.subr.bf16.mxu1 %v13190_v25  ;;  %v13622_v8 = vcombine.high %v4059_v53, %v4067_v62  ;;  %v4051_v25 = vld [vmem:[#allocation8 + $0x16e0] sm:$0xff]  ;;  %v13365_v63 = vcombine.low %v3803_v37, %v3811_v33 }
 0x472   :  { %10333 = vmatprep.subr.bf16.mxu0 %v13414_v10  ;;  %v4043_v10 = vld [vmem:[#allocation8 + $0x16a0] sm:$0xff] }
 0x473   :  { %v13605_v60 = vcombine.low %v4043_v10, %v4051_v25  ;;  %v3787_v53 = vld [vmem:[#allocation8 + $0xea0] sm:$0xff] }
 0x474   :  { %10287 = vmatpush1.bf16.msra.mxu1 %v13189_v50  ;;  %v13382_v50 = vcombine.high %v3819_v2, %v3827_v11  ;;  %v3795_v62 = vld [vmem:[#allocation8 + $0xee0] sm:$0xff] }
 0x475   :  { %10334 = vmatpush1.bf16.msra.mxu0 %v13413_v45  ;;  %10288 = vmatprep.subr.bf16.mxu1 %v13174_v18  ;;  %v13606_v45 = vcombine.high %v4043_v10, %v4051_v25  ;;  %v4035_v18 = vld [vmem:[#allocation8 + $0x1660] sm:$0xff]  ;;  %v13349_v11 = vcombine.low %v3787_v53, %v3795_v62 }
 0x476   :  { %10335 = vmatprep.subr.bf16.mxu0 %v13398_v12  ;;  %v4027_v12 = vld [vmem:[#allocation8 + $0x1620] sm:$0xff] }
 0x477   :  { %v13589_v38 = vcombine.low %v4027_v12, %v4035_v18  ;;  %v3771_v10 = vld [vmem:[#allocation8 + $0xe20] sm:$0xff] }
 0x478   :  { %10289 = vmatpush1.bf16.msra.mxu1 %v13173_v51  ;;  %v13366_v51 = vcombine.high %v3803_v37, %v3811_v33  ;;  %v3779_v25 = vld [vmem:[#allocation8 + $0xe60] sm:$0xff] }
 0x479   :  { %10336 = vmatpush1.bf16.msra.mxu0 %v13397_v47  ;;  %10290 = vmatprep.subr.bf16.mxu1 %v13158_v59  ;;  %v13590_v47 = vcombine.high %v4027_v12, %v4035_v18  ;;  %v4019_v59 = vld [vmem:[#allocation8 + $0x15e0] sm:$0xff]  ;;  %v13333_v33 = vcombine.low %v3771_v10, %v3779_v25 }
 0x47a   :  { %10337 = vmatprep.subr.bf16.mxu0 %v13638_v40  ;;  %v4011_v40 = vld [vmem:[#allocation8 + $0x15a0] sm:$0xff] }
 0x47b   :  { %v13573_v2 = vcombine.low %v4011_v40, %v4019_v59  ;;  %v3755_v12 = vld [vmem:[#allocation8 + $0xda0] sm:$0xff] }
 0x47c   :  { %10291 = vmatpush1.bf16.msra.mxu1 %v13157_v19  ;;  %v13350_v19 = vcombine.high %v3787_v53, %v3795_v62  ;;  %v3763_v18 = vld [vmem:[#allocation8 + $0xde0] sm:$0xff] }
 0x47d   :  { %10338 = vmatpush2.bf16.msra.mxu0 %v13637_v27  ;;  %10292 = vmatprep.subr.bf16.mxu1 %v13142_v15  ;;  %v13574_v27 = vcombine.high %v4011_v40, %v4019_v59  ;;  %v4003_v15 = vld [vmem:[#allocation8 + $0x1560] sm:$0xff]  ;;  %v13317_v62 = vcombine.low %v3755_v12, %v3763_v18 }
 0x47e   :  { %10339 = vmatprep.subr.bf16.mxu0 %v13622_v8  ;;  %v3995_v8 = vld [vmem:[#allocation8 + $0x1520] sm:$0xff] }
 0x47f   :  { %v13557_v37 = vcombine.low %v3995_v8, %v4003_v15  ;;  %v3739_v40 = vld [vmem:[#allocation8 + $0xd20] sm:$0xff] }
 0x480   :  { %10293 = vmatpush1.bf16.msra.mxu1 %v13141_v16  ;;  %v13334_v16 = vcombine.high %v3771_v10, %v3779_v25  ;;  %v3747_v59 = vld [vmem:[#allocation8 + $0xd60] sm:$0xff] }
 0x481   :  { %10340 = vmatpush2.bf16.msra.mxu0 %v13621_v34  ;;  %10294 = vmatprep.subr.bf16.mxu1 %v13382_v50  ;;  %v13558_v34 = vcombine.high %v3995_v8, %v4003_v15  ;;  %v3987_v50 = vld [vmem:[#allocation8 + $0x14e0] sm:$0xff]  ;;  %v13301_v25 = vcombine.low %v3739_v40, %v3747_v59 }
 0x482   :  { %10341 = vmatprep.subr.bf16.mxu0 %v13606_v45  ;;  %v3979_v45 = vld [vmem:[#allocation8 + $0x14a0] sm:$0xff] }
 0x483   :  { %v13541_v53 = vcombine.low %v3979_v45, %v3987_v50  ;;  %v3723_v8 = vld [vmem:[#allocation8 + $0xca0] sm:$0xff] }
 0x484   :  { %10295 = vmatpush2.bf16.msra.mxu1 %v13381_v52  ;;  %v13318_v52 = vcombine.high %v3755_v12, %v3763_v18  ;;  %v3731_v15 = vld [vmem:[#allocation8 + $0xce0] sm:$0xff] }
 0x485   :  { %10342 = vmatpush2.bf16.msra.mxu0 %v13605_v60  ;;  %10296 = vmatprep.subr.bf16.mxu1 %v13366_v51  ;;  %v13542_v60 = vcombine.high %v3979_v45, %v3987_v50  ;;  %v3971_v51 = vld [vmem:[#allocation8 + $0x1460] sm:$0xff]  ;;  %v13285_v18 = vcombine.low %v3723_v8, %v3731_v15 }
 0x486   :  { %10343 = vmatprep.subr.bf16.mxu0 %v13590_v47  ;;  %v3963_v47 = vld [vmem:[#allocation8 + $0x1420] sm:$0xff] }
 0x487   :  { %v13525_v10 = vcombine.low %v3963_v47, %v3971_v51  ;;  %v3707_v45 = vld [vmem:[#allocation8 + $0xc20] sm:$0xff] }
 0x488   :  { %10297 = vmatpush2.bf16.msra.mxu1 %v13365_v63  ;;  %v13302_v63 = vcombine.high %v3739_v40, %v3747_v59  ;;  %v3715_v50 = vld [vmem:[#allocation8 + $0xc60] sm:$0xff] }
 0x489   :  { %10344 = vmatpush2.bf16.msra.mxu0 %v13589_v38  ;;  %10298 = vmatprep.subr.bf16.mxu1 %v13350_v19  ;;  %v13526_v38 = vcombine.high %v3963_v47, %v3971_v51  ;;  %v3444_v19 = vld [vmem:[#allocation8 + $0x3e8] sm:$0xff]  ;;  %v4203_v47 = vld [vmem:[#allocation8 + $0x1ba0] sm:$0xff]  ;;  %v13269_v59 = vcombine.low %v3707_v45, %v3715_v50 }
 0x48a   :  { %10345 = vmatprep.subr.bf16.mxu0 %v13574_v27  ;;  %v3436_v27 = vld [vmem:[#allocation8 + $0x3a8] sm:$0xff]  ;;  %v4211_v51 = vld [vmem:[#allocation8 + $0x1be0] sm:$0xff] }
 0x48b   :  { %v12999_v12 = vcombine.low %v3436_v27, %v3444_v19 }
 0x48c   :  { %10299 = vmatpush2.bf16.msra.mxu1 %v13349_v11  ;;  %v13286_v11 = vcombine.high %v3723_v8, %v3731_v15  ;;  %v13765_v15 = vcombine.low %v4203_v47, %v4211_v51 }
 0x48d   :  { %10346 = vmatpush2.bf16.msra.mxu0 %v13573_v2  ;;  %10300 = vmatprep.subr.bf16.mxu1 %v13334_v16  ;;  %v13000_v2 = vcombine.high %v3436_v27, %v3444_v19  ;;  %v3428_v16 = vld [vmem:[#allocation8 + $0x368] sm:$0xff] }
 0x48e   :  { %10347 = vmatprep.subr.bf16.mxu0 %v13558_v34  ;;  %v3420_v34 = vld [vmem:[#allocation8 + $0x328] sm:$0xff] }
 0x48f   :  { %v12983_v40 = vcombine.low %v3420_v34, %v3428_v16  ;;  %v3388_v27 = vld [vmem:[#allocation8 + $0x228] sm:$0xff] }
 0x490   :  { %10301 = vmatpush2.bf16.msra.mxu1 %v13333_v33  ;;  %v13270_v33 = vcombine.high %v3707_v45, %v3715_v50  ;;  %v3396_v19 = vld [vmem:[#allocation8 + $0x268] sm:$0xff] }
 0x491   :  { %10348 = vmatpush2.bf16.msra.mxu0 %v13557_v37  ;;  %10302 = vmatprep.subr.bf16.mxu1 %v13318_v52  ;;  %v12984_v37 = vcombine.high %v3420_v34, %v3428_v16  ;;  %v3412_v52 = vld [vmem:[#allocation8 + $0x2e8] sm:$0xff]  ;;  %v4171_v34 = vld [vmem:[#allocation8 + $0x1aa0] sm:$0xff]  ;;  %v12951_v45 = vcombine.low %v3388_v27, %v3396_v19 }
 0x492   :  { %10349 = vmatprep.subr.bf16.mxu0 %v13542_v60  ;;  %v3404_v60 = vld [vmem:[#allocation8 + $0x2a8] sm:$0xff]  ;;  %v4179_v16 = vld [vmem:[#allocation8 + $0x1ae0] sm:$0xff] }
 0x493   :  { %v12967_v8 = vcombine.low %v3404_v60, %v3412_v52 }
 0x494   :  { %10303 = vmatpush2.bf16.msra.mxu1 %v13317_v62  ;;  %v13766_v62 = vcombine.high %v4203_v47, %v4211_v51  ;;  %v13733_v51 = vcombine.low %v4171_v34, %v4179_v16 }
 0x495   :  { %10350 = vmatpush2.bf16.msra.mxu0 %v13541_v53  ;;  %10304 = vmatprep.subr.bf16.mxu1 %v13302_v63  ;;  %v12968_v53 = vcombine.high %v3404_v60, %v3412_v52  ;;  %v4195_v63 = vld [vmem:[#allocation8 + $0x1b60] sm:$0xff] }
 0x496   :  { %10351 = vmatprep.subr.bf16.mxu0 %v13526_v38  ;;  %v4187_v38 = vld [vmem:[#allocation8 + $0x1b20] sm:$0xff] }
 0x497   :  { %v13749_v50 = vcombine.low %v4187_v38, %v4195_v63  ;;  %v4155_v60 = vld [vmem:[#allocation8 + $0x1a20] sm:$0xff] }
 0x498   :  { %10305 = vmatpush2.bf16.msra.mxu1 %v13301_v25  ;;  %v12952_v25 = vcombine.high %v3388_v27, %v3396_v19  ;;  %v4163_v52 = vld [vmem:[#allocation8 + $0x1a60] sm:$0xff] }
 0x499   :  { %10352 = vmatpush2.bf16.msra.mxu0 %v13525_v10  ;;  %10306 = vmatprep.subr.bf16.mxu1 %v13286_v11  ;;  %v13750_v10 = vcombine.high %v4187_v38, %v4195_v63  ;;  %v3380_v11 = vld [vmem:[#allocation8 + $0x1e8] sm:$0xff]  ;;  %v4139_v27 = vld [vmem:[#allocation8 + $0x19a0] sm:$0xff]  ;;  %v13717_v19 = vcombine.low %v4155_v60, %v4163_v52 }
 0x49a   :  { %10407 = vmatprep.subr.bf16.mxu0 %v13000_v2  ;;  %v3372_v2 = vld [vmem:[#allocation8 + $0x1a8] sm:$0xff]  ;;  %v4147_v38 = vld [vmem:[#allocation8 + $0x19e0] sm:$0xff] }
 0x49b   :  { %v12935_v47 = vcombine.low %v3372_v2, %v3380_v11 }
 0x49c   :  { %10354 = vmatmul.mubr.bf16.vlgmr.msra.gmra.mxu0 %v14933_v9  ;;  %10307 = vmatpush2.bf16.msra.mxu1 %v13285_v18  ;;  %v13734_v18 = vcombine.high %v4171_v34, %v4179_v16  ;;  %v13701_v16 = vcombine.low %v4139_v27, %v4147_v38 }
 0x49d   :  { %10408 = vmatpush1.bf16.msra.mxu0 %v12999_v12  ;;  %10439 = vmatprep.mubr.bf16.mxu0 %v14872_v0  ;;  %v12936_v12 = vcombine.high %v3372_v2, %v3380_v11  ;;  %v4123_v2 = vld [vmem:[#allocation8 + $0x1920] sm:$0xff] }
 0x49e   :  { %10409 = vmatprep.subr.bf16.mxu0 %v12984_v37  ;;  %10308 = vmatprep.subr.bf16.mxu1 %v13270_v33  ;;  %v3356_v37 = vld [vmem:[#allocation8 + $0x128] sm:$0xff]  ;;  %v4131_v11 = vld [vmem:[#allocation8 + $0x1960] sm:$0xff] }
 0x49f   :  { %v3364_v33 = vld [vmem:[#allocation8 + $0x168] sm:$0xff] }
 0x4a0   :  { %10309 = vmatpush2.bf16.msra.mxu1 %v13269_v59  ;;  %v13718_v59 = vcombine.high %v4155_v60, %v4163_v52  ;;  %v12919_v63 = vcombine.low %v3356_v37, %v3364_v33  ;;  %v13685_v52 = vcombine.low %v4123_v2, %v4131_v11 }
 0x4a1   :  { %10410 = vmatpush1.bf16.msra.mxu0 %v12983_v40  ;;  %10364 = vmatprep.subr.bf16.mxu1 %v13766_v62  ;;  %v12920_v40 = vcombine.high %v3356_v37, %v3364_v33  ;;  %v3348_v62 = vld [vmem:[#allocation8 + $0xe8] sm:$0xff]  ;;  %v4107_v37 = vld [vmem:[#allocation8 + $0x18a0] sm:$0xff] }
 0x4a2   :  { %10411 = vmatprep.subr.bf16.mxu0 %v12968_v53  ;;  %v3340_v53 = vld [vmem:[#allocation8 + $0xa8] sm:$0xff]  ;;  %v4115_v33 = vld [vmem:[#allocation8 + $0x18e0] sm:$0xff] }
 0x4a3   :  { %10311 = vmatmul.mubr.bf16.vlgmr.msra.gmra.mxu1 %v14898_v49  ;;  %v12903_v34 = vcombine.low %v3340_v53, %v3348_v62 }
 0x4a4   :  { %10365 = vmatpush1.bf16.msra.mxu1 %v13765_v15  ;;  %10396 = vmatprep.mubr.bf16.mxu1 %v14957_v35  ;;  %v13702_v15 = vcombine.high %v4139_v27, %v4147_v38  ;;  %v4099_v27 = vld [vmem:[#allocation8 + $0x1860] sm:$0xff] }
 0x4a5   :  { %10412 = vmatpush1.bf16.msra.mxu0 %v12967_v8  ;;  %10366 = vmatprep.subr.bf16.mxu1 %v13750_v10  ;;  %v12904_v8 = vcombine.high %v3340_v53, %v3348_v62  ;;  %v3324_v10 = vld [vmem:[#allocation8 + $0x28] sm:$0xff]  ;;  %v4091_v62 = vld [vmem:[#allocation8 + $0x1820] sm:$0xff] }
 0x4a6   :  { %10413 = vmatprep.subr.bf16.mxu0 %v12952_v25  ;;  %v3332_v25 = vld [vmem:[#allocation8 + $0x68] sm:$0xff] }
 0x4a7   :  { %v12887_v60 = vcombine.low %v3324_v10, %v3332_v25  ;;  %v3556_v53 = vld [vmem:[#allocation8 + $0x768] sm:$0xff] }
 0x4a8   :  { %10367 = vmatpush1.bf16.msra.mxu1 %v13749_v50  ;;  %v13686_v50 = vcombine.high %v4123_v2, %v4131_v11  ;;  %v4331_v2 = vld [vmem:[#allocation8 + $0x1fa0] sm:$0xff] }
 0x4a9   :  { %10414 = vmatpush1.bf16.msra.mxu0 %v12951_v45  ;;  %10368 = vmatprep.subr.bf16.mxu1 %v13734_v18  ;;  %v12888_v45 = vcombine.high %v3324_v10, %v3332_v25  ;;  %v3572_v18 = vld [vmem:[#allocation8 + $0x7e8] sm:$0xff]  ;;  %v4339_v11 = vld [vmem:[#allocation8 + $0x1fe0] sm:$0xff] }
 0x4aa   :  { %10415 = vmatprep.subr.bf16.mxu0 %v12936_v12  ;;  %v3564_v12 = vld [vmem:[#allocation8 + $0x7a8] sm:$0xff] }
 0x4ab   :  { %v3532_v10 = vld [vmem:[#allocation8 + $0x6a8] sm:$0xff] }
 0x4ac   :  { %10369 = vmatpush1.bf16.msra.mxu1 %v13733_v51  ;;  %v15051_v51 = vpop.f32.mrf.mxu0  ;;  %v3540_v25 = vld [vmem:[#allocation8 + $0x6e8] sm:$0xff] }
 0x4ad   :  { %10416 = vmatpush1.bf16.msra.mxu0 %v12935_v47  ;;  %10370 = vmatprep.subr.bf16.mxu1 %v13718_v59  ;;  %v13128_v47 = vcombine.high %v3564_v12, %v3572_v18  ;;  %15355 = vst [vmem:[#allocation33_spill] sm:$0xff] %v15051_v51  ;;  %v3548_v59 = vld [vmem:[#allocation8 + $0x728] sm:$0xff] }
 0x4ae   :  { %10417 = vmatprep.subr.bf16.mxu0 %v12920_v40  ;;  %v13670_v40 = vcombine.high %v4107_v37, %v4115_v33  ;;  %v15053_v38 = vpop.f32.mrf.mxu0 }
 0x4af   :  { %15356 = vst [vmem:[#allocation34_spill] sm:$0xff] %v15053_v38  ;;  %v3908_v38 = vld [vmem:[#allocation8 + $0x1268] sm:$0xff] }
 0x4b0   :  { %10371 = vmatpush1.bf16.msra.mxu1 %v13717_v19  ;;  %v13669_v19 = vcombine.low %v4107_v37, %v4115_v33  ;;  %v3524_v37 = vld [vmem:[#allocation8 + $0x668] sm:$0xff]  ;;  %v4315_v33 = vld [vmem:[#allocation8 + $0x1f20] sm:$0xff] }
 0x4b1   :  { %10418 = vmatpush1.bf16.msra.mxu0 %v12919_v63  ;;  %10372 = vmatprep.subr.bf16.mxu1 %v13702_v15  ;;  %v13127_v63 = vcombine.low %v3564_v12, %v3572_v18  ;;  %v13654_v15 = vcombine.high %v4091_v62, %v4099_v27  ;;  %v13894_v12 = vcombine.high %v4331_v2, %v4339_v11  ;;  %v3516_v18 = vld [vmem:[#allocation8 + $0x628] sm:$0xff] }
 0x4b2   :  { %10419 = vmatprep.subr.bf16.mxu0 %v12904_v8  ;;  %v13112_v8 = vcombine.high %v3548_v59, %v3556_v53  ;;  %v13080_v7 = vcombine.high %v3516_v18, %v3524_v37 }
 0x4b4   :  { %10373 = vmatpush1.bf16.msra.mxu1 %v13701_v16  ;;  %v13111_v16 = vcombine.low %v3548_v59, %v3556_v53  ;;  %v3500_v53 = vld [vmem:[#allocation8 + $0x5a8] sm:$0xff] }
 0x4b5   :  { %10420 = vmatpush1.bf16.msra.mxu0 %v12903_v34  ;;  %10374 = vmatprep.subr.bf16.mxu1 %v13686_v50  ;;  %v15055_v34 = vpop.f32.mrf.mxu0  ;;  %v13096_v50 = vcombine.high %v3532_v10, %v3540_v25 }
 0x4b6   :  { %10421 = vmatprep.subr.bf16.mxu0 %v12888_v45  ;;  %v13653_v45 = vcombine.low %v4091_v62, %v4099_v27  ;;  %v3508_v62 = vld [vmem:[#allocation8 + $0x5e8] sm:$0xff]  ;;  %v4299_v27 = vld [vmem:[#allocation8 + $0x1ea0] sm:$0xff] }
 0x4b7   :  { %v13064_v20 = vcombine.high %v3500_v53, %v3508_v62  ;;  %v13063_v5 = vcombine.low %v3500_v53, %v3508_v62 }
 0x4b8   :  { %10375 = vmatpush1.bf16.msra.mxu1 %v13685_v52  ;;  %v15057_v52 = vpop.f32.mrf.mxu0 }
 0x4b9   :  { %10422 = vmatpush1.bf16.msra.mxu0 %v12887_v60  ;;  %10376 = vmatprep.subr.bf16.mxu1 %v13670_v40  ;;  %v4323_v60 = vld [vmem:[#allocation8 + $0x1f60] sm:$0xff]  ;;  %15357 = vst [vmem:[#allocation35_spill] sm:$0xff] %v15057_v52  ;;  %v13893_v40 = vcombine.low %v4331_v2, %v4339_v11  ;;  %v3484_v2 = vld [vmem:[#allocation8 + $0x528] sm:$0xff] }
 0x4ba   :  { %10423 = vmatprep.subr.bf16.mxu0 %v13128_v47  ;;  %v13095_v47 = vcombine.low %v3532_v10, %v3540_v25  ;;  %v13878_v59 = vcombine.high %v4315_v33, %v4323_v60  ;;  %v3492_v11 = vld [vmem:[#allocation8 + $0x568] sm:$0xff] }
 0x4bb   :  { %v13047_v39 = vcombine.low %v3484_v2, %v3492_v11 }
 0x4bc   :  { %10377 = vmatpush1.bf16.msra.mxu1 %v13669_v19  ;;  %v15059_v19 = vpop.f32.mrf.mxu0 }
 0x4bd   :  { %10424 = vmatpush2.bf16.msra.mxu0 %v13127_v63  ;;  %10378 = vmatprep.subr.bf16.mxu1 %v13654_v15  ;;  %v4307_v63 = vld [vmem:[#allocation8 + $0x1ee0] sm:$0xff]  ;;  %v13877_v15 = vcombine.low %v4315_v33, %v4323_v60  ;;  %v3468_v60 = vld [vmem:[#allocation8 + $0x4a8] sm:$0xff] }
 0x4be   :  { %10425 = vmatprep.subr.bf16.mxu0 %v13112_v8  ;;  %v13079_v8 = vcombine.low %v3516_v18, %v3524_v37  ;;  %v15063_v10 = vpop.f32.mrf.mxu0  ;;  %v13862_v25 = vcombine.high %v4299_v27, %v4307_v63  ;;  %v13861_v18 = vcombine.low %v4299_v27, %v4307_v63  ;;  %v13048_v37 = vcombine.high %v3484_v2, %v3492_v11  ;;  %v3452_v27 = vld [vmem:[#allocation8 + $0x428] sm:$0xff] }
 0x4bf   :  { %15359 = vst [vmem:[#allocation37_spill] sm:$0xff] %v15063_v10  ;;  %v3460_v63 = vld [vmem:[#allocation8 + $0x468] sm:$0xff] }
 0x4c0   :  { %10379 = vmatpush1.bf16.msra.mxu1 %v13653_v45  ;;  %v4283_v45 = vld [vmem:[#allocation8 + $0x1e20] sm:$0xff]  ;;  %v13015_v23 = vcombine.low %v3452_v27, %v3460_v63 }
 0x4c1   :  { %10426 = vmatpush2.bf16.msra.mxu0 %v13111_v16  ;;  %10380 = vmatprep.subr.bf16.mxu1 %v13894_v12  ;;  %v15061_v16 = vpop.f32.mrf.mxu1 }
 0x4c2   :  { %10427 = vmatprep.subr.bf16.mxu0 %v13096_v50  ;;  %15358 = vst [vmem:[#allocation36_spill] sm:$0xff] %v15061_v16  ;;  %v4291_v50 = vld [vmem:[#allocation8 + $0x1e60] sm:$0xff] }
 0x4c3   :  { %v15065_v12 = vpop.f32.mrf.mxu1  ;;  %v13846_v33 = vcombine.high %v4283_v45, %v4291_v50  ;;  %v13845_v54 = vcombine.low %v4283_v45, %v4291_v50  ;;  %v3948_v45 = vld [vmem:[#allocation8 + $0x13a8] sm:$0xff] }
 0x4c4   :  { %10381 = vmatpush2.bf16.msra.mxu1 %v13893_v40  ;;  %15360 = vst [vmem:[#allocation38_spill] sm:$0xff] %v15065_v12  ;;  %v4267_v40 = vld [vmem:[#allocation8 + $0x1da0] sm:$0xff]  ;;  %v3956_v50 = vld [vmem:[#allocation8 + $0x13e8] sm:$0xff] }
 0x4c5   :  { %10428 = vmatpush2.bf16.msra.mxu0 %v13095_v47  ;;  %10382 = vmatprep.subr.bf16.mxu1 %v13878_v59  ;;  %v3476_v47 = vld [vmem:[#allocation8 + $0x4e8] sm:$0xff]  ;;  %v4275_v59 = vld [vmem:[#allocation8 + $0x1de0] sm:$0xff]  ;;  %v15069_v16 = vpop.f32.mrf.mxu1 }
 0x4c6   :  { %10429 = vmatprep.subr.bf16.mxu0 %v13080_v7  ;;  %v15067_v7 = vpop.f32.mrf.mxu0  ;;  %v13032_v53 = vcombine.high %v3468_v60, %v3476_v47  ;;  %v13031_v51 = vcombine.low %v3468_v60, %v3476_v47  ;;  %v13829_v21 = vcombine.low %v4267_v40, %v4275_v59 }
 0x4c8   :  { %10383 = vmatpush2.bf16.msra.mxu1 %v13877_v15  ;;  %v15071_v62 = vpop.f32.mrf.mxu0  ;;  %v4259_v15 = vld [vmem:[#allocation8 + $0x1d60] sm:$0xff] }
 0x4c9   :  { %10430 = vmatpush2.bf16.msra.mxu0 %v13079_v8  ;;  %10384 = vmatprep.subr.bf16.mxu1 %v13862_v25  ;;  %15361 = vst [vmem:[#allocation39_spill] sm:$0xff] %v15071_v62  ;;  %v4251_v8 = vld [vmem:[#allocation8 + $0x1d20] sm:$0xff]  ;;  %v15073_v25 = vpop.f32.mrf.mxu1  ;;  %v13511_v62 = vcombine.low %v3948_v45, %v3956_v50 }
 0x4ca   :  { %10431 = vmatprep.subr.bf16.mxu0 %v13064_v20  ;;  %v13830_v20 = vcombine.high %v4267_v40, %v4275_v59  ;;  %15362 = vst [vmem:[#allocation40_spill] sm:$0xff] %v15073_v25  ;;  %v15075_v2 = vpop.f32.mrf.mxu0  ;;  %v13814_v11 = vcombine.high %v4251_v8, %v4259_v15  ;;  %v3932_v40 = vld [vmem:[#allocation8 + $0x1328] sm:$0xff] }
 0x4cb   :  { %v3940_v59 = vld [vmem:[#allocation8 + $0x1368] sm:$0xff] }
 0x4cc   :  { %10385 = vmatpush2.bf16.msra.mxu1 %v13861_v18  ;;  %v4235_v18 = vld [vmem:[#allocation8 + $0x1ca0] sm:$0xff]  ;;  %v10097_v1 = vpop.f32.mrf.mxu0  ;;  %v3900_v25 = vld [vmem:[#allocation8 + $0x1228] sm:$0xff] }
 0x4cd   :  { %10432 = vmatpush2.bf16.msra.mxu0 %v13063_v5  ;;  %10386 = vmatprep.subr.bf16.mxu1 %v13846_v33  ;;  %v13016_v5 = vcombine.high %v3452_v27, %v3460_v63  ;;  %v15077_v33 = vpop.f32.mrf.mxu1  ;;  %v3916_v63 = vld [vmem:[#allocation8 + $0x12a8] sm:$0xff] }
 0x4ce   :  { %10433 = vmatprep.subr.bf16.mxu0 %v13048_v37  ;;  %v4243_v37 = vld [vmem:[#allocation8 + $0x1ce0] sm:$0xff]  ;;  %v10099_v10 = vpop.f32.mrf.mxu0 }
 0x4cf   :  { %v15079_v60 = vpop.f32.mrf.mxu1  ;;  %v13798_v47 = vcombine.high %v4235_v18, %v4243_v37  ;;  %v13797_v12 = vcombine.low %v4235_v18, %v4243_v37 }
 0x4d0   :  { %10387 = vmatpush2.bf16.msra.mxu1 %v13845_v54  ;;  %v13512_v54 = vcombine.high %v3948_v45, %v3956_v50  ;;  %15363 = vst [vmem:[#allocation41_spill] sm:$0xff] %v15079_v60  ;;  %v3684_v60 = vld [vmem:[#allocation8 + $0xb68] sm:$0xff] }
 0x4d1   :  { %10434 = vmatpush2.bf16.msra.mxu0 %v13047_v39  ;;  %10388 = vmatprep.subr.bf16.mxu1 %v13830_v20  ;;  %v13813_v39 = vcombine.low %v4251_v8, %v4259_v15  ;;  %v4227_v20 = vld [vmem:[#allocation8 + $0x1c60] sm:$0xff]  ;;  %v15081_v27 = vpop.f32.mrf.mxu1  ;;  %v3924_v8 = vld [vmem:[#allocation8 + $0x12e8] sm:$0xff] }
 0x4d2   :  { %10435 = vmatprep.subr.bf16.mxu0 %v13032_v53  ;;  %v4219_v53 = vld [vmem:[#allocation8 + $0x1c20] sm:$0xff]  ;;  %15364 = vst [vmem:[#allocation42_spill] sm:$0xff] %v15081_v27  ;;  %v3692_v15 = vld [vmem:[#allocation8 + $0xba8] sm:$0xff]  ;;  %v13480_v50 = vcombine.high %v3916_v63, %v3924_v8 }
 0x4d3   :  { %v13781_v45 = vcombine.low %v4219_v53, %v4227_v20  ;;  %v15085_v18 = vpop.f32.mrf.mxu1  ;;  %v3668_v27 = vld [vmem:[#allocation8 + $0xae8] sm:$0xff] }
 0x4d4   :  { %10389 = vmatpush2.bf16.msra.mxu1 %v13829_v21  ;;  %v13782_v21 = vcombine.high %v4219_v53, %v4227_v20  ;;  %15365 = vst [vmem:[#allocation43_spill] sm:$0xff] %v15085_v18 }
 0x4d5   :  { %10436 = vmatpush2.bf16.msra.mxu0 %v13031_v51  ;;  %10390 = vmatprep.subr.bf16.mxu1 %v13814_v11  ;;  %v13496_v51 = vcombine.high %v3932_v40, %v3940_v59  ;;  %v10101_v11 = vpop.f32.mrf.mxu0 }
 0x4d6   :  { %10437 = vmatprep.subr.bf16.mxu0 %v13016_v5  ;;  %v3700_v5 = vld [vmem:[#allocation8 + $0xbe8] sm:$0xff] }
 0x4d7   :  { %v13256_v37 = vcombine.high %v3692_v15, %v3700_v5  ;;  %v15088_v52 = vpop.f32.mrf.mxu0 }
 0x4d8   :  { %10391 = vmatpush2.bf16.msra.mxu1 %v13813_v39  ;;  %v3676_v39 = vld [vmem:[#allocation8 + $0xb28] sm:$0xff]  ;;  %15366 = vst [vmem:[#allocation44_spill] sm:$0xff] %v15088_v52 }
 0x4d9   :  { %10438 = vmatpush2.bf16.msra.mxu0 %v13015_v23  ;;  %10392 = vmatprep.subr.bf16.mxu1 %v13798_v47  ;;  %v13495_v23 = vcombine.low %v3932_v40, %v3940_v59  ;;  %v13255_v40 = vcombine.low %v3692_v15, %v3700_v5  ;;  %v15093_v59 = vpop.f32.mrf.mxu1  ;;  %v13240_v20 = vcombine.high %v3676_v39, %v3684_v60 }
 0x4da   :  { %10493 = vmatprep.subr.bf16.mxu0 %v13512_v54  ;;  %v14492_v54 = vld [vmem:[#allocation10] sm:$0xff] }
 0x4db   :  { %v4374_v47 = vrot.slane %v14492_v54, %v14939_v30  ;;  %v3892_v30 = vld [vmem:[#allocation8 + $0x11e8] sm:$0xff] }
 0x4dc   :  { %10440 = vmatmul.mubr.bf16.vlgmr.msra.gmra.mxu0 %v14895_v44  ;;  %10393 = vmatpush2.bf16.msra.mxu1 %v13797_v12  ;;  %v15091_v12 = vrot.slane %v14492_v54, %v14942_v61  ;;  %v10183_v53 = vpop.f32.mrf.mxu0  ;;  %v3876_v54 = vld [vmem:[#allocation8 + $0x1168] sm:$0xff] }
 0x4dd   :  { %10494 = vmatpush1.bf16.msra.mxu0 %v13511_v62  ;;  %10525 = vmatprep.mubr.bf16.mxu0 %v14931_v3  ;;  %v13479_v62 = vcombine.low %v3916_v63, %v3924_v8  ;;  %v10098_v18 = vadd.f32 %v10097_v1, %v4374_v47  ;;  %v13239_v63 = vcombine.low %v3676_v39, %v3684_v60  ;;  %v3644_v60 = vld [vmem:[#allocation8 + $0xa28] sm:$0xff] }
 0x4de   :  { %10495 = vmatprep.subr.bf16.mxu0 %v13496_v51  ;;  %10394 = vmatprep.subr.bf16.mxu1 %v13782_v21  ;;  %v13464_v51 = vcombine.high %v3900_v25, %v3908_v38  ;;  %v3884_v21 = vld [vmem:[#allocation8 + $0x11a8] sm:$0xff]  ;;  %v13463_v8 = vcombine.low %v3900_v25, %v3908_v38  ;;  %v10100_v15 = vadd.f32 %v10099_v10, %v15091_v12 }
 0x4df   :  { %v13224_v1 = vcombine.high %v3660_v57, %v3668_v27  ;;  %v10102_v61 = vadd.f32 %v10101_v11, %v4374_v47  ;;  %v3652_v38 = vld [vmem:[#allocation8 + $0xa68] sm:$0xff]  ;;  %v13447_v10 = vcombine.low %v3884_v21, %v3892_v30  ;;  %v13223_v39 = vcombine.low %v3660_v57, %v3668_v27 }
 0x4e0   :  { %10395 = vmatpush2.bf16.msra.mxu1 %v13781_v45  ;;  %v15098_v45 = vpop.f32.mrf.mxu0  ;;  %v3628_v11 = vld [vmem:[#allocation8 + $0x9a8] sm:$0xff] }
 0x4e1   :  { %10496 = vmatpush1.bf16.msra.mxu0 %v13495_v23  ;;  %10450 = vmatprep.subr.bf16.mxu1 %v13256_v37  ;;  %v13448_v23 = vcombine.high %v3884_v21, %v3892_v30  ;;  %15367 = vst [vmem:[#allocation45_spill] sm:$0xff] %v15098_v45  ;;  %v3868_v37 = vld [vmem:[#allocation8 + $0x1128] sm:$0xff] }
 0x4e2   :  { %10497 = vmatprep.subr.bf16.mxu0 %v13480_v50  ;;  %v3860_v45 = vld [vmem:[#allocation8 + $0x10e8] sm:$0xff] }
 0x4e3   :  { %v10140_v52 = vpop.f32.mrf.mxu1  ;;  %10397 = vmatmul.mubr.bf16.vlgmr.msra.gmra.mxu1 %v14960_v42  ;;  %v3636_v47 = vld [vmem:[#allocation8 + $0x9e8] sm:$0xff] }
 0x4e4   :  { %v10141_v5 = vadd.f32 %v10140_v52, %v10098_v18  ;;  %10451 = vmatpush1.bf16.msra.mxu1 %v13255_v40  ;;  %10482 = vmatprep.mubr.bf16.mxu1 %v14891_v56  ;;  %v10187_v40 = vpop.f32.mrf.mxu0  ;;  %v3836_v57 = vld [vmem:[#allocation8 + $0x1028] sm:$0xff] }
 0x4e5   :  { %10498 = vmatpush1.bf16.msra.mxu0 %v13479_v62  ;;  %v10142_v50 = vpop.f32.mrf.mxu1  ;;  %10452 = vmatprep.subr.bf16.mxu1 %v13240_v20  ;;  %v13432_v62 = vcombine.high %v3868_v37, %v3876_v54  ;;  %v13208_v20 = vcombine.high %v3644_v60, %v3652_v38  ;;  %v3844_v27 = vld [vmem:[#allocation8 + $0x1068] sm:$0xff] }
 0x4e6   :  { %10499 = vmatprep.subr.bf16.mxu0 %v13464_v51  ;;  %v15100_v43 = vadd.f32 %v10142_v50, %v10100_v15  ;;  %v15102_v25 = vadd.f32 %v10183_v53, %v10141_v5  ;;  %v3852_v51 = vld [vmem:[#allocation8 + $0x10a8] sm:$0xff]  ;;  %v13431_v53 = vcombine.low %v3868_v37, %v3876_v54  ;;  %v13207_v5 = vcombine.low %v3644_v60, %v3652_v38 }
 0x4e7   :  { %v10144_v52 = vpop.f32.mrf.mxu1  ;;  %v13416_v30 = vcombine.high %v3852_v51, %v3860_v45  ;;  %v3612_v21 = vld [vmem:[#allocation8 + $0x928] sm:$0xff]  ;;  %v13400_v50 = vcombine.high %v3836_v57, %v3844_v27  ;;  %v13399_v38 = vcombine.low %v3836_v57, %v3844_v27 }
 0x4e8   :  { %v10145_v18 = vadd.f32 %v10144_v52, %v10102_v61  ;;  %10453 = vmatpush1.bf16.msra.mxu1 %v13239_v63  ;;  %v13192_v61 = vcombine.high %v3628_v11, %v3636_v47  ;;  %v3620_v63 = vld [vmem:[#allocation8 + $0x968] sm:$0xff] }
 0x4e9   :  { %10500 = vmatpush1.bf16.msra.mxu0 %v13463_v8  ;;  %10454 = vmatprep.subr.bf16.mxu1 %v13224_v1  ;;  %v13415_v8 = vcombine.low %v3852_v51, %v3860_v45  ;;  %v13176_v1 = vcombine.high %v3612_v21, %v3620_v63  ;;  %v4076_v52 = vld [vmem:[#allocation8 + $0x17a8] sm:$0xff] }
 0x4ea   :  { %10501 = vmatprep.subr.bf16.mxu0 %v13448_v23  ;;  %v15104_v15 = vadd.f32 %v10187_v40, %v10145_v18  ;;  %v13191_v23 = vcombine.low %v3628_v11, %v3636_v47  ;;  %v4084_v37 = vld [vmem:[#allocation8 + $0x17e8] sm:$0xff] }
 0x4eb   :  { %v3596_v54 = vld [vmem:[#allocation8 + $0x8a8] sm:$0xff]  ;;  %v13640_v18 = vcombine.high %v4076_v52, %v4084_v37  ;;  %v13639_v51 = vcombine.low %v4076_v52, %v4084_v37 }
 0x4ec   :  { %10455 = vmatpush1.bf16.msra.mxu1 %v13223_v39  ;;  %v3604_v60 = vld [vmem:[#allocation8 + $0x8e8] sm:$0xff] }
 0x4ed   :  { %10502 = vmatpush1.bf16.msra.mxu0 %v13447_v10  ;;  %10456 = vmatprep.subr.bf16.mxu1 %v13208_v20  ;;  %v13175_v10 = vcombine.low %v3612_v21, %v3620_v63  ;;  %v13160_v39 = vcombine.high %v3596_v54, %v3604_v60  ;;  %v4068_v45 = vld [vmem:[#allocation8 + $0x1768] sm:$0xff]  ;;  %v13159_v11 = vcombine.low %v3596_v54, %v3604_v60 }
 0x4ee   :  { %10503 = vmatprep.subr.bf16.mxu0 %v13432_v62  ;;  %v4060_v62 = vld [vmem:[#allocation8 + $0x1728] sm:$0xff] }
 0x4ef   :  { %v3580_v40 = vld [vmem:[#allocation8 + $0x828] sm:$0xff]  ;;  %v13624_v47 = vcombine.high %v4060_v62, %v4068_v45  ;;  %v13623_v27 = vcombine.low %v4060_v62, %v4068_v45 }
 0x4f0   :  { %10457 = vmatpush1.bf16.msra.mxu1 %v13207_v5  ;;  %v3588_v20 = vld [vmem:[#allocation8 + $0x868] sm:$0xff] }
 0x4f1   :  { %10504 = vmatpush1.bf16.msra.mxu0 %v13431_v53  ;;  %10458 = vmatprep.subr.bf16.mxu1 %v13192_v61  ;;  %v13144_v53 = vcombine.high %v3580_v40, %v3588_v20  ;;  %v4044_v5 = vld [vmem:[#allocation8 + $0x16a8] sm:$0xff]  ;;  %v13143_v21 = vcombine.low %v3580_v40, %v3588_v20 }
 0x4f2   :  { %10505 = vmatprep.subr.bf16.mxu0 %v13416_v30  ;;  %v4052_v30 = vld [vmem:[#allocation8 + $0x16e8] sm:$0xff] }
 0x4f3   :  { %v3820_v61 = vld [vmem:[#allocation8 + $0xfa8] sm:$0xff]  ;;  %v13608_v63 = vcombine.high %v4044_v5, %v4052_v30  ;;  %v13607_v37 = vcombine.low %v4044_v5, %v4052_v30 }
 0x4f4   :  { %10459 = vmatpush1.bf16.msra.mxu1 %v13191_v23  ;;  %v3828_v57 = vld [vmem:[#allocation8 + $0xfe8] sm:$0xff] }
 0x4f5   :  { %10506 = vmatpush1.bf16.msra.mxu0 %v13415_v8  ;;  %10460 = vmatprep.subr.bf16.mxu1 %v13176_v1  ;;  %v13384_v8 = vcombine.high %v3820_v61, %v3828_v57  ;;  %v4028_v23 = vld [vmem:[#allocation8 + $0x1628] sm:$0xff]  ;;  %v13383_v54 = vcombine.low %v3820_v61, %v3828_v57 }
 0x4f6   :  { %10507 = vmatprep.subr.bf16.mxu0 %v13400_v50  ;;  %v4036_v50 = vld [vmem:[#allocation8 + $0x1668] sm:$0xff] }
 0x4f7   :  { %v3804_v1 = vld [vmem:[#allocation8 + $0xf28] sm:$0xff]  ;;  %v13592_v60 = vcombine.high %v4028_v23, %v4036_v50  ;;  %v13591_v45 = vcombine.low %v4028_v23, %v4036_v50 }
 0x4f8   :  { %10461 = vmatpush1.bf16.msra.mxu1 %v13175_v10  ;;  %v3812_v52 = vld [vmem:[#allocation8 + $0xf68] sm:$0xff] }
 0x4f9   :  { %10508 = vmatpush1.bf16.msra.mxu0 %v13399_v38  ;;  %10462 = vmatprep.subr.bf16.mxu1 %v13160_v39  ;;  %v13368_v38 = vcombine.high %v3804_v1, %v3812_v52  ;;  %v4012_v10 = vld [vmem:[#allocation8 + $0x15a8] sm:$0xff]  ;;  %v13367_v40 = vcombine.low %v3804_v1, %v3812_v52 }
 0x4fa   :  { %10509 = vmatprep.subr.bf16.mxu0 %v13640_v18  ;;  %v4020_v18 = vld [vmem:[#allocation8 + $0x15e8] sm:$0xff] }
 0x4fb   :  { %v3788_v39 = vld [vmem:[#allocation8 + $0xea8] sm:$0xff]  ;;  %v13576_v20 = vcombine.high %v4012_v10, %v4020_v18  ;;  %v13575_v30 = vcombine.low %v4012_v10, %v4020_v18 }
 0x4fc   :  { %10463 = vmatpush1.bf16.msra.mxu1 %v13159_v11  ;;  %v3796_v62 = vld [vmem:[#allocation8 + $0xee8] sm:$0xff] }
 0x4fd   :  { %10510 = vmatpush2.bf16.msra.mxu0 %v13639_v51  ;;  %10464 = vmatprep.subr.bf16.mxu1 %v13144_v53  ;;  %v13352_v51 = vcombine.high %v3788_v39, %v3796_v62  ;;  %v3996_v11 = vld [vmem:[#allocation8 + $0x1528] sm:$0xff]  ;;  %v13351_v61 = vcombine.low %v3788_v39, %v3796_v62 }
 0x4fe   :  { %10511 = vmatprep.subr.bf16.mxu0 %v13624_v47  ;;  %v4004_v47 = vld [vmem:[#allocation8 + $0x1568] sm:$0xff] }
 0x4ff   :  { %v3772_v53 = vld [vmem:[#allocation8 + $0xe28] sm:$0xff]  ;;  %v13560_v57 = vcombine.high %v3996_v11, %v4004_v47  ;;  %v13559_v50 = vcombine.low %v3996_v11, %v4004_v47 }
 0x500   :  { %10465 = vmatpush1.bf16.msra.mxu1 %v13143_v21  ;;  %v3780_v5 = vld [vmem:[#allocation8 + $0xe68] sm:$0xff] }
 0x501   :  { %10512 = vmatpush2.bf16.msra.mxu0 %v13623_v27  ;;  %10466 = vmatprep.subr.bf16.mxu1 %v13384_v8  ;;  %v13336_v27 = vcombine.high %v3772_v53, %v3780_v5  ;;  %v3980_v21 = vld [vmem:[#allocation8 + $0x14a8] sm:$0xff]  ;;  %v13335_v1 = vcombine.low %v3772_v53, %v3780_v5 }
 0x502   :  { %10513 = vmatprep.subr.bf16.mxu0 %v13608_v63  ;;  %v3988_v63 = vld [vmem:[#allocation8 + $0x14e8] sm:$0xff] }
 0x503   :  { %v3756_v8 = vld [vmem:[#allocation8 + $0xda8] sm:$0xff]  ;;  %v13544_v52 = vcombine.high %v3980_v21, %v3988_v63  ;;  %v13543_v18 = vcombine.low %v3980_v21, %v3988_v63 }
 0x504   :  { %10467 = vmatpush2.bf16.msra.mxu1 %v13383_v54  ;;  %v3764_v23 = vld [vmem:[#allocation8 + $0xde8] sm:$0xff] }
 0x505   :  { %10514 = vmatpush2.bf16.msra.mxu0 %v13607_v37  ;;  %10468 = vmatprep.subr.bf16.mxu1 %v13368_v38  ;;  %v13320_v37 = vcombine.high %v3756_v8, %v3764_v23  ;;  %v3964_v54 = vld [vmem:[#allocation8 + $0x1428] sm:$0xff]  ;;  %v13319_v39 = vcombine.low %v3756_v8, %v3764_v23 }
 0x506   :  { %10515 = vmatprep.subr.bf16.mxu0 %v13592_v60  ;;  %v3972_v60 = vld [vmem:[#allocation8 + $0x1468] sm:$0xff] }
 0x507   :  { %v3740_v38 = vld [vmem:[#allocation8 + $0xd28] sm:$0xff]  ;;  %v13528_v62 = vcombine.high %v3964_v54, %v3972_v60  ;;  %v13527_v47 = vcombine.low %v3964_v54, %v3972_v60 }
 0x508   :  { %10469 = vmatpush2.bf16.msra.mxu1 %v13367_v40  ;;  %v3748_v10 = vld [vmem:[#allocation8 + $0xd68] sm:$0xff]  ;;  %v3437_v40 = vld [vmem:[#allocation8 + $0x3b0] sm:$0xff] }
 0x509   :  { %10516 = vmatpush2.bf16.msra.mxu0 %v13591_v45  ;;  %10470 = vmatprep.subr.bf16.mxu1 %v13352_v51  ;;  %v13304_v45 = vcombine.high %v3740_v38, %v3748_v10  ;;  %v3724_v51 = vld [vmem:[#allocation8 + $0xca8] sm:$0xff]  ;;  %v13303_v53 = vcombine.low %v3740_v38, %v3748_v10 }
 0x50a   :  { %10517 = vmatprep.subr.bf16.mxu0 %v13576_v20  ;;  %v3445_v20 = vld [vmem:[#allocation8 + $0x3f0] sm:$0xff]  ;;  %v3732_v11 = vld [vmem:[#allocation8 + $0xce8] sm:$0xff] }
 0x50b   :  { %v13002_v5 = vcombine.high %v3437_v40, %v3445_v20  ;;  %v3716_v21 = vld [vmem:[#allocation8 + $0xc68] sm:$0xff]  ;;  %v13001_v63 = vcombine.low %v3437_v40, %v3445_v20  ;;  %v13287_v8 = vcombine.low %v3724_v51, %v3732_v11  ;;  %v3397_v40 = vld [vmem:[#allocation8 + $0x270] sm:$0xff] }
 0x50c   :  { %10471 = vmatpush2.bf16.msra.mxu1 %v13351_v61  ;;  %v3421_v61 = vld [vmem:[#allocation8 + $0x330] sm:$0xff]  ;;  %v4212_v54 = vld [vmem:[#allocation8 + $0x1be8] sm:$0xff] }
 0x50d   :  { %10518 = vmatpush2.bf16.msra.mxu0 %v13575_v30  ;;  %10472 = vmatprep.subr.bf16.mxu1 %v13336_v27  ;;  %v13288_v30 = vcombine.high %v3724_v51, %v3732_v11  ;;  %v3708_v27 = vld [vmem:[#allocation8 + $0xc28] sm:$0xff]  ;;  %v15108_v11 = vpop.f32.mrf.mxu1 }
 0x50e   :  { %10519 = vmatprep.subr.bf16.mxu0 %v13560_v57  ;;  %v3429_v57 = vld [vmem:[#allocation8 + $0x370] sm:$0xff]  ;;  %v13271_v38 = vcombine.low %v3708_v27, %v3716_v21 }
 0x50f   :  { %v12986_v23 = vcombine.high %v3421_v61, %v3429_v57  ;;  %v12985_v60 = vcombine.low %v3421_v61, %v3429_v57  ;;  %v4172_v61 = vld [vmem:[#allocation8 + $0x1aa8] sm:$0xff] }
 0x510   :  { %10473 = vmatpush2.bf16.msra.mxu1 %v13335_v1  ;;  %v3405_v1 = vld [vmem:[#allocation8 + $0x2b0] sm:$0xff]  ;;  %v4180_v57 = vld [vmem:[#allocation8 + $0x1ae8] sm:$0xff] }
 0x511   :  { %10520 = vmatpush2.bf16.msra.mxu0 %v13559_v50  ;;  %10474 = vmatprep.subr.bf16.mxu1 %v13320_v37  ;;  %v13272_v50 = vcombine.high %v3708_v27, %v3716_v21  ;;  %v4204_v37 = vld [vmem:[#allocation8 + $0x1ba8] sm:$0xff] }
 0x512   :  { %10521 = vmatprep.subr.bf16.mxu0 %v13544_v52  ;;  %v3413_v52 = vld [vmem:[#allocation8 + $0x2f0] sm:$0xff]  ;;  %v13767_v51 = vcombine.low %v4204_v37, %v4212_v54 }
 0x513   :  { %v12970_v10 = vcombine.high %v3405_v1, %v3413_v52  ;;  %v12969_v20 = vcombine.low %v3405_v1, %v3413_v52  ;;  %v13736_v1 = vcombine.high %v4172_v61, %v4180_v57  ;;  %v3357_v52 = vld [vmem:[#allocation8 + $0x130] sm:$0xff] }
 0x514   :  { %10475 = vmatpush2.bf16.msra.mxu1 %v13319_v39  ;;  %v4188_v39 = vld [vmem:[#allocation8 + $0x1b28] sm:$0xff] }
 0x515   :  { %10522 = vmatpush2.bf16.msra.mxu0 %v13543_v18  ;;  %10476 = vmatprep.subr.bf16.mxu1 %v13304_v45  ;;  %v13768_v18 = vcombine.high %v4204_v37, %v4212_v54  ;;  %v3389_v45 = vld [vmem:[#allocation8 + $0x230] sm:$0xff]  ;;  %v4156_v54 = vld [vmem:[#allocation8 + $0x1a28] sm:$0xff] }
 0x516   :  { %10523 = vmatprep.subr.bf16.mxu0 %v13528_v62  ;;  %v4196_v62 = vld [vmem:[#allocation8 + $0x1b68] sm:$0xff]  ;;  %v12953_v21 = vcombine.low %v3389_v45, %v3397_v40  ;;  %v3365_v37 = vld [vmem:[#allocation8 + $0x170] sm:$0xff] }
 0x518   :  { %10477 = vmatpush2.bf16.msra.mxu1 %v13303_v53  ;;  %v12954_v53 = vcombine.high %v3389_v45, %v3397_v40  ;;  %v12922_v45 = vcombine.high %v3357_v52, %v3365_v37  ;;  %v3349_v40 = vld [vmem:[#allocation8 + $0xf0] sm:$0xff] }
 0x519   :  { %10524 = vmatpush2.bf16.msra.mxu0 %v13527_v47  ;;  %10478 = vmatprep.subr.bf16.mxu1 %v13288_v30  ;;  %v13752_v47 = vcombine.high %v4188_v39, %v4196_v62  ;;  %v3381_v30 = vld [vmem:[#allocation8 + $0x1f0] sm:$0xff] }
 0x51a   :  { %10579 = vmatprep.subr.bf16.mxu0 %v13002_v5  ;;  %v3373_v5 = vld [vmem:[#allocation8 + $0x1b0] sm:$0xff] }
 0x51c   :  { %10526 = vmatmul.mubr.bf16.vlgmr.msra.gmra.mxu0 %v14933_v9  ;;  %10479 = vmatpush2.bf16.msra.mxu1 %v13287_v8  ;;  %v13751_v8 = vcombine.low %v4188_v39, %v4196_v62  ;;  %v3341_v62 = vld [vmem:[#allocation8 + $0xb0] sm:$0xff] }
 0x51d   :  { %10580 = vmatpush1.bf16.msra.mxu0 %v13001_v63  ;;  %10611 = vmatprep.mubr.bf16.mxu0 %v14872_v0 }
 0x51e   :  { %10581 = vmatprep.subr.bf16.mxu0 %v12986_v23  ;;  %10480 = vmatprep.subr.bf16.mxu1 %v13272_v50  ;;  %v12938_v23 = vcombine.high %v3373_v5, %v3381_v30 }
 0x520   :  { %10481 = vmatpush2.bf16.msra.mxu1 %v13271_v38 }
 0x521   :  { %10582 = vmatpush1.bf16.msra.mxu0 %v12985_v60  ;;  %10536 = vmatprep.subr.bf16.mxu1 %v13768_v18  ;;  %v4164_v60 = vld [vmem:[#allocation8 + $0x1a68] sm:$0xff] }
 0x522   :  { %10583 = vmatprep.subr.bf16.mxu0 %v12970_v10  ;;  %v12937_v10 = vcombine.low %v3373_v5, %v3381_v30  ;;  %v13720_v39 = vcombine.high %v4156_v54, %v4164_v60  ;;  %v12906_v5 = vcombine.high %v3341_v62, %v3349_v40  ;;  %v3325_v30 = vld [vmem:[#allocation8 + $0x30] sm:$0xff] }
 0x523   :  { %v10226_v27 = vpop.f32.mrf.mxu1  ;;  %10483 = vmatmul.mubr.bf16.vlgmr.msra.gmra.mxu1 %v14898_v49 }
 0x524   :  { %v10227_v63 = vadd.f32 %v10226_v27, %v15102_v25  ;;  %10537 = vmatpush1.bf16.msra.mxu1 %v13767_v51  ;;  %10568 = vmatprep.mubr.bf16.mxu1 %v14957_v35  ;;  %v13735_v25 = vcombine.low %v4172_v61, %v4180_v57  ;;  %v4140_v51 = vld [vmem:[#allocation8 + $0x19a8] sm:$0xff]  ;;  %v13719_v27 = vcombine.low %v4156_v54, %v4164_v60  ;;  %v3333_v61 = vld [vmem:[#allocation8 + $0x70] sm:$0xff] }
 0x525   :  { %10584 = vmatpush1.bf16.msra.mxu0 %v12969_v20  ;;  %v15113_v50 = vpop.f32.mrf.mxu1  ;;  %10538 = vmatprep.subr.bf16.mxu1 %v13752_v47  ;;  %v4148_v47 = vld [vmem:[#allocation8 + $0x19e8] sm:$0xff]  ;;  %v12889_v60 = vcombine.low %v3325_v30, %v3333_v61 }
 0x526   :  { %10585 = vmatprep.subr.bf16.mxu0 %v12954_v53  ;;  %v12921_v53 = vcombine.low %v3357_v52, %v3365_v37  ;;  %v4124_v57 = vld [vmem:[#allocation8 + $0x1928] sm:$0xff]  ;;  %v3573_v52 = vld [vmem:[#allocation8 + $0x7f0] sm:$0xff] }
 0x527   :  { %v10230_v38 = vpop.f32.mrf.mxu1  ;;  %v4108_v37 = vld [vmem:[#allocation8 + $0x18a8] sm:$0xff] }
 0x528   :  { %v10231_v18 = vadd.f32 %v10230_v38, %v15104_v15  ;;  %10539 = vmatpush1.bf16.msra.mxu1 %v13751_v8  ;;  %v13704_v15 = vcombine.high %v4140_v51, %v4148_v47  ;;  %v12905_v8 = vcombine.low %v3341_v62, %v3349_v40  ;;  %v3565_v38 = vld [vmem:[#allocation8 + $0x7b0] sm:$0xff]  ;;  %v4116_v54 = vld [vmem:[#allocation8 + $0x18e8] sm:$0xff] }
 0x529   :  { %10586 = vmatpush1.bf16.msra.mxu0 %v12953_v21  ;;  %10540 = vmatprep.subr.bf16.mxu1 %v13736_v1  ;;  %v4132_v21 = vld [vmem:[#allocation8 + $0x1968] sm:$0xff] }
 0x52a   :  { %10587 = vmatprep.subr.bf16.mxu0 %v12938_v23  ;;  %v15116_v20 = vpack.c.bf16 %v10231_v18, %v10227_v63  ;;  %v13703_v23 = vcombine.low %v4140_v51, %v4148_v47  ;;  %v12890_v63 = vcombine.high %v3325_v30, %v3333_v61  ;;  %v13688_v1 = vcombine.high %v4124_v57, %v4132_v21  ;;  %v4092_v62 = vld [vmem:[#allocation8 + $0x1828] sm:$0xff] }
 0x52b   :  { %v13130_v18 = vcombine.high %v3565_v38, %v3573_v52  ;;  %v4100_v40 = vld [vmem:[#allocation8 + $0x1868] sm:$0xff]  ;;  %v13129_v51 = vcombine.low %v3565_v38, %v3573_v52  ;;  %v13671_v47 = vcombine.low %v4108_v37, %v4116_v54 }
 0x52c   :  { %10541 = vmatpush1.bf16.msra.mxu1 %v13735_v25  ;;  %v13672_v25 = vcombine.high %v4108_v37, %v4116_v54  ;;  %v4332_v30 = vld [vmem:[#allocation8 + $0x1fa8] sm:$0xff] }
 0x52d   :  { %10588 = vmatpush1.bf16.msra.mxu0 %v12937_v10  ;;  %10542 = vmatprep.subr.bf16.mxu1 %v13720_v39  ;;  %v13687_v10 = vcombine.low %v4124_v57, %v4132_v21  ;;  %v3557_v39 = vld [vmem:[#allocation8 + $0x770] sm:$0xff]  ;;  %v4340_v61 = vld [vmem:[#allocation8 + $0x1fe8] sm:$0xff]  ;;  %v13655_v21 = vcombine.low %v4092_v62, %v4100_v40 }
 0x52e   :  { %10589 = vmatprep.subr.bf16.mxu0 %v12922_v45  ;;  %v3549_v45 = vld [vmem:[#allocation8 + $0x730] sm:$0xff]  ;;  %v4316_v38 = vld [vmem:[#allocation8 + $0x1f28] sm:$0xff]  ;;  %v13895_v54 = vcombine.low %v4332_v30, %v4340_v61 }
 0x52f   :  { %v13113_v57 = vcombine.low %v3549_v45, %v3557_v39  ;;  %v4324_v52 = vld [vmem:[#allocation8 + $0x1f68] sm:$0xff] }
 0x530   :  { %10543 = vmatpush1.bf16.msra.mxu1 %v13719_v27  ;;  %v13656_v27 = vcombine.high %v4092_v62, %v4100_v40  ;;  %v13879_v40 = vcombine.low %v4316_v38, %v4324_v52 }
 0x531   :  { %10590 = vmatpush1.bf16.msra.mxu0 %v12921_v53  ;;  %10544 = vmatprep.subr.bf16.mxu1 %v13704_v15  ;;  %v13114_v53 = vcombine.high %v3549_v45, %v3557_v39  ;;  %v3541_v15 = vld [vmem:[#allocation8 + $0x6f0] sm:$0xff]  ;;  %v4300_v45 = vld [vmem:[#allocation8 + $0x1ea8] sm:$0xff] }
 0x532   :  { %10591 = vmatprep.subr.bf16.mxu0 %v12906_v5  ;;  %v3533_v5 = vld [vmem:[#allocation8 + $0x6b0] sm:$0xff]  ;;  %v4308_v39 = vld [vmem:[#allocation8 + $0x1ee8] sm:$0xff] }
 0x533   :  { %v13097_v37 = vcombine.low %v3533_v5, %v3541_v15 }
 0x534   :  { %10545 = vmatpush1.bf16.msra.mxu1 %v13703_v23  ;;  %v13896_v23 = vcombine.high %v4332_v30, %v4340_v61  ;;  %v13863_v61 = vcombine.low %v4300_v45, %v4308_v39 }
 0x535   :  { %10592 = vmatpush1.bf16.msra.mxu0 %v12905_v8  ;;  %10546 = vmatprep.subr.bf16.mxu1 %v13688_v1  ;;  %v13098_v8 = vcombine.high %v3533_v5, %v3541_v15  ;;  %v3525_v1 = vld [vmem:[#allocation8 + $0x670] sm:$0xff]  ;;  %v4284_v5 = vld [vmem:[#allocation8 + $0x1e28] sm:$0xff] }
 0x536   :  { %10593 = vmatprep.subr.bf16.mxu0 %v12890_v63  ;;  %v3517_v63 = vld [vmem:[#allocation8 + $0x630] sm:$0xff]  ;;  %v4292_v15 = vld [vmem:[#allocation8 + $0x1e68] sm:$0xff] }
 0x537   :  { %v13081_v62 = vcombine.low %v3517_v63, %v3525_v1 }
 0x538   :  { %10547 = vmatpush1.bf16.msra.mxu1 %v13687_v10  ;;  %v13880_v10 = vcombine.high %v4316_v38, %v4324_v52  ;;  %v13847_v52 = vcombine.low %v4284_v5, %v4292_v15 }
 0x539   :  { %10594 = vmatpush1.bf16.msra.mxu0 %v12889_v60  ;;  %10548 = vmatprep.subr.bf16.mxu1 %v13672_v25  ;;  %v13082_v60 = vcombine.high %v3517_v63, %v3525_v1  ;;  %v3509_v25 = vld [vmem:[#allocation8 + $0x5f0] sm:$0xff]  ;;  %v4268_v63 = vld [vmem:[#allocation8 + $0x1da8] sm:$0xff] }
 0x53a   :  { %10595 = vmatprep.subr.bf16.mxu0 %v13130_v18  ;;  %v3501_v18 = vld [vmem:[#allocation8 + $0x5b0] sm:$0xff]  ;;  %v4276_v1 = vld [vmem:[#allocation8 + $0x1de8] sm:$0xff] }
 0x53b   :  { %v13065_v30 = vcombine.low %v3501_v18, %v3509_v25 }
 0x53c   :  { %10549 = vmatpush1.bf16.msra.mxu1 %v13671_v47  ;;  %v13864_v47 = vcombine.high %v4300_v45, %v4308_v39  ;;  %v13831_v39 = vcombine.low %v4268_v63, %v4276_v1 }
 0x53d   :  { %10596 = vmatpush2.bf16.msra.mxu0 %v13129_v51  ;;  %10550 = vmatprep.subr.bf16.mxu1 %v13656_v27  ;;  %v13066_v51 = vcombine.high %v3501_v18, %v3509_v25  ;;  %v3493_v27 = vld [vmem:[#allocation8 + $0x570] sm:$0xff]  ;;  %v4252_v18 = vld [vmem:[#allocation8 + $0x1d28] sm:$0xff] }
 0x53e   :  { %10597 = vmatprep.subr.bf16.mxu0 %v13114_v53  ;;  %v3485_v53 = vld [vmem:[#allocation8 + $0x530] sm:$0xff]  ;;  %v4260_v25 = vld [vmem:[#allocation8 + $0x1d68] sm:$0xff] }
 0x53f   :  { %v13049_v38 = vcombine.low %v3485_v53, %v3493_v27 }
 0x540   :  { %10551 = vmatpush1.bf16.msra.mxu1 %v13655_v21  ;;  %v13848_v21 = vcombine.high %v4284_v5, %v4292_v15  ;;  %v13815_v15 = vcombine.low %v4252_v18, %v4260_v25 }
 0x541   :  { %10598 = vmatpush2.bf16.msra.mxu0 %v13113_v57  ;;  %10552 = vmatprep.subr.bf16.mxu1 %v13896_v23  ;;  %v13050_v57 = vcombine.high %v3485_v53, %v3493_v27  ;;  %v3477_v23 = vld [vmem:[#allocation8 + $0x4f0] sm:$0xff]  ;;  %v4236_v53 = vld [vmem:[#allocation8 + $0x1ca8] sm:$0xff] }
 0x542   :  { %10599 = vmatprep.subr.bf16.mxu0 %v13098_v8  ;;  %v3469_v8 = vld [vmem:[#allocation8 + $0x4b0] sm:$0xff]  ;;  %v4244_v27 = vld [vmem:[#allocation8 + $0x1ce8] sm:$0xff] }
 0x543   :  { %v13033_v45 = vcombine.low %v3469_v8, %v3477_v23 }
 0x544   :  { %10553 = vmatpush2.bf16.msra.mxu1 %v13895_v54  ;;  %v13832_v54 = vcombine.high %v4268_v63, %v4276_v1  ;;  %v13799_v1 = vcombine.low %v4236_v53, %v4244_v27 }
 0x545   :  { %10600 = vmatpush2.bf16.msra.mxu0 %v13097_v37  ;;  %10554 = vmatprep.subr.bf16.mxu1 %v13880_v10  ;;  %v13034_v37 = vcombine.high %v3469_v8, %v3477_v23  ;;  %v3461_v10 = vld [vmem:[#allocation8 + $0x470] sm:$0xff]  ;;  %v4220_v8 = vld [vmem:[#allocation8 + $0x1c28] sm:$0xff] }
 0x546   :  { %10601 = vmatprep.subr.bf16.mxu0 %v13082_v60  ;;  %v3453_v60 = vld [vmem:[#allocation8 + $0x430] sm:$0xff]  ;;  %v4228_v23 = vld [vmem:[#allocation8 + $0x1c68] sm:$0xff] }
 0x547   :  { %v13017_v5 = vcombine.low %v3453_v60, %v3461_v10 }
 0x548   :  { %10555 = vmatpush2.bf16.msra.mxu1 %v13879_v40  ;;  %v13816_v40 = vcombine.high %v4252_v18, %v4260_v25  ;;  %v13783_v25 = vcombine.low %v4220_v8, %v4228_v23 }
 0x549   :  { %10602 = vmatpush2.bf16.msra.mxu0 %v13081_v62  ;;  %10556 = vmatprep.subr.bf16.mxu1 %v13864_v47  ;;  %v13018_v62 = vcombine.high %v3453_v60, %v3461_v10  ;;  %v3957_v47 = vld [vmem:[#allocation8 + $0x13f0] sm:$0xff] }
 0x54a   :  { %10603 = vmatprep.subr.bf16.mxu0 %v13066_v51  ;;  %v3949_v51 = vld [vmem:[#allocation8 + $0x13b0] sm:$0xff] }
 0x54b   :  { %v13513_v63 = vcombine.low %v3949_v51, %v3957_v47  ;;  %v3693_v60 = vld [vmem:[#allocation8 + $0xbb0] sm:$0xff] }
 0x54c   :  { %10557 = vmatpush2.bf16.msra.mxu1 %v13863_v61  ;;  %v13800_v61 = vcombine.high %v4236_v53, %v4244_v27  ;;  %v3701_v10 = vld [vmem:[#allocation8 + $0xbf0] sm:$0xff] }
 0x54d   :  { %10604 = vmatpush2.bf16.msra.mxu0 %v13065_v30  ;;  %10558 = vmatprep.subr.bf16.mxu1 %v13848_v21  ;;  %v13514_v30 = vcombine.high %v3949_v51, %v3957_v47  ;;  %v3941_v21 = vld [vmem:[#allocation8 + $0x1370] sm:$0xff]  ;;  %v13257_v27 = vcombine.low %v3693_v60, %v3701_v10 }
 0x54e   :  { %10605 = vmatprep.subr.bf16.mxu0 %v13050_v57  ;;  %v3933_v57 = vld [vmem:[#allocation8 + $0x1330] sm:$0xff] }
 0x54f   :  { %v13497_v18 = vcombine.low %v3933_v57, %v3941_v21  ;;  %v3901_v51 = vld [vmem:[#allocation8 + $0x1230] sm:$0xff] }
 0x550   :  { %10559 = vmatpush2.bf16.msra.mxu1 %v13847_v52  ;;  %v13784_v52 = vcombine.high %v4220_v8, %v4228_v23  ;;  %v3909_v47 = vld [vmem:[#allocation8 + $0x1270] sm:$0xff] }
 0x551   :  { %10606 = vmatpush2.bf16.msra.mxu0 %v13049_v38  ;;  %10560 = vmatprep.subr.bf16.mxu1 %v13832_v54  ;;  %v13498_v38 = vcombine.high %v3933_v57, %v3941_v21  ;;  %v3925_v54 = vld [vmem:[#allocation8 + $0x12f0] sm:$0xff]  ;;  %v13465_v8 = vcombine.low %v3901_v51, %v3909_v47 }
 0x552   :  { %10607 = vmatprep.subr.bf16.mxu0 %v13034_v37  ;;  %v3917_v37 = vld [vmem:[#allocation8 + $0x12b0] sm:$0xff] }
 0x553   :  { %v13481_v53 = vcombine.low %v3917_v37, %v3925_v54  ;;  %v3661_v57 = vld [vmem:[#allocation8 + $0xab0] sm:$0xff] }
 0x554   :  { %10561 = vmatpush2.bf16.msra.mxu1 %v13831_v39  ;;  %v13258_v39 = vcombine.high %v3693_v60, %v3701_v10  ;;  %v3669_v21 = vld [vmem:[#allocation8 + $0xaf0] sm:$0xff] }
 0x555   :  { %10608 = vmatpush2.bf16.msra.mxu0 %v13033_v45  ;;  %10562 = vmatprep.subr.bf16.mxu1 %v13816_v40  ;;  %v13482_v45 = vcombine.high %v3917_v37, %v3925_v54  ;;  %v3685_v40 = vld [vmem:[#allocation8 + $0xb70] sm:$0xff]  ;;  %v13225_v10 = vcombine.low %v3661_v57, %v3669_v21 }
 0x556   :  { %10609 = vmatprep.subr.bf16.mxu0 %v13018_v62  ;;  %v3677_v62 = vld [vmem:[#allocation8 + $0xb30] sm:$0xff] }
 0x557   :  { %v13241_v23 = vcombine.low %v3677_v62, %v3685_v40  ;;  %v3645_v37 = vld [vmem:[#allocation8 + $0xa30] sm:$0xff] }
 0x558   :  { %10563 = vmatpush2.bf16.msra.mxu1 %v13815_v15  ;;  %v13466_v15 = vcombine.high %v3901_v51, %v3909_v47  ;;  %v3653_v54 = vld [vmem:[#allocation8 + $0xa70] sm:$0xff] }
 0x559   :  { %10610 = vmatpush2.bf16.msra.mxu0 %v13017_v5  ;;  %10564 = vmatprep.subr.bf16.mxu1 %v13800_v61  ;;  %v13242_v5 = vcombine.high %v3677_v62, %v3685_v40  ;;  %v3893_v61 = vld [vmem:[#allocation8 + $0x11f0] sm:$0xff]  ;;  %v13209_v47 = vcombine.low %v3645_v37, %v3653_v54 }
 0x55a   :  { %10665 = vmatprep.subr.bf16.mxu0 %v13514_v30  ;;  %v3885_v30 = vld [vmem:[#allocation8 + $0x11b0] sm:$0xff] }
 0x55b   :  { %v13449_v60 = vcombine.low %v3885_v30, %v3893_v61  ;;  %v3629_v51 = vld [vmem:[#allocation8 + $0x9b0] sm:$0xff] }
 0x55c   :  { %10612 = vmatmul.mubr.bf16.vlgmr.msra.gmra.mxu0 %v14895_v44  ;;  %10565 = vmatpush2.bf16.msra.mxu1 %v13799_v1  ;;  %v13226_v1 = vcombine.high %v3661_v57, %v3669_v21  ;;  %v3637_v62 = vld [vmem:[#allocation8 + $0x9f0] sm:$0xff] }
 0x55d   :  { %10666 = vmatpush1.bf16.msra.mxu0 %v13513_v63  ;;  %10697 = vmatprep.mubr.bf16.mxu0 %v14931_v3  ;;  %v13450_v63 = vcombine.high %v3885_v30, %v3893_v61  ;;  %v3613_v30 = vld [vmem:[#allocation8 + $0x930] sm:$0xff]  ;;  %v13193_v21 = vcombine.low %v3629_v51, %v3637_v62 }
 0x55e   :  { %10667 = vmatprep.subr.bf16.mxu0 %v13498_v38  ;;  %10566 = vmatprep.subr.bf16.mxu1 %v13784_v52  ;;  %v3869_v38 = vld [vmem:[#allocation8 + $0x1130] sm:$0xff] }
 0x55f   :  { %v3877_v52 = vld [vmem:[#allocation8 + $0x1170] sm:$0xff] }
 0x560   :  { %10567 = vmatpush2.bf16.msra.mxu1 %v13783_v25  ;;  %v13210_v25 = vcombine.high %v3645_v37, %v3653_v54  ;;  %v13433_v40 = vcombine.low %v3869_v38, %v3877_v52  ;;  %v3621_v61 = vld [vmem:[#allocation8 + $0x970] sm:$0xff] }
 0x561   :  { %10668 = vmatpush1.bf16.msra.mxu0 %v13497_v18  ;;  %10622 = vmatprep.subr.bf16.mxu1 %v13258_v39  ;;  %v13434_v18 = vcombine.high %v3869_v38, %v3877_v52  ;;  %v3861_v39 = vld [vmem:[#allocation8 + $0x10f0] sm:$0xff]  ;;  %v13177_v54 = vcombine.low %v3613_v30, %v3621_v61 }
 0x562   :  { %10669 = vmatprep.subr.bf16.mxu0 %v13482_v45  ;;  %v3853_v45 = vld [vmem:[#allocation8 + $0x10b0] sm:$0xff] }
 0x563   :  { %10569 = vmatmul.mubr.bf16.vlgmr.msra.gmra.mxu1 %v14960_v42  ;;  %v13417_v57 = vcombine.low %v3853_v45, %v3861_v39  ;;  %v3597_v38 = vld [vmem:[#allocation8 + $0x8b0] sm:$0xff] }
 0x564   :  { %10623 = vmatpush1.bf16.msra.mxu1 %v13257_v27  ;;  %10654 = vmatprep.mubr.bf16.mxu1 %v14891_v56  ;;  %v13194_v27 = vcombine.high %v3629_v51, %v3637_v62  ;;  %v3605_v52 = vld [vmem:[#allocation8 + $0x8f0] sm:$0xff] }
 0x565   :  { %10670 = vmatpush1.bf16.msra.mxu0 %v13481_v53  ;;  %10624 = vmatprep.subr.bf16.mxu1 %v13242_v5  ;;  %v13418_v53 = vcombine.high %v3853_v45, %v3861_v39  ;;  %v3837_v5 = vld [vmem:[#allocation8 + $0x1030] sm:$0xff]  ;;  %v13161_v62 = vcombine.low %v3597_v38, %v3605_v52 }
 0x566   :  { %10671 = vmatprep.subr.bf16.mxu0 %v13466_v15  ;;  %v3845_v15 = vld [vmem:[#allocation8 + $0x1070] sm:$0xff] }
 0x567   :  { %v13401_v37 = vcombine.low %v3837_v5, %v3845_v15  ;;  %v3581_v45 = vld [vmem:[#allocation8 + $0x830] sm:$0xff] }
 0x568   :  { %10625 = vmatpush1.bf16.msra.mxu1 %v13241_v23  ;;  %v13178_v23 = vcombine.high %v3613_v30, %v3621_v61  ;;  %v3589_v39 = vld [vmem:[#allocation8 + $0x870] sm:$0xff] }
 0x569   :  { %10672 = vmatpush1.bf16.msra.mxu0 %v13465_v8  ;;  %10626 = vmatprep.subr.bf16.mxu1 %v13226_v1  ;;  %v13402_v8 = vcombine.high %v3837_v5, %v3845_v15  ;;  %v4085_v1 = vld [vmem:[#allocation8 + $0x17f0] sm:$0xff]  ;;  %v13145_v61 = vcombine.low %v3581_v45, %v3589_v39 }
 0x56a   :  { %10673 = vmatprep.subr.bf16.mxu0 %v13450_v63  ;;  %v4077_v63 = vld [vmem:[#allocation8 + $0x17b0] sm:$0xff] }
 0x56b   :  { %v13641_v51 = vcombine.low %v4077_v63, %v4085_v1  ;;  %v3821_v5 = vld [vmem:[#allocation8 + $0xfb0] sm:$0xff] }
 0x56c   :  { %10627 = vmatpush1.bf16.msra.mxu1 %v13225_v10  ;;  %v13162_v10 = vcombine.high %v3597_v38, %v3605_v52  ;;  %v3829_v15 = vld [vmem:[#allocation8 + $0xff0] sm:$0xff] }
 0x56d   :  { %10674 = vmatpush1.bf16.msra.mxu0 %v13449_v60  ;;  %10628 = vmatprep.subr.bf16.mxu1 %v13210_v25  ;;  %v13642_v60 = vcombine.high %v4077_v63, %v4085_v1  ;;  %v4069_v25 = vld [vmem:[#allocation8 + $0x1770] sm:$0xff]  ;;  %v13385_v52 = vcombine.low %v3821_v5, %v3829_v15 }
 0x56e   :  { %10675 = vmatprep.subr.bf16.mxu0 %v13434_v18  ;;  %v4061_v18 = vld [vmem:[#allocation8 + $0x1730] sm:$0xff] }
 0x56f   :  { %v13625_v30 = vcombine.low %v4061_v18, %v4069_v25  ;;  %v3805_v63 = vld [vmem:[#allocation8 + $0xf30] sm:$0xff] }
 0x570   :  { %10629 = vmatpush1.bf16.msra.mxu1 %v13209_v47  ;;  %v13146_v47 = vcombine.high %v3581_v45, %v3589_v39  ;;  %v3813_v1 = vld [vmem:[#allocation8 + $0xf70] sm:$0xff] }
 0x571   :  { %10676 = vmatpush1.bf16.msra.mxu0 %v13433_v40  ;;  %10630 = vmatprep.subr.bf16.mxu1 %v13194_v27  ;;  %v13626_v40 = vcombine.high %v4061_v18, %v4069_v25  ;;  %v4053_v27 = vld [vmem:[#allocation8 + $0x16f0] sm:$0xff]  ;;  %v13369_v39 = vcombine.low %v3805_v63, %v3813_v1 }
 0x572   :  { %10677 = vmatprep.subr.bf16.mxu0 %v13418_v53  ;;  %v4045_v53 = vld [vmem:[#allocation8 + $0x16b0] sm:$0xff] }
 0x573   :  { %v13609_v38 = vcombine.low %v4045_v53, %v4053_v27  ;;  %v3789_v18 = vld [vmem:[#allocation8 + $0xeb0] sm:$0xff] }
 0x574   :  { %10631 = vmatpush1.bf16.msra.mxu1 %v13193_v21  ;;  %v13386_v21 = vcombine.high %v3821_v5, %v3829_v15  ;;  %v3797_v25 = vld [vmem:[#allocation8 + $0xef0] sm:$0xff] }
 0x575   :  { %10678 = vmatpush1.bf16.msra.mxu0 %v13417_v57  ;;  %10632 = vmatprep.subr.bf16.mxu1 %v13178_v23  ;;  %v13610_v57 = vcombine.high %v4045_v53, %v4053_v27  ;;  %v4037_v23 = vld [vmem:[#allocation8 + $0x1670] sm:$0xff]  ;;  %v13353_v15 = vcombine.low %v3789_v18, %v3797_v25 }
 0x576   :  { %10679 = vmatprep.subr.bf16.mxu0 %v13402_v8  ;;  %v4029_v8 = vld [vmem:[#allocation8 + $0x1630] sm:$0xff] }
 0x577   :  { %v13593_v45 = vcombine.low %v4029_v8, %v4037_v23  ;;  %v3773_v53 = vld [vmem:[#allocation8 + $0xe30] sm:$0xff] }
 0x578   :  { %10633 = vmatpush1.bf16.msra.mxu1 %v13177_v54  ;;  %v13370_v54 = vcombine.high %v3805_v63, %v3813_v1  ;;  %v3781_v27 = vld [vmem:[#allocation8 + $0xe70] sm:$0xff] }
 0x579   :  { %10680 = vmatpush1.bf16.msra.mxu0 %v13401_v37  ;;  %10634 = vmatprep.subr.bf16.mxu1 %v13162_v10  ;;  %v13594_v37 = vcombine.high %v4029_v8, %v4037_v23  ;;  %v4021_v10 = vld [vmem:[#allocation8 + $0x15f0] sm:$0xff]  ;;  %v13337_v1 = vcombine.low %v3773_v53, %v3781_v27 }
 0x57a   :  { %10681 = vmatprep.subr.bf16.mxu0 %v13642_v60  ;;  %v4013_v60 = vld [vmem:[#allocation8 + $0x15b0] sm:$0xff] }
 0x57b   :  { %v13577_v5 = vcombine.low %v4013_v60, %v4021_v10  ;;  %v3757_v8 = vld [vmem:[#allocation8 + $0xdb0] sm:$0xff] }
 0x57c   :  { %10635 = vmatpush1.bf16.msra.mxu1 %v13161_v62  ;;  %v13354_v62 = vcombine.high %v3789_v18, %v3797_v25  ;;  %v3765_v23 = vld [vmem:[#allocation8 + $0xdf0] sm:$0xff] }
 0x57d   :  { %10682 = vmatpush2.bf16.msra.mxu0 %v13641_v51  ;;  %10636 = vmatprep.subr.bf16.mxu1 %v13146_v47  ;;  %v13578_v51 = vcombine.high %v4013_v60, %v4021_v10  ;;  %v4005_v47 = vld [vmem:[#allocation8 + $0x1570] sm:$0xff]  ;;  %v13321_v25 = vcombine.low %v3757_v8, %v3765_v23 }
 0x57e   :  { %10683 = vmatprep.subr.bf16.mxu0 %v13626_v40  ;;  %v3997_v40 = vld [vmem:[#allocation8 + $0x1530] sm:$0xff] }
 0x57f   :  { %v13561_v63 = vcombine.low %v3997_v40, %v4005_v47  ;;  %v3741_v60 = vld [vmem:[#allocation8 + $0xd30] sm:$0xff] }
 0x580   :  { %10637 = vmatpush1.bf16.msra.mxu1 %v13145_v61  ;;  %v13338_v61 = vcombine.high %v3773_v53, %v3781_v27  ;;  %v3749_v10 = vld [vmem:[#allocation8 + $0xd70] sm:$0xff] }
 0x581   :  { %10684 = vmatpush2.bf16.msra.mxu0 %v13625_v30  ;;  %10638 = vmatprep.subr.bf16.mxu1 %v13386_v21  ;;  %v13562_v30 = vcombine.high %v3997_v40, %v4005_v47  ;;  %v3989_v21 = vld [vmem:[#allocation8 + $0x14f0] sm:$0xff]  ;;  %v13305_v27 = vcombine.low %v3741_v60, %v3749_v10 }
 0x582   :  { %10685 = vmatprep.subr.bf16.mxu0 %v13610_v57  ;;  %v3981_v57 = vld [vmem:[#allocation8 + $0x14b0] sm:$0xff] }
 0x583   :  { %v13545_v18 = vcombine.low %v3981_v57, %v3989_v21  ;;  %v3725_v40 = vld [vmem:[#allocation8 + $0xcb0] sm:$0xff] }
 0x584   :  { %10639 = vmatpush2.bf16.msra.mxu1 %v13385_v52  ;;  %v13322_v52 = vcombine.high %v3757_v8, %v3765_v23  ;;  %v3733_v47 = vld [vmem:[#allocation8 + $0xcf0] sm:$0xff] }
 0x585   :  { %10686 = vmatpush2.bf16.msra.mxu0 %v13609_v38  ;;  %10640 = vmatprep.subr.bf16.mxu1 %v13370_v54  ;;  %v13546_v38 = vcombine.high %v3981_v57, %v3989_v21  ;;  %v3973_v54 = vld [vmem:[#allocation8 + $0x1470] sm:$0xff]  ;;  %v13289_v23 = vcombine.low %v3725_v40, %v3733_v47 }
 0x586   :  { %10687 = vmatprep.subr.bf16.mxu0 %v13594_v37  ;;  %v3965_v37 = vld [vmem:[#allocation8 + $0x1430] sm:$0xff] }
 0x587   :  { %v13529_v53 = vcombine.low %v3965_v37, %v3973_v54  ;;  %v3709_v57 = vld [vmem:[#allocation8 + $0xc30] sm:$0xff] }
 0x588   :  { %10641 = vmatpush2.bf16.msra.mxu1 %v13369_v39  ;;  %v13306_v39 = vcombine.high %v3741_v60, %v3749_v10  ;;  %v3717_v21 = vld [vmem:[#allocation8 + $0xc70] sm:$0xff] }
 0x589   :  { %10688 = vmatpush2.bf16.msra.mxu0 %v13593_v45  ;;  %10642 = vmatprep.subr.bf16.mxu1 %v13354_v62  ;;  %v13530_v45 = vcombine.high %v3965_v37, %v3973_v54  ;;  %v3446_v62 = vld [vmem:[#allocation8 + $0x3f8] sm:$0xff]  ;;  %v4205_v37 = vld [vmem:[#allocation8 + $0x1bb0] sm:$0xff]  ;;  %v13273_v10 = vcombine.low %v3709_v57, %v3717_v21 }
 0x58a   :  { %10689 = vmatprep.subr.bf16.mxu0 %v13578_v51  ;;  %v3438_v51 = vld [vmem:[#allocation8 + $0x3b8] sm:$0xff]  ;;  %v4213_v54 = vld [vmem:[#allocation8 + $0x1bf0] sm:$0xff] }
 0x58b   :  { %v13003_v8 = vcombine.low %v3438_v51, %v3446_v62 }
 0x58c   :  { %10643 = vmatpush2.bf16.msra.mxu1 %v13353_v15  ;;  %v13290_v15 = vcombine.high %v3725_v40, %v3733_v47  ;;  %v13769_v47 = vcombine.low %v4205_v37, %v4213_v54 }
 0x58d   :  { %10690 = vmatpush2.bf16.msra.mxu0 %v13577_v5  ;;  %10644 = vmatprep.subr.bf16.mxu1 %v13338_v61  ;;  %v13004_v5 = vcombine.high %v3438_v51, %v3446_v62  ;;  %v3430_v61 = vld [vmem:[#allocation8 + $0x378] sm:$0xff] }
 0x58e   :  { %10691 = vmatprep.subr.bf16.mxu0 %v13562_v30  ;;  %v3422_v30 = vld [vmem:[#allocation8 + $0x338] sm:$0xff] }
 0x58f   :  { %v12987_v60 = vcombine.low %v3422_v30, %v3430_v61  ;;  %v3390_v51 = vld [vmem:[#allocation8 + $0x238] sm:$0xff] }
 0x590   :  { %10645 = vmatpush2.bf16.msra.mxu1 %v13337_v1  ;;  %v13274_v1 = vcombine.high %v3709_v57, %v3717_v21  ;;  %v3398_v62 = vld [vmem:[#allocation8 + $0x278] sm:$0xff] }
 0x591   :  { %10692 = vmatpush2.bf16.msra.mxu0 %v13561_v63  ;;  %10646 = vmatprep.subr.bf16.mxu1 %v13322_v52  ;;  %v12988_v63 = vcombine.high %v3422_v30, %v3430_v61  ;;  %v3414_v52 = vld [vmem:[#allocation8 + $0x2f8] sm:$0xff]  ;;  %v4181_v30 = vld [vmem:[#allocation8 + $0x1af0] sm:$0xff]  ;;  %v12955_v61 = vcombine.low %v3390_v51, %v3398_v62 }
 0x592   :  { %10693 = vmatprep.subr.bf16.mxu0 %v13546_v38  ;;  %v3406_v38 = vld [vmem:[#allocation8 + $0x2b8] sm:$0xff] }
 0x593   :  { %v12971_v40 = vcombine.low %v3406_v38, %v3414_v52 }
 0x594   :  { %10647 = vmatpush2.bf16.msra.mxu1 %v13321_v25  ;;  %v13770_v25 = vcombine.high %v4205_v37, %v4213_v54 }
 0x595   :  { %10694 = vmatpush2.bf16.msra.mxu0 %v13545_v18  ;;  %10648 = vmatprep.subr.bf16.mxu1 %v13306_v39  ;;  %v12972_v18 = vcombine.high %v3406_v38, %v3414_v52  ;;  %v4197_v39 = vld [vmem:[#allocation8 + $0x1b70] sm:$0xff] }
 0x596   :  { %10695 = vmatprep.subr.bf16.mxu0 %v13530_v45  ;;  %v4189_v45 = vld [vmem:[#allocation8 + $0x1b30] sm:$0xff] }
 0x597   :  { %v13753_v57 = vcombine.low %v4189_v45, %v4197_v39  ;;  %v4165_v38 = vld [vmem:[#allocation8 + $0x1a70] sm:$0xff] }
 0x598   :  { %10649 = vmatpush2.bf16.msra.mxu1 %v13305_v27  ;;  %v12956_v27 = vcombine.high %v3390_v51, %v3398_v62 }
 0x599   :  { %10696 = vmatpush2.bf16.msra.mxu0 %v13529_v53  ;;  %10650 = vmatprep.subr.bf16.mxu1 %v13290_v15  ;;  %v13754_v53 = vcombine.high %v4189_v45, %v4197_v39  ;;  %v4173_v15 = vld [vmem:[#allocation8 + $0x1ab0] sm:$0xff] }
 0x59a   :  { %10751 = vmatprep.subr.bf16.mxu0 %v13004_v5  ;;  %v3382_v5 = vld [vmem:[#allocation8 + $0x1f8] sm:$0xff]  ;;  %v13737_v37 = vcombine.low %v4173_v15, %v4181_v30  ;;  %v4149_v45 = vld [vmem:[#allocation8 + $0x19f0] sm:$0xff] }
 0x59c   :  { %10698 = vmatmul.mubr.bf16.vlgmr.msra.gmra.mxu0 %v14933_v9  ;;  %10651 = vmatpush2.bf16.msra.mxu1 %v13289_v23  ;;  %v3358_v23 = vld [vmem:[#allocation8 + $0x138] sm:$0xff] }
 0x59d   :  { %10752 = vmatpush1.bf16.msra.mxu0 %v13003_v8  ;;  %10783 = vmatprep.mubr.bf16.mxu0 %v14872_v0  ;;  %v3374_v0 = vld [vmem:[#allocation8 + $0x1b8] sm:$0xff]  ;;  %v13738_v8 = vcombine.high %v4173_v15, %v4181_v30 }
 0x59e   :  { %10753 = vmatprep.subr.bf16.mxu0 %v12988_v63  ;;  %10652 = vmatprep.subr.bf16.mxu1 %v13274_v1  ;;  %v12940_v21 = vcombine.high %v3374_v0, %v3382_v5  ;;  %v3366_v63 = vld [vmem:[#allocation8 + $0x178] sm:$0xff]  ;;  %v4157_v1 = vld [vmem:[#allocation8 + $0x1a30] sm:$0xff]  ;;  %v12939_v52 = vcombine.low %v3374_v0, %v3382_v5 }
 0x59f   :  { %v12924_v54 = vcombine.high %v3358_v23, %v3366_v63  ;;  %v12923_v39 = vcombine.low %v3358_v23, %v3366_v63  ;;  %v13721_v51 = vcombine.low %v4157_v1, %v4165_v38  ;;  %v4133_v0 = vld [vmem:[#allocation8 + $0x1970] sm:$0xff] }
 0x5a0   :  { %10653 = vmatpush2.bf16.msra.mxu1 %v13273_v10  ;;  %v3342_v10 = vld [vmem:[#allocation8 + $0xb8] sm:$0xff]  ;;  %v4117_v23 = vld [vmem:[#allocation8 + $0x18f0] sm:$0xff] }
 0x5a1   :  { %10754 = vmatpush1.bf16.msra.mxu0 %v12987_v60  ;;  %10708 = vmatprep.subr.bf16.mxu1 %v13770_v25  ;;  %v13722_v60 = vcombine.high %v4157_v1, %v4165_v38  ;;  %v4141_v25 = vld [vmem:[#allocation8 + $0x19b0] sm:$0xff] }
 0x5a2   :  { %10755 = vmatprep.subr.bf16.mxu0 %v12972_v18  ;;  %v3350_v18 = vld [vmem:[#allocation8 + $0xf8] sm:$0xff]  ;;  %v13705_v15 = vcombine.low %v4141_v25, %v4149_v45 }
 0x5a3   :  { %10655 = vmatmul.mubr.bf16.vlgmr.msra.gmra.mxu1 %v14898_v49  ;;  %v12908_v62 = vcombine.high %v3342_v10, %v3350_v18  ;;  %v12907_v5 = vcombine.low %v3342_v10, %v3350_v18  ;;  %v4101_v10 = vld [vmem:[#allocation8 + $0x1870] sm:$0xff] }
 0x5a4   :  { %10709 = vmatpush1.bf16.msra.mxu1 %v13769_v47  ;;  %10740 = vmatprep.mubr.bf16.mxu1 %v14957_v35  ;;  %v3326_v47 = vld [vmem:[#allocation8 + $0x38] sm:$0xff] }
 0x5a5   :  { %10756 = vmatpush1.bf16.msra.mxu0 %v12971_v40  ;;  %10710 = vmatprep.subr.bf16.mxu1 %v13754_v53  ;;  %v13706_v40 = vcombine.high %v4141_v25, %v4149_v45  ;;  %v3334_v53 = vld [vmem:[#allocation8 + $0x78] sm:$0xff] }
 0x5a6   :  { %10757 = vmatprep.subr.bf16.mxu0 %v12956_v27  ;;  %v4125_v27 = vld [vmem:[#allocation8 + $0x1930] sm:$0xff]  ;;  %v12892_v30 = vcombine.high %v3326_v47, %v3334_v53  ;;  %v12891_v63 = vcombine.low %v3326_v47, %v3334_v53 }
 0x5a7   :  { %v13689_v1 = vcombine.low %v4125_v27, %v4133_v0  ;;  %v4341_v47 = vld [vmem:[#allocation8 + $0x1ff0] sm:$0xff] }
 0x5a8   :  { %10711 = vmatpush1.bf16.msra.mxu1 %v13753_v57  ;;  %v3566_v57 = vld [vmem:[#allocation8 + $0x7b8] sm:$0xff] }
 0x5a9   :  { %10758 = vmatpush1.bf16.msra.mxu0 %v12955_v61  ;;  %10712 = vmatprep.subr.bf16.mxu1 %v13738_v8  ;;  %v13690_v61 = vcombine.high %v4125_v27, %v4133_v0  ;;  %v4109_v8 = vld [vmem:[#allocation8 + $0x18b0] sm:$0xff] }
 0x5aa   :  { %10759 = vmatprep.subr.bf16.mxu0 %v12940_v21  ;;  %v3574_v21 = vld [vmem:[#allocation8 + $0x7f8] sm:$0xff]  ;;  %v13673_v25 = vcombine.low %v4109_v8, %v4117_v23 }
 0x5ab   :  { %v13132_v38 = vcombine.high %v3566_v57, %v3574_v21  ;;  %v13131_v18 = vcombine.low %v3566_v57, %v3574_v21  ;;  %v4325_v57 = vld [vmem:[#allocation8 + $0x1f70] sm:$0xff] }
 0x5ac   :  { %10713 = vmatpush1.bf16.msra.mxu1 %v13737_v37  ;;  %v3550_v37 = vld [vmem:[#allocation8 + $0x738] sm:$0xff] }
 0x5ad   :  { %10760 = vmatpush1.bf16.msra.mxu0 %v12939_v52  ;;  %10714 = vmatprep.subr.bf16.mxu1 %v13722_v60  ;;  %v13674_v52 = vcombine.high %v4109_v8, %v4117_v23  ;;  %v4093_v60 = vld [vmem:[#allocation8 + $0x1830] sm:$0xff] }
 0x5ae   :  { %10761 = vmatprep.subr.bf16.mxu0 %v12924_v54  ;;  %v3558_v54 = vld [vmem:[#allocation8 + $0x778] sm:$0xff]  ;;  %v13657_v27 = vcombine.low %v4093_v60, %v4101_v10 }
 0x5af   :  { %v13116_v45 = vcombine.high %v3550_v37, %v3558_v54  ;;  %v13115_v53 = vcombine.low %v3550_v37, %v3558_v54  ;;  %v4309_v37 = vld [vmem:[#allocation8 + $0x1ef0] sm:$0xff] }
 0x5b0   :  { %10715 = vmatpush1.bf16.msra.mxu1 %v13721_v51  ;;  %v3534_v51 = vld [vmem:[#allocation8 + $0x6b8] sm:$0xff] }
 0x5b1   :  { %10762 = vmatpush1.bf16.msra.mxu0 %v12923_v39  ;;  %10716 = vmatprep.subr.bf16.mxu1 %v13706_v40  ;;  %v13658_v39 = vcombine.high %v4093_v60, %v4101_v10  ;;  %v4333_v40 = vld [vmem:[#allocation8 + $0x1fb0] sm:$0xff] }
 0x5b2   :  { %10763 = vmatprep.subr.bf16.mxu0 %v12908_v62  ;;  %v3542_v62 = vld [vmem:[#allocation8 + $0x6f8] sm:$0xff]  ;;  %v13897_v8 = vcombine.low %v4333_v40, %v4341_v47 }
 0x5b3   :  { %v13100_v0 = vcombine.high %v3534_v51, %v3542_v62  ;;  %v13099_v21 = vcombine.low %v3534_v51, %v3542_v62  ;;  %v4293_v51 = vld [vmem:[#allocation8 + $0x1e70] sm:$0xff] }
 0x5b4   :  { %10717 = vmatpush1.bf16.msra.mxu1 %v13705_v15  ;;  %v3518_v15 = vld [vmem:[#allocation8 + $0x638] sm:$0xff] }
 0x5b5   :  { %10764 = vmatpush1.bf16.msra.mxu0 %v12907_v5  ;;  %10718 = vmatprep.subr.bf16.mxu1 %v13690_v61  ;;  %v13898_v5 = vcombine.high %v4333_v40, %v4341_v47  ;;  %v4317_v61 = vld [vmem:[#allocation8 + $0x1f30] sm:$0xff] }
 0x5b6   :  { %10765 = vmatprep.subr.bf16.mxu0 %v12892_v30  ;;  %v3526_v30 = vld [vmem:[#allocation8 + $0x678] sm:$0xff]  ;;  %v13881_v60 = vcombine.low %v4317_v61, %v4325_v57 }
 0x5b7   :  { %v13084_v23 = vcombine.high %v3518_v15, %v3526_v30  ;;  %v13083_v54 = vcombine.low %v3518_v15, %v3526_v30  ;;  %v4277_v15 = vld [vmem:[#allocation8 + $0x1df0] sm:$0xff] }
 0x5b8   :  { %10719 = vmatpush1.bf16.msra.mxu1 %v13689_v1  ;;  %v3502_v1 = vld [vmem:[#allocation8 + $0x5b8] sm:$0xff] }
 0x5b9   :  { %10766 = vmatpush1.bf16.msra.mxu0 %v12891_v63  ;;  %10720 = vmatprep.subr.bf16.mxu1 %v13674_v52  ;;  %v13882_v63 = vcombine.high %v4317_v61, %v4325_v57  ;;  %v4301_v52 = vld [vmem:[#allocation8 + $0x1eb0] sm:$0xff] }
 0x5ba   :  { %10767 = vmatprep.subr.bf16.mxu0 %v13132_v38  ;;  %v3510_v38 = vld [vmem:[#allocation8 + $0x5f8] sm:$0xff]  ;;  %v13865_v40 = vcombine.low %v4301_v52, %v4309_v37 }
 0x5bb   :  { %v13068_v10 = vcombine.high %v3502_v1, %v3510_v38  ;;  %v13067_v62 = vcombine.low %v3502_v1, %v3510_v38  ;;  %v4261_v1 = vld [vmem:[#allocation8 + $0x1d70] sm:$0xff] }
 0x5bc   :  { %10721 = vmatpush1.bf16.msra.mxu1 %v13673_v25  ;;  %v3486_v25 = vld [vmem:[#allocation8 + $0x538] sm:$0xff] }
 0x5bd   :  { %10768 = vmatpush2.bf16.msra.mxu0 %v13131_v18  ;;  %10722 = vmatprep.subr.bf16.mxu1 %v13658_v39  ;;  %v13866_v18 = vcombine.high %v4301_v52, %v4309_v37  ;;  %v4285_v39 = vld [vmem:[#allocation8 + $0x1e30] sm:$0xff] }
 0x5be   :  { %10769 = vmatprep.subr.bf16.mxu0 %v13116_v45  ;;  %v3494_v45 = vld [vmem:[#allocation8 + $0x578] sm:$0xff]  ;;  %v13849_v61 = vcombine.low %v4285_v39, %v4293_v51 }
 0x5bf   :  { %v13052_v47 = vcombine.high %v3486_v25, %v3494_v45  ;;  %v13051_v30 = vcombine.low %v3486_v25, %v3494_v45  ;;  %v4245_v25 = vld [vmem:[#allocation8 + $0x1cf0] sm:$0xff] }
 0x5c0   :  { %10723 = vmatpush1.bf16.msra.mxu1 %v13657_v27  ;;  %v3470_v27 = vld [vmem:[#allocation8 + $0x4b8] sm:$0xff] }
 0x5c1   :  { %10770 = vmatpush2.bf16.msra.mxu0 %v13115_v53  ;;  %10724 = vmatprep.subr.bf16.mxu1 %v13898_v5  ;;  %v13850_v53 = vcombine.high %v4285_v39, %v4293_v51  ;;  %v4269_v5 = vld [vmem:[#allocation8 + $0x1db0] sm:$0xff] }
 0x5c2   :  { %10771 = vmatprep.subr.bf16.mxu0 %v13100_v0  ;;  %v3478_v0 = vld [vmem:[#allocation8 + $0x4f8] sm:$0xff]  ;;  %v13833_v52 = vcombine.low %v4269_v5, %v4277_v15 }
 0x5c3   :  { %v13036_v57 = vcombine.high %v3470_v27, %v3478_v0  ;;  %v13035_v38 = vcombine.low %v3470_v27, %v3478_v0  ;;  %v4229_v27 = vld [vmem:[#allocation8 + $0x1c70] sm:$0xff] }
 0x5c4   :  { %10725 = vmatpush2.bf16.msra.mxu1 %v13897_v8  ;;  %v3454_v8 = vld [vmem:[#allocation8 + $0x438] sm:$0xff] }
 0x5c5   :  { %10772 = vmatpush2.bf16.msra.mxu0 %v13099_v21  ;;  %10726 = vmatprep.subr.bf16.mxu1 %v13882_v63  ;;  %v13834_v21 = vcombine.high %v4269_v5, %v4277_v15  ;;  %v4253_v63 = vld [vmem:[#allocation8 + $0x1d30] sm:$0xff] }
 0x5c6   :  { %10773 = vmatprep.subr.bf16.mxu0 %v13084_v23  ;;  %v3462_v23 = vld [vmem:[#allocation8 + $0x478] sm:$0xff]  ;;  %v13817_v39 = vcombine.low %v4253_v63, %v4261_v1 }
 0x5c7   :  { %v13020_v37 = vcombine.high %v3454_v8, %v3462_v23  ;;  %v13019_v45 = vcombine.low %v3454_v8, %v3462_v23  ;;  %v3926_v8 = vld [vmem:[#allocation8 + $0x12f8] sm:$0xff] }
 0x5c8   :  { %10727 = vmatpush2.bf16.msra.mxu1 %v13881_v60  ;;  %v3950_v60 = vld [vmem:[#allocation8 + $0x13b8] sm:$0xff] }
 0x5c9   :  { %10774 = vmatpush2.bf16.msra.mxu0 %v13083_v54  ;;  %10728 = vmatprep.subr.bf16.mxu1 %v13866_v18  ;;  %v13818_v54 = vcombine.high %v4253_v63, %v4261_v1  ;;  %v4237_v18 = vld [vmem:[#allocation8 + $0x1cb0] sm:$0xff]  ;;  %v3694_v23 = vld [vmem:[#allocation8 + $0xbb8] sm:$0xff] }
 0x5ca   :  { %10775 = vmatprep.subr.bf16.mxu0 %v13068_v10  ;;  %v3958_v10 = vld [vmem:[#allocation8 + $0x13f8] sm:$0xff]  ;;  %v13801_v5 = vcombine.low %v4237_v18, %v4245_v25 }
 0x5cb   :  { %v13516_v51 = vcombine.high %v3950_v60, %v3958_v10  ;;  %v13515_v0 = vcombine.low %v3950_v60, %v3958_v10  ;;  %v3702_v63 = vld [vmem:[#allocation8 + $0xbf8] sm:$0xff] }
 0x5cc   :  { %10729 = vmatpush2.bf16.msra.mxu1 %v13865_v40  ;;  %v3934_v40 = vld [vmem:[#allocation8 + $0x1338] sm:$0xff]  ;;  %v13260_v60 = vcombine.high %v3694_v23, %v3702_v63 }
 0x5cd   :  { %10776 = vmatpush2.bf16.msra.mxu0 %v13067_v62  ;;  %10730 = vmatprep.subr.bf16.mxu1 %v13850_v53  ;;  %v13802_v62 = vcombine.high %v4237_v18, %v4245_v25  ;;  %v4221_v53 = vld [vmem:[#allocation8 + $0x1c30] sm:$0xff]  ;;  %v3678_v10 = vld [vmem:[#allocation8 + $0xb38] sm:$0xff] }
 0x5ce   :  { %10777 = vmatprep.subr.bf16.mxu0 %v13052_v47  ;;  %v3942_v47 = vld [vmem:[#allocation8 + $0x1378] sm:$0xff] }
 0x5cf   :  { %v13500_v15 = vcombine.high %v3934_v40, %v3942_v47  ;;  %v3686_v18 = vld [vmem:[#allocation8 + $0xb78] sm:$0xff] }
 0x5d0   :  { %10731 = vmatpush2.bf16.msra.mxu1 %v13849_v61  ;;  %v3902_v25 = vld [vmem:[#allocation8 + $0x1238] sm:$0xff] }
 0x5d1   :  { %10778 = vmatpush2.bf16.msra.mxu0 %v13051_v30  ;;  %10732 = vmatprep.subr.bf16.mxu1 %v13834_v21  ;;  %v15126_v30 = vld [vmem:[#allocation10] sm:$0xff]  ;;  %v3918_v21 = vld [vmem:[#allocation8 + $0x12b8] sm:$0xff] }
 0x5d2   :  { %10779 = vmatprep.subr.bf16.mxu0 %v13036_v57  ;;  %v4354_v61 = vrot.slane %v15126_v30, %v14825_v48  ;;  %v13786_v57 = vcombine.high %v4221_v53, %v4229_v27 }
 0x5d4   :  { %10733 = vmatpush2.bf16.msra.mxu1 %v13833_v52  ;;  %v9588_v1 = vadd.f32 %v14986_v14, %v4354_v61  ;;  %v13785_v52 = vcombine.low %v4221_v53, %v4229_v27  ;;  %v13483_v14 = vcombine.low %v3918_v21, %v3926_v8  ;;  %v3662_v53 = vld [vmem:[#allocation8 + $0xab8] sm:$0xff] }
 0x5d5   :  { %10780 = vmatpush2.bf16.msra.mxu0 %v13035_v38  ;;  %10734 = vmatprep.subr.bf16.mxu1 %v13818_v54  ;;  %v13499_v38 = vcombine.low %v3934_v40, %v3942_v47  ;;  %v9584_v54 = vadd.f32 %v14982_v17, %v4354_v61  ;;  %v3886_v40 = vld [vmem:[#allocation8 + $0x11b8] sm:$0xff] }
 0x5d6   :  { %10781 = vmatprep.subr.bf16.mxu0 %v13020_v37  ;;  %v13484_v37 = vcombine.high %v3918_v21, %v3926_v8  ;;  %v3894_v47 = vld [vmem:[#allocation8 + $0x11f8] sm:$0xff] }
 0x5d7   :  { %v3670_v27 = vld [vmem:[#allocation8 + $0xaf8] sm:$0xff] }
 0x5d8   :  { %10735 = vmatpush2.bf16.msra.mxu1 %v13817_v39  ;;  %v13259_v39 = vcombine.low %v3694_v23, %v3702_v63  ;;  %v13228_v61 = vcombine.high %v3662_v53, %v3670_v27  ;;  %v3878_v21 = vld [vmem:[#allocation8 + $0x1178] sm:$0xff]  ;;  %v13227_v63 = vcombine.low %v3662_v53, %v3670_v27 }
 0x5d9   :  { %10782 = vmatpush2.bf16.msra.mxu0 %v13019_v45  ;;  %10736 = vmatprep.subr.bf16.mxu1 %v13802_v62  ;;  %v9631_v45 = vadd.f32 %v15002_v22, %v9588_v1  ;;  %v13244_v62 = vcombine.high %v3678_v10, %v3686_v18  ;;  %v3646_v8 = vld [vmem:[#allocation8 + $0xa38] sm:$0xff] }
 0x5da   :  { %10837 = vmatprep.subr.bf16.mxu0 %v13516_v51  ;;  %v3598_v53 = vld [vmem:[#allocation8 + $0x8b8] sm:$0xff] }
 0x5db   :  { %v9674_v51 = vadd.f32 %v15000_v58, %v9631_v45  ;;  %v13452_v58 = vcombine.high %v3886_v40, %v3894_v47  ;;  %v3846_v45 = vld [vmem:[#allocation8 + $0x1078] sm:$0xff] }
 0x5dc   :  { %10784 = vmatmul.mubr.bf16.vlgmr.msra.gmra.mxu0 %v14895_v44  ;;  %10737 = vmatpush2.bf16.msra.mxu1 %v13801_v5  ;;  %v3910_v44 = vld [vmem:[#allocation8 + $0x1278] sm:$0xff] }
 0x5dd   :  { %10838 = vmatpush1.bf16.msra.mxu0 %v13515_v0  ;;  %10869 = vmatprep.mubr.bf16.mxu0 %v14931_v3  ;;  %v9627_v3 = vadd.f32 %v14994_v41, %v9584_v54  ;;  %v13468_v17 = vcombine.high %v3902_v25, %v3910_v44  ;;  %v9717_v22 = vadd.f32 %v15018_v32, %v9674_v51  ;;  %v3606_v27 = vld [vmem:[#allocation8 + $0x8f8] sm:$0xff] }
 0x5de   :  { %10839 = vmatprep.subr.bf16.mxu0 %v13500_v15  ;;  %10738 = vmatprep.subr.bf16.mxu1 %v13786_v57  ;;  %v13467_v5 = vcombine.low %v3902_v25, %v3910_v44  ;;  %v13243_v41 = vcombine.low %v3678_v10, %v3686_v18  ;;  %v3870_v57 = vld [vmem:[#allocation8 + $0x1138] sm:$0xff]  ;;  %v13451_v32 = vcombine.low %v3886_v40, %v3894_v47 }
 0x5df   :  { %v9670_v0 = vadd.f32 %v14992_v31, %v9627_v3  ;;  %v3654_v31 = vld [vmem:[#allocation8 + $0xa78] sm:$0xff]  ;;  %v13436_v1 = vcombine.high %v3870_v57, %v3878_v21 }
 0x5e0   :  { %10739 = vmatpush2.bf16.msra.mxu1 %v13785_v52  ;;  %v3862_v52 = vld [vmem:[#allocation8 + $0x10f8] sm:$0xff]  ;;  %v13211_v10 = vcombine.low %v3646_v8, %v3654_v31 }
 0x5e1   :  { %10840 = vmatpush1.bf16.msra.mxu0 %v13499_v38  ;;  %10794 = vmatprep.subr.bf16.mxu1 %v13260_v60  ;;  %v9713_v15 = vadd.f32 %v15006_v6, %v9670_v0  ;;  %v3854_v38 = vld [vmem:[#allocation8 + $0x10b8] sm:$0xff]  ;;  %v13435_v60 = vcombine.low %v3870_v57, %v3878_v21  ;;  %v4350_v21 = vrot.slane %v15126_v30, %v14783_v29 }
 0x5e2   :  { %10841 = vmatprep.subr.bf16.mxu0 %v13484_v37  ;;  %v3630_v6 = vld [vmem:[#allocation8 + $0x9b8] sm:$0xff]  ;;  %v13420_v18 = vcombine.high %v3854_v38, %v3862_v52  ;;  %v13419_v3 = vcombine.low %v3854_v38, %v3862_v52 }
 0x5e3   :  { %10741 = vmatmul.mubr.bf16.vlgmr.msra.gmra.mxu1 %v14960_v42  ;;  %v15142_v23 = vpack.c.bf16 %v9717_v22, %v9713_v15  ;;  %v3638_v37 = vld [vmem:[#allocation8 + $0x9f8] sm:$0xff]  ;;  %v9586_v52 = vadd.f32 %v14984_v28, %v4350_v21 }
 0x5e4   :  { %10795 = vmatpush1.bf16.msra.mxu1 %v13259_v39  ;;  %10826 = vmatprep.mubr.bf16.mxu1 %v14891_v56  ;;  %v13212_v56 = vcombine.high %v3646_v8, %v3654_v31  ;;  %v13196_v25 = vcombine.high %v3630_v6, %v3638_v37  ;;  %v3838_v44 = vld [vmem:[#allocation8 + $0x1038] sm:$0xff]  ;;  %v13195_v51 = vcombine.low %v3630_v6, %v3638_v37 }
 0x5e5   :  { %10842 = vmatpush1.bf16.msra.mxu0 %v13483_v14  ;;  %10796 = vmatprep.subr.bf16.mxu1 %v13244_v62  ;;  %v13902_v54 = vmul.bf16 3216621497, %v15142_v23  ;;  %v3614_v14 = vld [vmem:[#allocation8 + $0x938] sm:$0xff]  ;;  %v13404_v62 = vcombine.high %v3838_v44, %v3846_v45  ;;  %v13403_v0 = vcombine.low %v3838_v44, %v3846_v45  ;;  %v13163_v31 = vcombine.low %v3598_v53, %v3606_v27 }
 0x5e6   :  { %10843 = vmatprep.subr.bf16.mxu0 %v13468_v17  ;;  %v3622_v39 = vld [vmem:[#allocation8 + $0x978] sm:$0xff] }
 0x5e7   :  { %14410 = vpow.bf16 %v13902_v54  ;;  %v13180_v17 = vcombine.high %v3614_v14, %v3622_v39  ;;  %v4078_v40 = vld [vmem:[#allocation8 + $0x17b8] sm:$0xff]  ;;  %v13179_v22 = vcombine.low %v3614_v14, %v3622_v39  ;;  %v9582_v54 = vadd.f32 %v14980_v36, %v4350_v21  ;;  %v15166_v21 = vpop.f32.mrf.mxu1 }
 0x5e8   :  { %10797 = vmatpush1.bf16.msra.mxu1 %v13243_v41  ;;  %v4086_v47 = vld [vmem:[#allocation8 + $0x17f8] sm:$0xff]  ;;  %v13164_v41 = vcombine.high %v3598_v53, %v3606_v27 }
 0x5e9   :  { %10844 = vmatpush1.bf16.msra.mxu0 %v13467_v5  ;;  %10798 = vmatprep.subr.bf16.mxu1 %v13228_v61  ;;  %v13644_v5 = vcombine.high %v4078_v40, %v4086_v47  ;;  %v4070_v15 = vld [vmem:[#allocation8 + $0x1778] sm:$0xff]  ;;  %v13643_v8 = vcombine.low %v4078_v40, %v4086_v47 }
 0x5ea   :  { %10845 = vmatprep.subr.bf16.mxu0 %v13452_v58  ;;  %v4062_v58 = vld [vmem:[#allocation8 + $0x1738] sm:$0xff] }
 0x5eb   :  { %v3582_v61 = vld [vmem:[#allocation8 + $0x838] sm:$0xff] }
 0x5ec   :  { %10799 = vmatpush1.bf16.msra.mxu1 %v13227_v63  ;;  %v3590_v57 = vld [vmem:[#allocation8 + $0x878] sm:$0xff]  ;;  %v4370_v63 = vrot.slane %v15126_v30, %v14912_v46 }
 0x5ed   :  { %10846 = vmatpush1.bf16.msra.mxu0 %v13451_v32  ;;  %10800 = vmatprep.subr.bf16.mxu1 %v13212_v56  ;;  %v13628_v32 = vcombine.high %v4062_v58, %v4070_v15  ;;  %v4046_v56 = vld [vmem:[#allocation8 + $0x16b8] sm:$0xff] }
 0x5ee   :  { %10847 = vmatprep.subr.bf16.mxu0 %v13436_v1  ;;  %v13148_v1 = vcombine.high %v3582_v61, %v3590_v57  ;;  %v4054_v38 = vld [vmem:[#allocation8 + $0x16f8] sm:$0xff]  ;;  %v9928_v45 = vadd.f32 %v15055_v34, %v4370_v63 }
 0x5ef   :  { %v3822_v6 = vld [vmem:[#allocation8 + $0xfb8] sm:$0xff]  ;;  %v13611_v40 = vcombine.low %v4046_v56, %v4054_v38 }
 0x5f0   :  { %10801 = vmatpush1.bf16.msra.mxu1 %v13211_v10  ;;  %v3830_v37 = vld [vmem:[#allocation8 + $0xff8] sm:$0xff]  ;;  %v13627_v10 = vcombine.low %v4062_v58, %v4070_v15 }
 0x5f1   :  { %10848 = vmatpush1.bf16.msra.mxu0 %v13435_v60  ;;  %10802 = vmatprep.subr.bf16.mxu1 %v13196_v25  ;;  %v9932_v60 = vadd.f32 %v15059_v19, %v4370_v63  ;;  %v13612_v25 = vcombine.high %v4046_v56, %v4054_v38  ;;  %v13388_v39 = vcombine.high %v3822_v6, %v3830_v37  ;;  %v4030_v28 = vld [vmem:[#allocation8 + $0x1638] sm:$0xff]  ;;  %v15173_v56 = vpop.f32.mrf.mxu1 }
 0x5f2   :  { %10849 = vmatprep.subr.bf16.mxu0 %v13420_v18  ;;  %v13147_v18 = vcombine.low %v3582_v61, %v3590_v57  ;;  %v3806_v36 = vld [vmem:[#allocation8 + $0xf38] sm:$0xff]  ;;  %v9625_v19 = vadd.f32 %v14990_v26, %v9582_v54  ;;  %v13387_v34 = vcombine.low %v3822_v6, %v3830_v37  ;;  %v15368_v61 = vld [vmem:[#allocation25_spill] sm:$0xff] }
 0x5f3   :  { %v9975_v14 = vadd.f32 %v15077_v33, %v9932_v60  ;;  %v4006_v63 = vld [vmem:[#allocation8 + $0x1578] sm:$0xff] }
 0x5f4   :  { %10803 = vmatpush1.bf16.msra.mxu1 %v13195_v51  ;;  %v9629_v51 = vadd.f32 %v14998_v55, %v9586_v52  ;;  %v4014_v55 = vld [vmem:[#allocation8 + $0x15b8] sm:$0xff] }
 0x5f5   :  { %10850 = vmatpush1.bf16.msra.mxu0 %v13419_v3  ;;  %10804 = vmatprep.subr.bf16.mxu1 %v13180_v17  ;;  %v14411_v44 = vpop.eup %14410  ;;  %v4038_v3 = vld [vmem:[#allocation8 + $0x1678] sm:$0xff]  ;;  %v9971_v17 = vadd.f32 %v15069_v16, %v9928_v45  ;;  %v10018_v27 = vadd.f32 %v15075_v2, %v9975_v14  ;;  %v15164_v2 = vpop.f32.mrf.mxu0 }
 0x5f6   :  { %10851 = vmatprep.subr.bf16.mxu0 %v13404_v62  ;;  %v3814_v62 = vld [vmem:[#allocation8 + $0xf78] sm:$0xff]  ;;  %v9672_v47 = vadd.f32 %v14996_v4, %v9629_v51  ;;  %v11004_v53 = vadd.bf16 1065369472, %v14411_v44  ;;  %v13596_v33 = vcombine.high %v4030_v28, %v4038_v3  ;;  %v13595_v15 = vcombine.low %v4030_v28, %v4038_v3  ;;  %v15180_v14 = vpop.f32.mrf.mxu1 }
 0x5f7   :  { %v3790_v16 = vld [vmem:[#allocation8 + $0xeb8] sm:$0xff]  ;;  %v10014_v58 = vadd.f32 %v15067_v7, %v9971_v17  ;;  %v10061_v4 = vadd.f32 %v15093_v59, %v10018_v27 }
 0x5f8   :  { %10805 = vmatpush1.bf16.msra.mxu1 %v13179_v22  ;;  %v4022_v22 = vld [vmem:[#allocation8 + $0x15f8] sm:$0xff]  ;;  %v9715_v26 = vadd.f32 %v15010_v24, %v9672_v47  ;;  %14412 = vrcp.bf16 %v11004_v53  ;;  %v15185_v53 = vpop.f32.mrf.mxu1 }
 0x5f9   :  { %10852 = vmatpush1.bf16.msra.mxu0 %v13403_v0  ;;  %10806 = vmatprep.subr.bf16.mxu1 %v13164_v41  ;;  %v13372_v0 = vcombine.high %v3806_v36, %v3814_v62  ;;  %v3798_v41 = vld [vmem:[#allocation8 + $0xef8] sm:$0xff]  ;;  %v13579_v37 = vcombine.low %v4014_v55, %v4022_v22 }
 0x5fa   :  { %10853 = vmatprep.subr.bf16.mxu0 %v13644_v5  ;;  %v9668_v5 = vadd.f32 %v14988_v13, %v9625_v19  ;;  %v13580_v13 = vcombine.high %v4014_v55, %v4022_v22  ;;  %v15369_v24 = vld [vmem:[#allocation42_spill] sm:$0xff]  ;;  %v13355_v54 = vcombine.low %v3790_v16, %v3798_v41 }
 0x5fb   :  { %v3998_v7 = vld [vmem:[#allocation8 + $0x1538] sm:$0xff] }
 0x5fc   :  { %10807 = vmatpush1.bf16.msra.mxu1 %v13163_v31  ;;  %v9711_v57 = vadd.f32 %v15368_v61, %v9668_v5  ;;  %v10057_v31 = vadd.f32 %v15369_v24, %v10014_v58  ;;  %v3774_v38 = vld [vmem:[#allocation8 + $0xe38] sm:$0xff]  ;;  %v13564_v60 = vcombine.high %v3998_v7, %v4006_v63  ;;  %v13563_v51 = vcombine.low %v3998_v7, %v4006_v63  ;;  %v14251_v7 = vld [vmem:[#allocation11 + $0x38] sm:$0xff]  }
 0x5fd   :  { %10854 = vmatpush2.bf16.msra.mxu0 %v13643_v8  ;;  %10808 = vmatprep.subr.bf16.mxu1 %v13148_v1  ;;  %v13371_v8 = vcombine.low %v3806_v36, %v3814_v62  ;;  %v15171_v1 = vpop.f32.mrf.mxu0  ;;  %v3782_v52 = vld [vmem:[#allocation8 + $0xe78] sm:$0xff] }
 0x5fe   :  { %10855 = vmatprep.subr.bf16.mxu0 %v13628_v32  ;;  %v13356_v32 = vcombine.high %v3790_v16, %v3798_v41  ;;  %v15169_v59 = vpack.c.bf16 %v9715_v26, %v9711_v57  ;;  %v15175_v6 = vpack.c.bf16 %v10061_v4, %v10057_v31  ;;  %v3766_v28 = vld [vmem:[#allocation8 + $0xdf8] sm:$0xff]  ;;  %v13339_v36 = vcombine.low %v3774_v38, %v3782_v52  ;;  %v10318_v16 = vpop.f32.mrf.mxu1 }
 0x5ff   :  { %v15178_v45 = vpop.f32.mrf.mxu0  ;;  %v3966_v17 = vld [vmem:[#allocation8 + $0x1438] sm:$0xff] }
 0x600   :  { %10809 = vmatpush1.bf16.msra.mxu1 %v13147_v18  ;;  %v3982_v18 = vld [vmem:[#allocation8 + $0x14b8] sm:$0xff]  ;;  %v13901_v44 = vmul.bf16 3216621497, %v15169_v59  ;;  %v13906_v3 = vmul.bf16 3216621497, %v15175_v6  ;;  %v15189_v61 = vpop.f32.mrf.mxu1 }
 0x601   :  { %10856 = vmatpush2.bf16.msra.mxu0 %v13627_v10  ;;  %10810 = vmatprep.subr.bf16.mxu1 %v13388_v39  ;;  %v13340_v10 = vcombine.high %v3774_v38, %v3782_v52  ;;  %v3758_v39 = vld [vmem:[#allocation8 + $0xdb8] sm:$0xff]  ;;  %v15183_v47 = vpop.f32.mrf.mxu0  ;;  %v15193_v52 = vld [vmem:[#allocation10 + $0x8] sm:$0xff] }
 0x602   :  { %10857 = vmatprep.subr.bf16.mxu0 %v13612_v25  ;;  %v3990_v25 = vld [vmem:[#allocation8 + $0x14f8] sm:$0xff]  ;;  %v13324_v19 = vcombine.high %v3758_v39, %v3766_v28  ;;  %14414 = vpow.bf16 %v13901_v44 }
 0x603   :  { %v13548_v62 = vcombine.high %v3982_v18, %v3990_v25  ;;  %14416 = vpow.bf16 %v13906_v3  ;;  %v13547_v27 = vcombine.low %v3982_v18, %v3990_v25  ;;  %v10275_v26 = vpop.f32.mrf.mxu0  ;;  %v3726_v41 = vld [vmem:[#allocation8 + $0xcb8] sm:$0xff]  ;;  %v4386_v18 = vrot.slane %v15193_v52, %v14825_v48 }
 0x604   :  { %10811 = vmatpush2.bf16.msra.mxu1 %v13387_v34  ;;  %v3742_v34 = vld [vmem:[#allocation8 + $0xd38] sm:$0xff] }
 0x605   :  { %10858 = vmatpush2.bf16.msra.mxu0 %v13611_v40  ;;  %10812 = vmatprep.subr.bf16.mxu1 %v13372_v0  ;;  %v3974_v40 = vld [vmem:[#allocation8 + $0x1478] sm:$0xff]  ;;  %v13323_v0 = vcombine.low %v3758_v39, %v3766_v28 }
 0x606   :  { %10859 = vmatprep.subr.bf16.mxu0 %v13596_v33  ;;  %v3750_v33 = vld [vmem:[#allocation8 + $0xd78] sm:$0xff]  ;;  %v13532_v55 = vcombine.high %v3966_v17, %v3974_v40  ;;  %v14413_v5 = vpop.eup %14412  ;;  %v13531_v4 = vcombine.low %v3966_v17, %v3974_v40  ;;  %v15373_v40 = vld [vmem:[#allocation40_spill] sm:$0xff] }
 0x607   :  { %v13308_v22 = vcombine.high %v3742_v34, %v3750_v33  ;;  %v3734_v58 = vld [vmem:[#allocation8 + $0xcf8] sm:$0xff]  ;;  %v13307_v57 = vcombine.low %v3742_v34, %v3750_v33  ;;  %v11022_v24 = vmul.bf16 1065369472, %v14413_v5 }
 0x608   :  { %10813 = vmatpush2.bf16.msra.mxu1 %v13371_v8  ;;  %v14250_v8 = vld [vmem:[#allocation11 + $0x78] sm:$0xff]   ;;  %v3710_v31 = vld [vmem:[#allocation8 + $0xc38] sm:$0xff] }
 0x609   :  { %10860 = vmatpush2.bf16.msra.mxu0 %v13595_v15  ;;  %10814 = vmatprep.subr.bf16.mxu1 %v13356_v32  ;;  %v15187_v15 = vpop.f32.mrf.mxu0  ;;  %v3718_v32 = vld [vmem:[#allocation8 + $0xc78] sm:$0xff]  ;;  %v11052_v25 = vmul.bf16 %v11022_v24, %v15142_v23 }
 0x60a   :  { %10861 = vmatprep.subr.bf16.mxu0 %v13580_v13  ;;  %v13292_v13 = vcombine.high %v3726_v41, %v3734_v58  ;;  %v15370_v63 = vld [vmem:[#allocation22_spill] sm:$0xff]  ;;  %v13276_v44 = vcombine.high %v3710_v31, %v3718_v32  ;;  %v15371_v39 = vld [vmem:[#allocation35_spill] sm:$0xff]  ;;  %v13275_v23 = vcombine.low %v3710_v31, %v3718_v32 }
 0x60b   :  { %v4366_v38 = vrot.slane %v15126_v30, %v15370_v63  ;;  %v4206_v30 = vld [vmem:[#allocation8 + $0x1bb8] sm:$0xff] }
 0x60c   :  { %10815 = vmatpush2.bf16.msra.mxu1 %v13355_v54  ;;  %v15195_v54 = vpop.f32.mrf.mxu1  ;;  %v4214_v3 = vld [vmem:[#allocation8 + $0x1bf8] sm:$0xff] }
 0x60d   :  { %10862 = vmatpush2.bf16.msra.mxu0 %v13579_v37  ;;  %10816 = vmatprep.subr.bf16.mxu1 %v13340_v10  ;;  %v10357_v37 = vpop.f32.mrf.mxu0  ;;  %v14252_v10 = vld [vmem:[#allocation11 + $0x70] sm:$0xff]   ;;  %v9930_v28 = vadd.f32 %v15371_v39, %v4366_v38  ;;  %v15374_v5 = vld [vmem:[#allocation38_spill] sm:$0xff] }
 0x60e   :  { %10863 = vmatprep.subr.bf16.mxu0 %v13564_v60  ;;  %v13291_v60 = vcombine.low %v3726_v41, %v3734_v58  ;;  %v15206_v33 = vpop.f32.mrf.mxu1  ;;  %v4190_v41 = vld [vmem:[#allocation8 + $0x1b38] sm:$0xff] }
 0x60f   :  { %v9973_v34 = vadd.f32 %v15373_v40, %v9930_v28  ;;  %v15204_v48 = vpop.f32.mrf.mxu0  ;;  %v4198_v58 = vld [vmem:[#allocation8 + $0x1b78] sm:$0xff] }
 0x610   :  { %10817 = vmatpush2.bf16.msra.mxu1 %v13339_v36  ;;  %v14253_v36 = vld [vmem:[#allocation11 + $0x30] sm:$0xff]   ;;  %v4174_v39 = vld [vmem:[#allocation8 + $0x1ab8] sm:$0xff]  ;;  %v13755_v40 = vcombine.low %v4190_v41, %v4198_v58 }
 0x611   :  { %10864 = vmatpush2.bf16.msra.mxu0 %v13563_v51  ;;  %10818 = vmatprep.subr.bf16.mxu1 %v13324_v19  ;;  %v10276_v51 = vadd.f32 %v10275_v26, %v4386_v18  ;;  %v15372_v19 = vld [vmem:[#allocation34_spill] sm:$0xff]  ;;  %v10361_v32 = vpop.f32.mrf.mxu0 }
 0x612   :  { %10865 = vmatprep.subr.bf16.mxu0 %v13548_v62  ;;  %v14415_v62 = vpop.eup %14414  ;;  %v9926_v17 = vadd.f32 %v15372_v19, %v4366_v38  ;;  %v13771_v38 = vcombine.low %v4206_v30, %v4214_v3  ;;  %v15380_v19 = vld [vmem:[#allocation41_spill] sm:$0xff] }
 0x614   :  { %10819 = vmatpush2.bf16.msra.mxu1 %v13323_v0  ;;  %v10272_v0 = vadd.f32 %v15178_v45, %v4386_v18  ;;  %v9969_v26 = vadd.f32 %v15374_v5, %v9926_v17  ;;  %v14259_v5 = vld [vmem:[#allocation11 + $0x18] sm:$0xff]  }
 0x615   :  { %10866 = vmatpush2.bf16.msra.mxu0 %v13547_v27  ;;  %10820 = vmatprep.subr.bf16.mxu1 %v13308_v22  ;;  %v14254_v27 = vld [vmem:[#allocation11 + $0x68] sm:$0xff]   ;;  %v13772_v22 = vcombine.high %v4206_v30, %v4214_v3 }
 0x616   :  { %10867 = vmatprep.subr.bf16.mxu0 %v13532_v55  ;;  %v10319_v55 = vadd.f32 %v10318_v16, %v10276_v51  ;;  %v13756_v16 = vcombine.high %v4190_v41, %v4198_v58  ;;  %v15379_v30 = vld [vmem:[#allocation26_spill] sm:$0xff] }
 0x618   :  { %10821 = vmatpush2.bf16.msra.mxu1 %v13307_v57  ;;  %v10315_v57 = vadd.f32 %v15180_v14, %v10272_v0  ;;  %v10362_v45 = vadd.f32 %v10361_v32, %v10319_v55  ;;  %v4182_v14 = vld [vmem:[#allocation8 + $0x1af8] sm:$0xff]  ;;  %v15384_v32 = vld [vmem:[#allocation28_spill] sm:$0xff] }
 0x619   :  { %10868 = vmatpush2.bf16.msra.mxu0 %v13531_v4  ;;  %10822 = vmatprep.subr.bf16.mxu1 %v13292_v13  ;;  %v11003_v4 = vadd.bf16 1065369472, %v14415_v62  ;;  %v15375_v13 = vld [vmem:[#allocation39_spill] sm:$0xff] }
 0x61a   :  { %14046 = vmatprep.subr.bf16.mxu0 %v14250_v8  ;;  %v14255_v8 = vld [vmem:[#allocation11 + $0x28] sm:$0xff]   ;;  %v10016_v24 = vadd.f32 %v15375_v13, %v9973_v34  ;;  %v10358_v28 = vadd.f32 %v10357_v37, %v10315_v57  ;;  %v14258_v34 = vld [vmem:[#allocation11 + $0x58] sm:$0xff]   ;;  %v13740_v37 = vcombine.high %v4174_v39, %v4182_v14 }
 0x61b   :  { %14418 = vrcp.bf16 %v11003_v4  ;;  %v15378_v62 = vld [vmem:[#allocation27_spill] sm:$0xff] }
 0x61c   :  { %10870 = vmatmul.mubr.bf16.vlgmr.msra.gmra.mxu0 %v14933_v9  ;;  %10823 = vmatpush2.bf16.msra.mxu1 %v13291_v60  ;;  %v14417_v9 = vpop.eup %14416  ;;  %v14256_v60 = vld [vmem:[#allocation11 + $0x60] sm:$0xff]   ;;  %v9760_v3 = vadd.f32 %v15379_v30, %v15378_v62  ;;  %v4158_v0 = vld [vmem:[#allocation8 + $0x1a38] sm:$0xff] }
 0x61d   :  { %14047 = vmatpush3.bf16.msra.mxu0 %v14251_v7  ;;  %12130 = vmatprep.mubr.bf16.mxu0 %v11052_v25  ;;  %v11008_v31 = vadd.bf16 1065369472, %v14417_v9  ;;  %v10404_v7 = vpop.f32.mrf.mxu1  ;;  %v15377_v25 = vld [vmem:[#allocation43_spill] sm:$0xff] }
 0x61e   :  { %14048 = vmatprep.subr.bf16.mxu0 %v14252_v10  ;;  %10824 = vmatprep.subr.bf16.mxu1 %v13276_v44  ;;  %v15376_v10 = vld [vmem:[#allocation37_spill] sm:$0xff]  ;;  %v10059_v44 = vadd.f32 %v15377_v25, %v10016_v24  ;;  %v10405_v51 = vadd.f32 %v10404_v7, %v10362_v45  ;;  %v4166_v55 = vld [vmem:[#allocation8 + $0x1a78] sm:$0xff]  ;;  %v14261_v24 = vld [vmem:[#allocation11 + $0x10] sm:$0xff]  }
 0x61f   :  { %v10012_v18 = vadd.f32 %v15376_v10, %v9969_v26  ;;  %14420 = vrcp.bf16 %v11008_v31  ;;  %v13739_v26 = vcombine.low %v4174_v39, %v4182_v14  ;;  %v13724_v41 = vcombine.high %v4158_v0, %v4166_v55  ;;  %v4142_v57 = vld [vmem:[#allocation8 + $0x19b8] sm:$0xff]  ;;  %v15383_v31 = vld [vmem:[#allocation29_spill] sm:$0xff] }
 0x620   :  { %10825 = vmatpush2.bf16.msra.mxu1 %v13275_v23  ;;  %v10401_v23 = vadd.f32 %v15195_v54, %v10358_v28  ;;  %v15382_v54 = vld [vmem:[#allocation33_spill] sm:$0xff]  ;;  %v9842_v7 = vadd.f32 %v15384_v32, %v15383_v31  ;;  %v4134_v39 = vld [vmem:[#allocation8 + $0x1978] sm:$0xff] }
 0x621   :  { %14049 = vmatpush3.bf16.msra.mxu0 %v14253_v36  ;;  %10880 = vmatprep.subr.bf16.mxu1 %v13772_v22  ;;  %v14257_v36 = vld [vmem:[#allocation11 + $0x20] sm:$0xff]   ;;  %v10055_v17 = vadd.f32 %v15380_v19, %v10012_v18  ;;  %v15386_v18 = vld [vmem:[#allocation31_spill] sm:$0xff] }
 0x622   :  { %14050 = vmatprep.subr.bf16.mxu0 %v14254_v27  ;;  %v15381_v27 = vld [vmem:[#allocation30_spill] sm:$0xff]  ;;  %v15223_v22 = vpack.c.bf16 %v10405_v51, %v10401_v23  ;;  %v9885_v25 = vadd.f32 %v15386_v18, %v9842_v7 }
 0x623   :  { %10827 = vmatmul.mubr.bf16.vlgmr.msra.gmra.mxu1 %v14898_v49  ;;  %v9803_v49 = vadd.f32 %v15381_v27, %v9760_v3  ;;  %v15221_v9 = vpack.c.bf16 %v10059_v44, %v10055_v17  ;;  %v4126_v44 = vld [vmem:[#allocation8 + $0x1938] sm:$0xff]  ;;  %v14266_v27 = vld [vmem:[#allocation11 + $0x178] sm:$0xff]  }
 0x624   :  { %10881 = vmatpush1.bf16.msra.mxu1 %v13771_v38  ;;  %10912 = vmatprep.mubr.bf16.mxu1 %v14957_v35  ;;  %v14260_v35 = vld [vmem:[#allocation11 + $0x50] sm:$0xff]   ;;  %v13910_v13 = vmul.bf16 3216621497, %v15223_v22  ;;  %v14263_v14 = vld [vmem:[#allocation11 + $0x8] sm:$0xff]   ;;  %v13692_v30 = vcombine.high %v4126_v44, %v4134_v39 }
 0x625   :  { %14051 = vmatpush3.bf16.msra.mxu0 %v14255_v8  ;;  %10882 = vmatprep.subr.bf16.mxu1 %v13756_v16  ;;  %v9846_v58 = vadd.f32 %v15382_v54, %v9803_v49  ;;  %v13905_v4 = vmul.bf16 3216621497, %v15221_v9  ;;  %v4150_v8 = vld [vmem:[#allocation8 + $0x19f8] sm:$0xff]  ;;  %v15385_v38 = vld [vmem:[#allocation36_spill] sm:$0xff]  ;;  %v13723_v16 = vcombine.low %v4158_v0, %v4166_v55 }
 0x626   :  { %14052 = vmatprep.subr.bf16.mxu0 %v14256_v60  ;;  %v14262_v60 = vld [vmem:[#allocation11 + $0x48] sm:$0xff]   ;;  %v13708_v10 = vcombine.high %v4142_v57, %v4150_v8  ;;  %v13707_v51 = vcombine.low %v4142_v57, %v4150_v8 }
 0x627   :  { %v9889_v45 = vadd.f32 %v15385_v38, %v9846_v58  ;;  %14422 = vpow.bf16 %v13905_v4  ;;  %v4110_v19 = vld [vmem:[#allocation8 + $0x18b8] sm:$0xff]  ;;  %v14268_v58 = vld [vmem:[#allocation11 + $0x170] sm:$0xff]  }
 0x628   :  { %10883 = vmatpush1.bf16.msra.mxu1 %v13755_v40  ;;  %14424 = vpow.bf16 %v13910_v13  ;;  %v4118_v17 = vld [vmem:[#allocation8 + $0x18f8] sm:$0xff]  ;;  %v14265_v40 = vld [vmem:[#allocation11] sm:$0xff]  }
 0x629   :  { %14053 = vmatpush3.bf16.msra.mxu0 %v14257_v36  ;;  %10884 = vmatprep.subr.bf16.mxu1 %v13740_v37  ;;  %v15232_v28 = vpack.c.bf16 %v9889_v45, %v9885_v25  ;;  %v14264_v36 = vld [vmem:[#allocation11 + $0x40] sm:$0xff]   ;;  %v14419_v62 = vpop.eup %14418  ;;  %v13691_v37 = vcombine.low %v4126_v44, %v4134_v39  ;;  %v13676_v49 = vcombine.high %v4110_v19, %v4118_v17  ;;  %v4094_v55 = vld [vmem:[#allocation8 + $0x1838] sm:$0xff] }
 0x62a   :  { %14054 = vmatprep.subr.bf16.mxu0 %v14258_v34  ;;  %v11020_v34 = vmul.bf16 1065369472, %v14419_v62  ;;  %v13675_v54 = vcombine.low %v4110_v19, %v4118_v17  ;;  %v4334_v13 = vld [vmem:[#allocation8 + $0x1fb8] sm:$0xff]  ;;  %v14273_v62 = vld [vmem:[#allocation11 + $0x120] sm:$0xff]   ;;  %v14274_v17 = vld [vmem:[#allocation11 + $0x158] sm:$0xff]  }
 0x62b   :  { %v13904_v23 = vmul.bf16 3216621497, %v15232_v28  ;;  %v14270_v38 = vld [vmem:[#allocation11 + $0x168] sm:$0xff]  }
 0x62c   :  { %10885 = vmatpush1.bf16.msra.mxu1 %v13739_v26  ;;  %v14267_v26 = vld [vmem:[#allocation11 + $0x138] sm:$0xff]   ;;  %v14271_v18 = vld [vmem:[#allocation11 + $0x128] sm:$0xff]  }
 0x62d   :  { %14055 = vmatpush3.bf16.msra.mxu0 %v14259_v5  ;;  %10886 = vmatprep.subr.bf16.mxu1 %v13724_v41  ;;  %v14421_v3 = vpop.eup %14420  ;;  %v4102_v5 = vld [vmem:[#allocation8 + $0x1878] sm:$0xff]  ;;  %14426 = vpow.bf16 %v13904_v23  ;;  %v4382_v41 = vrot.slane %v15193_v52, %v14783_v29 }
 0x62e   :  { %14056 = vmatprep.subr.bf16.mxu0 %v14260_v35  ;;  %v11030_v0 = vmul.bf16 1065369472, %v14421_v3  ;;  %v11051_v35 = vmul.bf16 %v11020_v34, %v15169_v59  ;;  %v13660_v57 = vcombine.high %v4094_v55, %v4102_v5  ;;  %v14269_v59 = vld [vmem:[#allocation11 + $0x130] sm:$0xff]   ;;  %v13659_v7 = vcombine.low %v4094_v55, %v4102_v5  ;;  %v4286_v23 = vld [vmem:[#allocation8 + $0x1e38] sm:$0xff] }
 0x62f   :  { %v10274_v8 = vadd.f32 %v15183_v47, %v4382_v41  ;;  %v10270_v32 = vadd.f32 %v15171_v1, %v4382_v41  ;;  %v15388_v41 = vld [vmem:[#allocation45_spill] sm:$0xff] }
 0x630   :  { %10887 = vmatpush1.bf16.msra.mxu1 %v13723_v16  ;;  %v11056_v4 = vmul.bf16 %v11030_v0, %v15175_v6  ;;  %v4318_v16 = vld [vmem:[#allocation8 + $0x1f38] sm:$0xff] }
 0x631   :  { %14057 = vmatpush3.bf16.msra.mxu0 %v14261_v24  ;;  %10888 = vmatprep.subr.bf16.mxu1 %v13708_v10  ;;  %v4342_v24 = vld [vmem:[#allocation8 + $0x1ff8] sm:$0xff]  ;;  %v10317_v29 = vadd.f32 %v15185_v53, %v10274_v8  ;;  %v10313_v47 = vadd.f32 %v15173_v56, %v10270_v32  ;;  %v14272_v53 = vld [vmem:[#allocation11 + $0x160] sm:$0xff]  }
 0x632   :  { %14058 = vmatprep.subr.bf16.mxu0 %v14262_v60  ;;  %v13900_v6 = vcombine.high %v4334_v13, %v4342_v24  ;;  %v4326_v60 = vld [vmem:[#allocation8 + $0x1f78] sm:$0xff]  ;;  %v13899_v1 = vcombine.low %v4334_v13, %v4342_v24 }
 0x633   :  { %v10360_v25 = vadd.f32 %v15204_v48, %v10317_v29  ;;  %v13884_v39 = vcombine.high %v4318_v16, %v4326_v60  ;;  %v4310_v56 = vld [vmem:[#allocation8 + $0x1ef8] sm:$0xff]  ;;  %v13883_v19 = vcombine.low %v4318_v16, %v4326_v60  ;;  %v14280_v29 = vld [vmem:[#allocation11 + $0x140] sm:$0xff]  }
 0x634   :  { %10889 = vmatpush1.bf16.msra.mxu1 %v13707_v51  ;;  %v4254_v13 = vld [vmem:[#allocation8 + $0x1d38] sm:$0xff] }
 0x635   :  { %14059 = vmatpush3.bf16.msra.mxu0 %v14263_v14  ;;  %10890 = vmatprep.subr.bf16.mxu1 %v13692_v30  ;;  %v14423_v31 = vpop.eup %14422  ;;  %v10356_v14 = vadd.f32 %v15187_v15, %v10313_v47  ;;  %v10403_v51 = vadd.f32 %v15206_v33, %v10360_v25  ;;  %v15387_v30 = vld [vmem:[#allocation44_spill] sm:$0xff]  ;;  %v4262_v24 = vld [vmem:[#allocation8 + $0x1d78] sm:$0xff] }
 0x636   :  { %14060 = vmatprep.subr.bf16.mxu0 %v14264_v36  ;;  %v14425_v45 = vpop.eup %14424  ;;  %v11007_v10 = vadd.bf16 1065369472, %v14423_v31  ;;  %v4302_v36 = vld [vmem:[#allocation8 + $0x1eb8] sm:$0xff]  ;;  %v10104_v3 = vadd.f32 %v15387_v30, %v15091_v12  ;;  %v15260_v31 = vpop.f32.mrf.mxu1  ;;  %v15389_v47 = vld [vmem:[#allocation32_spill] sm:$0xff] }
 0x637   :  { %v11012_v44 = vadd.bf16 1065369472, %v14425_v45  ;;  %v10399_v48 = vadd.f32 %v15189_v61, %v10356_v14  ;;  %v13867_v12 = vcombine.low %v4302_v36, %v4310_v56  ;;  %v14276_v61 = vld [vmem:[#allocation11 + $0x150] sm:$0xff]   ;;  %v13903_v16 = vmul.bf16 3216621497, %v15389_v47  ;;  %v14283_v30 = vld [vmem:[#allocation11 + $0x238] sm:$0xff]  }
 0x638   :  { %10891 = vmatpush1.bf16.msra.mxu1 %v13691_v37  ;;  %14428 = vrcp.bf16 %v11007_v10  ;;  %v10147_v33 = vadd.f32 %v15108_v11, %v10104_v3  ;;  %v4294_v37 = vld [vmem:[#allocation8 + $0x1e78] sm:$0xff]  ;;  %v14277_v11 = vld [vmem:[#allocation11 + $0x110] sm:$0xff]   ;;  %v15267_v10 = vpop.f32.mrf.mxu1 }
 0x639   :  { %14061 = vmatpush3.bf16.msra.mxu0 %v14265_v40  ;;  %10892 = vmatprep.subr.bf16.mxu1 %v13676_v49  ;;  %14430 = vrcp.bf16 %v11012_v44  ;;  %v13868_v40 = vcombine.high %v4302_v36, %v4310_v56  ;;  %v15250_v34 = vpack.c.bf16 %v10403_v51, %v10399_v48  ;;  %v13852_v0 = vcombine.high %v4286_v23, %v4294_v37  ;;  %v4222_v51 = vld [vmem:[#allocation8 + $0x1c38] sm:$0xff] }
 0x63a   :  { %14090 = vmatprep.subr.bf16.mxu0 %v14266_v27  ;;  %v14275_v27 = vld [vmem:[#allocation11 + $0x118] sm:$0xff]   ;;  %v10190_v55 = vadd.f32 %v15164_v2, %v10147_v33  ;;  %v4230_v36 = vld [vmem:[#allocation8 + $0x1c78] sm:$0xff] }
 0x63b   :  { %v14427_v15 = vpop.eup %14426  ;;  %v13909_v5 = vmul.bf16 3216621497, %v15250_v34 }
 0x63c   :  { %12131 = vmatmul.mubr.bf16.vlgmr.msra.gmra.mxu0 %v11051_v35  ;;  %10893 = vmatpush1.bf16.msra.mxu1 %v13675_v54  ;;  %v11006_v49 = vadd.bf16 1065369472, %v14427_v15  ;;  %v4278_v35 = vld [vmem:[#allocation8 + $0x1df8] sm:$0xff]  ;;  %v10186_v54 = vadd.f32 %v15388_v41, %v15100_v43  ;;  %v14290_v41 = vld [vmem:[#allocation11 + $0xf0] sm:$0xff]  }
 0x63d   :  { %14091 = vmatpush3.bf16.msra.mxu0 %v14267_v26  ;;  %12212 = vmatprep.mubr.bf16.mxu0 %v11056_v4  ;;  %v4270_v26 = vld [vmem:[#allocation8 + $0x1db8] sm:$0xff]  ;;  %v13851_v4 = vcombine.low %v4286_v23, %v4294_v37  ;;  %v14285_v37 = vld [vmem:[#allocation11 + $0x230] sm:$0xff]  }
 0x63e   :  { %14092 = vmatprep.subr.bf16.mxu0 %v14268_v58  ;;  %10894 = vmatprep.subr.bf16.mxu1 %v13660_v57  ;;  %v10233_v58 = vadd.f32 %v15166_v21, %v10190_v55  ;;  %v14278_v57 = vld [vmem:[#allocation11 + $0x148] sm:$0xff]   ;;  %14432 = vrcp.bf16 %v11006_v49  ;;  %v13836_v8 = vcombine.high %v4270_v26, %v4278_v35  ;;  %v10229_v2 = vadd.f32 %v15113_v50, %v10186_v54  ;;  %v14292_v54 = vld [vmem:[#allocation11 + $0x260] sm:$0xff]  }
 0x63f   :  { %14434 = vpow.bf16 %v13909_v5  ;;  %v14279_v43 = vld [vmem:[#allocation11 + $0x108] sm:$0xff]   ;;  %v13835_v21 = vcombine.low %v4270_v26, %v4278_v35  ;;  %v14287_v26 = vld [vmem:[#allocation11 + $0xb8] sm:$0xff]  }
 0x640   :  { %10895 = vmatpush1.bf16.msra.mxu1 %v13659_v7  ;;  %v15262_v32 = vpack.c.bf16 %v10233_v58, %v10229_v2  ;;  %v4238_v50 = vld [vmem:[#allocation8 + $0x1cb8] sm:$0xff]  ;;  %14436 = vpow.bf16 %v13903_v16  ;;  %v15390_v58 = vld [vmem:[#allocation20_spill] sm:$0xff] }
 0x641   :  { %14093 = vmatpush3.bf16.msra.mxu0 %v14269_v59  ;;  %10896 = vmatprep.subr.bf16.mxu1 %v13900_v6  ;;  %v15258_v59 = vpop.f32.mrf.mxu0  ;;  %v4246_v6 = vld [vmem:[#allocation8 + $0x1cf8] sm:$0xff] }
 0x642   :  { %14094 = vmatprep.subr.bf16.mxu0 %v14270_v38  ;;  %v13820_v38 = vcombine.high %v4254_v13, %v4262_v24  ;;  %v13908_v44 = vmul.bf16 3216621497, %v15262_v32  ;;  %v13803_v48 = vcombine.low %v4238_v50, %v4246_v6  ;;  %v14289_v5 = vld [vmem:[#allocation11 + $0x228] sm:$0xff]  }
 0x643   :  { %v15265_v60 = vpop.f32.mrf.mxu0  ;;  %v14295_v16 = vld [vmem:[#allocation11 + $0xa8] sm:$0xff]  }
 0x644   :  { %10897 = vmatpush2.bf16.msra.mxu1 %v13899_v1  ;;  %v13819_v1 = vcombine.low %v4254_v13, %v4262_v24  ;;  %14438 = vpow.bf16 %v13908_v44  ;;  %v14291_v13 = vld [vmem:[#allocation11 + $0xb0] sm:$0xff]   ;;  %v14296_v24 = vld [vmem:[#allocation11 + $0x258] sm:$0xff]  }
 0x645   :  { %14095 = vmatpush3.bf16.msra.mxu0 %v14271_v18  ;;  %10898 = vmatprep.subr.bf16.mxu1 %v13884_v39  ;;  %v14281_v18 = vld [vmem:[#allocation11 + $0x100] sm:$0xff]   ;;  %v13804_v39 = vcombine.high %v4238_v50, %v4246_v6  ;;  %v15270_v56 = vpop.f32.mrf.mxu0 }
 0x646   :  { %14096 = vmatprep.subr.bf16.mxu0 %v14272_v53  ;;  %v14429_v7 = vpop.eup %14428  ;;  %v14282_v53 = vld [vmem:[#allocation11 + $0x278] sm:$0xff]  }
 0x647   :  { %v14431_v45 = vpop.eup %14430  ;;  %v11028_v25 = vmul.bf16 1065369472, %v14429_v7  ;;  %v10447_v33 = vpop.f32.mrf.mxu0  ;;  %v14294_v7 = vld [vmem:[#allocation11 + $0xe8] sm:$0xff]  }
 0x648   :  { %10899 = vmatpush2.bf16.msra.mxu1 %v13883_v19  ;;  %v11038_v14 = vmul.bf16 1065369472, %v14431_v45  ;;  %v14284_v19 = vld [vmem:[#allocation11 + $0x270] sm:$0xff]  }
 0x649   :  { %14097 = vmatpush3.bf16.msra.mxu0 %v14273_v62  ;;  %10900 = vmatprep.subr.bf16.mxu1 %v13868_v40  ;;  %v15272_v62 = vpop.f32.mrf.mxu1  ;;  %v11055_v3 = vmul.bf16 %v11028_v25, %v15221_v9  ;;  %v13788_v40 = vcombine.high %v4222_v51, %v4230_v36  ;;  %v14288_v9 = vld [vmem:[#allocation11 + $0x268] sm:$0xff]  }
 0x64a   :  { %14098 = vmatprep.subr.bf16.mxu0 %v14274_v17  ;;  %v11060_v17 = vmul.bf16 %v11038_v14, %v15223_v22  ;;  %v14301_v14 = vld [vmem:[#allocation11 + $0x210] sm:$0xff]  }
 0x64b   :  { %v10490_v23 = vpop.f32.mrf.mxu1 }
 0x64c   :  { %10901 = vmatpush2.bf16.msra.mxu1 %v13867_v12  ;;  %v14433_v15 = vpop.eup %14432  ;;  %v13787_v12 = vcombine.low %v4222_v51, %v4230_v36  ;;  %v14299_v36 = vld [vmem:[#allocation11 + $0xa0] sm:$0xff]  }
 0x64d   :  { %14099 = vmatpush3.bf16.msra.mxu0 %v14275_v27  ;;  %10902 = vmatprep.subr.bf16.mxu1 %v13852_v0  ;;  %v14435_v27 = vpop.eup %14434  ;;  %v15278_v49 = vpop.f32.mrf.mxu1  ;;  %v14286_v0 = vld [vmem:[#allocation11 + $0xf8] sm:$0xff]   ;;  %v11026_v22 = vmul.bf16 1065369472, %v14433_v15 }
 0x64e   :  { %14100 = vmatprep.subr.bf16.mxu0 %v14276_v61  ;;  %v15276_v61 = vpop.f32.mrf.mxu0  ;;  %v11011_v55 = vadd.bf16 1065369472, %v14435_v27 }
 0x650   :  { %10903 = vmatpush2.bf16.msra.mxu1 %v13851_v4  ;;  %v10529_v35 = vpop.f32.mrf.mxu0  ;;  %v4394_v4 = vrot.slane %v15193_v52, %v15390_v58  ;;  %14440 = vrcp.bf16 %v11011_v55  ;;  %v14341_v55 = vld [vmem:[#allocation11 + $0x338] sm:$0xff]   ;;  %v14345_v58 = vld [vmem:[#allocation11 + $0x330] sm:$0xff]  }
 0x651   :  { %14101 = vmatpush3.bf16.msra.mxu0 %v14277_v11  ;;  %10904 = vmatprep.subr.bf16.mxu1 %v13836_v8  ;;  %v10572_v11 = vpop.f32.mrf.mxu1  ;;  %v14293_v8 = vld [vmem:[#allocation11 + $0x220] sm:$0xff]  }
 0x652   :  { %14102 = vmatprep.subr.bf16.mxu0 %v14278_v57  ;;  %v11054_v57 = vmul.bf16 %v11026_v22, %v15232_v28  ;;  %v10448_v2 = vadd.f32 %v10447_v33, %v4394_v4  ;;  %v10444_v28 = vadd.f32 %v15265_v60, %v4394_v4  ;;  %v14306_v33 = vld [vmem:[#allocation11 + $0xd0] sm:$0xff]   ;;  %v14310_v22 = vld [vmem:[#allocation11 + $0xc8] sm:$0xff]   ;;  %v14313_v4 = vld [vmem:[#allocation11 + $0x80] sm:$0xff]  }
 0x654   :  { %10905 = vmatpush2.bf16.msra.mxu1 %v13835_v21  ;;  %v15284_v21 = vpop.f32.mrf.mxu0  ;;  %v10491_v45 = vadd.f32 %v10490_v23, %v10448_v2  ;;  %v10487_v6 = vadd.f32 %v15267_v10, %v10444_v28  ;;  %v14302_v10 = vld [vmem:[#allocation11 + $0xd8] sm:$0xff]   ;;  %v13907_v23 = vmul.bf16 3216621497, %v15116_v20  ;;  %v14316_v28 = vld [vmem:[#allocation11 + $0x1f0] sm:$0xff]  }
 0x655   :  { %14103 = vmatpush3.bf16.msra.mxu0 %v14279_v43  ;;  %10906 = vmatprep.subr.bf16.mxu1 %v13820_v38  ;;  %v14437_v43 = vpop.eup %14436  ;;  %v14314_v2 = vld [vmem:[#allocation11 + $0x1f8] sm:$0xff]  }
 0x656   :  { %14104 = vmatprep.subr.bf16.mxu0 %v14280_v29  ;;  %v15286_v29 = vpop.f32.mrf.mxu1  ;;  %v14439_v38 = vpop.eup %14438  ;;  %v11005_v50 = vadd.bf16 1065369472, %v14437_v43  ;;  %v10530_v60 = vadd.f32 %v10529_v35, %v10487_v6  ;;  %v14344_v35 = vld [vmem:[#allocation11 + $0x370] sm:$0xff]   ;;  %v14353_v6 = vld [vmem:[#allocation11 + $0x320] sm:$0xff]  }
 0x657   :  { %v11010_v25 = vadd.bf16 1065369472, %v14439_v38  ;;  %v10533_v44 = vpop.f32.mrf.mxu0 }
 0x658   :  { %10907 = vmatpush2.bf16.msra.mxu1 %v13819_v1  ;;  %v10576_v1 = vpop.f32.mrf.mxu1  ;;  %14442 = vrcp.bf16 %v11005_v50 }
 0x659   :  { %14105 = vmatpush3.bf16.msra.mxu0 %v14281_v18  ;;  %10908 = vmatprep.subr.bf16.mxu1 %v13804_v39  ;;  %v14300_v18 = vld [vmem:[#allocation11 + $0x250] sm:$0xff]   ;;  %v10534_v39 = vadd.f32 %v10533_v44, %v10491_v45  ;;  %14444 = vrcp.bf16 %v11010_v25  ;;  %v14352_v45 = vld [vmem:[#allocation11 + $0x360] sm:$0xff]   ;;  %v14354_v44 = vld [vmem:[#allocation11 + $0x358] sm:$0xff]  }
 0x65a   :  { %14134 = vmatprep.subr.bf16.mxu0 %v14282_v53  ;;  %v14298_v53 = vld [vmem:[#allocation11 + $0xe0] sm:$0xff]   ;;  %14446 = vpow.bf16 %v13907_v23  ;;  %v14317_v25 = vld [vmem:[#allocation11 + $0x1b0] sm:$0xff]  }
 0x65b   :  { %v10577_v51 = vadd.f32 %v10576_v1, %v10534_v39  ;;  %v14324_v23 = vld [vmem:[#allocation11 + $0x1d0] sm:$0xff]  }
 0x65c   :  { %12213 = vmatmul.mubr.bf16.vlgmr.msra.gmra.mxu0 %v11055_v3  ;;  %10909 = vmatpush2.bf16.msra.mxu1 %v13803_v48  ;;  %v10573_v3 = vadd.f32 %v10572_v11, %v10530_v60  ;;  %v14305_v48 = vld [vmem:[#allocation11 + $0x208] sm:$0xff]   ;;  %v14312_v11 = vld [vmem:[#allocation11 + $0xc0] sm:$0xff]  }
 0x65d   :  { %14135 = vmatpush3.bf16.msra.mxu0 %v14283_v30  ;;  %12294 = vmatprep.mubr.bf16.mxu0 %v11060_v17  ;;  %v14304_v30 = vld [vmem:[#allocation11 + $0x248] sm:$0xff]   ;;  %v14303_v17 = vld [vmem:[#allocation11 + $0x98] sm:$0xff]  }
 0x65e   :  { %14136 = vmatprep.subr.bf16.mxu0 %v14284_v19  ;;  %10910 = vmatprep.subr.bf16.mxu1 %v13788_v40  ;;  %v15290_v19 = vpack.c.bf16 %v10577_v51, %v10573_v3  ;;  %v14308_v40 = vld [vmem:[#allocation11 + $0x240] sm:$0xff]   ;;  %v14441_v15 = vpop.eup %14440 }
 0x65f   :  { %v11036_v27 = vmul.bf16 1065369472, %v14441_v15  ;;  %v14320_v51 = vld [vmem:[#allocation11 + $0x1e0] sm:$0xff]   ;;  %v14359_v15 = vld [vmem:[#allocation11 + $0x308] sm:$0xff]  }
 0x660   :  { %10911 = vmatpush2.bf16.msra.mxu1 %v13787_v12  ;;  %v13912_v12 = vmul.bf16 3216621497, %v15290_v19  ;;  %v14321_v3 = vld [vmem:[#allocation11 + $0x1a0] sm:$0xff]  }
 0x661   :  { %14137 = vmatpush3.bf16.msra.mxu0 %v14285_v37  ;;  %14068 = vmatprep.subr.bf16.mxu1 %v14286_v0  ;;  %v14309_v37 = vld [vmem:[#allocation11 + $0x200] sm:$0xff]   ;;  %v14340_v0 = vld [vmem:[#allocation11 + $0x378] sm:$0xff]  }
 0x662   :  { %14138 = vmatprep.subr.bf16.mxu0 %v14288_v9  ;;  %v14307_v9 = vld [vmem:[#allocation11 + $0x90] sm:$0xff]   ;;  %14448 = vpow.bf16 %v13912_v12 }
 0x663   :  { %10913 = vmatmul.mubr.bf16.vlgmr.msra.gmra.mxu1 %v14960_v42  ;;  %v14297_v42 = vld [vmem:[#allocation11 + $0x218] sm:$0xff]  }
 0x664   :  { %14069 = vmatpush3.bf16.msra.mxu1 %v14287_v26  ;;  %12171 = vmatprep.mubr.bf16.mxu1 %v11054_v57  ;;  %v14311_v26 = vld [vmem:[#allocation11 + $0x88] sm:$0xff]  }
 0x665   :  { %14139 = vmatpush3.bf16.msra.mxu0 %v14289_v5  ;;  %14070 = vmatprep.subr.bf16.mxu1 %v14290_v41  ;;  %v11059_v5 = vmul.bf16 %v11036_v27, %v15250_v34  ;;  %v14348_v57 = vld [vmem:[#allocation11 + $0x368] sm:$0xff]   ;;  %v14325_v27 = vld [vmem:[#allocation11 + $0x190] sm:$0xff]  }
 0x666   :  { %14140 = vmatprep.subr.bf16.mxu0 %v14292_v54  ;;  %v14443_v41 = vpop.eup %14442 }
 0x667   :  { %v14445_v54 = vpop.eup %14444 }
 0x668   :  { %14071 = vmatpush3.bf16.msra.mxu1 %v14291_v13  ;;  %v11034_v34 = vmul.bf16 1065369472, %v14445_v54  ;;  %v14349_v13 = vld [vmem:[#allocation11 + $0x328] sm:$0xff]   ;;  %v14447_v1 = vpop.eup %14446  ;;  %v4398_v54 = vrot.slane %v15193_v52, %v15370_v63  ;;  %v14332_v63 = vld [vmem:[#allocation11 + $0x2f0] sm:$0xff]  }
 0x669   :  { %14141 = vmatpush3.bf16.msra.mxu0 %v14293_v8  ;;  %14072 = vmatprep.subr.bf16.mxu1 %v14294_v7  ;;  %v11024_v8 = vmul.bf16 1065369472, %v14443_v41  ;;  %v14315_v7 = vld [vmem:[#allocation11 + $0x1b8] sm:$0xff]   ;;  %v11009_v39 = vadd.bf16 1065369472, %v14447_v1  ;;  %v14333_v1 = vld [vmem:[#allocation11 + $0x2b0] sm:$0xff]  }
 0x66a   :  { %14142 = vmatprep.subr.bf16.mxu0 %v14296_v24  ;;  %v15391_v24 = vld [vmem:[#allocation21_spill] sm:$0xff]  ;;  %v11058_v50 = vmul.bf16 %v11034_v34, %v15262_v32 }
 0x66b   :  { %v4390_v43 = vrot.slane %v15193_v52, %v15391_v24  ;;  %v11053_v38 = vmul.bf16 %v11024_v8, %v15389_v47  ;;  %v14318_v47 = vld [vmem:[#allocation11 + $0x1e8] sm:$0xff]   ;;  %v14355_v32 = vld [vmem:[#allocation11 + $0x318] sm:$0xff]   ;;  %14450 = vrcp.bf16 %v11009_v39 }
 0x66c   :  { %14073 = vmatpush3.bf16.msra.mxu1 %v14295_v16 }
 0x66d   :  { %14143 = vmatpush3.bf16.msra.mxu0 %v14297_v42  ;;  %14074 = vmatprep.subr.bf16.mxu1 %v14298_v53  ;;  %v10446_v42 = vadd.f32 %v15270_v56, %v4390_v43  ;;  %v10442_v16 = vadd.f32 %v15258_v59, %v4390_v43  ;;  %v14319_v59 = vld [vmem:[#allocation11 + $0x1a8] sm:$0xff]  }
 0x66e   :  { %14144 = vmatprep.subr.bf16.mxu0 %v14300_v18 }
 0x66f   :  { %v10489_v18 = vadd.f32 %v15272_v62, %v10446_v42  ;;  %v10485_v56 = vadd.f32 %v15260_v31, %v10442_v16  ;;  %v14356_v62 = vld [vmem:[#allocation11 + $0x350] sm:$0xff]  }
 0x670   :  { %14075 = vmatpush3.bf16.msra.mxu1 %v14299_v36  ;;  %v14449_v53 = vpop.eup %14448 }
 0x671   :  { %14145 = vmatpush3.bf16.msra.mxu0 %v14301_v14  ;;  %14076 = vmatprep.subr.bf16.mxu1 %v14302_v10  ;;  %v10532_v14 = vadd.f32 %v15284_v21, %v10489_v18  ;;  %v11014_v60 = vadd.bf16 1065369472, %v14449_v53  ;;  %v10528_v36 = vadd.f32 %v15276_v61, %v10485_v56  ;;  %v14357_v10 = vld [vmem:[#allocation11 + $0x310] sm:$0xff]   ;;  %v14358_v21 = vld [vmem:[#allocation11 + $0x348] sm:$0xff]   ;;  %v14323_v61 = vld [vmem:[#allocation11 + $0x198] sm:$0xff]  }
 0x672   :  { %14146 = vmatprep.subr.bf16.mxu0 %v14304_v30 }
 0x673   :  { %v10575_v30 = vadd.f32 %v15286_v29, %v10532_v14  ;;  %v10571_v31 = vadd.f32 %v15278_v49, %v10528_v36  ;;  %14452 = vrcp.bf16 %v11014_v60  ;;  %v14360_v29 = vld [vmem:[#allocation11 + $0x340] sm:$0xff]  }
 0x674   :  { %14077 = vmatpush3.bf16.msra.mxu1 %v14303_v17  ;;  %v14322_v17 = vld [vmem:[#allocation11 + $0x1d8] sm:$0xff]  }
 0x675   :  { %14147 = vmatpush3.bf16.msra.mxu0 %v14305_v48  ;;  %14078 = vmatprep.subr.bf16.mxu1 %v14306_v33  ;;  %v10613_v48 = vpop.f32.mrf.mxu0 }
 0x676   :  { %14148 = vmatprep.subr.bf16.mxu0 %v14308_v40  ;;  %v15307_v40 = vpack.c.bf16 %v10575_v30, %v10571_v31  ;;  %v10614_v24 = vadd.f32 %v10613_v48, %v4398_v54  ;;  %v14336_v30 = vld [vmem:[#allocation11 + $0x2e0] sm:$0xff]  }
 0x677   :  { %v10615_v33 = vpop.f32.mrf.mxu0 }
 0x678   :  { %14079 = vmatpush3.bf16.msra.mxu1 %v14307_v9  ;;  %v13911_v49 = vmul.bf16 3216621497, %v15307_v40  ;;  %v10656_v9 = vpop.f32.mrf.mxu1 }
 0x679   :  { %14149 = vmatpush3.bf16.msra.mxu0 %v14309_v37  ;;  %14080 = vmatprep.subr.bf16.mxu1 %v14310_v22  ;;  %v14361_v37 = vld [vmem:[#allocation11 + $0x300] sm:$0xff]   ;;  %v10617_v12 = vpop.f32.mrf.mxu0  ;;  %v14327_v22 = vld [vmem:[#allocation11 + $0x188] sm:$0xff]  }
 0x67a   :  { %14178 = vmatprep.subr.bf16.mxu0 %v14340_v0  ;;  %v14326_v0 = vld [vmem:[#allocation11 + $0x1c8] sm:$0xff]   ;;  %14454 = vpow.bf16 %v13911_v49  ;;  %v10618_v43 = vadd.f32 %v10617_v12, %v4398_v54  ;;  %v14364_v54 = vld [vmem:[#allocation11 + $0x3f0] sm:$0xff]  }
 0x67b   :  { %v14346_v49 = vld [vmem:[#allocation11 + $0x2c8] sm:$0xff]  }
 0x67c   :  { %12295 = vmatmul.mubr.bf16.vlgmr.msra.gmra.mxu0 %v11059_v5  ;;  %14081 = vmatpush3.bf16.msra.mxu1 %v14311_v26  ;;  %v10658_v5 = vpop.f32.mrf.mxu1  ;;  %v14328_v26 = vld [vmem:[#allocation11 + $0x1c0] sm:$0xff]  }
 0x67d   :  { %14179 = vmatpush3.bf16.msra.mxu0 %v14341_v55  ;;  %14082 = vmatprep.subr.bf16.mxu1 %v14312_v11  ;;  %v10619_v55 = vpop.f32.mrf.mxu0 }
 0x67e   :  { %14180 = vmatprep.subr.bf16.mxu0 %v14344_v35  ;;  %v14451_v35 = vpop.eup %14450  ;;  %v10660_v8 = vpop.f32.mrf.mxu1 }
 0x67f   :  { %v10699_v41 = vpop.f32.mrf.mxu0 }
 0x680   :  { %14083 = vmatpush3.bf16.msra.mxu1 %v14313_v4  ;;  %v11032_v4 = vmul.bf16 1065369472, %v14451_v35 }
 0x681   :  { %14181 = vmatpush3.bf16.msra.mxu0 %v14345_v58  ;;  %14112 = vmatprep.subr.bf16.mxu1 %v14314_v2  ;;  %v14453_v11 = vpop.eup %14452  ;;  %v14329_v58 = vld [vmem:[#allocation11 + $0x180] sm:$0xff]   ;;  %v14330_v2 = vld [vmem:[#allocation11 + $0x2f8] sm:$0xff]  }
 0x682   :  { %14182 = vmatprep.subr.bf16.mxu0 %v14348_v57  ;;  %v4402_v57 = vrot.slane %v15193_v52, %v14912_v46  ;;  %v11042_v34 = vmul.bf16 1065369472, %v14453_v11  ;;  %v14363_v11 = vld [vmem:[#allocation11 + $0x3b8] sm:$0xff]  }
 0x683   :  { %12172 = vmatmul.mubr.bf16.vlgmr.msra.gmra.mxu1 %v11053_v38  ;;  %v11057_v38 = vmul.bf16 %v11032_v4, %v15116_v20  ;;  %v14334_v20 = vld [vmem:[#allocation11 + $0x2e8] sm:$0xff]  }
 0x684   :  { %14113 = vmatpush3.bf16.msra.mxu1 %v14315_v7  ;;  %12253 = vmatprep.mubr.bf16.mxu1 %v11058_v50  ;;  %v14331_v7 = vld [vmem:[#allocation11 + $0x2b8] sm:$0xff]   ;;  %v10620_v42 = vadd.f32 %v10619_v55, %v4402_v57  ;;  %v10657_v50 = vadd.f32 %v10656_v9, %v10614_v24  ;;  %v11062_v46 = vmul.bf16 %v11042_v34, %v15290_v19  ;;  %v14366_v4 = vld [vmem:[#allocation11 + $0x3e8] sm:$0xff]  }
 0x685   :  { %14183 = vmatpush3.bf16.msra.mxu0 %v14349_v13  ;;  %14114 = vmatprep.subr.bf16.mxu1 %v14316_v28  ;;  %v10701_v13 = vpop.f32.mrf.mxu0  ;;  %v10616_v28 = vadd.f32 %v10615_v33, %v4402_v57  ;;  %v14342_v33 = vld [vmem:[#allocation11 + $0x2d0] sm:$0xff]   ;;  %v14367_v57 = vld [vmem:[#allocation11 + $0x3a8] sm:$0xff]  }
 0x686   :  { %14184 = vmatprep.subr.bf16.mxu0 %v14352_v45  ;;  %v10662_v45 = vpop.f32.mrf.mxu1  ;;  %v10700_v53 = vadd.f32 %v10699_v41, %v10657_v50  ;;  %v14375_v50 = vld [vmem:[#allocation11 + $0x388] sm:$0xff]  }
 0x687   :  { %v10703_v52 = vpop.f32.mrf.mxu0 }
 0x688   :  { %14115 = vmatpush3.bf16.msra.mxu1 %v14317_v25  ;;  %v14455_v18 = vpop.eup %14454  ;;  %v10659_v25 = vadd.f32 %v10658_v5, %v10616_v28  ;;  %v14362_v5 = vld [vmem:[#allocation11 + $0x3f8] sm:$0xff]  }
 0x689   :  { %14185 = vmatpush3.bf16.msra.mxu0 %v14353_v6  ;;  %14116 = vmatprep.subr.bf16.mxu1 %v14318_v47  ;;  %v10661_v6 = vadd.f32 %v10660_v8, %v10618_v43  ;;  %v10705_v39 = vpop.f32.mrf.mxu0  ;;  %v14368_v8 = vld [vmem:[#allocation11 + $0x3e0] sm:$0xff]  }
 0x68a   :  { %14186 = vmatprep.subr.bf16.mxu0 %v14354_v44  ;;  %v10663_v44 = vadd.f32 %v10662_v45, %v10620_v42  ;;  %v14374_v42 = vld [vmem:[#allocation11 + $0x3c8] sm:$0xff]  }
 0x68b   :  { %v10704_v56 = vadd.f32 %v10703_v52, %v10661_v6  ;;  %v14376_v6 = vld [vmem:[#allocation11 + $0x3c0] sm:$0xff]  }
 0x68c   :  { %14117 = vmatpush3.bf16.msra.mxu1 %v14319_v59  ;;  %v10706_v60 = vadd.f32 %v10705_v39, %v10663_v44  ;;  %v15393_v39 = vld [vmem:[#allocation24_spill] sm:$0xff] }
 0x68d   :  { %14187 = vmatpush3.bf16.msra.mxu0 %v14355_v32  ;;  %14118 = vmatprep.subr.bf16.mxu1 %v14320_v51  ;;  %v11013_v32 = vadd.bf16 1065369472, %v14455_v18  ;;  %v14335_v51 = vld [vmem:[#allocation11 + $0x2a8] sm:$0xff]  }
 0x68e   :  { %14188 = vmatprep.subr.bf16.mxu0 %v14356_v62  ;;  %v10702_v62 = vadd.f32 %v10701_v13, %v10659_v25  ;;  %v14370_v13 = vld [vmem:[#allocation11 + $0x3d8] sm:$0xff]  }
 0x68f   :  { %14456 = vrcp.bf16 %v11013_v32 }
 0x690   :  { %14119 = vmatpush3.bf16.msra.mxu1 %v14321_v3 }
 0x691   :  { %14189 = vmatpush3.bf16.msra.mxu0 %v14357_v10  ;;  %14120 = vmatprep.subr.bf16.mxu1 %v14322_v17  ;;  %v14337_v17 = vld [vmem:[#allocation11 + $0x2a0] sm:$0xff]  }
 0x692   :  { %14190 = vmatprep.subr.bf16.mxu0 %v14358_v21 }
 0x694   :  { %14121 = vmatpush3.bf16.msra.mxu1 %v14323_v61 }
 0x695   :  { %14191 = vmatpush3.bf16.msra.mxu0 %v14359_v15  ;;  %14122 = vmatprep.subr.bf16.mxu1 %v14324_v23  ;;  %v14338_v15 = vld [vmem:[#allocation11 + $0x2d8] sm:$0xff]   ;;  %v14343_v23 = vld [vmem:[#allocation11 + $0x290] sm:$0xff]  }
 0x696   :  { %14192 = vmatprep.subr.bf16.mxu0 %v14360_v29  ;;  %v14339_v29 = vld [vmem:[#allocation11 + $0x298] sm:$0xff]  }
 0x698   :  { %14123 = vmatpush3.bf16.msra.mxu1 %v14325_v27  ;;  %v14350_v27 = vld [vmem:[#allocation11 + $0x2c0] sm:$0xff]  }
 0x699   :  { %14193 = vmatpush3.bf16.msra.mxu0 %v14361_v37  ;;  %14124 = vmatprep.subr.bf16.mxu1 %v14326_v0  ;;  %v14347_v37 = vld [vmem:[#allocation11 + $0x288] sm:$0xff]   ;;  %v14351_v0 = vld [vmem:[#allocation11 + $0x280] sm:$0xff]  }
 0x69c   :  { %14125 = vmatpush3.bf16.msra.mxu1 %v14327_v22  ;;  %v10785_v52 = vpop.f32.mrf.mxu0 }
 0x69d   :  { %14126 = vmatprep.subr.bf16.mxu1 %v14328_v26  ;;  %v14457_v12 = vpop.eup %14456 }
 0x69e   :  { %v11040_v22 = vmul.bf16 1065369472, %v14457_v12 }
 0x6a0   :  { %14127 = vmatpush3.bf16.msra.mxu1 %v14329_v58  ;;  %v11061_v41 = vmul.bf16 %v11040_v22, %v15307_v40  ;;  %v14365_v58 = vld [vmem:[#allocation11 + $0x3b0] sm:$0xff]  }
 0x6a1   :  { %14156 = vmatprep.subr.bf16.mxu1 %v14330_v2  ;;  %v14369_v2 = vld [vmem:[#allocation11 + $0x3a0] sm:$0xff]  }
 0x6a3   :  { %v10742_v16 = vpop.f32.mrf.mxu1  ;;  %12254 = vmatmul.mubr.bf16.vlgmr.msra.gmra.mxu1 %v11057_v38  ;;  %v14372_v38 = vld [vmem:[#allocation11 + $0x3d0] sm:$0xff]  }
 0x6a4   :  { %14157 = vmatpush3.bf16.msra.mxu1 %v14331_v7  ;;  %12335 = vmatprep.mubr.bf16.mxu1 %v11062_v46  ;;  %v10743_v59 = vadd.f32 %v10742_v16, %v10700_v53  ;;  %v14371_v7 = vld [vmem:[#allocation11 + $0x398] sm:$0xff]   ;;  %v14377_v46 = vld [vmem:[#allocation11 + $0x380] sm:$0xff]   ;;  %v10787_v16 = vpop.f32.mrf.mxu0  ;;  %v15392_v53 = vld [vmem:[#allocation23_spill] sm:$0xff] }
 0x6a5   :  { %v10744_v47 = vpop.f32.mrf.mxu1  ;;  %14158 = vmatprep.subr.bf16.mxu1 %v14332_v63  ;;  %v14373_v63 = vld [vmem:[#allocation11 + $0x390] sm:$0xff]  }
 0x6a6   :  { %v10745_v10 = vadd.f32 %v10744_v47, %v10702_v62  ;;  %v10789_v18 = vpop.f32.mrf.mxu0 }
 0x6a7   :  { %v10746_v14 = vpop.f32.mrf.mxu1 }
 0x6a8   :  { %v10747_v19 = vadd.f32 %v10746_v14, %v10704_v56  ;;  %14159 = vmatpush3.bf16.msra.mxu1 %v14333_v1  ;;  %v10791_v44 = vpop.f32.mrf.mxu0 }
 0x6a9   :  { %v10748_v36 = vpop.f32.mrf.mxu1  ;;  %14160 = vmatprep.subr.bf16.mxu1 %v14334_v20  ;;  %v14494_v20 = vld [vmem:[#allocation10 + $0x8] sm:$0xff] }
 0x6aa   :  { %v15316_v31 = vpack.c.bf16 %v10747_v19, %v10743_v59  ;;  %v10749_v3 = vadd.f32 %v10748_v36, %v10706_v60  ;;  %v4406_v56 = vrot.slane %v14494_v20, %v15392_v53  ;;  %v4410_v14 = vrot.slane %v14494_v20, %v15393_v39 }
 0x6ac   :  { %v13913_v21 = vmul.bf16 3216621497, %v15316_v31  ;;  %v10936_v48 = vpack.c.bf16 %v10749_v3, %v10745_v10  ;;  %14161 = vmatpush3.bf16.msra.mxu1 %v14335_v51  ;;  %v10786_v62 = vadd.f32 %v10785_v52, %v4406_v56  ;;  %v10790_v19 = vadd.f32 %v10789_v18, %v4406_v56 }
 0x6ad   :  { %14162 = vmatprep.subr.bf16.mxu1 %v14336_v30  ;;  %v10788_v51 = vadd.f32 %v10787_v16, %v4410_v14  ;;  %v10792_v36 = vadd.f32 %v10791_v44, %v4410_v14 }
 0x6ae   :  { %14458 = vpow.bf16 %v13913_v21  ;;  %v13914_v61 = vmul.bf16 3216621497, %v10936_v48 }
 0x6b0   :  { %14460 = vpow.bf16 %v13914_v61  ;;  %14163 = vmatpush3.bf16.msra.mxu1 %v14337_v17 }
 0x6b1   :  { %14164 = vmatprep.subr.bf16.mxu1 %v14338_v15 }
 0x6b4   :  { %14165 = vmatpush3.bf16.msra.mxu1 %v14339_v29 }
 0x6b5   :  { %14166 = vmatprep.subr.bf16.mxu1 %v14342_v33 }
 0x6b8   :  { %14167 = vmatpush3.bf16.msra.mxu1 %v14343_v23 }
 0x6b9   :  { %14168 = vmatprep.subr.bf16.mxu1 %v14346_v49 }
 0x6bc   :  { %v14459_v9 = vpop.eup %14458  ;;  %14169 = vmatpush3.bf16.msra.mxu1 %v14347_v37 }
 0x6bd   :  { %v11015_v55 = vadd.bf16 1065369472, %v14459_v9  ;;  %14170 = vmatprep.subr.bf16.mxu1 %v14350_v27 }
 0x6be   :  { %v14461_v26 = vpop.eup %14460 }
 0x6bf   :  { %14462 = vrcp.bf16 %v11015_v55  ;;  %v11016_v35 = vadd.bf16 1065369472, %v14461_v26 }
 0x6c0   :  { %14171 = vmatpush3.bf16.msra.mxu1 %v14351_v0 }
 0x6c1   :  { %14464 = vrcp.bf16 %v11016_v35  ;;  %14200 = vmatprep.subr.bf16.mxu1 %v14362_v5 }
 0x6c3   :  { %12336 = vmatmul.mubr.bf16.vlgmr.msra.gmra.mxu1 %v11061_v41 }
 0x6c4   :  { %14201 = vmatpush3.bf16.msra.mxu1 %v14363_v11 }
 0x6c5   :  { %14202 = vmatprep.subr.bf16.mxu1 %v14364_v54 }
 0x6c8   :  { %14203 = vmatpush3.bf16.msra.mxu1 %v14365_v58 }
 0x6c9   :  { %14204 = vmatprep.subr.bf16.mxu1 %v14366_v4 }
 0x6cc   :  { %14205 = vmatpush3.bf16.msra.mxu1 %v14367_v57 }
 0x6cd   :  { %v14463_v34 = vpop.eup %14462  ;;  %14206 = vmatprep.subr.bf16.mxu1 %v14368_v8 }
 0x6ce   :  { %v11044_v43 = vmul.bf16 1065369472, %v14463_v34 }
 0x6cf   :  { %v14465_v24 = vpop.eup %14464 }
 0x6d0   :  { %v11046_v40 = vmul.bf16 1065369472, %v14465_v24  ;;  %14207 = vmatpush3.bf16.msra.mxu1 %v14369_v2  ;;  %v11063_v45 = vmul.bf16 %v11044_v43, %v15316_v31 }
 0x6d1   :  { %14208 = vmatprep.subr.bf16.mxu1 %v14370_v13 }
 0x6d2   :  { %v11064_v28 = vmul.bf16 %v11046_v40, %v10936_v48 }
 0x6d4   :  { %12376 = vmatprep.mubr.bf16.mxu0 %v11064_v28  ;;  %14209 = vmatpush3.bf16.msra.mxu1 %v14371_v7 }
 0x6d5   :  { %12377 = vmatmul.mubr.bf16.vlgmr.msra.gmra.mxu0 %v11063_v45  ;;  %14210 = vmatprep.subr.bf16.mxu1 %v14372_v38 }
 0x6d8   :  { %14211 = vmatpush3.bf16.msra.mxu1 %v14373_v63 }
 0x6d9   :  { %14212 = vmatprep.subr.bf16.mxu1 %v14374_v42 }
 0x6dc   :  { %14213 = vmatpush3.bf16.msra.mxu1 %v14375_v50  ;;  %v10871_v47 = vpop.f32.mrf.mxu0 }
 0x6dd   :  { %14214 = vmatprep.subr.bf16.mxu1 %v14376_v6 }
 0x6de   :  { %v10873_v59 = vpop.f32.mrf.mxu0 }
 0x6e0   :  { %14215 = vmatpush3.bf16.msra.mxu1 %v14377_v46  ;;  %v10875_v31 = vpop.f32.mrf.mxu0 }
 0x6e2   :  { %v10877_v29 = vpop.f32.mrf.mxu0 }
 0x6e3   :  { %v10828_v25 = vpop.f32.mrf.mxu1 }
 0x6e4   :  { %v10829_v30 = vadd.f32 %v10828_v25, %v10786_v62 }
 0x6e5   :  { %v10830_v1 = vpop.f32.mrf.mxu1 }
 0x6e6   :  { %v10831_v21 = vadd.f32 %v10830_v1, %v10788_v51  ;;  %v10872_v15 = vadd.f32 %v10871_v47, %v10829_v30  ;;  %v13917_v47 = vld [vmem:[#allocation13] ss:$0 sm:$0xff] }
 0x6e7   :  { %v10832_v32 = vpop.f32.mrf.mxu1 }
 0x6e8   :  { %v10833_v10 = vadd.f32 %v10832_v32, %v10790_v19  ;;  %v10874_v49 = vadd.f32 %v10873_v59, %v10831_v21 }
 0x6e9   :  { %v10834_v60 = vpop.f32.mrf.mxu1 }
 0x6ea   :  { %v10835_v48 = vadd.f32 %v10834_v60, %v10792_v36  ;;  %v10876_v61 = vadd.f32 %v10875_v31, %v10833_v10 }
 0x6ec   :  { %v10878_v27 = vadd.f32 %v10877_v29, %v10835_v48 }
 0x6fc   :  { %v14062_v13 = vpop.f32.mrf.mxu0 }
 0x6fe   :  { %v14063_v24 = vpop.f32.mrf.mxu0 }
 0x6ff   :  { %v14064_v1 = vadd.f32 %v14063_v24, %v14062_v13 }
 0x700   :  { %v14065_v43 = vpop.f32.mrf.mxu0 }
 0x701   :  { %v12133_v39 = vadd.f32 %v14064_v1, %v13917_v47 }
 0x702   :  { %v14066_v40 = vpop.f32.mrf.mxu0 }
 0x703   :  { %v14067_v14 = vadd.f32 %v14066_v40, %v14065_v43 }
 0x705   :  { %v12136_v51 = vadd.f32 %v14067_v14, %v13917_v47 }
 0x71c   :  { %v14106_v38 = vpop.f32.mrf.mxu0 }
 0x71e   :  { %v14107_v45 = vpop.f32.mrf.mxu0 }
 0x71f   :  { %v14108_v36 = vadd.f32 %v14107_v45, %v14106_v38 }
 0x720   :  { %v14109_v42 = vpop.f32.mrf.mxu0 }
 0x722   :  { %v14110_v6 = vpop.f32.mrf.mxu0 }
 0x723   :  { %v10914_v3 = vpop.f32.mrf.mxu1  ;;  %v14111_v48 = vadd.f32 %v14110_v6, %v14109_v42 }
 0x724   :  { %v10915_v23 = vadd.f32 %v10914_v3, %v10872_v15 }
 0x725   :  { %v10916_v17 = vpop.f32.mrf.mxu1 }
 0x726   :  { %v10917_v9 = vadd.f32 %v10916_v17, %v10874_v49 }
 0x727   :  { %v10918_v33 = vpop.f32.mrf.mxu1 }
 0x728   :  { %v10919_v37 = vadd.f32 %v10918_v33, %v10876_v61 }
 0x729   :  { %v10920_v12 = vpop.f32.mrf.mxu1 }
 0x72a   :  { %v10937_v0 = vpack.c.bf16 %v10919_v37, %v10915_v23  ;;  %v10921_v22 = vadd.f32 %v10920_v12, %v10878_v27 }
 0x72c   :  { %v13915_v55 = vmul.bf16 3216621497, %v10937_v0  ;;  %v10938_v5 = vpack.c.bf16 %v10921_v22, %v10917_v9 }
 0x72e   :  { %14466 = vpow.bf16 %v13915_v55  ;;  %v13916_v26 = vmul.bf16 3216621497, %v10938_v5 }
 0x730   :  { %14468 = vpow.bf16 %v13916_v26 }
 0x73c   :  { %v14467_v35 = vpop.eup %14466  ;;  %v14150_v52 = vpop.f32.mrf.mxu0 }
 0x73d   :  { %v11017_v11 = vadd.bf16 1065369472, %v14467_v35 }
 0x73e   :  { %v14469_v41 = vpop.eup %14468  ;;  %v14151_v18 = vpop.f32.mrf.mxu0 }
 0x73f   :  { %14470 = vrcp.bf16 %v11017_v11  ;;  %v11018_v54 = vadd.bf16 1065369472, %v14469_v41  ;;  %v14152_v29 = vadd.f32 %v14151_v18, %v14150_v52 }
 0x740   :  { %v14153_v44 = vpop.f32.mrf.mxu0 }
 0x741   :  { %14472 = vrcp.bf16 %v11018_v54 }
 0x742   :  { %v14154_v56 = vpop.f32.mrf.mxu0 }
 0x743   :  { %v14084_v7 = vpop.f32.mrf.mxu1  ;;  %v14155_v22 = vadd.f32 %v14154_v56, %v14153_v44 }
 0x745   :  { %v14085_v28 = vpop.f32.mrf.mxu1 }
 0x746   :  { %v14086_v53 = vadd.f32 %v14085_v28, %v14084_v7 }
 0x747   :  { %v14087_v63 = vpop.f32.mrf.mxu1 }
 0x748   :  { %v12174_v62 = vadd.f32 %v14086_v53, %v12133_v39 }
 0x749   :  { %v14088_v50 = vpop.f32.mrf.mxu1 }
 0x74a   :  { %v14089_v19 = vadd.f32 %v14088_v50, %v14087_v63  ;;  %v12215_v3 = vadd.f32 %v14108_v36, %v12174_v62 }
 0x74c   :  { %v12177_v31 = vadd.f32 %v14089_v19, %v12136_v51 }
 0x74d   :  { %v14471_v58 = vpop.eup %14470 }
 0x74e   :  { %v11048_v57 = vmul.bf16 1065369472, %v14471_v58  ;;  %v12218_v33 = vadd.f32 %v14111_v48, %v12177_v31 }
 0x74f   :  { %v14473_v4 = vpop.eup %14472 }
 0x750   :  { %v11050_v8 = vmul.bf16 1065369472, %v14473_v4  ;;  %v11065_v34 = vmul.bf16 %v11048_v57, %v10937_v0 }
 0x752   :  { %v11066_v2 = vmul.bf16 %v11050_v8, %v10938_v5 }
 0x754   :  { %12417 = vmatprep.mubr.bf16.mxu1 %v11066_v2 }
 0x755   :  { %12418 = vmatmul.mubr.bf16.vlgmr.msra.gmra.mxu1 %v11065_v34 }
 0x763   :  { %v14128_v46 = vpop.f32.mrf.mxu1 }
 0x765   :  { %v14129_v16 = vpop.f32.mrf.mxu1 }
 0x766   :  { %v14130_v30 = vadd.f32 %v14129_v16, %v14128_v46 }
 0x767   :  { %v14131_v25 = vpop.f32.mrf.mxu1 }
 0x768   :  { %v12256_v17 = vadd.f32 %v14130_v30, %v12215_v3 }
 0x769   :  { %v14132_v20 = vpop.f32.mrf.mxu1 }
 0x76a   :  { %v14133_v15 = vadd.f32 %v14132_v20, %v14131_v25  ;;  %v12297_v27 = vadd.f32 %v14152_v29, %v12256_v17 }
 0x76c   :  { %v12259_v37 = vadd.f32 %v14133_v15, %v12218_v33 }
 0x76e   :  { %v12300_v35 = vadd.f32 %v14155_v22, %v12259_v37 }
 0x783   :  { %v14172_v32 = vpop.f32.mrf.mxu1 }
 0x785   :  { %v14173_v60 = vpop.f32.mrf.mxu1 }
 0x786   :  { %v14174_v23 = vadd.f32 %v14173_v60, %v14172_v32 }
 0x787   :  { %v14175_v21 = vpop.f32.mrf.mxu1 }
 0x788   :  { %v12338_v55 = vadd.f32 %v14174_v23, %v12297_v27 }
 0x789   :  { %v14176_v49 = vpop.f32.mrf.mxu1 }
 0x78a   :  { %v14177_v5 = vadd.f32 %v14176_v49, %v14175_v21 }
 0x78c   :  { %v12341_v4 = vadd.f32 %v14177_v5, %v12300_v35 }
 0x795   :  { %v14194_v59 = vpop.f32.mrf.mxu0 }
 0x797   :  { %v14195_v10 = vpop.f32.mrf.mxu0 }
 0x798   :  { %v14196_v12 = vadd.f32 %v14195_v10, %v14194_v59 }
 0x799   :  { %v14197_v61 = vpop.f32.mrf.mxu0 }
 0x79a   :  { %v12379_v11 = vadd.f32 %v14196_v12, %v12338_v55 }
 0x79b   :  { %v14198_v9 = vpop.f32.mrf.mxu0 }
 0x79c   :  { %v14199_v41 = vadd.f32 %v14198_v9, %v14197_v61 }
 0x79e   :  { %v12382_v2 = vadd.f32 %v14199_v41, %v12341_v4 }
 0x815   :  { %v14216_v0 = vpop.f32.mrf.mxu1 }
 0x817   :  { %v14217_v26 = vpop.f32.mrf.mxu1 }
 0x818   :  { %v14218_v54 = vadd.f32 %v14217_v26, %v14216_v0 }
 0x819   :  { %v14219_v58 = vpop.f32.mrf.mxu1 }
 0x81a   :  { %v12420_v57 = vadd.f32 %v14218_v54, %v12379_v11 }
 0x81b   :  { %v14220_v8 = vpop.f32.mrf.mxu1 }
 0x81c   :  { %v14221_v34 = vadd.f32 %v14220_v8, %v14219_v58  ;;  %12426 = vmax.xlane.f32.xlu0 %v12420_v57 }
 0x81e   :  { %v12423_v13 = vadd.f32 %v14221_v34, %v12382_v2 }
 0x820   :  { %12428 = vmax.xlane.f32.xlu0 %v12423_v13 }
 0x8a5   :  { %v12427_v24 = vpop.xlane.xlu0 %12426 }
 0x8a6   :  { %v12430_v43 = vsub.f32 %v12420_v57, %v12427_v24 }
 0x8a8   :  { %v12432_v40 = vmul.f32 1.442695, %v12430_v43 }
 0x8a9   :  { %v12429_v7 = vpop.xlane.xlu0 %12428 }
 0x8aa   :  { %14474 = vpow2.f32 %v12432_v40  ;;  %v12431_v38 = vsub.f32 %v12423_v13, %v12429_v7 }
 0x8ac   :  { %v12434_v28 = vmul.f32 1.442695, %v12431_v38 }
 0x8ae   :  { %14476 = vpow2.f32 %v12434_v28 }
 0x8b7   :  { %v14475_v45 = vpop.eup %14474 }
 0x8b8   :  { %12436 = vadd.xlane.f32.xlu1 %v14475_v45 }
 0x8bb   :  { %v14477_v63 = vpop.eup %14476 }
 0x8bc   :  { %12438 = vadd.xlane.f32.xlu1 %v14477_v63 }
 0x941   :  { %v12437_v42 = vpop.xlane.xlu1 %12436 }
 0x942   :  { %14478 = vrcp.f32 %v12437_v42 }
 0x945   :  { %v12439_v50 = vpop.xlane.xlu1 %12438 }
 0x946   :  { %14480 = vrcp.f32 %v12439_v50 }
 0x94f   :  { %v14479_v6 = vpop.eup %14478 }
 0x950   :  { %v12442_v46 = vmul.f32 %v14479_v6, %v14475_v45 }
 0x952   :  { %12444 = vst [vmem:[#allocation14] sm:$0xff] %v12442_v46 }
 0x953   :  { %v14481_v52 = vpop.eup %14480 }
 0x954   :  { %v12443_v16 = vmul.f32 %v14481_v52, %v14477_v63 }
 0x956   :  { %12445 = vst [vmem:[#allocation14 + $0x8] sm:$0xff] %v12443_v16 }
 0x957   :  { %14646 = shalt.err (!%p14643_p11)
}
 0x958   :  { %s14681_s1 = smov 128   ;;  %s14682_s17 = smov 8  }
 0x959   :  { %12457 = dma.vmem_to_hbm [thread:$0]  %s12452_s6, 256, %s15333_s7, [#allocation4], %s14681_s1, %s14681_s1, %s14682_s17  }
 0x95a   :  { %14663 = dma.done.wait [#allocation4], 256  }
 0x95b   :  { %14664 = vsyncadd [#allocation4], 4294967040 }
 0x95c   :  { %12461 = vsyncpa [#allocation3], 1 }
 0x95d   :  { %12462 = vsyncpa [#allocation6], 1 }
 0x95e   :  { %12463 = vsyncpa [#allocation9], 1 }
 0x95f   :  { %12464 = vsyncpa [#allocation12], 1 }
 0x960   :  { %12465 = vsyncpa [#allocation4], 1 }

</bundles_post_ra>
